<compile_context>
chip_gen: v5e
topology: v5e:2x2
jax: 0.10.0
libtpu: 0.0.40
codegen_flags: <defaults>
</compile_context>

<pallas_src>
import numpy as np
import jax
import jax.numpy as jnp
from jax.experimental import pallas as pl
from jax.experimental.pallas import tpu as pltpu

# ----------------------------- configuration -------------------------------
# Small but structurally faithful MegaNeRFConfig.
M_SUBMODULES = 2
GRID_SIZE = (1, 2)                    # rows, cols -> 2 submodules
HIDDEN = 32                           # hidden_dim
HIDDEN2 = HIDDEN // 2
SKIP_LAYERS = (2,)                    # skip_connections (num_layers=4)
APP_DIM = 16                          # appearance_dim
NUM_EMBED = 1000                      # nn.Embedding(1000, appearance_dim)
SCENE_BOUNDS = (-100.0, -100.0, -10.0, 100.0, 100.0, 50.0)
FOREGROUND_RATIO = 0.8

POS_FREQS, POS_MAXLOG2 = 10, 10       # PositionalEncoding(3, 10, 10)
DIR_FREQS, DIR_MAXLOG2 = 4, 4         # PositionalEncoding(3, 4, 4)
D_POS = 3 * (1 + 2 * POS_FREQS)       # 63
D_DIR = 3 * (1 + 2 * DIR_FREQS)       # 27
D_IN = D_POS + APP_DIM                # 79 (MLP input dim == input_x dim)

# padded sublane layout of the input feature slab (points on lanes)
D_POS_P = 64                          # 63 -> 64
D_DIR_P = 32                          # 27 -> 32
X0_ROWS = D_POS_P + APP_DIM           # 80  : [pos | app]   (layer-0 / skip input)
D_FEAT = X0_ROWS + D_DIR_P            # 112 : [pos | app | dir]

# fused / module-stacked weight geometry
MH = M_SUBMODULES * HIDDEN            # 64  : stacked hidden rows
MH2 = M_SUBMODULES * HIDDEN2          # 32
FD_ROWS = MH + M_SUBMODULES           # 66  : stacked feats + stacked sigma rows
FD_P = ((FD_ROWS + 7) // 8) * 8       # 72
RGB_ROWS = 3 * M_SUBMODULES           # 6
RGB_P = ((RGB_ROWS + 7) // 8) * 8     # 8
OUT_ROWS = 8                          # density + rgb(3) + 4 pad rows

# row offsets inside the K=MH weight slab (W_H)
WH_W1 = 0
WH_W2X = MH
WH_W3 = 2 * MH
WH_FD = 3 * MH
WH_C1F = 3 * MH + FD_P
WH_ROWS = WH_C1F + MH2                # 296

# row offsets inside the K=32 weight slab (W_S)
WS_C1D = 0
WS_C2 = MH2
WS_ROWS = MH2 + RGB_P                 # 40

# row offsets inside the bias slab (f32 column)
OFF_B0 = 0
OFF_B1 = MH
OFF_B2 = 2 * MH
OFF_B3 = 3 * MH
OFF_BFD = 4 * MH
OFF_BC1 = 4 * MH + FD_P
OFF_BC2 = OFF_BC1 + MH2
B_ROWS = OFF_BC2 + RGB_P              # 368

TILE = 2048                           # points per grid step (multiple of 128)
N_POINTS = 3500                       # not a multiple of TILE; pads to 2 tiles

# bf16 weights + feature slab (review request, all chip generations); biases,
# elementwise math and MXU accumulation stay f32.
COMPUTE_DTYPE = jnp.bfloat16


# ------------------------------- Pallas kernel ------------------------------
def meganerf_kernel(assign_ref, feat_ref, wx0_ref, wh_ref, ws_ref, b_ref,
                    out_ref):
    f32 = jnp.float32
    T = out_ref.shape[-1]

    assign = assign_ref[...]                       # [1, T] int32 routing
    x0 = feat_ref[0:X0_ROWS, :]                    # [80, T]  pos(64) | app(16)
    dirp = feat_ref[X0_ROWS:D_FEAT, :]             # [32, T]  dir-enc (padded)

    def dot(w, x):
        # MXU matmul; activations cast to weight dtype (bf16), f32 accumulate.
        return jnp.dot(w, x.astype(w.dtype), preferred_element_type=f32)

    relu = lambda v: jnp.maximum(v, 0.0)

    def bias(off, rows):
        return b_ref[off:off + rows, :]            # [rows, 1] f32 (lane bcast)

    # --- fused shared-RHS matmul: [W0_m0; W0_m1; W2pa_m0; W2pa_m1] @ x0 ----
    y0 = dot(wx0_ref[...], x0)                     # [2*MH, T] = [128, T]
    x = relu(y0[0:MH, :] + bias(OFF_B0, MH))       # layer 0, both modules
    skip = y0[MH:2 * MH, :]                        # skip-layer x0 contribution

    # --- block-diagonal stacked main layers (one matmul per layer) ----------
    x = relu(dot(wh_ref[WH_W1:WH_W1 + MH, :], x) + bias(OFF_B1, MH))
    x = relu(dot(wh_ref[WH_W2X:WH_W2X + MH, :], x) + skip + bias(OFF_B2, MH))
    x = relu(dot(wh_ref[WH_W3:WH_W3 + MH, :], x) + bias(OFF_B3, MH))

    # --- fused feature + density heads (stacked across modules) -------------
    fd = dot(wh_ref[WH_FD:WH_FD + FD_P, :], x) + bias(OFF_BFD, FD_P)  # [72, T]
    feats = fd[0:MH, :]                            # [2H, T] stacked features
    sigma = relu(fd[MH:MH + M_SUBMODULES, :])      # [M, T]  stacked densities

    # --- viewdir color branch (module-stacked) -------------------------------
    h = relu(dot(wh_ref[WH_C1F:WH_C1F + MH2, :], feats)
             + dot(ws_ref[WS_C1D:WS_C1D + MH2, :], dirp)
             + bias(OFF_BC1, MH2))                 # [2*H2, T]
    rgb = jax.nn.sigmoid(dot(ws_ref[WS_C2:WS_C2 + RGB_P, :], h)
                         + bias(OFF_BC2, RGB_P))   # [8, T] (rows 6:8 unused)

    # --- nearest-centroid selection ------------------------------------------
    # TODO(synk): if M_SUBMODULES grows, replace compute-all-then-select with
    # wrapper-side sort-by-assignment + PrefetchScalarGridSpec group offsets.
    acc_sig = jnp.zeros((1, T), f32)
    acc_rgb = jnp.zeros((3, T), f32)
    for m in range(M_SUBMODULES):
        sel = assign == m
        acc_sig = jnp.where(sel, sigma[m:m + 1, :], acc_sig)
        acc_rgb = jnp.where(sel, rgb[3 * m:3 * m + 3, :], acc_rgb)

    # single lane-dense, (8,128)-aligned store
    out_ref[...] = jnp.concatenate(
        [acc_sig, acc_rgb, jnp.zeros((OUT_ROWS - 4, T), f32)], axis=0)


def meganerf_pallas(assign_t, feat_t, w_x0, w_h, w_s, b_all):
    n_pad = feat_t.shape[1]
    n_tiles = n_pad // TILE

    def point_spec(rows):
        return pl.BlockSpec((rows, TILE), lambda t: (0, t))

    def const_spec(arr):
        # full-array block with constant index_map -> fetched once, resident
        return pl.BlockSpec(arr.shape, lambda t: (0, 0))

    grid_spec = pltpu.PrefetchScalarGridSpec(
        num_scalar_prefetch=0,
        grid=(n_tiles,),
        in_specs=[point_spec(1), point_spec(D_FEAT),
                  const_spec(w_x0), const_spec(w_h),
                  const_spec(w_s), const_spec(b_all)],
        out_specs=pl.BlockSpec((OUT_ROWS, TILE), lambda t: (0, t)),
    )

    fn = pl.pallas_call(
        meganerf_kernel,
        out_shape=jax.ShapeDtypeStruct((OUT_ROWS, n_pad), jnp.float32),
        grid_spec=grid_spec,
        compiler_params=pltpu.CompilerParams(
            dimension_semantics=("parallel",),
            vmem_limit_bytes=32 * 1024 * 1024),
    )
    return fn(assign_t, feat_t, w_x0, w_h, w_s, b_all)


# ------------------------------- JAX glue -----------------------------------
def positional_encoding(x, max_freq_log2, num_freqs):
    freqs = 2.0 ** np.linspace(0.0, max_freq_log2, num_freqs)
    out = [x]
    for f in freqs:
        out.append(jnp.sin(f * x))
        out.append(jnp.cos(f * x))
    return jnp.concatenate(out, axis=-1)


def make_centroids():
    x_min, y_min, z_min, x_max, y_max, z_max = SCENE_BOUNDS
    rows, cols = GRID_SIZE
    xc = np.linspace(x_min, x_max, cols + 1)
    yc = np.linspace(y_min, y_max, rows + 1)
    cents = []
    for i in range(rows):
        for j in range(cols):
            cents.append([(xc[j] + xc[j + 1]) / 2.0,
                          (yc[i] + yc[i + 1]) / 2.0,
                          (z_min + z_max) / 2.0])
    return np.array(cents, dtype=np.float32)


def foreground_bounds():
    x_min, y_min, z_min, x_max, y_max, z_max = SCENE_BOUNDS
    xr, yr, zr = x_max - x_min, y_max - y_min, z_max - z_min
    margin = (1.0 - FOREGROUND_RATIO) / 2.0
    return (x_min + xr * margin, y_min + yr * margin, z_min + zr * margin,
            x_max - xr * margin, y_max - yr * margin, z_max - zr * margin)


def init_linear(key, fan_in, fan_out):
    kw, kb = jax.random.split(key)
    bound = 1.0 / np.sqrt(fan_in)
    w = jax.random.uniform(kw, (fan_in, fan_out), jnp.float32, -bound, bound)
    b = jax.random.uniform(kb, (fan_out,), jnp.float32, -bound, bound)
    return w, b


def make_params(key):
    """Natural (PyTorch-layout) parameters, stacked over the module axis."""
    module_keys = jax.random.split(key, M_SUBMODULES)
    mods = []
    for mk in module_keys:
        k = jax.random.split(mk, 9)
        p = {}
        p["w0"], p["b0"] = init_linear(k[0], D_IN, HIDDEN)
        p["w1"], p["b1"] = init_linear(k[1], HIDDEN, HIDDEN)
        p["w2"], p["b2"] = init_linear(k[2], HIDDEN + D_IN, HIDDEN)   # skip layer
        p["w3"], p["b3"] = init_linear(k[3], HIDDEN, HIDDEN)
        p["wd"], p["bd"] = init_linear(k[4], HIDDEN, 1)
        p["wf"], p["bf"] = init_linear(k[5], HIDDEN, HIDDEN)
        p["wc1"], p["bc1"] = init_linear(k[6], HIDDEN + D_DIR, HIDDEN2)
        p["wc2"], p["bc2"] = init_linear(k[7], HIDDEN2, 3)
        p["emb"] = jax.random.normal(k[8], (NUM_EMBED, APP_DIM), jnp.float32)
        mods.append(p)
    return {n: jnp.stack([m[n] for m in mods], axis=0) for n in mods[0]}


def pack_kernel_params(params):
    """Fuse / block-diagonal-stack weights into 3 bf16 slabs + 1 f32 bias column."""
    f32 = jnp.float32
    M, H = M_SUBMODULES, HIDDEN

    def pad_cols(w, total):
        return jnp.concatenate(
            [w, jnp.zeros((w.shape[0], total - w.shape[1]), f32)], axis=1)

    def pad_x0(wT):
        # wT: [rows, 79] -> [rows, 80] with a zero col between pos(63) and app(16)
        return jnp.concatenate(
            [wT[:, :D_POS], jnp.zeros((wT.shape[0], D_POS_P - D_POS), f32),
             wT[:, D_POS:]], axis=1)

    def block_diag(mats):
        rows = sum(m_.shape[0] for m_ in mats)
        cols = sum(m_.shape[1] for m_ in mats)
        out = jnp.zeros((rows, cols), f32)
        r = c = 0
        for m_ in mats:
            out = out.at[r:r + m_.shape[0], c:c + m_.shape[1]].set(m_)
            r += m_.shape[0]
            c += m_.shape[1]
        return out

    w0, w1, w2, w3 = params["w0"], params["w1"], params["w2"], params["w3"]
    wd, wf, wc1, wc2 = params["wd"], params["wf"], params["wc1"], params["wc2"]

    # fused shared-RHS weight: [W0 stacked ; W2pa stacked] -> [2*MH, 80]
    w0_rows = [pad_x0(w0[m].T) for m in range(M)]
    w2pa_rows = [pad_x0(w2[m, H:, :].T) for m in range(M)]
    W_X0 = jnp.concatenate(w0_rows + w2pa_rows, axis=0)

    # K = MH slab: block-diag W1, W2x, W3, [Wf ; Wd] (padded), Wc1f
    W1_bd = block_diag([w1[m].T for m in range(M)])
    W2X_bd = block_diag([w2[m, :H, :].T for m in range(M)])
    W3_bd = block_diag([w3[m].T for m in range(M)])
    WF_bd = block_diag([wf[m].T for m in range(M)])
    WD_rows = jnp.zeros((M, MH), f32)
    for m in range(M):
        WD_rows = WD_rows.at[m, m * H:(m + 1) * H].set(wd[m, :, 0])
    WFD = jnp.concatenate(
        [WF_bd, WD_rows, jnp.zeros((FD_P - FD_ROWS, MH), f32)], axis=0)
    WC1F_bd = block_diag([wc1[m, :H, :].T for m in range(M)])
    W_H = jnp.concatenate([W1_bd, W2X_bd, W3_bd, WFD, WC1F_bd], axis=0)

    # K = 32 slab: Wc1d row-stacked (shared dir RHS) + Wc2 block-diag (padded)
    WC1D = jnp.concatenate(
        [pad_cols(wc1[m, H:, :].T, D_DIR_P) for m in range(M)], axis=0)
    WC2_bd = block_diag([wc2[m].T for m in range(M)])
    WC2_p = jnp.concatenate(
        [WC2_bd, jnp.zeros((RGB_P - RGB_ROWS, MH2), f32)], axis=0)
    W_S = jnp.concatenate([WC1D, WC2_p], axis=0)

    # bias column (f32), ordering matches the W_H / W_S row layouts
    B_ALL = jnp.concatenate([
        params["b0"].reshape(-1), params["b1"].reshape(-1),
        params["b2"].reshape(-1), params["b3"].reshape(-1),
        params["bf"].reshape(-1), params["bd"].reshape(-1),
        jnp.zeros((FD_P - FD_ROWS,), f32),
        params["bc1"].reshape(-1),
        params["bc2"].reshape(-1), jnp.zeros((RGB_P - RGB_ROWS,), f32),
    ])[:, None].astype(f32)

    assert W_X0.shape == (2 * MH, X0_ROWS)
    assert W_H.shape == (WH_ROWS, MH)
    assert W_S.shape == (WS_ROWS, D_DIR_P)
    assert B_ALL.shape == (B_ROWS, 1)

    cw = lambda w: w.astype(COMPUTE_DTYPE)
    return cw(W_X0), cw(W_H), cw(W_S), B_ALL


def meganerf_forward(params, points, viewdirs, appearance_idx):
    """Full MegaNeRF.forward: routing / encodings in JAX + Pallas fused MLP."""
    centroids = jnp.asarray(make_centroids())
    fx0, fy0, fz0, fx1, fy1, fz1 = foreground_bounds()

    fg = ((points[:, 0] >= fx0) & (points[:, 0] <= fx1) &
          (points[:, 1] >= fy0) & (points[:, 1] <= fy1) &
          (points[:, 2] >= fz0) & (points[:, 2] <= fz1))

    dist = jnp.linalg.norm(points[:, None, :] - centroids[None, :, :], axis=-1)
    assign = jnp.where(fg, jnp.argmin(dist, axis=-1), -1).astype(jnp.int32)

    pos_enc = positional_encoding(points, POS_MAXLOG2, POS_FREQS)     # [N, 63]
    dir_enc = positional_encoding(viewdirs, DIR_MAXLOG2, DIR_FREQS)   # [N, 27]

    # Gather the appearance embedding once per point from its assigned module's
    # table (background rows use table 0; their output is zeroed by routing).
    app = params["emb"][jnp.maximum(assign, 0), appearance_idx]       # [N, 16]

    n = points.shape[0]
    feat_t = jnp.concatenate([
        pos_enc.T, jnp.zeros((D_POS_P - D_POS, n), jnp.float32),
        app.T,
        dir_enc.T, jnp.zeros((D_DIR_P - D_DIR, n), jnp.float32),
    ], axis=0).astype(COMPUTE_DTYPE)                                  # [112, N]
    assign_t = assign[None, :]                                        # [1, N]

    # pad point axis to a multiple of TILE (pad rows are routed to no module)
    n_pad = pl.cdiv(n, TILE) * TILE
    pad = n_pad - n
    if pad:
        feat_t = jnp.pad(feat_t, ((0, 0), (0, pad)))
        assign_t = jnp.pad(assign_t, ((0, 0), (0, pad)), constant_values=-1)

    w_x0, w_h, w_s, b_all = pack_kernel_params(params)
    out = meganerf_pallas(assign_t, feat_t, w_x0, w_h, w_s, b_all)    # [8, n_pad]
    density = out[0:1, :n].T                                          # [N, 1]
    color = out[1:4, :n].T                                            # [N, 3]
    return density, color


# --------------------------- pure-JAX reference ------------------------------
def reference_forward(params, points, viewdirs, appearance_idx):
    centroids = jnp.asarray(make_centroids())
    fx0, fy0, fz0, fx1, fy1, fz1 = foreground_bounds()
    fg = ((points[:, 0] >= fx0) & (points[:, 0] <= fx1) &
          (points[:, 1] >= fy0) & (points[:, 1] <= fy1) &
          (points[:, 2] >= fz0) & (points[:, 2] <= fz1))
    dist = jnp.linalg.norm(points[:, None, :] - centroids[None, :, :], axis=-1)
    assign = jnp.where(fg, jnp.argmin(dist, axis=-1), -1)[:, None]

    pos_enc = positional_encoding(points, POS_MAXLOG2, POS_FREQS)
    dir_enc = positional_encoding(viewdirs, DIR_MAXLOG2, DIR_FREQS)

    n = points.shape[0]
    density = jnp.zeros((n, 1), jnp.float32)
    color = jnp.zeros((n, 3), jnp.float32)
    relu = lambda v: jnp.maximum(v, 0.0)
    for m in range(M_SUBMODULES):
        p = {k: v[m] for k, v in params.items()}
        app = p["emb"][appearance_idx]
        x0 = jnp.concatenate([pos_enc, app], -1)
        x = relu(x0 @ p["w0"] + p["b0"])
        x = relu(x @ p["w1"] + p["b1"])
        x = relu(jnp.concatenate([x, x0], -1) @ p["w2"] + p["b2"])
        x = relu(x @ p["w3"] + p["b3"])
        sigma = relu(x @ p["wd"] + p["bd"])
        feats = x @ p["wf"] + p["bf"]
        h = relu(jnp.concatenate([feats, dir_enc], -1) @ p["wc1"] + p["bc1"])
        rgb = jax.nn.sigmoid(h @ p["wc2"] + p["bc2"])
        sel = assign == m
        density = jnp.where(sel, sigma, density)
        color = jnp.where(sel, rgb, color)
    return density, color


# ---------------------------------- main -------------------------------------
if __name__ == "__main__":
    key = jax.random.PRNGKey(0)
    kp, kpts, kdir, kapp = jax.random.split(key, 4)

    params = make_params(kp)

    x_min, y_min, z_min, x_max, y_max, z_max = SCENE_BOUNDS
    lo = jnp.array([x_min, y_min, z_min], jnp.float32)
    hi = jnp.array([x_max, y_max, z_max], jnp.float32)
    points = jax.random.uniform(kpts, (N_POINTS, 3), jnp.float32) * (hi - lo) + lo
    viewdirs = jax.random.normal(kdir, (N_POINTS, 3), jnp.float32)
    viewdirs = viewdirs / jnp.linalg.norm(viewdirs, axis=-1, keepdims=True)
    appearance_idx = jax.random.randint(kapp, (N_POINTS,), 0, NUM_EMBED)

    fwd = jax.jit(meganerf_forward)
    density, color = fwd(params, points, viewdirs, appearance_idx)
    density, color = jax.block_until_ready((density, color))

    ref_density, ref_color = reference_forward(params, points, viewdirs,
                                               appearance_idx)
    density, color = np.asarray(density), np.asarray(color)
    ref_density, ref_color = np.asarray(ref_density), np.asarray(ref_color)

    # Tolerances: with bf16 weights/slab the raw +-100-magnitude coordinate rows
    # of the positional encoding quantize at ~2^-9 relative, which after 6
    # matmuls can reach ~0.1 absolute on unbounded density values; color is
    # sigmoid-bounded so stays tight.  With COMPUTE_DTYPE=float32 the tight
    # 2e-2 check applies.
    if COMPUTE_DTYPE == jnp.bfloat16:
        d_atol, d_rtol, c_atol, c_rtol = 2e-1, 5e-2, 3e-2, 3e-2
    else:
        d_atol, d_rtol, c_atol, c_rtol = 2e-2, 2e-2, 2e-2, 2e-2

    np.testing.assert_allclose(density, ref_density, atol=d_atol, rtol=d_rtol)
    np.testing.assert_allclose(color, ref_color, atol=c_atol, rtol=c_rtol)
    # mean-error checks (much tighter than the worst-case tail tolerances)
    assert float(np.mean(np.abs(density - ref_density))) < 3e-2
    assert float(np.mean(np.abs(color - ref_color))) < 5e-3

    print("KERNEL_OK")
</pallas_src>

<mosaic_0001>
module attributes {stable_mosaic.version = 11 : i64} {
  func.func @meganerf_kernel(%arg0: i32, %arg1: memref<1x2048xi32, #tpu.memory_space<vmem>>, %arg2: memref<112x2048xbf16, #tpu.memory_space<vmem>>, %arg3: memref<128x80xbf16, #tpu.memory_space<vmem>>, %arg4: memref<296x64xbf16, #tpu.memory_space<vmem>>, %arg5: memref<40x32xbf16, #tpu.memory_space<vmem>>, %arg6: memref<368x1xf32, #tpu.memory_space<vmem>>, %arg7: memref<8x2048xf32, #tpu.memory_space<vmem>>) attributes {dimension_semantics = [#tpu.dimension_semantics<parallel>], iteration_bounds = array<i64: 2>, scalar_prefetch = 0 : i64, scratch_operands = 0 : i64, tpu.core_type = #tpu.core_type<tc>, window_params = [{transform_indices = @transform_0, window_bounds = array<i64: 1, 2048>}, {transform_indices = @transform_1, window_bounds = array<i64: 112, 2048>}, {pipeline_mode = #tpu.pipeline_mode<synchronous>, transform_indices = @transform_2, window_bounds = array<i64: 128, 80>}, {pipeline_mode = #tpu.pipeline_mode<synchronous>, transform_indices = @transform_3, window_bounds = array<i64: 296, 64>}, {pipeline_mode = #tpu.pipeline_mode<synchronous>, transform_indices = @transform_4, window_bounds = array<i64: 40, 32>}, {pipeline_mode = #tpu.pipeline_mode<synchronous>, transform_indices = @transform_5, window_bounds = array<i64: 368, 1>}, {transform_indices = @transform_6, window_bounds = array<i64: 8, 2048>}]} {
    %c0 = arith.constant 0 : index
    %c0_0 = arith.constant 0 : index
    %0 = vector.load %arg1[%c0, %c0_0] : memref<1x2048xi32, #tpu.memory_space<vmem>>, vector<1x2048xi32>
    %c0_1 = arith.constant 0 : index
    %c0_2 = arith.constant 0 : index
    %1 = vector.load %arg2[%c0_1, %c0_2] : memref<112x2048xbf16, #tpu.memory_space<vmem>>, vector<80x2048xbf16>
    %c80 = arith.constant 80 : index
    %c0_3 = arith.constant 0 : index
    %2 = vector.load %arg2[%c80, %c0_3] : memref<112x2048xbf16, #tpu.memory_space<vmem>>, vector<32x2048xbf16>
    %c0_4 = arith.constant 0 : index
    %c0_5 = arith.constant 0 : index
    %3 = vector.load %arg3[%c0_4, %c0_5] : memref<128x80xbf16, #tpu.memory_space<vmem>>, vector<128x80xbf16>
    %cst = arith.constant dense<0.000000e+00> : vector<128x2048xf32>
    %4 = tpu.matmul %3, %1, %cst {dimension_numbers = #tpu.dot_dimension_numbers<[1], [0], [0], [1], [0, 0, 1, 1], [], []>} : vector<128x80xbf16>, vector<80x2048xbf16>, vector<128x2048xf32> -> vector<128x2048xf32>
    %5 = vector.extract_strided_slice %4 {offsets = [0, 0], sizes = [64, 2048], strides = [1, 1]} : vector<128x2048xf32> to vector<64x2048xf32>
    %c0_6 = arith.constant 0 : index
    %c0_7 = arith.constant 0 : index
    %6 = vector.load %arg6[%c0_6, %c0_7] : memref<368x1xf32, #tpu.memory_space<vmem>>, vector<64x1xf32>
    %7 = vector.broadcast %6 : vector<64x1xf32> to vector<64x2048xf32>
    %8 = arith.addf %5, %7 : vector<64x2048xf32>
    %cst_8 = arith.constant 0.000000e+00 : f32
    %9 = vector.broadcast %cst_8 : f32 to vector<64x2048xf32>
    %10 = arith.maximumf %8, %9 : vector<64x2048xf32>
    %11 = vector.extract_strided_slice %4 {offsets = [64, 0], sizes = [64, 2048], strides = [1, 1]} : vector<128x2048xf32> to vector<64x2048xf32>
    %c0_9 = arith.constant 0 : index
    %c0_10 = arith.constant 0 : index
    %12 = vector.load %arg4[%c0_9, %c0_10] : memref<296x64xbf16, #tpu.memory_space<vmem>>, vector<64x64xbf16>
    %13 = arith.truncf %10 : vector<64x2048xf32> to vector<64x2048xbf16>
    %cst_11 = arith.constant dense<0.000000e+00> : vector<64x2048xf32>
    %14 = tpu.matmul %12, %13, %cst_11 {dimension_numbers = #tpu.dot_dimension_numbers<[1], [0], [0], [1], [0, 0, 1, 1], [], []>} : vector<64x64xbf16>, vector<64x2048xbf16>, vector<64x2048xf32> -> vector<64x2048xf32>
    %c64 = arith.constant 64 : index
    %c0_12 = arith.constant 0 : index
    %15 = vector.load %arg6[%c64, %c0_12] : memref<368x1xf32, #tpu.memory_space<vmem>>, vector<64x1xf32>
    %16 = vector.broadcast %15 : vector<64x1xf32> to vector<64x2048xf32>
    %17 = arith.addf %14, %16 : vector<64x2048xf32>
    %cst_13 = arith.constant 0.000000e+00 : f32
    %18 = vector.broadcast %cst_13 : f32 to vector<64x2048xf32>
    %19 = arith.maximumf %17, %18 : vector<64x2048xf32>
    %c64_14 = arith.constant 64 : index
    %c0_15 = arith.constant 0 : index
    %20 = vector.load %arg4[%c64_14, %c0_15] : memref<296x64xbf16, #tpu.memory_space<vmem>>, vector<64x64xbf16>
    %21 = arith.truncf %19 : vector<64x2048xf32> to vector<64x2048xbf16>
    %cst_16 = arith.constant dense<0.000000e+00> : vector<64x2048xf32>
    %22 = tpu.matmul %20, %21, %cst_16 {dimension_numbers = #tpu.dot_dimension_numbers<[1], [0], [0], [1], [0, 0, 1, 1], [], []>} : vector<64x64xbf16>, vector<64x2048xbf16>, vector<64x2048xf32> -> vector<64x2048xf32>
    %23 = arith.addf %22, %11 : vector<64x2048xf32>
    %c128 = arith.constant 128 : index
    %c0_17 = arith.constant 0 : index
    %24 = vector.load %arg6[%c128, %c0_17] : memref<368x1xf32, #tpu.memory_space<vmem>>, vector<64x1xf32>
    %25 = vector.broadcast %24 : vector<64x1xf32> to vector<64x2048xf32>
    %26 = arith.addf %23, %25 : vector<64x2048xf32>
    %cst_18 = arith.constant 0.000000e+00 : f32
    %27 = vector.broadcast %cst_18 : f32 to vector<64x2048xf32>
    %28 = arith.maximumf %26, %27 : vector<64x2048xf32>
    %c128_19 = arith.constant 128 : index
    %c0_20 = arith.constant 0 : index
    %29 = vector.load %arg4[%c128_19, %c0_20] : memref<296x64xbf16, #tpu.memory_space<vmem>>, vector<64x64xbf16>
    %30 = arith.truncf %28 : vector<64x2048xf32> to vector<64x2048xbf16>
    %cst_21 = arith.constant dense<0.000000e+00> : vector<64x2048xf32>
    %31 = tpu.matmul %29, %30, %cst_21 {dimension_numbers = #tpu.dot_dimension_numbers<[1], [0], [0], [1], [0, 0, 1, 1], [], []>} : vector<64x64xbf16>, vector<64x2048xbf16>, vector<64x2048xf32> -> vector<64x2048xf32>
    %c192 = arith.constant 192 : index
    %c0_22 = arith.constant 0 : index
    %32 = vector.load %arg6[%c192, %c0_22] : memref<368x1xf32, #tpu.memory_space<vmem>>, vector<64x1xf32>
    %33 = vector.broadcast %32 : vector<64x1xf32> to vector<64x2048xf32>
    %34 = arith.addf %31, %33 : vector<64x2048xf32>
    %cst_23 = arith.constant 0.000000e+00 : f32
    %35 = vector.broadcast %cst_23 : f32 to vector<64x2048xf32>
    %36 = arith.maximumf %34, %35 : vector<64x2048xf32>
    %c192_24 = arith.constant 192 : index
    %c0_25 = arith.constant 0 : index
    %37 = vector.load %arg4[%c192_24, %c0_25] : memref<296x64xbf16, #tpu.memory_space<vmem>>, vector<72x64xbf16>
    %38 = arith.truncf %36 : vector<64x2048xf32> to vector<64x2048xbf16>
    %cst_26 = arith.constant dense<0.000000e+00> : vector<72x2048xf32>
    %39 = tpu.matmul %37, %38, %cst_26 {dimension_numbers = #tpu.dot_dimension_numbers<[1], [0], [0], [1], [0, 0, 1, 1], [], []>} : vector<72x64xbf16>, vector<64x2048xbf16>, vector<72x2048xf32> -> vector<72x2048xf32>
    %c256 = arith.constant 256 : index
    %c0_27 = arith.constant 0 : index
    %40 = vector.load %arg6[%c256, %c0_27] : memref<368x1xf32, #tpu.memory_space<vmem>>, vector<72x1xf32>
    %41 = vector.broadcast %40 : vector<72x1xf32> to vector<72x2048xf32>
    %42 = arith.addf %39, %41 : vector<72x2048xf32>
    %43 = vector.extract_strided_slice %42 {offsets = [0, 0], sizes = [64, 2048], strides = [1, 1]} : vector<72x2048xf32> to vector<64x2048xf32>
    %44 = vector.extract_strided_slice %42 {offsets = [64, 0], sizes = [2, 2048], strides = [1, 1]} : vector<72x2048xf32> to vector<2x2048xf32>
    %cst_28 = arith.constant 0.000000e+00 : f32
    %45 = vector.broadcast %cst_28 : f32 to vector<2x2048xf32>
    %46 = arith.maximumf %44, %45 : vector<2x2048xf32>
    %c264 = arith.constant 264 : index
    %c0_29 = arith.constant 0 : index
    %47 = vector.load %arg4[%c264, %c0_29] : memref<296x64xbf16, #tpu.memory_space<vmem>>, vector<32x64xbf16>
    %48 = arith.truncf %43 : vector<64x2048xf32> to vector<64x2048xbf16>
    %cst_30 = arith.constant dense<0.000000e+00> : vector<32x2048xf32>
    %49 = tpu.matmul %47, %48, %cst_30 {dimension_numbers = #tpu.dot_dimension_numbers<[1], [0], [0], [1], [0, 0, 1, 1], [], []>} : vector<32x64xbf16>, vector<64x2048xbf16>, vector<32x2048xf32> -> vector<32x2048xf32>
    %c0_31 = arith.constant 0 : index
    %c0_32 = arith.constant 0 : index
    %50 = vector.load %arg5[%c0_31, %c0_32] : memref<40x32xbf16, #tpu.memory_space<vmem>>, vector<32x32xbf16>
    %cst_33 = arith.constant dense<0.000000e+00> : vector<32x2048xf32>
    %51 = tpu.matmul %50, %2, %cst_33 {dimension_numbers = #tpu.dot_dimension_numbers<[1], [0], [0], [1], [0, 0, 1, 1], [], []>} : vector<32x32xbf16>, vector<32x2048xbf16>, vector<32x2048xf32> -> vector<32x2048xf32>
    %52 = arith.addf %49, %51 : vector<32x2048xf32>
    %c328 = arith.constant 328 : index
    %c0_34 = arith.constant 0 : index
    %53 = vector.load %arg6[%c328, %c0_34] : memref<368x1xf32, #tpu.memory_space<vmem>>, vector<32x1xf32>
    %54 = vector.broadcast %53 : vector<32x1xf32> to vector<32x2048xf32>
    %55 = arith.addf %52, %54 : vector<32x2048xf32>
    %cst_35 = arith.constant 0.000000e+00 : f32
    %56 = vector.broadcast %cst_35 : f32 to vector<32x2048xf32>
    %57 = arith.maximumf %55, %56 : vector<32x2048xf32>
    %c32 = arith.constant 32 : index
    %c0_36 = arith.constant 0 : index
    %58 = vector.load %arg5[%c32, %c0_36] : memref<40x32xbf16, #tpu.memory_space<vmem>>, vector<8x32xbf16>
    %59 = arith.truncf %57 : vector<32x2048xf32> to vector<32x2048xbf16>
    %cst_37 = arith.constant dense<0.000000e+00> : vector<8x2048xf32>
    %60 = tpu.matmul %58, %59, %cst_37 {dimension_numbers = #tpu.dot_dimension_numbers<[1], [0], [0], [1], [0, 0, 1, 1], [], []>} : vector<8x32xbf16>, vector<32x2048xbf16>, vector<8x2048xf32> -> vector<8x2048xf32>
    %c360 = arith.constant 360 : index
    %c0_38 = arith.constant 0 : index
    %61 = vector.load %arg6[%c360, %c0_38] : memref<368x1xf32, #tpu.memory_space<vmem>>, vector<8x1xf32>
    %62 = vector.broadcast %61 : vector<8x1xf32> to vector<8x2048xf32>
    %63 = arith.addf %60, %62 : vector<8x2048xf32>
    %64 = arith.negf %63 : vector<8x2048xf32>
    %65 = math.exp %64 : vector<8x2048xf32>
    %cst_39 = arith.constant 1.000000e+00 : f32
    %66 = vector.broadcast %cst_39 : f32 to vector<8x2048xf32>
    %67 = arith.addf %66, %65 : vector<8x2048xf32>
    %68 = arith.divf %66, %67 : vector<8x2048xf32>
    %cst_40 = arith.constant 0.000000e+00 : f32
    %69 = vector.broadcast %cst_40 : f32 to vector<1x2048xf32>
    %cst_41 = arith.constant 0.000000e+00 : f32
    %70 = vector.broadcast %cst_41 : f32 to vector<3x2048xf32>
    %c0_i32 = arith.constant 0 : i32
    %71 = vector.broadcast %c0_i32 : i32 to vector<1x2048xi32>
    %72 = arith.cmpi eq, %0, %71 : vector<1x2048xi32>
    %73 = vector.extract_strided_slice %46 {offsets = [0, 0], sizes = [1, 2048], strides = [1, 1]} : vector<2x2048xf32> to vector<1x2048xf32>
    %74 = arith.select %72, %73, %69 : vector<1x2048xi1>, vector<1x2048xf32>
    %75 = vector.extract_strided_slice %68 {offsets = [0, 0], sizes = [3, 2048], strides = [1, 1]} : vector<8x2048xf32> to vector<3x2048xf32>
    %76 = vector.shape_cast %72 : vector<1x2048xi1> to vector<1x2048xi1>
    %77 = vector.broadcast %76 : vector<1x2048xi1> to vector<3x2048xi1>
    %78 = arith.select %77, %75, %70 : vector<3x2048xi1>, vector<3x2048xf32>
    %c1_i32 = arith.constant 1 : i32
    %79 = vector.broadcast %c1_i32 : i32 to vector<1x2048xi32>
    %80 = arith.cmpi eq, %0, %79 : vector<1x2048xi32>
    %81 = vector.extract_strided_slice %46 {offsets = [1, 0], sizes = [1, 2048], strides = [1, 1]} : vector<2x2048xf32> to vector<1x2048xf32>
    %82 = arith.select %80, %81, %74 : vector<1x2048xi1>, vector<1x2048xf32>
    %83 = vector.extract_strided_slice %68 {offsets = [3, 0], sizes = [3, 2048], strides = [1, 1]} : vector<8x2048xf32> to vector<3x2048xf32>
    %84 = vector.shape_cast %80 : vector<1x2048xi1> to vector<1x2048xi1>
    %85 = vector.broadcast %84 : vector<1x2048xi1> to vector<3x2048xi1>
    %86 = arith.select %85, %83, %78 : vector<3x2048xi1>, vector<3x2048xf32>
    %cst_42 = arith.constant 0.000000e+00 : f32
    %87 = vector.broadcast %cst_42 : f32 to vector<4x2048xf32>
    %88 = tpu.concatenate %82, %86, %87 in 0 : vector<1x2048xf32>, vector<3x2048xf32>, vector<4x2048xf32> -> vector<8x2048xf32>
    %c0_43 = arith.constant 0 : index
    %c0_44 = arith.constant 0 : index
    %89 = vector.load %arg7[%c0_43, %c0_44] : memref<8x2048xf32, #tpu.memory_space<vmem>>, vector<8x2048xf32>
    tpu.vector_store %arg7[%c0_43, %c0_44], %88 {strides = array<i32>} : memref<8x2048xf32, #tpu.memory_space<vmem>>, vector<8x2048xf32>,
    return
  }
  func.func @transform_0(%arg0: i32) -> (i32, i32) {
    %c0_i32 = arith.constant 0 : i32
    %c0_i32_0 = arith.constant 0 : i32
    return %c0_i32, %arg0 : i32, i32
  }
  func.func @transform_1(%arg0: i32) -> (i32, i32) {
    %c0_i32 = arith.constant 0 : i32
    %c0_i32_0 = arith.constant 0 : i32
    return %c0_i32, %arg0 : i32, i32
  }
  func.func @transform_2(%arg0: i32) -> (i32, i32) {
    %c0_i32 = arith.constant 0 : i32
    %c0_i32_0 = arith.constant 0 : i32
    %c0_i32_1 = arith.constant 0 : i32
    return %c0_i32, %c0_i32_0 : i32, i32
  }
  func.func @transform_3(%arg0: i32) -> (i32, i32) {
    %c0_i32 = arith.constant 0 : i32
    %c0_i32_0 = arith.constant 0 : i32
    %c0_i32_1 = arith.constant 0 : i32
    return %c0_i32, %c0_i32_0 : i32, i32
  }
  func.func @transform_4(%arg0: i32) -> (i32, i32) {
    %c0_i32 = arith.constant 0 : i32
    %c0_i32_0 = arith.constant 0 : i32
    %c0_i32_1 = arith.constant 0 : i32
    return %c0_i32, %c0_i32_0 : i32, i32
  }
  func.func @transform_5(%arg0: i32) -> (i32, i32) {
    %c0_i32 = arith.constant 0 : i32
    %c0_i32_0 = arith.constant 0 : i32
    %c0_i32_1 = arith.constant 0 : i32
    return %c0_i32, %c0_i32_0 : i32, i32
  }
  func.func @transform_6(%arg0: i32) -> (i32, i32) {
    %c0_i32 = arith.constant 0 : i32
    %c0_i32_0 = arith.constant 0 : i32
    return %c0_i32, %arg0 : i32, i32
  }
}

</mosaic_0001>

<bundles_post_ra>
// kernel: meganerf_forward.1
= control target key start
LH: loop header
LB: loop body
LE: loop exit
PB: predicated region body
PF: predicated region fallthrough
CT: control target
= control target key end

     0   :  { %s8657_s21 = smov 0   ;;  %s8659_s22 = smov 0   ;;  %s13682_s0 = inlined_call_operand.vmem [shape: s32[1,4096], index: 0, kind: input, shape index: {}]   ;;  %s13683_s1 = inlined_call_operand.vmem [shape: bf16[112,4096], index: 1, kind: input, shape index: {}]   ;;  %s13684_s2 = inlined_call_operand.vmem [shape: bf16[128,80], index: 2, kind: input, shape index: {}]   ;;  %s13685_s3 = inlined_call_operand.vmem [shape: bf16[296,64], index: 3, kind: input, shape index: {}]   ;;  %s13686_s4 = inlined_call_operand.vmem [shape: bf16[40,32], index: 4, kind: input, shape index: {}]   ;;  %s13687_s5 = inlined_call_operand.vmem [shape: f32[368,1], index: 5, kind: input, shape index: {}]   ;;  %s13688_s6 = inlined_call_operand.vmem [shape: f32[8,4096], index: 6, kind: output, shape index: {}]  }
   0x1   :  { %s8661_s23 = smov 0  }
   0x2 LB: > { %s7279_s24 = sadd.s32 4294967295, %s8619_s23   ;;  %s8674_s25 = sadd.s32 1, %s8619_s23   ;;  %s8619_s23 = sphi %s8661_s23, %s14290_s23   ;;  %s8615_s22 = sphi %s8659_s22, %s14289_s22   ;;  %s8611_s21 = sphi %s8657_s21, %s14288_s21  }
   0x3   : > { %s46_s26 = ssub.s32 %s8619_s23, %s8674_s25  ;;  %s49_s27 = sadd.s32 1, %s8615_s22 }
   0x4   : > { %p47_p0 = scmp.eq.s32.totalorder %s46_s26, 0  ;;  %p56_p1 = scmp.ne.s32.totalorder %s8615_s22, %s8611_s21 }
   0x5   : > { %p57_p2 = scmp.eq.s32.totalorder %s8619_s23, 0  ;;  %p7282_p4 = scmp.ge.s32.totalorder %s8619_s23, 2 }
   0x6   : > { %s8683_s28 = scalar_select %p47_p0, %s8615_s22, %s49_s27  }
   0x7   : > { %p58_p3 = por %p57_p2, %p56_p1  ;;  %204 = sbr.rel (%p7282_p4) target bundleno = 128 (0x80), region = 32 }
   0xc   : > { %215 = sbr.rel (!%p58_p3) target bundleno = 128 (0x80), region = 40  ;;  %s217_s29 = sand.u32 (%p58_p3), 1, %s8615_s22  }
   0xd   : > { %s8347_s30 = sshll.u32 (%p58_p3), %s8619_s23, 6  ;;  %s8488_s7 = smul.u32 (%p58_p3), 896, %s217_s29 }
   0xe   : > { %s8691_s10 = scalar_lea.vmem (%p58_p3), %s13683_s1, %s8347_s30 }
   0xf   : > { %v235_v0 = vld [vmem:[%s8691_s10] sm:$0xff] (%p58_p3)  ;;  %v237_v1 = vld [vmem:[%s8691_s10 + $0x8] sm:$0xff] (%p58_p3)  ;;  %v239_v2 = vld [vmem:[%s8691_s10 + $0x10] sm:$0xff] (%p58_p3)  ;;  %s8696_s11 = scalar_lea.vmem (%p58_p3), [#allocation2], %s8488_s7 }
  0x10   : > { %236 = vst [vmem:[%s8696_s11] sm:$0xff] (%p58_p3), %v235_v0  ;;  %v241_v3 = vld [vmem:[%s8691_s10 + $0x18] sm:$0xff] (%p58_p3)  ;;  %v243_v4 = vld [vmem:[%s8691_s10 + $0x20] sm:$0xff] (%p58_p3)  ;;  %v245_v5 = vld [vmem:[%s8691_s10 + $0x28] sm:$0xff] (%p58_p3) }
  0x11   : > { %238 = vst [vmem:[%s8696_s11 + $0x8] sm:$0xff] %v237_v1  ;;  %v247_v6 = vld [vmem:[%s8691_s10 + $0x30] sm:$0xff]  ;;  %v249_v7 = vld [vmem:[%s8691_s10 + $0x38] sm:$0xff]  ;;  %v251_v8 = vld [vmem:[%s8691_s10 + $0x80] sm:$0xff] }
  0x12   : > { %240 = vst [vmem:[%s8696_s11 + $0x10] sm:$0xff] %v239_v2  ;;  %v253_v9 = vld [vmem:[%s8691_s10 + $0x88] sm:$0xff]  ;;  %v255_v10 = vld [vmem:[%s8691_s10 + $0x90] sm:$0xff]  ;;  %v257_v11 = vld [vmem:[%s8691_s10 + $0x98] sm:$0xff] }
  0x13   : > { %242 = vst [vmem:[%s8696_s11 + $0x18] sm:$0xff] %v241_v3  ;;  %v259_v12 = vld [vmem:[%s8691_s10 + $0xa0] sm:$0xff]  ;;  %v261_v13 = vld [vmem:[%s8691_s10 + $0xa8] sm:$0xff]  ;;  %v263_v14 = vld [vmem:[%s8691_s10 + $0xb0] sm:$0xff] }
  0x14   : > { %244 = vst [vmem:[%s8696_s11 + $0x20] sm:$0xff] %v243_v4  ;;  %v265_v15 = vld [vmem:[%s8691_s10 + $0xb8] sm:$0xff]  ;;  %v267_v16 = vld [vmem:[%s8691_s10 + $0x100] sm:$0xff]  ;;  %v269_v17 = vld [vmem:[%s8691_s10 + $0x108] sm:$0xff] }
  0x15   : > { %246 = vst [vmem:[%s8696_s11 + $0x28] sm:$0xff] %v245_v5  ;;  %v271_v18 = vld [vmem:[%s8691_s10 + $0x110] sm:$0xff]  ;;  %v273_v19 = vld [vmem:[%s8691_s10 + $0x118] sm:$0xff]  ;;  %v275_v20 = vld [vmem:[%s8691_s10 + $0x120] sm:$0xff] }
  0x16   : > { %248 = vst [vmem:[%s8696_s11 + $0x30] sm:$0xff] %v247_v6  ;;  %v277_v21 = vld [vmem:[%s8691_s10 + $0x128] sm:$0xff]  ;;  %v279_v22 = vld [vmem:[%s8691_s10 + $0x130] sm:$0xff]  ;;  %v281_v23 = vld [vmem:[%s8691_s10 + $0x138] sm:$0xff] }
  0x17   : > { %250 = vst [vmem:[%s8696_s11 + $0x38] sm:$0xff] %v249_v7  ;;  %v283_v24 = vld [vmem:[%s8691_s10 + $0x180] sm:$0xff]  ;;  %v285_v25 = vld [vmem:[%s8691_s10 + $0x188] sm:$0xff]  ;;  %v287_v26 = vld [vmem:[%s8691_s10 + $0x190] sm:$0xff] }
  0x18   : > { %252 = vst [vmem:[%s8696_s11 + $0x40] sm:$0xff] %v251_v8  ;;  %v289_v27 = vld [vmem:[%s8691_s10 + $0x198] sm:$0xff]  ;;  %v291_v28 = vld [vmem:[%s8691_s10 + $0x1a0] sm:$0xff]  ;;  %v293_v29 = vld [vmem:[%s8691_s10 + $0x1a8] sm:$0xff] }
  0x19   : > { %254 = vst [vmem:[%s8696_s11 + $0x48] sm:$0xff] %v253_v9  ;;  %v295_v30 = vld [vmem:[%s8691_s10 + $0x1b0] sm:$0xff]  ;;  %v297_v31 = vld [vmem:[%s8691_s10 + $0x1b8] sm:$0xff]  ;;  %v299_v32 = vld [vmem:[%s8691_s10 + $0x200] sm:$0xff] }
  0x1a   : > { %256 = vst [vmem:[%s8696_s11 + $0x50] sm:$0xff] %v255_v10  ;;  %v301_v33 = vld [vmem:[%s8691_s10 + $0x208] sm:$0xff]  ;;  %v303_v34 = vld [vmem:[%s8691_s10 + $0x210] sm:$0xff]  ;;  %v305_v35 = vld [vmem:[%s8691_s10 + $0x218] sm:$0xff] }
  0x1b   : > { %258 = vst [vmem:[%s8696_s11 + $0x58] sm:$0xff] %v257_v11  ;;  %v307_v36 = vld [vmem:[%s8691_s10 + $0x220] sm:$0xff]  ;;  %v309_v37 = vld [vmem:[%s8691_s10 + $0x228] sm:$0xff]  ;;  %v311_v38 = vld [vmem:[%s8691_s10 + $0x230] sm:$0xff] }
  0x1c   : > { %260 = vst [vmem:[%s8696_s11 + $0x60] sm:$0xff] %v259_v12  ;;  %v313_v39 = vld [vmem:[%s8691_s10 + $0x238] sm:$0xff]  ;;  %v315_v40 = vld [vmem:[%s8691_s10 + $0x280] sm:$0xff]  ;;  %v317_v41 = vld [vmem:[%s8691_s10 + $0x288] sm:$0xff] }
  0x1d   : > { %262 = vst [vmem:[%s8696_s11 + $0x68] sm:$0xff] %v261_v13  ;;  %v319_v42 = vld [vmem:[%s8691_s10 + $0x290] sm:$0xff]  ;;  %v321_v43 = vld [vmem:[%s8691_s10 + $0x298] sm:$0xff]  ;;  %v323_v44 = vld [vmem:[%s8691_s10 + $0x2a0] sm:$0xff] }
  0x1e   : > { %264 = vst [vmem:[%s8696_s11 + $0x70] sm:$0xff] %v263_v14  ;;  %v325_v45 = vld [vmem:[%s8691_s10 + $0x2a8] sm:$0xff]  ;;  %v327_v46 = vld [vmem:[%s8691_s10 + $0x2b0] sm:$0xff]  ;;  %v329_v47 = vld [vmem:[%s8691_s10 + $0x2b8] sm:$0xff] }
  0x1f   : > { %266 = vst [vmem:[%s8696_s11 + $0x78] sm:$0xff] %v265_v15  ;;  %v331_v48 = vld [vmem:[%s8691_s10 + $0x300] sm:$0xff]  ;;  %v333_v49 = vld [vmem:[%s8691_s10 + $0x308] sm:$0xff]  ;;  %v335_v50 = vld [vmem:[%s8691_s10 + $0x310] sm:$0xff] }
  0x20   : > { %268 = vst [vmem:[%s8696_s11 + $0x80] sm:$0xff] %v267_v16  ;;  %v337_v51 = vld [vmem:[%s8691_s10 + $0x318] sm:$0xff]  ;;  %v339_v52 = vld [vmem:[%s8691_s10 + $0x320] sm:$0xff]  ;;  %v341_v53 = vld [vmem:[%s8691_s10 + $0x328] sm:$0xff] }
  0x21   : > { %270 = vst [vmem:[%s8696_s11 + $0x88] sm:$0xff] %v269_v17  ;;  %v343_v54 = vld [vmem:[%s8691_s10 + $0x330] sm:$0xff]  ;;  %v345_v55 = vld [vmem:[%s8691_s10 + $0x338] sm:$0xff]  ;;  %v347_v56 = vld [vmem:[%s8691_s10 + $0x380] sm:$0xff] }
  0x22   : > { %272 = vst [vmem:[%s8696_s11 + $0x90] sm:$0xff] %v271_v18  ;;  %v349_v57 = vld [vmem:[%s8691_s10 + $0x388] sm:$0xff]  ;;  %v351_v58 = vld [vmem:[%s8691_s10 + $0x390] sm:$0xff]  ;;  %v353_v59 = vld [vmem:[%s8691_s10 + $0x398] sm:$0xff] }
  0x23   : > { %274 = vst [vmem:[%s8696_s11 + $0x98] sm:$0xff] %v273_v19  ;;  %v355_v60 = vld [vmem:[%s8691_s10 + $0x3a0] sm:$0xff]  ;;  %v357_v61 = vld [vmem:[%s8691_s10 + $0x3a8] sm:$0xff]  ;;  %v359_v62 = vld [vmem:[%s8691_s10 + $0x3b0] sm:$0xff] }
  0x24   : > { %276 = vst [vmem:[%s8696_s11 + $0xa0] sm:$0xff] %v275_v20  ;;  %v361_v63 = vld [vmem:[%s8691_s10 + $0x3b8] sm:$0xff]  ;;  %v363_v0 = vld [vmem:[%s8691_s10 + $0x400] sm:$0xff]  ;;  %v365_v1 = vld [vmem:[%s8691_s10 + $0x408] sm:$0xff] }
  0x25   : > { %278 = vst [vmem:[%s8696_s11 + $0xa8] sm:$0xff] %v277_v21  ;;  %v367_v2 = vld [vmem:[%s8691_s10 + $0x410] sm:$0xff]  ;;  %v369_v3 = vld [vmem:[%s8691_s10 + $0x418] sm:$0xff]  ;;  %v371_v4 = vld [vmem:[%s8691_s10 + $0x420] sm:$0xff] }
  0x26   : > { %280 = vst [vmem:[%s8696_s11 + $0xb0] sm:$0xff] %v279_v22  ;;  %v373_v5 = vld [vmem:[%s8691_s10 + $0x428] sm:$0xff]  ;;  %v375_v6 = vld [vmem:[%s8691_s10 + $0x430] sm:$0xff]  ;;  %v377_v7 = vld [vmem:[%s8691_s10 + $0x438] sm:$0xff] }
  0x27   : > { %282 = vst [vmem:[%s8696_s11 + $0xb8] sm:$0xff] %v281_v23  ;;  %v379_v8 = vld [vmem:[%s8691_s10 + $0x480] sm:$0xff]  ;;  %v381_v9 = vld [vmem:[%s8691_s10 + $0x488] sm:$0xff]  ;;  %v383_v10 = vld [vmem:[%s8691_s10 + $0x490] sm:$0xff] }
  0x28   : > { %284 = vst [vmem:[%s8696_s11 + $0xc0] sm:$0xff] %v283_v24  ;;  %v385_v11 = vld [vmem:[%s8691_s10 + $0x498] sm:$0xff]  ;;  %v387_v12 = vld [vmem:[%s8691_s10 + $0x4a0] sm:$0xff]  ;;  %v389_v13 = vld [vmem:[%s8691_s10 + $0x4a8] sm:$0xff] }
  0x29   : > { %286 = vst [vmem:[%s8696_s11 + $0xc8] sm:$0xff] %v285_v25  ;;  %v391_v14 = vld [vmem:[%s8691_s10 + $0x4b0] sm:$0xff]  ;;  %v393_v15 = vld [vmem:[%s8691_s10 + $0x4b8] sm:$0xff]  ;;  %v395_v16 = vld [vmem:[%s8691_s10 + $0x500] sm:$0xff] }
  0x2a   : > { %288 = vst [vmem:[%s8696_s11 + $0xd0] sm:$0xff] %v287_v26  ;;  %v397_v17 = vld [vmem:[%s8691_s10 + $0x508] sm:$0xff]  ;;  %v399_v18 = vld [vmem:[%s8691_s10 + $0x510] sm:$0xff]  ;;  %v401_v19 = vld [vmem:[%s8691_s10 + $0x518] sm:$0xff] }
  0x2b   : > { %290 = vst [vmem:[%s8696_s11 + $0xd8] sm:$0xff] %v289_v27  ;;  %v403_v20 = vld [vmem:[%s8691_s10 + $0x520] sm:$0xff]  ;;  %v405_v21 = vld [vmem:[%s8691_s10 + $0x528] sm:$0xff]  ;;  %v407_v22 = vld [vmem:[%s8691_s10 + $0x530] sm:$0xff] }
  0x2c   : > { %292 = vst [vmem:[%s8696_s11 + $0xe0] sm:$0xff] %v291_v28  ;;  %v409_v23 = vld [vmem:[%s8691_s10 + $0x538] sm:$0xff]  ;;  %v411_v24 = vld [vmem:[%s8691_s10 + $0x580] sm:$0xff]  ;;  %v413_v25 = vld [vmem:[%s8691_s10 + $0x588] sm:$0xff] }
  0x2d   : > { %294 = vst [vmem:[%s8696_s11 + $0xe8] sm:$0xff] %v293_v29  ;;  %v415_v26 = vld [vmem:[%s8691_s10 + $0x590] sm:$0xff]  ;;  %v417_v27 = vld [vmem:[%s8691_s10 + $0x598] sm:$0xff]  ;;  %v419_v28 = vld [vmem:[%s8691_s10 + $0x5a0] sm:$0xff] }
  0x2e   : > { %296 = vst [vmem:[%s8696_s11 + $0xf0] sm:$0xff] %v295_v30  ;;  %v421_v29 = vld [vmem:[%s8691_s10 + $0x5a8] sm:$0xff]  ;;  %v423_v30 = vld [vmem:[%s8691_s10 + $0x5b0] sm:$0xff] }
  0x2f   : > { %298 = vst [vmem:[%s8696_s11 + $0xf8] sm:$0xff] %v297_v31  ;;  %v425_v31 = vld [vmem:[%s8691_s10 + $0x5b8] sm:$0xff] }
  0x30   : > { %300 = vst [vmem:[%s8696_s11 + $0x100] sm:$0xff] %v299_v32  ;;  %v427_v32 = vld [vmem:[%s8691_s10 + $0x600] sm:$0xff] }
  0x31   : > { %302 = vst [vmem:[%s8696_s11 + $0x108] sm:$0xff] %v301_v33  ;;  %v429_v33 = vld [vmem:[%s8691_s10 + $0x608] sm:$0xff] }
  0x32   : > { %304 = vst [vmem:[%s8696_s11 + $0x110] sm:$0xff] %v303_v34  ;;  %v431_v34 = vld [vmem:[%s8691_s10 + $0x610] sm:$0xff] }
  0x33   : > { %306 = vst [vmem:[%s8696_s11 + $0x118] sm:$0xff] %v305_v35  ;;  %v433_v35 = vld [vmem:[%s8691_s10 + $0x618] sm:$0xff] }
  0x34   : > { %308 = vst [vmem:[%s8696_s11 + $0x120] sm:$0xff] %v307_v36  ;;  %v435_v36 = vld [vmem:[%s8691_s10 + $0x620] sm:$0xff] }
  0x35   : > { %310 = vst [vmem:[%s8696_s11 + $0x128] sm:$0xff] %v309_v37  ;;  %v437_v37 = vld [vmem:[%s8691_s10 + $0x628] sm:$0xff] }
  0x36   : > { %312 = vst [vmem:[%s8696_s11 + $0x130] sm:$0xff] %v311_v38  ;;  %v439_v38 = vld [vmem:[%s8691_s10 + $0x630] sm:$0xff] }
  0x37   : > { %314 = vst [vmem:[%s8696_s11 + $0x138] sm:$0xff] %v313_v39  ;;  %v441_v39 = vld [vmem:[%s8691_s10 + $0x638] sm:$0xff] }
  0x38   : > { %316 = vst [vmem:[%s8696_s11 + $0x140] sm:$0xff] %v315_v40  ;;  %v443_v40 = vld [vmem:[%s8691_s10 + $0x680] sm:$0xff] }
  0x39   : > { %318 = vst [vmem:[%s8696_s11 + $0x148] sm:$0xff] %v317_v41  ;;  %v445_v41 = vld [vmem:[%s8691_s10 + $0x688] sm:$0xff] }
  0x3a   : > { %320 = vst [vmem:[%s8696_s11 + $0x150] sm:$0xff] %v319_v42  ;;  %v447_v42 = vld [vmem:[%s8691_s10 + $0x690] sm:$0xff] }
  0x3b   : > { %322 = vst [vmem:[%s8696_s11 + $0x158] sm:$0xff] %v321_v43  ;;  %v449_v43 = vld [vmem:[%s8691_s10 + $0x698] sm:$0xff] }
  0x3c   : > { %324 = vst [vmem:[%s8696_s11 + $0x160] sm:$0xff] %v323_v44  ;;  %v451_v44 = vld [vmem:[%s8691_s10 + $0x6a0] sm:$0xff] }
  0x3d   : > { %326 = vst [vmem:[%s8696_s11 + $0x168] sm:$0xff] %v325_v45  ;;  %v453_v45 = vld [vmem:[%s8691_s10 + $0x6a8] sm:$0xff] }
  0x3e   : > { %328 = vst [vmem:[%s8696_s11 + $0x170] sm:$0xff] %v327_v46  ;;  %v455_v46 = vld [vmem:[%s8691_s10 + $0x6b0] sm:$0xff] }
  0x3f   : > { %330 = vst [vmem:[%s8696_s11 + $0x178] sm:$0xff] %v329_v47  ;;  %v457_v47 = vld [vmem:[%s8691_s10 + $0x6b8] sm:$0xff] }
  0x40   : > { %332 = vst [vmem:[%s8696_s11 + $0x180] sm:$0xff] %v331_v48 }
  0x41   : > { %334 = vst [vmem:[%s8696_s11 + $0x188] sm:$0xff] %v333_v49 }
  0x42   : > { %336 = vst [vmem:[%s8696_s11 + $0x190] sm:$0xff] %v335_v50 }
  0x43   : > { %338 = vst [vmem:[%s8696_s11 + $0x198] sm:$0xff] %v337_v51 }
  0x44   : > { %340 = vst [vmem:[%s8696_s11 + $0x1a0] sm:$0xff] %v339_v52 }
  0x45   : > { %342 = vst [vmem:[%s8696_s11 + $0x1a8] sm:$0xff] %v341_v53 }
  0x46   : > { %344 = vst [vmem:[%s8696_s11 + $0x1b0] sm:$0xff] %v343_v54 }
  0x47   : > { %346 = vst [vmem:[%s8696_s11 + $0x1b8] sm:$0xff] %v345_v55 }
  0x48   : > { %348 = vst [vmem:[%s8696_s11 + $0x1c0] sm:$0xff] %v347_v56 }
  0x49   : > { %350 = vst [vmem:[%s8696_s11 + $0x1c8] sm:$0xff] %v349_v57 }
  0x4a   : > { %352 = vst [vmem:[%s8696_s11 + $0x1d0] sm:$0xff] %v351_v58 }
  0x4b   : > { %354 = vst [vmem:[%s8696_s11 + $0x1d8] sm:$0xff] %v353_v59 }
  0x4c   : > { %356 = vst [vmem:[%s8696_s11 + $0x1e0] sm:$0xff] %v355_v60 }
  0x4d   : > { %358 = vst [vmem:[%s8696_s11 + $0x1e8] sm:$0xff] %v357_v61 }
  0x4e   : > { %360 = vst [vmem:[%s8696_s11 + $0x1f0] sm:$0xff] %v359_v62 }
  0x4f   : > { %362 = vst [vmem:[%s8696_s11 + $0x1f8] sm:$0xff] %v361_v63 }
  0x50   : > { %364 = vst [vmem:[%s8696_s11 + $0x200] sm:$0xff] %v363_v0 }
  0x51   : > { %366 = vst [vmem:[%s8696_s11 + $0x208] sm:$0xff] %v365_v1 }
  0x52   : > { %368 = vst [vmem:[%s8696_s11 + $0x210] sm:$0xff] %v367_v2 }
  0x53   : > { %370 = vst [vmem:[%s8696_s11 + $0x218] sm:$0xff] %v369_v3 }
  0x54   : > { %372 = vst [vmem:[%s8696_s11 + $0x220] sm:$0xff] %v371_v4 }
  0x55   : > { %374 = vst [vmem:[%s8696_s11 + $0x228] sm:$0xff] %v373_v5 }
  0x56   : > { %376 = vst [vmem:[%s8696_s11 + $0x230] sm:$0xff] %v375_v6 }
  0x57   : > { %378 = vst [vmem:[%s8696_s11 + $0x238] sm:$0xff] %v377_v7 }
  0x58   : > { %380 = vst [vmem:[%s8696_s11 + $0x240] sm:$0xff] %v379_v8 }
  0x59   : > { %382 = vst [vmem:[%s8696_s11 + $0x248] sm:$0xff] %v381_v9 }
  0x5a   : > { %384 = vst [vmem:[%s8696_s11 + $0x250] sm:$0xff] %v383_v10 }
  0x5b   : > { %386 = vst [vmem:[%s8696_s11 + $0x258] sm:$0xff] %v385_v11 }
  0x5c   : > { %388 = vst [vmem:[%s8696_s11 + $0x260] sm:$0xff] %v387_v12 }
  0x5d   : > { %390 = vst [vmem:[%s8696_s11 + $0x268] sm:$0xff] %v389_v13 }
  0x5e   : > { %392 = vst [vmem:[%s8696_s11 + $0x270] sm:$0xff] %v391_v14 }
  0x5f   : > { %394 = vst [vmem:[%s8696_s11 + $0x278] sm:$0xff] %v393_v15 }
  0x60   : > { %396 = vst [vmem:[%s8696_s11 + $0x280] sm:$0xff] %v395_v16 }
  0x61   : > { %398 = vst [vmem:[%s8696_s11 + $0x288] sm:$0xff] %v397_v17 }
  0x62   : > { %400 = vst [vmem:[%s8696_s11 + $0x290] sm:$0xff] %v399_v18 }
  0x63   : > { %402 = vst [vmem:[%s8696_s11 + $0x298] sm:$0xff] %v401_v19 }
  0x64   : > { %404 = vst [vmem:[%s8696_s11 + $0x2a0] sm:$0xff] %v403_v20 }
  0x65   : > { %406 = vst [vmem:[%s8696_s11 + $0x2a8] sm:$0xff] %v405_v21 }
  0x66   : > { %408 = vst [vmem:[%s8696_s11 + $0x2b0] sm:$0xff] %v407_v22 }
  0x67   : > { %410 = vst [vmem:[%s8696_s11 + $0x2b8] sm:$0xff] %v409_v23 }
  0x68   : > { %412 = vst [vmem:[%s8696_s11 + $0x2c0] sm:$0xff] %v411_v24 }
  0x69   : > { %414 = vst [vmem:[%s8696_s11 + $0x2c8] sm:$0xff] %v413_v25 }
  0x6a   : > { %416 = vst [vmem:[%s8696_s11 + $0x2d0] sm:$0xff] %v415_v26 }
  0x6b   : > { %418 = vst [vmem:[%s8696_s11 + $0x2d8] sm:$0xff] %v417_v27 }
  0x6c   : > { %420 = vst [vmem:[%s8696_s11 + $0x2e0] sm:$0xff] %v419_v28 }
  0x6d   : > { %422 = vst [vmem:[%s8696_s11 + $0x2e8] sm:$0xff] %v421_v29 }
  0x6e   : > { %424 = vst [vmem:[%s8696_s11 + $0x2f0] sm:$0xff] %v423_v30 }
  0x6f   : > { %426 = vst [vmem:[%s8696_s11 + $0x2f8] sm:$0xff] %v425_v31 }
  0x70   : > { %428 = vst [vmem:[%s8696_s11 + $0x300] sm:$0xff] %v427_v32 }
  0x71   : > { %430 = vst [vmem:[%s8696_s11 + $0x308] sm:$0xff] %v429_v33 }
  0x72   : > { %432 = vst [vmem:[%s8696_s11 + $0x310] sm:$0xff] %v431_v34 }
  0x73   : > { %434 = vst [vmem:[%s8696_s11 + $0x318] sm:$0xff] %v433_v35 }
  0x74   : > { %436 = vst [vmem:[%s8696_s11 + $0x320] sm:$0xff] %v435_v36 }
  0x75   : > { %438 = vst [vmem:[%s8696_s11 + $0x328] sm:$0xff] %v437_v37 }
  0x76   : > { %440 = vst [vmem:[%s8696_s11 + $0x330] sm:$0xff] %v439_v38 }
  0x77   : > { %442 = vst [vmem:[%s8696_s11 + $0x338] sm:$0xff] %v441_v39 }
  0x78   : > { %444 = vst [vmem:[%s8696_s11 + $0x340] sm:$0xff] %v443_v40 }
  0x79   : > { %446 = vst [vmem:[%s8696_s11 + $0x348] sm:$0xff] %v445_v41 }
  0x7a   : > { %448 = vst [vmem:[%s8696_s11 + $0x350] sm:$0xff] %v447_v42 }
  0x7b   : > { %450 = vst [vmem:[%s8696_s11 + $0x358] sm:$0xff] %v449_v43 }
  0x7c   : > { %452 = vst [vmem:[%s8696_s11 + $0x360] sm:$0xff] %v451_v44 }
  0x7d   : > { %454 = vst [vmem:[%s8696_s11 + $0x368] sm:$0xff] %v453_v45 }
  0x7e   : > { %456 = vst [vmem:[%s8696_s11 + $0x370] sm:$0xff] %v455_v46 }
  0x7f   : > { %458 = vst [vmem:[%s8696_s11 + $0x378] sm:$0xff] %v457_v47 }
  0x80 PF: > { %p7285_p5 = scmp.ge.s32.totalorder %s8619_s23, 1  ;;  %p463_p6 = scmp.lt.s32.totalorder %s8619_s23, 3 }
  0x82   : > { %p464_p7 = pnand %p7285_p5, %p463_p6 }
  0x84   : > { %467 = sbr.rel (%p464_p7) target bundleno = 2332 (0x91c), region = 63 }
  0x89   : > { %s470_s12 = sand.u32 1, %s8611_s21   ;;  %v1901_v48 = vld [vmem:[%s13687_s5 + $0x30] sm:$0xff]  ;;  %v1899_v49 = vld [vmem:[%s13687_s5 + $0x20] sm:$0xff]  ;;  %v13689_v50 = vmov 0   ;;  %v1902_v58 = vld [vmem:[%s13687_s5 + $0x38] sm:$0xff]  ;;  %vm1086_vm0 = vcmask 654336  }
  0x8a   : > { %s8489_s17 = smul.u32 896, %s470_s12  ;;  %8515 = vset.pattern.permute.xlu0 %v13689_v50  ;;  %8516 = vset.pattern.permute.xlu1 %v13689_v50  ;;  %v1900_v59 = vld [vmem:[%s13687_s5 + $0x28] sm:$0xff]  ;;  %v1895_v47 = vld [vmem:[%s13687_s5] sm:$0xff]  ;;  %vm2339_vm1 = vcmask 523264   ;;  %vm6880_vm2 = vcmask 1040384   ;;  %vm6882_vm3 = vcmask 1042434  }
  0x8b   : > { %1935 = vperm.xlu0 %8515, %v1901_v48   ;;  %1925 = vperm.xlu1 %8516, %v1899_v49   ;;  %vm6884_vm4 = vcmask 1041408   ;;  %vm6886_vm5 = vcmask 1044484   ;;  %vm6888_vm6 = vcmask 1046534   ;;  %vm6890_vm7 = vcmask 1045508   ;;  %s7286_s15 = sshll.u32 %s7279_s24, 4 }
  0x8c   : > { %8517 = vset.pattern.permute.xlu2 %v13689_v50  ;;  %s8931_s18 = scalar_lea.vmem [#allocation2], %s8489_s17  ;;  %vm6892_vm8 = vcmask 1043456   ;;  %vm5511_vm9 = vcmask 261120   ;;  %p504_p8 = scmp.lt.s32.totalorder %s7286_s15, 31 }
  0x8d   : > { %v7579_v51 = vld [vmem:[%s8931_s18 + $0x200] sm:$0xf]  ;;  %v8412_v53 = vld [vmem:[%s8931_s18 + $0x204] sm:$0xf]  ;;  %v7587_v56 = vld [vmem:[%s8931_s18 + $0x208] sm:$0xf] }
  0x8e   : > { %v8420_v52 = vld [vmem:[%s8931_s18 + $0x23c] sm:$0xf0]  ;;  %v7581_v55 = vld [vmem:[%s8931_s18 + $0x240] sm:$0xf0]  ;;  %v8421_v57 = vld [vmem:[%s8931_s18 + $0x244] sm:$0xf0] }
  0x8f   : > { %v7580_v54 = vor.u32 %v8420_v52, %v7579_v51  ;;  %v7584_v60 = vor.u32 %v8412_v53, %v7581_v55  ;;  %v7588_v61 = vor.u32 %v8421_v57, %v7587_v56  ;;  %v8413_v62 = vld [vmem:[%s8931_s18 + $0x20c] sm:$0xf]  ;;  %v7515_v0 = vld [vmem:[%s8931_s18 + $0x180] sm:$0xf]  ;;  %v8396_v3 = vld [vmem:[%s8931_s18 + $0x184] sm:$0xf] }
  0x90   : > { %v7589_v63 = vld [vmem:[%s8931_s18 + $0x248] sm:$0xf0]  ;;  %v8404_v2 = vld [vmem:[%s8931_s18 + $0x1bc] sm:$0xf0]  ;;  %v7517_v4 = vld [vmem:[%s8931_s18 + $0x1c0] sm:$0xf0] }
  0x91   : > { %1114 = vmatpush.bf16.msra.mxu0 %v7580_v54  ;;  %v7592_v1 = vor.u32 %v8413_v62, %v7589_v63  ;;  %1163 = vmatpush.bf16.msra.mxu1 %v7584_v60  ;;  %v7516_v5 = vor.u32 %v8404_v2, %v7515_v0  ;;  %v7520_v6 = vor.u32 %v8396_v3, %v7517_v4  ;;  %v7523_v7 = vld [vmem:[%s8931_s18 + $0x188] sm:$0xf]  ;;  %v8397_v9 = vld [vmem:[%s8931_s18 + $0x18c] sm:$0xf]  ;;  %v7451_v12 = vld [vmem:[%s8931_s18 + $0x100] sm:$0xf] }
  0x92   : > { %1212 = vmatpush.bf16.msra.mxu2 %v7588_v61  ;;  %v8405_v8 = vld [vmem:[%s8931_s18 + $0x1c4] sm:$0xf0]  ;;  %v7525_v11 = vld [vmem:[%s8931_s18 + $0x1c8] sm:$0xf0]  ;;  %v8388_v13 = vld [vmem:[%s8931_s18 + $0x13c] sm:$0xf0] }
  0x93   : > { %1261 = vmatpush.bf16.msra.mxu3 %v7592_v1  ;;  %v7524_v10 = vor.u32 %v8405_v8, %v7523_v7  ;;  %v7528_v14 = vor.u32 %v8397_v9, %v7525_v11  ;;  %v8380_v15 = vld [vmem:[%s8931_s18 + $0x104] sm:$0xf]  ;;  %v7459_v17 = vld [vmem:[%s8931_s18 + $0x108] sm:$0xf]  ;;  %1940 = vperm.xlu0 %8515, %v1902_v58   ;;  %v7452_v18 = vor.u32 %v8388_v13, %v7451_v12  ;;  %v8381_v20 = vld [vmem:[%s8931_s18 + $0x10c] sm:$0xf] }
  0x94   : > { %v7453_v16 = vld [vmem:[%s8931_s18 + $0x140] sm:$0xf0]  ;;  %1930 = vperm.xlu1 %8516, %v1900_v59   ;;  %v8389_v19 = vld [vmem:[%s8931_s18 + $0x144] sm:$0xf0]  ;;  %v7461_v21 = vld [vmem:[%s8931_s18 + $0x148] sm:$0xf0] }
  0x95   : > { %1115 = vmatpush.bf16.msra.mxu0 %v7516_v5  ;;  %1164 = vmatpush.bf16.msra.mxu1 %v7520_v6  ;;  %v7456_v22 = vor.u32 %v8380_v15, %v7453_v16  ;;  %v7460_v23 = vor.u32 %v8389_v19, %v7459_v17  ;;  %v7387_v24 = vld [vmem:[%s8931_s18 + $0x80] sm:$0xf]  ;;  %v8364_v26 = vld [vmem:[%s8931_s18 + $0x84] sm:$0xf]  ;;  %v7464_v27 = vor.u32 %v8381_v20, %v7461_v21  ;;  %v7395_v29 = vld [vmem:[%s8931_s18 + $0x88] sm:$0xf] }
  0x96   : > { %1213 = vmatpush.bf16.msra.mxu2 %v7524_v10  ;;  %v8372_v25 = vld [vmem:[%s8931_s18 + $0xbc] sm:$0xf0]  ;;  %v7389_v28 = vld [vmem:[%s8931_s18 + $0xc0] sm:$0xf0]  ;;  %v8373_v30 = vld [vmem:[%s8931_s18 + $0xc4] sm:$0xf0] }
  0x97   : > { %1262 = vmatpush.bf16.msra.mxu3 %v7528_v14  ;;  %v8365_v31 = vld [vmem:[%s8931_s18 + $0x8c] sm:$0xf]  ;;  %v7388_v33 = vor.u32 %v8372_v25, %v7387_v24  ;;  %v7323_v34 = vld [vmem:[%s8931_s18] sm:$0xf]  ;;  %v7392_v36 = vor.u32 %v8364_v26, %v7389_v28  ;;  %v7396_v37 = vor.u32 %v8373_v30, %v7395_v29  ;;  %v8348_v38 = vld [vmem:[%s8931_s18 + $0x4] sm:$0xf] }
  0x98   : > { %v7397_v32 = vld [vmem:[%s8931_s18 + $0xc8] sm:$0xf0]  ;;  %v8356_v35 = vld [vmem:[%s8931_s18 + $0x3c] sm:$0xf0]  ;;  %v7325_v39 = vld [vmem:[%s8931_s18 + $0x40] sm:$0xf0] }
  0x99   : > { %1116 = vmatpush.bf16.msra.mxu0 %v7452_v18  ;;  %1165 = vmatpush.bf16.msra.mxu1 %v7456_v22  ;;  %v7331_v40 = vld [vmem:[%s8931_s18 + $0x8] sm:$0xf]  ;;  %v7400_v41 = vor.u32 %v8365_v31, %v7397_v32  ;;  %v8349_v43 = vld [vmem:[%s8931_s18 + $0xc] sm:$0xf]  ;;  %v7603_v45 = vld [vmem:[%s8931_s18 + $0x218] sm:$0xf]  ;;  %v7324_v48 = vor.u32 %v8356_v35, %v7323_v34  ;;  %v7328_v52 = vor.u32 %v8348_v38, %v7325_v39 }
  0x9a   : > { %1214 = vmatpush.bf16.msra.mxu2 %v7460_v23  ;;  %v8357_v42 = vld [vmem:[%s8931_s18 + $0x44] sm:$0xf0]  ;;  %v7333_v44 = vld [vmem:[%s8931_s18 + $0x48] sm:$0xf0]  ;;  %v8423_v46 = vld [vmem:[%s8931_s18 + $0x254] sm:$0xf0] }
  0x9b   : > { %1263 = vmatpush.bf16.msra.mxu3 %v7464_v27  ;;  %v8415_v49 = vld [vmem:[%s8931_s18 + $0x21c] sm:$0xf]  ;;  %1905 = vperm.xlu0 %8515, %v1895_v47   ;;  %v7332_v53 = vor.u32 %v8357_v42, %v7331_v40  ;;  %v1896_v54 = vld [vmem:[%s13687_s5 + $0x8] sm:$0xff]  ;;  %v7336_v55 = vor.u32 %v8349_v43, %v7333_v44  ;;  %v7604_v56 = vor.u32 %v8423_v46, %v7603_v45  ;;  %v7595_v57 = vld [vmem:[%s8931_s18 + $0x210] sm:$0xf]  ;;  %s14292_s15 = smov (!%p504_p8, %s7286_s15), 31 }
  0x9c   : > { %v7605_v51 = vld [vmem:[%s8931_s18 + $0x258] sm:$0xf0]  ;;  %v8422_v58 = vld [vmem:[%s8931_s18 + $0x24c] sm:$0xf0]  ;;  %1910 = vperm.xlu1 %8516, %v1896_v54   ;;  %v8414_v61 = vld [vmem:[%s8931_s18 + $0x214] sm:$0xf]  ;;  %s13333_s16 = scalar_lea.vmem %s13682_s0, %s14292_s15 }
  0x9d   : > { %1117 = vmatpush.bf16.msra.mxu0 %v7388_v33  ;;  %1166 = vmatpush.bf16.msra.mxu1 %v7392_v36  ;;  %v8994_v59 = vld [vmem:[%s13684_s2] sm:$0xff]  ;;  %v7608_v60 = vor.u32 %v8415_v49, %v7605_v51  ;;  %v7597_v62 = vld [vmem:[%s8931_s18 + $0x250] sm:$0xf0]  ;;  %v7596_v63 = vor.u32 %v8422_v58, %v7595_v57  ;;  %v7531_v6 = vld [vmem:[%s8931_s18 + $0x190] sm:$0xf]  ;;  %s7288_s17 = sshll.u32 %s14292_s15, 3 }
  0x9e   : > { %1215 = vmatpush.bf16.msra.mxu2 %v7396_v37  ;;  %v7600_v0 = vor.u32 %v8414_v61, %v7597_v62  ;;  %v7539_v1 = vld [vmem:[%s8931_s18 + $0x198] sm:$0xf]  ;;  %v8399_v3 = vld [vmem:[%s8931_s18 + $0x19c] sm:$0xf]  ;;  %v8406_v7 = vld [vmem:[%s8931_s18 + $0x1cc] sm:$0xf0]  ;;  %s13389_s21 = scalar_lea.vmem %s13688_s6, %s7288_s17 }
  0x9f   : > { %1264 = vmatpush.bf16.msra.mxu3 %v7400_v41  ;;  %v8407_v2 = vld [vmem:[%s8931_s18 + $0x1d4] sm:$0xf0]  ;;  %v7541_v5 = vld [vmem:[%s8931_s18 + $0x1d8] sm:$0xf0]  ;;  %v7532_v9 = vor.u32 %v8406_v7, %v7531_v6  ;;  %v8398_v10 = vld [vmem:[%s8931_s18 + $0x194] sm:$0xf] }
  0xa0   : > { %v7540_v4 = vor.u32 %v8407_v2, %v7539_v1  ;;  %v7544_v8 = vor.u32 %v8399_v3, %v7541_v5  ;;  %v7533_v11 = vld [vmem:[%s8931_s18 + $0x1d0] sm:$0xf0]  ;;  %v9017_v13 = vld [vmem:[%s13684_s2 + $0x8] sm:$0xff]  ;;  %v1897_v14 = vld [vmem:[%s13687_s5 + $0x10] sm:$0xff] }
  0xa1   : > { %1118 = vmatpush.bf16.msra.mxu0 %v7324_v48  ;;  %1167 = vmatpush.bf16.msra.mxu1 %v7328_v52  ;;  %v7536_v12 = vor.u32 %v8398_v10, %v7533_v11  ;;  %v7475_v15 = vld [vmem:[%s8931_s18 + $0x118] sm:$0xf]  ;;  %v8383_v18 = vld [vmem:[%s8931_s18 + $0x11c] sm:$0xf]  ;;  %v1898_v21 = vld [vmem:[%s13687_s5 + $0x18] sm:$0xff] }
  0xa2   : > { %1216 = vmatpush.bf16.msra.mxu2 %v7332_v53  ;;  %v8391_v16 = vld [vmem:[%s8931_s18 + $0x154] sm:$0xf0]  ;;  %1915 = vperm.xlu2 %8517, %v1897_v14   ;;  %v7477_v19 = vld [vmem:[%s8931_s18 + $0x158] sm:$0xf0]  ;;  %v9040_v22 = vld [vmem:[%s13684_s2 + $0x10] sm:$0xff] }
  0xa3   : > { %1265 = vmatpush.bf16.msra.mxu3 %v7336_v55  ;;  %v7476_v17 = vor.u32 %v8391_v16, %v7475_v15  ;;  %v7480_v20 = vor.u32 %v8383_v18, %v7477_v19  ;;  %v7467_v23 = vld [vmem:[%s8931_s18 + $0x110] sm:$0xf]  ;;  %v8382_v25 = vld [vmem:[%s8931_s18 + $0x114] sm:$0xf]  ;;  %v7411_v30 = vld [vmem:[%s8931_s18 + $0x98] sm:$0xf] }
  0xa4   : > { %7641 = vmatmul.msk.bf16.vlgmr.msra.gmra.mxu0 %vm1086_vm0, %v8994_v59  ;;  %7649 = vmatmul.msk.bf16.vlgmr.msra.gmra.mxu1 %vm1086_vm0, %v8994_v59  ;;  %v8390_v24 = vld [vmem:[%s8931_s18 + $0x14c] sm:$0xf0]  ;;  %v7469_v27 = vld [vmem:[%s8931_s18 + $0x150] sm:$0xf0]  ;;  %v8375_v31 = vld [vmem:[%s8931_s18 + $0xd4] sm:$0xf0] }
  0xa5   : > { %7657 = vmatmul.msk.bf16.vlgmr.msra.gmra.mxu2 %vm1086_vm0, %v8994_v59  ;;  %1310 = vmatpush.bf16.msrb.mxu0 %v7596_v63  ;;  %v7468_v26 = vor.u32 %v8390_v24, %v7467_v23  ;;  %v7472_v28 = vor.u32 %v8382_v25, %v7469_v27  ;;  %v9057_v29 = vld [vmem:[%s13684_s2 + $0x18] sm:$0xff]  ;;  %v8367_v32 = vld [vmem:[%s8931_s18 + $0x9c] sm:$0xf]  ;;  %v7412_v33 = vor.u32 %v8375_v31, %v7411_v30  ;;  %v9091_v43 = vld [vmem:[%s13684_s2 + $0x28] sm:$0xff] }
  0xa6   : > { %1408 = vmatpush.bf16.msrb.mxu2 %v7604_v56  ;;  %7665 = vmatmul.msk.bf16.vlgmr.msra.gmra.mxu3 %vm1086_vm0, %v8994_v59  ;;  %v7413_v34 = vld [vmem:[%s8931_s18 + $0xd8] sm:$0xf0]  ;;  %v7403_v37 = vld [vmem:[%s8931_s18 + $0x90] sm:$0xf]  ;;  %v8366_v39 = vld [vmem:[%s8931_s18 + $0x94] sm:$0xf] }
  0xa7   : > { %1457 = vmatpush.bf16.msrb.mxu3 %v7608_v60  ;;  %1359 = vmatpush.bf16.msrb.mxu1 %v7600_v0  ;;  %v7416_v35 = vor.u32 %v8367_v32, %v7413_v34  ;;  %v9074_v36 = vld [vmem:[%s13684_s2 + $0x20] sm:$0xff]  ;;  %v8374_v38 = vld [vmem:[%s8931_s18 + $0xcc] sm:$0xf0]  ;;  %v7405_v41 = vld [vmem:[%s8931_s18 + $0xd0] sm:$0xf0] }
  0xa8   : > { %v7404_v40 = vor.u32 %v8374_v38, %v7403_v37  ;;  %v7408_v42 = vor.u32 %v8366_v39, %v7405_v41  ;;  %v7347_v44 = vld [vmem:[%s8931_s18 + $0x18] sm:$0xf]  ;;  %v8351_v46 = vld [vmem:[%s8931_s18 + $0x1c] sm:$0xf]  ;;  %v7339_v49 = vld [vmem:[%s8931_s18 + $0x10] sm:$0xf] }
  0xa9   : > { %1311 = vmatpush.bf16.msrb.mxu0 %v7532_v9  ;;  %v8359_v45 = vld [vmem:[%s8931_s18 + $0x54] sm:$0xf0]  ;;  %v7349_v48 = vld [vmem:[%s8931_s18 + $0x58] sm:$0xf0]  ;;  %v8358_v51 = vld [vmem:[%s8931_s18 + $0x4c] sm:$0xf0] }
  0xaa   : > { %1409 = vmatpush.bf16.msrb.mxu2 %v7540_v4  ;;  %1920 = vperm.xlu2 %8517, %v1898_v21   ;;  %v7348_v47 = vor.u32 %v8359_v45, %v7347_v44  ;;  %v7352_v52 = vor.u32 %v8351_v46, %v7349_v48  ;;  %v7340_v53 = vor.u32 %v8358_v51, %v7339_v49  ;;  %v8350_v54 = vld [vmem:[%s8931_s18 + $0x14] sm:$0xf]  ;;  %v9112_v57 = vld [vmem:[%s13684_s2 + $0x30] sm:$0xff]  ;;  %v7611_v5 = vld [vmem:[%s8931_s18 + $0x220] sm:$0xf] }
  0xab   : > { %1458 = vmatpush.bf16.msrb.mxu3 %v7544_v8  ;;  %1360 = vmatpush.bf16.msrb.mxu1 %v7536_v12  ;;  %v7341_v55 = vld [vmem:[%s8931_s18 + $0x50] sm:$0xf0]  ;;  %v7619_v58 = vld [vmem:[%s8931_s18 + $0x228] sm:$0xf]  ;;  %v8417_v61 = vld [vmem:[%s8931_s18 + $0x22c] sm:$0xf] }
  0xac   : > { %v7344_v56 = vor.u32 %v8350_v54, %v7341_v55  ;;  %v8425_v60 = vld [vmem:[%s8931_s18 + $0x264] sm:$0xf0]  ;;  %v7621_v63 = vld [vmem:[%s8931_s18 + $0x268] sm:$0xf0]  ;;  %v9129_v1 = vld [vmem:[%s13684_s2 + $0x38] sm:$0xff] }
  0xad   : > { %1312 = vmatpush.bf16.msrb.mxu0 %v7468_v26  ;;  %v7620_v62 = vor.u32 %v8425_v60, %v7619_v58  ;;  %v7624_v0 = vor.u32 %v8417_v61, %v7621_v63  ;;  %v8424_v6 = vld [vmem:[%s8931_s18 + $0x25c] sm:$0xf0]  ;;  %v8416_v7 = vld [vmem:[%s8931_s18 + $0x224] sm:$0xf]  ;;  %v7557_v34 = vld [vmem:[%s8931_s18 + $0x1e8] sm:$0xf0] }
  0xae   : > { %1410 = vmatpush.bf16.msrb.mxu2 %v7476_v17  ;;  %v7612_v9 = vor.u32 %v8424_v6, %v7611_v5  ;;  %v7613_v10 = vld [vmem:[%s8931_s18 + $0x260] sm:$0xf0]  ;;  %v7547_v55 = vld [vmem:[%s8931_s18 + $0x1a0] sm:$0xf]  ;;  %v2273_v63 = vld [vmem:[%s13687_s5 + $0x50] sm:$0xff] }
  0xaf   : > { %1459 = vmatpush.bf16.msrb.mxu3 %v7480_v20  ;;  %1361 = vmatpush.bf16.msrb.mxu1 %v7472_v28  ;;  %v7616_v11 = vor.u32 %v8416_v7, %v7613_v10  ;;  %v7555_v28 = vld [vmem:[%s8931_s18 + $0x1a8] sm:$0xf]  ;;  %v8400_v58 = vld [vmem:[%s8931_s18 + $0x1a4] sm:$0xf]  ;;  %v7379_v50 = vld [vmem:[%s8931_s18 + $0x38] sm:$0xf] }
  0xb1   : > { %1313 = vmatpush.bf16.msrb.mxu0 %v7404_v40 }
  0xb2   : > { %1411 = vmatpush.bf16.msrb.mxu2 %v7412_v33  ;;  %v8401_v33 = vld [vmem:[%s8931_s18 + $0x1ac] sm:$0xf] }
  0xb3   : > { %1460 = vmatpush.bf16.msrb.mxu3 %v7416_v35  ;;  %1362 = vmatpush.bf16.msrb.mxu1 %v7408_v42  ;;  %v2278_v35 = vld [vmem:[%s13687_s5 + $0x78] sm:$0xff]  ;;  %v7560_v38 = vor.u32 %v8401_v33, %v7557_v34 }
  0xb4   : > { %7642 = vmatmul.msk.bf16.gmra.mxu0 %vm1086_vm0, %v9017_v13  ;;  %7650 = vmatmul.msk.bf16.gmra.mxu1 %vm1086_vm0, %v9017_v13 }
  0xb5   : > { %7658 = vmatmul.msk.bf16.gmra.mxu2 %vm1086_vm0, %v9017_v13  ;;  %1314 = vmatpush.bf16.msrb.mxu0 %v7340_v53 }
  0xb6   : > { %7666 = vmatmul.msk.bf16.gmra.mxu3 %vm1086_vm0, %v9017_v13  ;;  %1412 = vmatpush.bf16.msrb.mxu2 %v7348_v47 }
  0xb7   : > { %1461 = vmatpush.bf16.msrb.mxu3 %v7352_v52  ;;  %1363 = vmatpush.bf16.msrb.mxu1 %v7344_v56  ;;  %v8408_v56 = vld [vmem:[%s8931_s18 + $0x1dc] sm:$0xf0] }
  0xb8   : > { %2316 = vperm.xlu0 %8515, %v2278_v35   ;;  %v7548_v61 = vor.u32 %v8408_v56, %v7547_v55 }
  0xb9   : > { %1506 = vmatpush.bf16.msra.mxu0 %v7612_v9 }
  0xba   : > { %1604 = vmatpush.bf16.msra.mxu2 %v7620_v62  ;;  %v7549_v62 = vld [vmem:[%s8931_s18 + $0x1e0] sm:$0xf0] }
  0xbb   : > { %1653 = vmatpush.bf16.msra.mxu3 %v7624_v0  ;;  %1555 = vmatpush.bf16.msra.mxu1 %v7616_v11  ;;  %v7552_v7 = vor.u32 %v8400_v58, %v7549_v62 }
  0xbd   : > { %1507 = vmatpush.bf16.msra.mxu0 %v7548_v61 }
  0xbf   : > { %1654 = vmatpush.bf16.msra.mxu3 %v7560_v38  ;;  %1556 = vmatpush.bf16.msra.mxu1 %v7552_v7 }
  0xc0   : > { %2291 = vperm.xlu0 %8515, %v2273_v63   ;;  %v7483_v63 = vld [vmem:[%s8931_s18 + $0x120] sm:$0xf] }
  0xc4   : > { %7643 = vmatmul.msk.bf16.gmra.mxu0 %vm1086_vm0, %v9040_v22  ;;  %7651 = vmatmul.msk.bf16.gmra.mxu1 %vm1086_vm0, %v9040_v22 }
  0xc5   : > { %7659 = vmatmul.msk.bf16.gmra.mxu2 %vm1086_vm0, %v9040_v22 }
  0xc6   : > { %7667 = vmatmul.msk.bf16.gmra.mxu3 %vm1086_vm0, %v9040_v22 }
  0xd4   : > { %7644 = vmatmul.msk.bf16.gmra.mxu0 %vm1086_vm0, %v9057_v29  ;;  %7652 = vmatmul.msk.bf16.gmra.mxu1 %vm1086_vm0, %v9057_v29 }
  0xd5   : > { %7660 = vmatmul.msk.bf16.gmra.mxu2 %vm1086_vm0, %v9057_v29 }
  0xd6   : > { %7668 = vmatmul.msk.bf16.gmra.mxu3 %vm1086_vm0, %v9057_v29 }
  0xe4   : > { %7645 = vmatmul.msk.bf16.gmra.mxu0 %vm1086_vm0, %v9074_v36  ;;  %7653 = vmatmul.msk.bf16.gmra.mxu1 %vm1086_vm0, %v9074_v36 }
  0xe5   : > { %7661 = vmatmul.msk.bf16.gmra.mxu2 %vm1086_vm0, %v9074_v36 }
  0xe6   : > { %7669 = vmatmul.msk.bf16.gmra.mxu3 %vm1086_vm0, %v9074_v36 }
  0xf4   : > { %7646 = vmatmul.msk.bf16.gmra.mxu0 %vm1086_vm0, %v9091_v43  ;;  %7654 = vmatmul.msk.bf16.gmra.mxu1 %vm1086_vm0, %v9091_v43 }
  0xf5   : > { %7662 = vmatmul.msk.bf16.gmra.mxu2 %vm1086_vm0, %v9091_v43 }
  0xf6   : > { %7670 = vmatmul.msk.bf16.gmra.mxu3 %vm1086_vm0, %v9091_v43 }
  0xfc   : > { %v9169_v31 = vpop.permute.xlu2 %1915 }
  0xfd   : > { %v9131_v2 = vpop.permute.xlu0 %1935  ;;  %v9133_v3 = vpop.permute.xlu1 %1925 }
 0x104   : > { %7647 = vmatmul.msk.bf16.gmra.mxu0 %vm1086_vm0, %v9112_v57  ;;  %7655 = vmatmul.msk.bf16.gmra.mxu1 %vm1086_vm0, %v9112_v57  ;;  %v9204_v6 = vpop.permute.xlu2 %1920 }
 0x105   : > { %7663 = vmatmul.msk.bf16.gmra.mxu2 %vm1086_vm0, %v9112_v57  ;;  %v9143_v4 = vpop.permute.xlu0 %1940 }
 0x106   : > { %7671 = vmatmul.msk.bf16.gmra.mxu3 %vm1086_vm0, %v9112_v57  ;;  %v9148_v8 = vpop.permute.xlu1 %1930 }
 0x10d   : > { %v9157_v15 = vpop.permute.xlu0 %1905 }
 0x10e   : > { %v9162_v17 = vpop.permute.xlu1 %1910 }
 0x114   : > { %7648 = vmatmul.msk.bf16.gmra.mxu0 %vm1086_vm0, %v9129_v1  ;;  %7656 = vmatmul.msk.bf16.gmra.mxu1 %vm1086_vm0, %v9129_v1 }
 0x115   : > { %7664 = vmatmul.msk.bf16.gmra.mxu2 %vm1086_vm0, %v9129_v1 }
 0x116   : > { %7672 = vmatmul.msk.bf16.gmra.mxu3 %vm1086_vm0, %v9129_v1 }
 0x121   : > { %v1120_v12 = vpop.f32.mrf.mxu0  ;;  %v1169_v14 = vpop.f32.mrf.mxu1 }
 0x122   : > { %v1943_v16 = vadd.f32 %v9157_v15, %v1120_v12  ;;  %v1944_v18 = vadd.f32 %v9157_v15, %v1169_v14 }
 0x124   : > { %7673 = vmatmul.msk.bf16.vlgmr.msrb.gmra.mxu0 %vm1086_vm0, %v8994_v59  ;;  %7681 = vmatmul.msk.bf16.vlgmr.msrb.gmra.mxu1 %vm1086_vm0, %v8994_v59  ;;  %v2071_v25 = vmax.f32 %v1943_v16, 0.0  ;;  %v2072_v27 = vmax.f32 %v1944_v18, 0.0 }
 0x125   : > { %7689 = vmatmul.msk.bf16.vlgmr.msrb.gmra.mxu2 %vm1086_vm0, %v8994_v59 }
 0x126   : > { %7697 = vmatmul.msk.bf16.vlgmr.msrb.gmra.mxu3 %vm1086_vm0, %v8994_v59  ;;  %v8409_v59 = vld [vmem:[%s8931_s18 + $0x1e4] sm:$0xf0] }
 0x127   : > { %v7556_v32 = vor.u32 %v8409_v59, %v7555_v28 }
 0x128   : > { %v1218_v19 = vpop.f32.mrf.mxu2 }
 0x129   : > { %v1267_v20 = vpop.f32.mrf.mxu3  ;;  %v1122_v21 = vpop.f32.mrf.mxu0  ;;  %v1945_v40 = vadd.f32 %v9157_v15, %v1218_v19  ;;  %1605 = vmatpush.bf16.msra.mxu2 %v7556_v32 }
 0x12a   : > { %v1171_v23 = vpop.f32.mrf.mxu1  ;;  %v1959_v24 = vadd.f32 %v9162_v17, %v1122_v21  ;;  %v1946_v42 = vadd.f32 %v9157_v15, %v1267_v20 }
 0x12b   : > { %v1960_v26 = vadd.f32 %v9162_v17, %v1171_v23  ;;  %v2073_v51 = vmax.f32 %v1945_v40, 0.0 }
 0x12c   : > { %v2087_v30 = vmax.f32 %v1959_v24, 0.0  ;;  %v2074_v53 = vmax.f32 %v1946_v42, 0.0 }
 0x12d   : > { %v2088_v37 = vmax.f32 %v1960_v26, 0.0 }
 0x12e   : > { %v9176_v39 = vpack.c.bf16 %v2087_v30, %v2071_v25  ;;  %v2272_v25 = vld [vmem:[%s13687_s5 + $0x48] sm:$0xff] }
 0x12f   : > { %v9179_v41 = vpack.c.bf16 %v2088_v37, %v2072_v27  ;;  %2286 = vperm.xlu0 %8515, %v2272_v25  }
 0x130   : > { %v1220_v44 = vpop.f32.mrf.mxu2 }
 0x131   : > { %v1961_v45 = vadd.f32 %v9162_v17, %v1220_v44  ;;  %v1269_v46 = vpop.f32.mrf.mxu3  ;;  %v1125_v47 = vpop.f32.mrf.mxu0 }
 0x132   : > { %v1962_v48 = vadd.f32 %v9162_v17, %v1269_v46  ;;  %v1174_v49 = vpop.f32.mrf.mxu1  ;;  %v1975_v0 = vadd.f32 %v9169_v31, %v1125_v47  ;;  %v8393_v46 = vld [vmem:[%s8931_s18 + $0x164] sm:$0xf0]  ;;  %v8385_v47 = vld [vmem:[%s8931_s18 + $0x12c] sm:$0xf] }
 0x133   : > { %v2089_v52 = vmax.f32 %v1961_v45, 0.0  ;;  %v1976_v9 = vadd.f32 %v9169_v31, %v1174_v49  ;;  %v7491_v45 = vld [vmem:[%s8931_s18 + $0x128] sm:$0xf] }
 0x134   : > { %v2090_v54 = vmax.f32 %v1962_v48, 0.0  ;;  %7674 = vmatmul.msk.bf16.gmra.mxu0 %vm1086_vm0, %v9017_v13  ;;  %7682 = vmatmul.msk.bf16.gmra.mxu1 %vm1086_vm0, %v9017_v13  ;;  %v2103_v16 = vmax.f32 %v1975_v0, 0.0  ;;  %v8392_v0 = vld [vmem:[%s8931_s18 + $0x15c] sm:$0xf0] }
 0x135   : > { %7690 = vmatmul.msk.bf16.gmra.mxu2 %vm1086_vm0, %v9017_v13  ;;  %v9193_v60 = vpack.c.bf16 %v2089_v52, %v2073_v51  ;;  %v2104_v19 = vmax.f32 %v1976_v9, 0.0  ;;  %v7492_v51 = vor.u32 %v8393_v46, %v7491_v45  ;;  %v7493_v52 = vld [vmem:[%s8931_s18 + $0x168] sm:$0xf0] }
 0x136   : > { %7698 = vmatmul.msk.bf16.gmra.mxu3 %vm1086_vm0, %v9017_v13  ;;  %v9202_v5 = vpack.c.bf16 %v2090_v54, %v2074_v53  ;;  %v3516_v53 = vld [vmem:[%s13687_s5 + $0xa0] sm:$0xff]  ;;  %v7496_v55 = vor.u32 %v8385_v47, %v7493_v52 }
 0x137   : > { %3542 = vperm.xlu0 %8515, %v3516_v53   ;;  %1606 = vmatpush.bf16.msra.mxu2 %v7492_v51 }
 0x138   : > { %v1223_v10 = vpop.f32.mrf.mxu2  ;;  %1655 = vmatpush.bf16.msra.mxu3 %v7496_v55 }
 0x139   : > { %v1272_v11 = vpop.f32.mrf.mxu3  ;;  %v1127_v13 = vpop.f32.mrf.mxu0  ;;  %v1977_v24 = vadd.f32 %v9169_v31, %v1223_v10  ;;  %v7484_v10 = vor.u32 %v8392_v0, %v7483_v63  ;;  %v7429_v63 = vld [vmem:[%s8931_s18 + $0xe8] sm:$0xf0]  ;;  %v2274_v0 = vld [vmem:[%s13687_s5 + $0x58] sm:$0xff] }
 0x13a   : > { %v1176_v12 = vpop.f32.mrf.mxu1  ;;  %v1991_v14 = vadd.f32 %v9204_v6, %v1127_v13  ;;  %v1978_v27 = vadd.f32 %v9169_v31, %v1272_v11  ;;  %v8384_v11 = vld [vmem:[%s8931_s18 + $0x124] sm:$0xf] }
 0x13b   : > { %v1992_v18 = vadd.f32 %v9204_v6, %v1176_v12  ;;  %v2105_v35 = vmax.f32 %v1977_v24, 0.0  ;;  %v7485_v13 = vld [vmem:[%s8931_s18 + $0x160] sm:$0xf0]  ;;  %1508 = vmatpush.bf16.msra.mxu0 %v7484_v10 }
 0x13c   : > { %v2119_v20 = vmax.f32 %v1991_v14, 0.0  ;;  %v2106_v38 = vmax.f32 %v1978_v27, 0.0  ;;  %v7488_v14 = vor.u32 %v8384_v11, %v7485_v13  ;;  %v3893_v11 = vld [vmem:[%s13687_s5 + $0xe8] sm:$0xff] }
 0x13d   : > { %v2120_v21 = vmax.f32 %v1992_v18, 0.0  ;;  %v3515_v18 = vld [vmem:[%s13687_s5 + $0x98] sm:$0xff] }
 0x13e   : > { %v9209_v23 = vpack.c.bf16 %v2119_v20, %v2103_v16  ;;  %1557 = vmatpush.bf16.msra.mxu1 %v7488_v14 }
 0x13f   : > { %v9215_v26 = vpack.c.bf16 %v2120_v21, %v2104_v19  ;;  %3537 = vperm.xlu0 %8515, %v3515_v18  }
 0x140   : > { %v1225_v28 = vpop.f32.mrf.mxu2 }
 0x141   : > { %v1993_v59 = vadd.f32 %v9204_v6, %v1225_v28  ;;  %v1274_v30 = vpop.f32.mrf.mxu3  ;;  %v1130_v32 = vpop.f32.mrf.mxu0 }
 0x142   : > { %v1994_v33 = vadd.f32 %v9204_v6, %v1274_v30  ;;  %v1179_v34 = vpop.f32.mrf.mxu1  ;;  %v2007_v44 = vadd.f32 %v9133_v3, %v1130_v32 }
 0x143   : > { %v2121_v37 = vmax.f32 %v1993_v59, 0.0  ;;  %v2008_v49 = vadd.f32 %v9133_v3, %v1179_v34 }
 0x144   : > { %v2122_v40 = vmax.f32 %v1994_v33, 0.0  ;;  %7675 = vmatmul.msk.bf16.gmra.mxu0 %vm1086_vm0, %v9040_v22  ;;  %7683 = vmatmul.msk.bf16.gmra.mxu1 %vm1086_vm0, %v9040_v22  ;;  %v2135_v58 = vmax.f32 %v2007_v44, 0.0  ;;  %v2275_v33 = vld [vmem:[%s13687_s5 + $0x60] sm:$0xff]  ;;  %v3894_v44 = vld [vmem:[%s13687_s5 + $0xf0] sm:$0xff] }
 0x145   : > { %7691 = vmatmul.msk.bf16.gmra.mxu2 %vm1086_vm0, %v9040_v22  ;;  %v9226_v42 = vpack.c.bf16 %v2121_v37, %v2105_v35  ;;  %v2136_v7 = vmax.f32 %v2008_v49, 0.0  ;;  %2301 = vperm.xlu1 %8516, %v2275_v33  }
 0x146   : > { %7699 = vmatmul.msk.bf16.gmra.mxu3 %vm1086_vm0, %v9040_v22  ;;  %v9234_v48 = vpack.c.bf16 %v2122_v40, %v2106_v38 }
 0x147   : > { %3928 = vperm.xlu0 %8515, %v3894_v44   ;;  %v8376_v44 = vld [vmem:[%s8931_s18 + $0xdc] sm:$0xf0] }
 0x148   : > { %v1228_v54 = vpop.f32.mrf.mxu2 }
 0x149   : > { %v1277_v22 = vpop.f32.mrf.mxu3  ;;  %v1132_v56 = vpop.f32.mrf.mxu0  ;;  %v2009_v20 = vadd.f32 %v9133_v3, %v1228_v54 }
 0x14a   : > { %v2023_v61 = vadd.f32 %v9148_v8, %v1132_v56  ;;  %v1181_v62 = vpop.f32.mrf.mxu1  ;;  %v2010_v24 = vadd.f32 %v9133_v3, %v1277_v22  ;;  %v7427_v22 = vld [vmem:[%s8931_s18 + $0xa8] sm:$0xf] }
 0x14b   : > { %v2024_v9 = vadd.f32 %v9148_v8, %v1181_v62  ;;  %v2137_v34 = vmax.f32 %v2009_v20, 0.0  ;;  %v8377_v56 = vld [vmem:[%s8931_s18 + $0xe4] sm:$0xf0] }
 0x14c   : > { %v2151_v12 = vmax.f32 %v2023_v61, 0.0  ;;  %v2138_v37 = vmax.f32 %v2010_v24, 0.0 }
 0x14d   : > { %v2152_v16 = vmax.f32 %v2024_v9, 0.0  ;;  %2296 = vperm.xlu1 %8516, %v2274_v0   ;;  %v8352_v0 = vld [vmem:[%s8931_s18 + $0x24] sm:$0xf] }
 0x14e   : > { %v9250_v19 = vpack.c.bf16 %v2151_v12, %v2135_v58  ;;  %v8369_v58 = vld [vmem:[%s8931_s18 + $0xac] sm:$0xf] }
 0x14f   : > { %v9253_v21 = vpack.c.bf16 %v2152_v16, %v2136_v7  ;;  %v7432_v9 = vor.u32 %v8369_v58, %v7429_v63  ;;  %3923 = vperm.xlu0 %8515, %v3893_v11   ;;  %v8360_v63 = vld [vmem:[%s8931_s18 + $0x5c] sm:$0xf0]  ;;  %v7363_v11 = vld [vmem:[%s8931_s18 + $0x28] sm:$0xf] }
 0x150   : > { %v1230_v25 = vpop.f32.mrf.mxu2 }
 0x151   : > { %v2025_v27 = vadd.f32 %v9148_v8, %v1230_v25  ;;  %v1279_v28 = vpop.f32.mrf.mxu3  ;;  %v1135_v59 = vpop.f32.mrf.mxu0  ;;  %1656 = vmatpush.bf16.msra.mxu3 %v7432_v9 }
 0x152   : > { %v2026_v30 = vadd.f32 %v9148_v8, %v1279_v28  ;;  %v1184_v32 = vpop.f32.mrf.mxu1  ;;  %v2039_v40 = vadd.f32 %v9131_v2, %v1135_v59  ;;  %v3518_v59 = vld [vmem:[%s13687_s5 + $0xb0] sm:$0xff] }
 0x153   : > { %v2153_v35 = vmax.f32 %v2025_v27, 0.0  ;;  %v2040_v47 = vadd.f32 %v9131_v2, %v1184_v32 }
 0x154   : > { %v2154_v38 = vmax.f32 %v2026_v30, 0.0  ;;  %7676 = vmatmul.msk.bf16.gmra.mxu0 %vm1086_vm0, %v9057_v29  ;;  %7684 = vmatmul.msk.bf16.gmra.mxu1 %vm1086_vm0, %v9057_v29  ;;  %v2167_v51 = vmax.f32 %v2039_v40, 0.0  ;;  %v7419_v40 = vld [vmem:[%s8931_s18 + $0xa0] sm:$0xf] }
 0x155   : > { %7692 = vmatmul.msk.bf16.gmra.mxu2 %vm1086_vm0, %v9057_v29  ;;  %v9271_v45 = vpack.c.bf16 %v2153_v35, %v2137_v34  ;;  %v2168_v61 = vmax.f32 %v2040_v47, 0.0  ;;  %3552 = vperm.xlu1 %8516, %v3518_v59   ;;  %v8368_v47 = vld [vmem:[%s8931_s18 + $0xa4] sm:$0xf] }
 0x156   : > { %7700 = vmatmul.msk.bf16.gmra.mxu3 %vm1086_vm0, %v9057_v29  ;;  %v9275_v46 = vpack.c.bf16 %v2154_v38, %v2138_v37  ;;  %v7428_v29 = vor.u32 %v8377_v56, %v7427_v22  ;;  %v3888_v37 = vld [vmem:[%s13687_s5 + $0xc0] sm:$0xff]  ;;  %v3517_v22 = vld [vmem:[%s13687_s5 + $0xa8] sm:$0xff]  ;;  %v4640_v56 = vld [vmem:[%s13687_s5 + $0x138] sm:$0xff] }
 0x157   : > { %3898 = vperm.xlu0 %8515, %v3888_v37  }
 0x158   : > { %v1233_v49 = vpop.f32.mrf.mxu2  ;;  %1607 = vmatpush.bf16.msra.mxu2 %v7428_v29  ;;  %v7355_v29 = vld [vmem:[%s8931_s18 + $0x20] sm:$0xf] }
 0x159   : > { %v1282_v52 = vpop.f32.mrf.mxu3  ;;  %v1137_v53 = vpop.f32.mrf.mxu0  ;;  %v2041_v12 = vadd.f32 %v9131_v2, %v1233_v49  ;;  %v7420_v49 = vor.u32 %v8376_v44, %v7419_v40  ;;  %v7356_v9 = vor.u32 %v8360_v63, %v7355_v29  ;;  %v7635_v40 = vld [vmem:[%s8931_s18 + $0x238] sm:$0xf]  ;;  %v7563_v29 = vld [vmem:[%s8931_s18 + $0x1b0] sm:$0xf]  ;;  %v8402_v63 = vld [vmem:[%s8931_s18 + $0x1b4] sm:$0xf] }
 0x15a   : > { %v2055_v54 = vadd.f32 %v9143_v4, %v1137_v53  ;;  %v1186_v55 = vpop.f32.mrf.mxu1  ;;  %v2042_v16 = vadd.f32 %v9131_v2, %v1282_v52  ;;  %v8427_v44 = vld [vmem:[%s8931_s18 + $0x274] sm:$0xf0] }
 0x15b   : > { %v2056_v62 = vadd.f32 %v9143_v4, %v1186_v55  ;;  %v2169_v30 = vmax.f32 %v2041_v12, 0.0  ;;  %1509 = vmatpush.bf16.msra.mxu0 %v7420_v49  ;;  %v8361_v12 = vld [vmem:[%s8931_s18 + $0x64] sm:$0xf0]  ;;  %v7636_v49 = vor.u32 %v8427_v44, %v7635_v40  ;;  %v8386_v40 = vld [vmem:[%s8931_s18 + $0x134] sm:$0xf] }
 0x15c   : > { %v2183_v7 = vmax.f32 %v2055_v54, 0.0  ;;  %v2170_v33 = vmax.f32 %v2042_v16, 0.0  ;;  %v7501_v44 = vld [vmem:[%s8931_s18 + $0x170] sm:$0xf0] }
 0x15d   : > { %v2184_v10 = vmax.f32 %v2056_v62, 0.0  ;;  %3547 = vperm.xlu1 %8516, %v3517_v22   ;;  %v4635_v22 = vld [vmem:[%s13687_s5 + $0x110] sm:$0xff] }
 0x15e   : > { %v9290_v13 = vpack.c.bf16 %v2183_v7, %v2167_v51  ;;  %v7421_v51 = vld [vmem:[%s8931_s18 + $0xe0] sm:$0xf0] }
 0x15f   : > { %v9293_v14 = vpack.c.bf16 %v2184_v10, %v2168_v61  ;;  %v7424_v53 = vor.u32 %v8368_v47, %v7421_v51  ;;  %4679 = vperm.xlu0 %8515, %v4640_v56   ;;  %v7357_v10 = vld [vmem:[%s8931_s18 + $0x60] sm:$0xf0]  ;;  %v8419_v47 = vld [vmem:[%s8931_s18 + $0x23c] sm:$0xf]  ;;  %1510 = vmatpush.bf16.msra.mxu0 %v7356_v9 }
 0x160   : > { %v1235_v18 = vpop.f32.mrf.mxu2  ;;  %v7360_v16 = vor.u32 %v8352_v0, %v7357_v10  ;;  %v7637_v51 = vld [vmem:[%s8931_s18 + $0x278] sm:$0xf0]  ;;  %v7565_v10 = vld [vmem:[%s8931_s18 + $0x1f0] sm:$0xf0] }
 0x161   : > { %v2057_v20 = vadd.f32 %v9143_v4, %v1235_v18  ;;  %v1284_v24 = vpop.f32.mrf.mxu3  ;;  %v9297_v25 = vpop.f32.mrf.mxu0  ;;  %1558 = vmatpush.bf16.msra.mxu1 %v7424_v53  ;;  %v7364_v18 = vor.u32 %v8361_v12, %v7363_v11  ;;  %v3512_v53 = vld [vmem:[%s13687_s5 + $0x80] sm:$0xff]  ;;  %v7640_v56 = vor.u32 %v8419_v47, %v7637_v51 }
 0x162   : > { %v2058_v27 = vadd.f32 %v9143_v4, %v1284_v24  ;;  %v9300_v28 = vpop.f32.mrf.mxu1  ;;  %v7365_v24 = vld [vmem:[%s8931_s18 + $0x68] sm:$0xf0]  ;;  %v7571_v11 = vld [vmem:[%s8931_s18 + $0x1b8] sm:$0xf]  ;;  %v8387_v51 = vld [vmem:[%s8931_s18 + $0x13c] sm:$0xf] }
 0x163   : > { %v2185_v32 = vmax.f32 %v2057_v20, 0.0  ;;  %v8353_v20 = vld [vmem:[%s8931_s18 + $0x2c] sm:$0xf]  ;;  %1608 = vmatpush.bf16.msra.mxu2 %v7364_v18  ;;  %v8411_v12 = vld [vmem:[%s8931_s18 + $0x1f4] sm:$0xf0]  ;;  %v7568_v18 = vor.u32 %v8402_v63, %v7565_v10  ;;  %v4634_v63 = vld [vmem:[%s13687_s5 + $0x108] sm:$0xff] }
 0x164   : > { %v2186_v34 = vmax.f32 %v2058_v27, 0.0  ;;  %7677 = vmatmul.msk.bf16.gmra.mxu0 %vm1086_vm0, %v9074_v36  ;;  %7685 = vmatmul.msk.bf16.gmra.mxu1 %vm1086_vm0, %v9074_v36  ;;  %v7627_v27 = vld [vmem:[%s8931_s18 + $0x230] sm:$0xf]  ;;  %v7368_v59 = vor.u32 %v8353_v20, %v7365_v24  ;;  %v7572_v24 = vor.u32 %v8411_v12, %v7571_v11  ;;  %v8395_v47 = vld [vmem:[%s8931_s18 + $0x174] sm:$0xf0] }
 0x165   : > { %v9307_v35 = vpack.c.bf16 %v2185_v32, %v2169_v30  ;;  %7693 = vmatmul.msk.bf16.gmra.mxu2 %vm1086_vm0, %v9074_v36  ;;  %v8426_v30 = vld [vmem:[%s8931_s18 + $0x26c] sm:$0xf0]  ;;  %v8418_v32 = vld [vmem:[%s8931_s18 + $0x234] sm:$0xf]  ;;  %1559 = vmatpush.bf16.msra.mxu1 %v7360_v16 }
 0x166   : > { %v9316_v38 = vpack.c.bf16 %v2186_v34, %v2170_v33  ;;  %7701 = vmatmul.msk.bf16.gmra.mxu3 %vm1086_vm0, %v9074_v36  ;;  %v7629_v33 = vld [vmem:[%s8931_s18 + $0x270] sm:$0xf0]  ;;  %v7628_v34 = vor.u32 %v8426_v30, %v7627_v27  ;;  %v8403_v27 = vld [vmem:[%s8931_s18 + $0x1bc] sm:$0xf]  ;;  %3522 = vperm.xlu1 %8516, %v3512_v53   ;;  %v7504_v53 = vor.u32 %v8386_v40, %v7501_v44  ;;  %v8378_v10 = vld [vmem:[%s8931_s18 + $0xec] sm:$0xf0] }
 0x167   : > { %v7632_v37 = vor.u32 %v8418_v32, %v7629_v33  ;;  %1657 = vmatpush.bf16.msra.mxu3 %v7368_v59  ;;  %1800 = vmatpush.bf16.msrb.mxu2 %v7636_v49  ;;  %v7573_v59 = vld [vmem:[%s8931_s18 + $0x1f8] sm:$0xf0]  ;;  %v7499_v33 = vld [vmem:[%s8931_s18 + $0x130] sm:$0xf]  ;;  %v8370_v11 = vld [vmem:[%s8931_s18 + $0xb4] sm:$0xf] }
 0x168   : > { %v9324_v52 = vpop.f32.mrf.mxu2  ;;  %1702 = vmatpush.bf16.msrb.mxu0 %v7628_v34  ;;  %v7576_v32 = vor.u32 %v8403_v27, %v7573_v59  ;;  %v8394_v34 = vld [vmem:[%s8931_s18 + $0x16c] sm:$0xf0]  ;;  %4654 = vperm.xlu0 %8515, %v4635_v22   ;;  %v8379_v27 = vld [vmem:[%s8931_s18 + $0xf4] sm:$0xf0] }
 0x169   : > { %13761 = vst [vmem:[#allocation3_spill] sm:$0xff] %v9324_v52  ;;  %v9326_v54 = vpop.f32.mrf.mxu3  ;;  %v9328_v55 = vpop.f32.mrf.mxu0  ;;  %1751 = vmatpush.bf16.msrb.mxu1 %v7632_v37  ;;  %v7507_v37 = vld [vmem:[%s8931_s18 + $0x138] sm:$0xf]  ;;  %v7500_v49 = vor.u32 %v8394_v34, %v7499_v33  ;;  %v8371_v33 = vld [vmem:[%s8931_s18 + $0xbc] sm:$0xf] }
 0x16a   : > { %13762 = vst [vmem:[#allocation4_spill] sm:$0xff] %v9326_v54  ;;  %v9330_v36 = vpop.f32.mrf.mxu1  ;;  %v7445_v34 = vld [vmem:[%s8931_s18 + $0xf8] sm:$0xf0]  ;;  %v8363_v54 = vld [vmem:[%s8931_s18 + $0x74] sm:$0xf0] }
 0x16b   : > { %1849 = vmatpush.bf16.msrb.mxu3 %v7640_v56  ;;  %1801 = vmatpush.bf16.msrb.mxu2 %v7572_v24  ;;  %v7508_v56 = vor.u32 %v8395_v47, %v7507_v37  ;;  %v7443_v24 = vld [vmem:[%s8931_s18 + $0xb8] sm:$0xf] }
 0x16c   : > { %v7444_v47 = vor.u32 %v8379_v27, %v7443_v24 }
 0x16d   : > { %1752 = vmatpush.bf16.msrb.mxu1 %v7568_v18  ;;  %v7437_v18 = vld [vmem:[%s8931_s18 + $0xf0] sm:$0xf0] }
 0x16e   : > { %v7440_v37 = vor.u32 %v8370_v11, %v7437_v18  ;;  %v7380_v11 = vor.u32 %v8363_v54, %v7379_v50  ;;  %v3890_v18 = vld [vmem:[%s13687_s5 + $0xd0] sm:$0xff]  ;;  %v2276_v50 = vld [vmem:[%s13687_s5 + $0x68] sm:$0xff] }
 0x16f   : > { %1850 = vmatpush.bf16.msrb.mxu3 %v7576_v32  ;;  %1802 = vmatpush.bf16.msrb.mxu2 %v7508_v56  ;;  %v7373_v56 = vld [vmem:[%s8931_s18 + $0x70] sm:$0xf0]  ;;  %v3889_v54 = vld [vmem:[%s13687_s5 + $0xc8] sm:$0xff] }
 0x170   : > { %v9338_v58 = vpop.f32.mrf.mxu2  ;;  %4649 = vperm.xlu0 %8515, %v4634_v63   ;;  %v2277_v63 = vld [vmem:[%s13687_s5 + $0x70] sm:$0xff] }
 0x171   : > { %13763 = vst [vmem:[#allocation5_spill] sm:$0xff] %v9338_v58  ;;  %v9340_v61 = vpop.f32.mrf.mxu3  ;;  %v9342_v62 = vpop.f32.mrf.mxu0  ;;  %1753 = vmatpush.bf16.msrb.mxu1 %v7504_v53  ;;  %v7448_v53 = vor.u32 %v8371_v33, %v7445_v34  ;;  %2311 = vperm.xlu2 %8517, %v2277_v63  }
 0x172   : > { %13764 = vst [vmem:[#allocation6_spill] sm:$0xff] %v9340_v61  ;;  %v9347_v7 = vpop.f32.mrf.mxu1 }
 0x173   : > { %1803 = vmatpush.bf16.msrb.mxu2 %v7444_v47 }
 0x174   : > { %7678 = vmatmul.msk.bf16.gmra.mxu0 %vm1086_vm0, %v9091_v43  ;;  %7686 = vmatmul.msk.bf16.gmra.mxu1 %vm1086_vm0, %v9091_v43 }
 0x175   : > { %7694 = vmatmul.msk.bf16.gmra.mxu2 %vm1086_vm0, %v9091_v43  ;;  %1754 = vmatpush.bf16.msrb.mxu1 %v7440_v37 }
 0x176   : > { %7702 = vmatmul.msk.bf16.gmra.mxu3 %vm1086_vm0, %v9091_v43  ;;  %v8410_v43 = vld [vmem:[%s8931_s18 + $0x1ec] sm:$0xf0] }
 0x177   : > { %v7564_v9 = vor.u32 %v8410_v43, %v7563_v29  ;;  %v7509_v29 = vld [vmem:[%s8931_s18 + $0x178] sm:$0xf0]  ;;  %v3895_v43 = vld [vmem:[%s13687_s5 + $0xf8] sm:$0xff]  ;;  %1804 = vmatpush.bf16.msrb.mxu2 %v7380_v11 }
 0x178   : > { %v9379_v0 = vpop.f32.mrf.mxu2  ;;  %v7512_v22 = vor.u32 %v8387_v51, %v7509_v29  ;;  %3933 = vperm.xlu1 %8516, %v3895_v43   ;;  %v8362_v51 = vld [vmem:[%s8931_s18 + $0x6c] sm:$0xf0]  ;;  %v8354_v29 = vld [vmem:[%s8931_s18 + $0x34] sm:$0xf]  ;;  %v7381_v43 = vld [vmem:[%s8931_s18 + $0x78] sm:$0xf0] }
 0x179   : > { %13765 = vst [vmem:[#allocation7_spill] sm:$0xff] %v9379_v0  ;;  %v9384_v20 = vpop.f32.mrf.mxu3  ;;  %v9386_v16 = vpop.f32.mrf.mxu0  ;;  %1703 = vmatpush.bf16.msrb.mxu0 %v7564_v9  ;;  %v7435_v9 = vld [vmem:[%s8931_s18 + $0xb0] sm:$0xf]  ;;  %2306 = vperm.xlu2 %8517, %v2276_v50   ;;  %v9507_v50 = vld [vmem:[%s13684_s2] sm:$0xff] }
 0x17a   : > { %13766 = vst [vmem:[#allocation8_spill] sm:$0xff] %v9384_v20  ;;  %v9390_v30 = vpop.f32.mrf.mxu1  ;;  %1851 = vmatpush.bf16.msrb.mxu3 %v7512_v22  ;;  %v7436_v44 = vor.u32 %v8378_v10, %v7435_v9  ;;  %v8355_v22 = vld [vmem:[%s8931_s18 + $0x3c] sm:$0xf]  ;;  %v7376_v10 = vor.u32 %v8354_v29, %v7373_v56 }
 0x17b   : > { %v7384_v27 = vor.u32 %v8355_v22, %v7381_v43  ;;  %v4637_v56 = vld [vmem:[%s13687_s5 + $0x120] sm:$0xff] }
 0x17c   : > { %1755 = vmatpush.bf16.msrb.mxu1 %v7376_v10  ;;  %v3519_v10 = vld [vmem:[%s13687_s5 + $0xb8] sm:$0xff] }
 0x17d   : > { %1704 = vmatpush.bf16.msrb.mxu0 %v7500_v49  ;;  %v7371_v49 = vld [vmem:[%s8931_s18 + $0x30] sm:$0xf] }
 0x17e   : > { %v7372_v9 = vor.u32 %v8362_v51, %v7371_v49  ;;  %1852 = vmatpush.bf16.msrb.mxu3 %v7448_v53  ;;  %v4641_v51 = vld [vmem:[%s13687_s5 + $0x140] sm:$0xff] }
 0x17f   : > { %v2271_v53 = vld [vmem:[%s13687_s5 + $0x40] sm:$0xff] }
 0x180   : > { %v9409_v12 = vpop.f32.mrf.mxu2  ;;  %3908 = vperm.xlu1 %8516, %v3890_v18  }
 0x181   : > { %13767 = vst [vmem:[#allocation9_spill] sm:$0xff] %v9409_v12  ;;  %v9414_v59 = vpop.f32.mrf.mxu3  ;;  %v9416_v32 = vpop.f32.mrf.mxu0  ;;  %1705 = vmatpush.bf16.msrb.mxu0 %v7436_v44  ;;  %2281 = vperm.xlu2 %8517, %v2271_v53  }
 0x182   : > { %13768 = vst [vmem:[#allocation10_spill] sm:$0xff] %v9414_v59  ;;  %v9420_v40 = vpop.f32.mrf.mxu1  ;;  %1853 = vmatpush.bf16.msrb.mxu3 %v7384_v27 }
 0x183   : > { %13769 = vst [vmem:[#allocation11_spill] sm:$0xff] %v9416_v32 }
 0x184   : > { %13770 = vst [vmem:[#allocation12_spill] sm:$0xff] %v9420_v40  ;;  %7679 = vmatmul.msk.bf16.gmra.mxu0 %vm1086_vm0, %v9112_v57  ;;  %7687 = vmatmul.msk.bf16.gmra.mxu1 %vm1086_vm0, %v9112_v57 }
 0x185   : > { %7695 = vmatmul.msk.bf16.gmra.mxu2 %vm1086_vm0, %v9112_v57  ;;  %1706 = vmatpush.bf16.msrb.mxu0 %v7372_v9 }
 0x186   : > { %7703 = vmatmul.msk.bf16.gmra.mxu3 %vm1086_vm0, %v9112_v57  ;;  %v6142_v57 = vld [vmem:[%s13687_s5 + $0x148] sm:$0xff] }
 0x187   : > { %6148 = vperm.xlu0 %8515, %v6142_v57  }
 0x188   : > { %v9444_v24 = vpop.f32.mrf.mxu2  ;;  %3903 = vperm.xlu1 %8516, %v3889_v54   ;;  %v3514_v54 = vld [vmem:[%s13687_s5 + $0x90] sm:$0xff] }
 0x189   : > { %13771 = vst [vmem:[#allocation13_spill] sm:$0xff] %v9444_v24  ;;  %v9446_v33 = vpop.f32.mrf.mxu3  ;;  %v9448_v34 = vpop.f32.mrf.mxu0  ;;  %3557 = vperm.xlu2 %8517, %v3519_v10  }
 0x18a   : > { %13772 = vst [vmem:[#allocation14_spill] sm:$0xff] %v9446_v33  ;;  %v9453_v44 = vpop.f32.mrf.mxu1 }
 0x18b   : > { %13773 = vst [vmem:[#allocation15_spill] sm:$0xff] %v9448_v34 }
 0x18c   : > { %13774 = vst [vmem:[#allocation16_spill] sm:$0xff] %v9453_v44 }
 0x18f   : > { %4684 = vperm.xlu0 %8515, %v4641_v51  }
 0x190   : > { %v9461_v37 = vpop.f32.mrf.mxu2  ;;  %4664 = vperm.xlu1 %8516, %v4637_v56   ;;  %v6144_v56 = vld [vmem:[%s13687_s5 + $0x158] sm:$0xff] }
 0x191   : > { %13775 = vst [vmem:[#allocation17_spill] sm:$0xff] %v9461_v37  ;;  %v9463_v47 = vpop.f32.mrf.mxu3  ;;  %v9465_v49 = vpop.f32.mrf.mxu0  ;;  %3532 = vperm.xlu2 %8517, %v3514_v54  }
 0x192   : > { %13776 = vst [vmem:[#allocation18_spill] sm:$0xff] %v9463_v47  ;;  %v9470_v29 = vpop.f32.mrf.mxu1 }
 0x193   : > { %13777 = vst [vmem:[#allocation19_spill] sm:$0xff] %v9470_v29 }
 0x194   : > { %7680 = vmatmul.msk.bf16.gmra.mxu0 %vm1086_vm0, %v9129_v1  ;;  %7688 = vmatmul.msk.bf16.gmra.mxu1 %vm1086_vm0, %v9129_v1 }
 0x195   : > { %7696 = vmatmul.msk.bf16.gmra.mxu2 %vm1086_vm0, %v9129_v1 }
 0x196   : > { %7704 = vmatmul.msk.bf16.gmra.mxu3 %vm1086_vm0, %v9129_v1  ;;  %v4636_v1 = vld [vmem:[%s13687_s5 + $0x118] sm:$0xff] }
 0x198   : > { %v9486_v22 = vpop.f32.mrf.mxu2  ;;  %4659 = vperm.xlu1 %8516, %v4636_v1  }
 0x199   : > { %13778 = vst [vmem:[#allocation20_spill] sm:$0xff] %v9486_v22  ;;  %v9488_v43 = vpop.f32.mrf.mxu3  ;;  %v9490_v63 = vpop.f32.mrf.mxu0 }
 0x19a   : > { %13779 = vst [vmem:[#allocation21_spill] sm:$0xff] %v9488_v43  ;;  %v9492_v9 = vpop.f32.mrf.mxu1 }
 0x19b   : > { %13780 = vst [vmem:[#allocation22_spill] sm:$0xff] %v9490_v63 }
 0x19c   : > { %13781 = vst [vmem:[#allocation23_spill] sm:$0xff] %v9492_v9 }
 0x1a0   : > { %v9500_v11 = vpop.f32.mrf.mxu2  ;;  %6158 = vperm.xlu1 %8516, %v6144_v56  }
 0x1a1   : > { %13782 = vst [vmem:[#allocation24_spill] sm:$0xff] %v9500_v11  ;;  %v9502_v18 = vpop.f32.mrf.mxu3  ;;  %v1316_v27 = vpop.f32.mrf.mxu0 }
 0x1a2   : > { %13783 = vst [vmem:[#allocation25_spill] sm:$0xff] %v9502_v18  ;;  %v1365_v57 = vpop.f32.mrf.mxu1  ;;  %v1947_v51 = vadd.f32 %v9157_v15, %v1316_v27 }
 0x1a3   : > { %v1948_v53 = vadd.f32 %v9157_v15, %v1365_v57 }
 0x1a4   : > { %7705 = vmatmul.msk.bf16.vlgmr.msra.gmra.mxu0 %vm1086_vm0, %v9507_v50  ;;  %7713 = vmatmul.msk.bf16.vlgmr.msra.gmra.mxu1 %vm1086_vm0, %v9507_v50  ;;  %v2075_v52 = vmax.f32 %v1947_v51, 0.0  ;;  %v3513_v51 = vld [vmem:[%s13687_s5 + $0x88] sm:$0xff] }
 0x1a5   : > { %7721 = vmatmul.msk.bf16.vlgmr.msra.gmra.mxu2 %vm1086_vm0, %v9507_v50  ;;  %2356 = vmatpush.bf16.msra.mxu0 %v9290_v13 }
 0x1a6   : > { %7729 = vmatmul.msk.bf16.vlgmr.msra.gmra.mxu3 %vm1086_vm0, %v9507_v50  ;;  %2385 = vmatpush.bf16.msra.mxu1 %v9293_v14  ;;  %v2076_v14 = vmax.f32 %v1948_v53, 0.0 }
 0x1a7   : > { %2414 = vmatpush.bf16.msra.mxu2 %v9307_v35  ;;  %2443 = vmatpush.bf16.msra.mxu3 %v9316_v38 }
 0x1a8   : > { %v1414_v10 = vpop.f32.mrf.mxu2  ;;  %3527 = vperm.xlu2 %8517, %v3513_v51  }
 0x1a9   : > { %v1463_v1 = vpop.f32.mrf.mxu3  ;;  %v1318_v27 = vpop.f32.mrf.mxu0  ;;  %2357 = vmatpush.bf16.msra.mxu0 %v9250_v19  ;;  %v1949_v53 = vadd.f32 %v9157_v15, %v1414_v10 }
 0x1aa   : > { %v1963_v13 = vadd.f32 %v9162_v17, %v1318_v27  ;;  %v1367_v57 = vpop.f32.mrf.mxu1  ;;  %2386 = vmatpush.bf16.msra.mxu1 %v9253_v21  ;;  %v6143_v21 = vld [vmem:[%s13687_s5 + $0x150] sm:$0xff] }
 0x1ab   : > { %2415 = vmatpush.bf16.msra.mxu2 %v9271_v45  ;;  %v1964_v35 = vadd.f32 %v9162_v17, %v1367_v57  ;;  %2444 = vmatpush.bf16.msra.mxu3 %v9275_v46  ;;  %v1950_v46 = vadd.f32 %v9157_v15, %v1463_v1  ;;  %v2077_v27 = vmax.f32 %v1949_v53, 0.0  ;;  %v9560_v57 = vld [vmem:[%s13684_s2 + $0x8] sm:$0xff] }
 0x1ac   : > { %v2091_v38 = vmax.f32 %v1963_v13, 0.0  ;;  %6153 = vperm.xlu1 %8516, %v6143_v21  }
 0x1ad   : > { %v2092_v54 = vmax.f32 %v1964_v35, 0.0  ;;  %2358 = vmatpush.bf16.msra.mxu0 %v9209_v23  ;;  %v2078_v1 = vmax.f32 %v1950_v46, 0.0 }
 0x1ae   : > { %v9539_v19 = vpack.c.bf16 %v2091_v38, %v2075_v52  ;;  %2387 = vmatpush.bf16.msra.mxu1 %v9215_v26 }
 0x1af   : > { %2416 = vmatpush.bf16.msra.mxu2 %v9226_v42  ;;  %v9547_v45 = vpack.c.bf16 %v2092_v54, %v2076_v14  ;;  %2445 = vmatpush.bf16.msra.mxu3 %v9234_v48 }
 0x1b0   : > { %v1416_v56 = vpop.f32.mrf.mxu2 }
 0x1b1   : > { %v1965_v23 = vadd.f32 %v9162_v17, %v1416_v56  ;;  %v1465_v52 = vpop.f32.mrf.mxu3  ;;  %v1321_v10 = vpop.f32.mrf.mxu0  ;;  %2359 = vmatpush.bf16.msra.mxu0 %v9176_v39  ;;  %v3892_v39 = vld [vmem:[%s13687_s5 + $0xe0] sm:$0xff] }
 0x1b2   : > { %v1966_v26 = vadd.f32 %v9162_v17, %v1465_v52  ;;  %v1370_v42 = vpop.f32.mrf.mxu1  ;;  %2388 = vmatpush.bf16.msra.mxu1 %v9179_v41  ;;  %3918 = vperm.xlu2 %8517, %v3892_v39  }
 0x1b3   : > { %v2093_v13 = vmax.f32 %v1965_v23, 0.0  ;;  %2417 = vmatpush.bf16.msra.mxu2 %v9193_v60  ;;  %2446 = vmatpush.bf16.msra.mxu3 %v9202_v5  ;;  %v1979_v60 = vadd.f32 %v9169_v31, %v1321_v10  ;;  %v1980_v14 = vadd.f32 %v9169_v31, %v1370_v42  ;;  %v3891_v42 = vld [vmem:[%s13687_s5 + $0xd8] sm:$0xff] }
 0x1b4   : > { %v2094_v48 = vmax.f32 %v1966_v26, 0.0  ;;  %7706 = vmatmul.msk.bf16.gmra.mxu0 %vm1086_vm0, %v9560_v57  ;;  %7714 = vmatmul.msk.bf16.gmra.mxu1 %vm1086_vm0, %v9560_v57 }
 0x1b5   : > { %7722 = vmatmul.msk.bf16.gmra.mxu2 %vm1086_vm0, %v9560_v57  ;;  %v9571_v41 = vpack.c.bf16 %v2093_v13, %v2077_v27  ;;  %v2107_v51 = vmax.f32 %v1979_v60, 0.0  ;;  %v2108_v46 = vmax.f32 %v1980_v14, 0.0 }
 0x1b6   : > { %7730 = vmatmul.msk.bf16.gmra.mxu3 %vm1086_vm0, %v9560_v57  ;;  %v9576_v5 = vpack.c.bf16 %v2094_v48, %v2078_v1 }
 0x1b8   : > { %v1419_v35 = vpop.f32.mrf.mxu2 }
 0x1b9   : > { %v1468_v38 = vpop.f32.mrf.mxu3  ;;  %v1323_v54 = vpop.f32.mrf.mxu0  ;;  %v1981_v26 = vadd.f32 %v9169_v31, %v1419_v35 }
 0x1ba   : > { %v1995_v53 = vadd.f32 %v9204_v6, %v1323_v54  ;;  %v1372_v21 = vpop.f32.mrf.mxu1  ;;  %v1982_v13 = vadd.f32 %v9169_v31, %v1468_v38  ;;  %3913 = vperm.xlu2 %8517, %v3891_v42  }
 0x1bb   : > { %v1996_v56 = vadd.f32 %v9204_v6, %v1372_v21 }
 0x1bc   : > { %v2123_v23 = vmax.f32 %v1995_v53, 0.0  ;;  %v2110_v35 = vmax.f32 %v1982_v13, 0.0 }
 0x1bd   : > { %v2124_v52 = vmax.f32 %v1996_v56, 0.0 }
 0x1be   : > { %v9581_v10 = vpack.c.bf16 %v2123_v23, %v2107_v51  ;;  %v2109_v51 = vmax.f32 %v1981_v26, 0.0  ;;  %v4639_v23 = vld [vmem:[%s13687_s5 + $0x130] sm:$0xff] }
 0x1bf   : > { %v9587_v27 = vpack.c.bf16 %v2124_v52, %v2108_v46  ;;  %v9595_v46 = vld [vmem:[%s13684_s2 + $0x10] sm:$0xff] }
 0x1c0   : > { %v1421_v1 = vpop.f32.mrf.mxu2 }
 0x1c1   : > { %v1997_v48 = vadd.f32 %v9204_v6, %v1421_v1  ;;  %v1470_v39 = vpop.f32.mrf.mxu3  ;;  %v1326_v60 = vpop.f32.mrf.mxu0 }
 0x1c2   : > { %v1998_v14 = vadd.f32 %v9204_v6, %v1470_v39  ;;  %v1375_v54 = vpop.f32.mrf.mxu1  ;;  %v2011_v56 = vadd.f32 %v9133_v3, %v1326_v60  ;;  %4674 = vperm.xlu2 %8517, %v4639_v23  }
 0x1c3   : > { %v2125_v53 = vmax.f32 %v1997_v48, 0.0  ;;  %v2012_v26 = vadd.f32 %v9133_v3, %v1375_v54 }
 0x1c4   : > { %v2126_v21 = vmax.f32 %v1998_v14, 0.0  ;;  %7707 = vmatmul.msk.bf16.gmra.mxu0 %vm1086_vm0, %v9595_v46  ;;  %7715 = vmatmul.msk.bf16.gmra.mxu1 %vm1086_vm0, %v9595_v46  ;;  %v2139_v48 = vmax.f32 %v2011_v56, 0.0 }
 0x1c5   : > { %7723 = vmatmul.msk.bf16.gmra.mxu2 %vm1086_vm0, %v9595_v46  ;;  %v9603_v38 = vpack.c.bf16 %v2125_v53, %v2109_v51  ;;  %v2140_v60 = vmax.f32 %v2012_v26, 0.0 }
 0x1c6   : > { %7731 = vmatmul.msk.bf16.gmra.mxu3 %vm1086_vm0, %v9595_v46  ;;  %v9611_v52 = vpack.c.bf16 %v2126_v21, %v2110_v35  ;;  %v4638_v35 = vld [vmem:[%s13687_s5 + $0x128] sm:$0xff] }
 0x1c8   : > { %v1424_v42 = vpop.f32.mrf.mxu2 }
 0x1c9   : > { %v1473_v13 = vpop.f32.mrf.mxu3  ;;  %v1328_v1 = vpop.f32.mrf.mxu0  ;;  %v2013_v54 = vadd.f32 %v9133_v3, %v1424_v42 }
 0x1ca   : > { %v2027_v39 = vadd.f32 %v9148_v8, %v1328_v1  ;;  %v1377_v14 = vpop.f32.mrf.mxu1  ;;  %v2014_v56 = vadd.f32 %v9133_v3, %v1473_v13  ;;  %4669 = vperm.xlu2 %8517, %v4638_v35  }
 0x1cb   : > { %v2028_v51 = vadd.f32 %v9148_v8, %v1377_v14  ;;  %v2141_v59 = vmax.f32 %v2013_v54, 0.0 }
 0x1cc   : > { %v2155_v53 = vmax.f32 %v2027_v39, 0.0  ;;  %v2142_v18 = vmax.f32 %v2014_v56, 0.0 }
 0x1cd   : > { %v2156_v61 = vmax.f32 %v2028_v51, 0.0 }
 0x1ce   : > { %v9619_v21 = vpack.c.bf16 %v2155_v53, %v2139_v48 }
 0x1cf   : > { %v9622_v23 = vpack.c.bf16 %v2156_v61, %v2140_v60  ;;  %v9630_v61 = vld [vmem:[%s13684_s2 + $0x18] sm:$0xff] }
 0x1d0   : > { %v1426_v20 = vpop.f32.mrf.mxu2 }
 0x1d1   : > { %v2029_v26 = vadd.f32 %v9148_v8, %v1426_v20  ;;  %v1475_v1 = vpop.f32.mrf.mxu3  ;;  %v1331_v14 = vpop.f32.mrf.mxu0  ;;  %v4633_v20 = vld [vmem:[%s13687_s5 + $0x100] sm:$0xff] }
 0x1d2   : > { %v2030_v39 = vadd.f32 %v9148_v8, %v1475_v1  ;;  %v1380_v51 = vpop.f32.mrf.mxu1  ;;  %v2043_v13 = vadd.f32 %v9131_v2, %v1331_v14  ;;  %4644 = vperm.xlu2 %8517, %v4633_v20  }
 0x1d3   : > { %v2157_v12 = vmax.f32 %v2029_v26, 0.0  ;;  %v2044_v53 = vadd.f32 %v9131_v2, %v1380_v51 }
 0x1d4   : > { %v2158_v48 = vmax.f32 %v2030_v39, 0.0  ;;  %7708 = vmatmul.msk.bf16.gmra.mxu0 %vm1086_vm0, %v9630_v61  ;;  %7716 = vmatmul.msk.bf16.gmra.mxu1 %vm1086_vm0, %v9630_v61  ;;  %v2171_v26 = vmax.f32 %v2043_v13, 0.0 }
 0x1d5   : > { %7724 = vmatmul.msk.bf16.gmra.mxu2 %vm1086_vm0, %v9630_v61  ;;  %v9641_v42 = vpack.c.bf16 %v2157_v12, %v2141_v59  ;;  %v2172_v33 = vmax.f32 %v2044_v53, 0.0 }
 0x1d6   : > { %7732 = vmatmul.msk.bf16.gmra.mxu3 %vm1086_vm0, %v9630_v61  ;;  %v9646_v60 = vpack.c.bf16 %v2158_v48, %v2142_v18  ;;  %v6145_v18 = vld [vmem:[%s13687_s5 + $0x160] sm:$0xff] }
 0x1d8   : > { %v1429_v35 = vpop.f32.mrf.mxu2 }
 0x1d9   : > { %v1478_v54 = vpop.f32.mrf.mxu3  ;;  %v1333_v56 = vpop.f32.mrf.mxu0  ;;  %v2045_v51 = vadd.f32 %v9131_v2, %v1429_v35  ;;  %v6327_v35 = vld [vmem:[%s13687_s5 + $0x168] sm:$0xff] }
 0x1da   : > { %v2059_v1 = vadd.f32 %v9143_v4, %v1333_v56  ;;  %v1382_v39 = vpop.f32.mrf.mxu1  ;;  %v2046_v13 = vadd.f32 %v9131_v2, %v1478_v54  ;;  %6163 = vperm.xlu2 %8517, %v6145_v18  }
 0x1db   : > { %v2060_v12 = vadd.f32 %v9143_v4, %v1382_v39  ;;  %v2173_v47 = vmax.f32 %v2045_v51, 0.0 }
 0x1dc   : > { %v2187_v59 = vmax.f32 %v2059_v1, 0.0 }
 0x1dd   : > { %v2188_v14 = vmax.f32 %v2060_v12, 0.0 }
 0x1de   : > { %v9654_v48 = vpack.c.bf16 %v2187_v59, %v2171_v26  ;;  %v2174_v59 = vmax.f32 %v2046_v13, 0.0 }
 0x1df   : > { %v9657_v20 = vpack.c.bf16 %v2188_v14, %v2172_v33  ;;  %v9669_v33 = vld [vmem:[%s13684_s2 + $0x20] sm:$0xff] }
 0x1e0   : > { %v1431_v11 = vpop.f32.mrf.mxu2 }
 0x1e1   : > { %v2061_v53 = vadd.f32 %v9143_v4, %v1431_v11  ;;  %v1480_v56 = vpop.f32.mrf.mxu3  ;;  %v9661_v39 = vpop.f32.mrf.mxu0 }
 0x1e2   : > { %13784 = vst [vmem:[#allocation26_spill] sm:$0xff] %v9661_v39  ;;  %v2062_v1 = vadd.f32 %v9143_v4, %v1480_v56  ;;  %v9664_v12 = vpop.f32.mrf.mxu1  ;;  %6330 = vperm.xlu2 %8517, %v6327_v35  }
 0x1e3   : > { %13785 = vst [vmem:[#allocation27_spill] sm:$0xff] %v9664_v12  ;;  %v2189_v26 = vmax.f32 %v2061_v53, 0.0  ;;  %v9730_v12 = vld [vmem:[%s13684_s2 + $0x30] sm:$0xff] }
 0x1e4   : > { %v2190_v24 = vmax.f32 %v2062_v1, 0.0  ;;  %7709 = vmatmul.msk.bf16.gmra.mxu0 %vm1086_vm0, %v9669_v33  ;;  %7717 = vmatmul.msk.bf16.gmra.mxu1 %vm1086_vm0, %v9669_v33 }
 0x1e5   : > { %v2261_v11 = vpack.c.bf16 %v2189_v26, %v2173_v47  ;;  %7725 = vmatmul.msk.bf16.gmra.mxu2 %vm1086_vm0, %v9669_v33 }
 0x1e6   : > { %v2262_v54 = vpack.c.bf16 %v2190_v24, %v2174_v59  ;;  %7733 = vmatmul.msk.bf16.gmra.mxu3 %vm1086_vm0, %v9669_v33  ;;  %v9701_v24 = vld [vmem:[%s13684_s2 + $0x28] sm:$0xff] }
 0x1e8   : > { %v9682_v14 = vpop.f32.mrf.mxu2 }
 0x1e9   : > { %13786 = vst [vmem:[#allocation28_spill] sm:$0xff] %v9682_v14  ;;  %v9684_v18 = vpop.f32.mrf.mxu3  ;;  %v9686_v47 = vpop.f32.mrf.mxu0 }
 0x1ea   : > { %13787 = vst [vmem:[#allocation29_spill] sm:$0xff] %v9684_v18  ;;  %v9688_v51 = vpop.f32.mrf.mxu1 }
 0x1eb   : > { %13788 = vst [vmem:[#allocation30_spill] sm:$0xff] %v9686_v47 }
 0x1ec   : > { %13789 = vst [vmem:[#allocation31_spill] sm:$0xff] %v9688_v51 }
 0x1f0   : > { %v9690_v13 = vpop.f32.mrf.mxu2 }
 0x1f1   : > { %13790 = vst [vmem:[#allocation32_spill] sm:$0xff] %v9690_v13  ;;  %v9692_v53 = vpop.f32.mrf.mxu3  ;;  %v9694_v56 = vpop.f32.mrf.mxu0 }
 0x1f2   : > { %13791 = vst [vmem:[#allocation33_spill] sm:$0xff] %v9692_v53  ;;  %v9696_v1 = vpop.f32.mrf.mxu1 }
 0x1f3   : > { %13792 = vst [vmem:[#allocation34_spill] sm:$0xff] %v9694_v56  ;;  %v9759_v56 = vld [vmem:[%s13684_s2 + $0x38] sm:$0xff] }
 0x1f4   : > { %13793 = vst [vmem:[#allocation35_spill] sm:$0xff] %v9696_v1  ;;  %7710 = vmatmul.msk.bf16.gmra.mxu0 %vm1086_vm0, %v9701_v24  ;;  %7718 = vmatmul.msk.bf16.gmra.mxu1 %vm1086_vm0, %v9701_v24 }
 0x1f5   : > { %7726 = vmatmul.msk.bf16.gmra.mxu2 %vm1086_vm0, %v9701_v24 }
 0x1f6   : > { %7734 = vmatmul.msk.bf16.gmra.mxu3 %vm1086_vm0, %v9701_v24 }
 0x1f8   : > { %v9711_v26 = vpop.f32.mrf.mxu2 }
 0x1f9   : > { %13794 = vst [vmem:[#allocation36_spill] sm:$0xff] %v9711_v26  ;;  %v9713_v59 = vpop.f32.mrf.mxu3  ;;  %v9715_v35 = vpop.f32.mrf.mxu0 }
 0x1fa   : > { %13795 = vst [vmem:[#allocation37_spill] sm:$0xff] %v9713_v59  ;;  %v9717_v18 = vpop.f32.mrf.mxu1 }
 0x1fb   : > { %13796 = vst [vmem:[#allocation38_spill] sm:$0xff] %v9715_v35 }
 0x1fc   : > { %13797 = vst [vmem:[#allocation39_spill] sm:$0xff] %v9717_v18 }
 0x200   : > { %v9719_v14 = vpop.f32.mrf.mxu2 }
 0x201   : > { %13798 = vst [vmem:[#allocation40_spill] sm:$0xff] %v9719_v14  ;;  %v9721_v53 = vpop.f32.mrf.mxu3  ;;  %v9723_v13 = vpop.f32.mrf.mxu0 }
 0x202   : > { %13799 = vst [vmem:[#allocation41_spill] sm:$0xff] %v9721_v53  ;;  %v9725_v1 = vpop.f32.mrf.mxu1 }
 0x203   : > { %13800 = vst [vmem:[#allocation42_spill] sm:$0xff] %v9723_v13 }
 0x204   : > { %13801 = vst [vmem:[#allocation43_spill] sm:$0xff] %v9725_v1  ;;  %7711 = vmatmul.msk.bf16.gmra.mxu0 %vm1086_vm0, %v9730_v12  ;;  %7719 = vmatmul.msk.bf16.gmra.mxu1 %vm1086_vm0, %v9730_v12 }
 0x205   : > { %7727 = vmatmul.msk.bf16.gmra.mxu2 %vm1086_vm0, %v9730_v12 }
 0x206   : > { %7735 = vmatmul.msk.bf16.gmra.mxu3 %vm1086_vm0, %v9730_v12 }
 0x208   : > { %v9740_v59 = vpop.f32.mrf.mxu2 }
 0x209   : > { %13802 = vst [vmem:[#allocation44_spill] sm:$0xff] %v9740_v59  ;;  %v9742_v53 = vpop.f32.mrf.mxu3  ;;  %v9744_v14 = vpop.f32.mrf.mxu0 }
 0x20a   : > { %13803 = vst [vmem:[#allocation45_spill] sm:$0xff] %v9742_v53  ;;  %v9746_v26 = vpop.f32.mrf.mxu1 }
 0x20b   : > { %13804 = vst [vmem:[#allocation46_spill] sm:$0xff] %v9744_v14 }
 0x20c   : > { %13805 = vst [vmem:[#allocation47_spill] sm:$0xff] %v9746_v26 }
 0x210   : > { %v9748_v1 = vpop.f32.mrf.mxu2 }
 0x211   : > { %13806 = vst [vmem:[#allocation48_spill] sm:$0xff] %v9748_v1  ;;  %v9750_v13 = vpop.f32.mrf.mxu3  ;;  %v9752_v18 = vpop.f32.mrf.mxu0 }
 0x212   : > { %13807 = vst [vmem:[#allocation49_spill] sm:$0xff] %v9750_v13  ;;  %v9754_v35 = vpop.f32.mrf.mxu1 }
 0x213   : > { %13808 = vst [vmem:[#allocation50_spill] sm:$0xff] %v9752_v18 }
 0x214   : > { %13809 = vst [vmem:[#allocation51_spill] sm:$0xff] %v9754_v35  ;;  %7712 = vmatmul.msk.bf16.gmra.mxu0 %vm1086_vm0, %v9759_v56  ;;  %7720 = vmatmul.msk.bf16.gmra.mxu1 %vm1086_vm0, %v9759_v56 }
 0x215   : > { %7728 = vmatmul.msk.bf16.gmra.mxu2 %vm1086_vm0, %v9759_v56 }
 0x216   : > { %7736 = vmatmul.msk.bf16.gmra.mxu3 %vm1086_vm0, %v9759_v56 }
 0x218   : > { %v9769_v53 = vpop.f32.mrf.mxu2 }
 0x219   : > { %13810 = vst [vmem:[#allocation52_spill] sm:$0xff] %v9769_v53  ;;  %v9771_v13 = vpop.f32.mrf.mxu3  ;;  %v9773_v59 = vpop.f32.mrf.mxu0 }
 0x21a   : > { %13811 = vst [vmem:[#allocation53_spill] sm:$0xff] %v9771_v13  ;;  %v9775_v1 = vpop.f32.mrf.mxu1 }
 0x21b   : > { %13812 = vst [vmem:[#allocation54_spill] sm:$0xff] %v9773_v59 }
 0x21c   : > { %13813 = vst [vmem:[#allocation55_spill] sm:$0xff] %v9775_v1 }
 0x220   : > { %v9777_v26 = vpop.f32.mrf.mxu2 }
 0x221   : > { %13814 = vst [vmem:[#allocation56_spill] sm:$0xff] %v9777_v26  ;;  %v9779_v14 = vpop.f32.mrf.mxu3  ;;  %v1512_v35 = vpop.f32.mrf.mxu0 }
 0x222   : > { %13815 = vst [vmem:[#allocation57_spill] sm:$0xff] %v9779_v14  ;;  %v1561_v18 = vpop.f32.mrf.mxu1  ;;  %v1951_v13 = vadd.f32 %v9157_v15, %v1512_v35 }
 0x223   : > { %v1952_v14 = vadd.f32 %v9157_v15, %v1561_v18 }
 0x224   : > { %7737 = vmatmul.msk.bf16.vlgmr.msrb.gmra.mxu0 %vm1086_vm0, %v9507_v50  ;;  %7745 = vmatmul.msk.bf16.vlgmr.msrb.gmra.mxu1 %vm1086_vm0, %v9507_v50  ;;  %v2079_v59 = vmax.f32 %v1951_v13, 0.0 }
 0x225   : > { %7753 = vmatmul.msk.bf16.vlgmr.msrb.gmra.mxu2 %vm1086_vm0, %v9507_v50  ;;  %2472 = vmatpush.bf16.msrb.mxu0 %v9654_v48  ;;  %v2080_v51 = vmax.f32 %v1952_v14, 0.0 }
 0x226   : > { %7761 = vmatmul.msk.bf16.vlgmr.msrb.gmra.mxu3 %vm1086_vm0, %v9507_v50  ;;  %2501 = vmatpush.bf16.msrb.mxu1 %v9657_v20 }
 0x227   : > { %2530 = vmatpush.bf16.msrb.mxu2 %v2261_v11  ;;  %2559 = vmatpush.bf16.msrb.mxu3 %v2262_v54 }
 0x228   : > { %v1610_v26 = vpop.f32.mrf.mxu2 }
 0x229   : > { %v1659_v53 = vpop.f32.mrf.mxu3  ;;  %v1514_v1 = vpop.f32.mrf.mxu0  ;;  %2473 = vmatpush.bf16.msrb.mxu0 %v9619_v21  ;;  %v1953_v21 = vadd.f32 %v9157_v15, %v1610_v26 }
 0x22a   : > { %v1967_v39 = vadd.f32 %v9162_v17, %v1514_v1  ;;  %v1563_v35 = vpop.f32.mrf.mxu1  ;;  %2502 = vmatpush.bf16.msrb.mxu1 %v9622_v23  ;;  %v1954_v23 = vadd.f32 %v9157_v15, %v1659_v53 }
 0x22b   : > { %2531 = vmatpush.bf16.msrb.mxu2 %v9641_v42  ;;  %v1968_v50 = vadd.f32 %v9162_v17, %v1563_v35  ;;  %2560 = vmatpush.bf16.msrb.mxu3 %v9646_v60  ;;  %v2081_v13 = vmax.f32 %v1953_v21, 0.0 }
 0x22c   : > { %v2095_v48 = vmax.f32 %v1967_v39, 0.0 }
 0x22d   : > { %v2096_v20 = vmax.f32 %v1968_v50, 0.0  ;;  %2474 = vmatpush.bf16.msrb.mxu0 %v9581_v10 }
 0x22e   : > { %v9800_v11 = vpack.c.bf16 %v2095_v48, %v2079_v59  ;;  %2503 = vmatpush.bf16.msrb.mxu1 %v9587_v27 }
 0x22f   : > { %2532 = vmatpush.bf16.msrb.mxu2 %v9603_v38  ;;  %v9805_v54 = vpack.c.bf16 %v2096_v20, %v2080_v51  ;;  %2561 = vmatpush.bf16.msrb.mxu3 %v9611_v52  ;;  %v2082_v38 = vmax.f32 %v1954_v23, 0.0 }
 0x230   : > { %v1612_v42 = vpop.f32.mrf.mxu2 }
 0x231   : > { %v1969_v60 = vadd.f32 %v9162_v17, %v1612_v42  ;;  %v1661_v39 = vpop.f32.mrf.mxu3  ;;  %v1517_v14 = vpop.f32.mrf.mxu0  ;;  %2475 = vmatpush.bf16.msrb.mxu0 %v9539_v19 }
 0x232   : > { %v1970_v10 = vadd.f32 %v9162_v17, %v1661_v39  ;;  %v1566_v18 = vpop.f32.mrf.mxu1  ;;  %2504 = vmatpush.bf16.msrb.mxu1 %v9547_v45  ;;  %v1983_v52 = vadd.f32 %v9169_v31, %v1517_v14 }
 0x233   : > { %v2097_v27 = vmax.f32 %v1969_v60, 0.0  ;;  %2533 = vmatpush.bf16.msrb.mxu2 %v9571_v41  ;;  %2562 = vmatpush.bf16.msrb.mxu3 %v9576_v5  ;;  %v1984_v41 = vadd.f32 %v9169_v31, %v1566_v18 }
 0x234   : > { %v2098_v51 = vmax.f32 %v1970_v10, 0.0  ;;  %7738 = vmatmul.msk.bf16.gmra.mxu0 %vm1086_vm0, %v9560_v57  ;;  %7746 = vmatmul.msk.bf16.gmra.mxu1 %vm1086_vm0, %v9560_v57  ;;  %v2111_v26 = vmax.f32 %v1983_v52, 0.0 }
 0x235   : > { %7754 = vmatmul.msk.bf16.gmra.mxu2 %vm1086_vm0, %v9560_v57  ;;  %v9821_v19 = vpack.c.bf16 %v2097_v27, %v2081_v13  ;;  %v2112_v50 = vmax.f32 %v1984_v41, 0.0 }
 0x236   : > { %7762 = vmatmul.msk.bf16.gmra.mxu3 %vm1086_vm0, %v9560_v57  ;;  %v9826_v45 = vpack.c.bf16 %v2098_v51, %v2082_v38 }
 0x238   : > { %v1615_v5 = vpop.f32.mrf.mxu2 }
 0x239   : > { %v1664_v53 = vpop.f32.mrf.mxu3  ;;  %v1519_v1 = vpop.f32.mrf.mxu0  ;;  %v1985_v57 = vadd.f32 %v9169_v31, %v1615_v5 }
 0x23a   : > { %v1999_v59 = vadd.f32 %v9204_v6, %v1519_v1  ;;  %v1568_v35 = vpop.f32.mrf.mxu1  ;;  %v1986_v60 = vadd.f32 %v9169_v31, %v1664_v53 }
 0x23b   : > { %v2000_v48 = vadd.f32 %v9204_v6, %v1568_v35  ;;  %v2113_v38 = vmax.f32 %v1985_v57, 0.0 }
 0x23c   : > { %v2127_v20 = vmax.f32 %v1999_v59, 0.0  ;;  %v2114_v52 = vmax.f32 %v1986_v60, 0.0 }
 0x23d   : > { %v2128_v21 = vmax.f32 %v2000_v48, 0.0 }
 0x23e   : > { %v9831_v23 = vpack.c.bf16 %v2127_v20, %v2111_v26 }
 0x23f   : > { %v9834_v42 = vpack.c.bf16 %v2128_v21, %v2112_v50 }
 0x240   : > { %v1617_v39 = vpop.f32.mrf.mxu2 }
 0x241   : > { %v2001_v14 = vadd.f32 %v9204_v6, %v1617_v39  ;;  %v1666_v10 = vpop.f32.mrf.mxu3  ;;  %v1522_v18 = vpop.f32.mrf.mxu0 }
 0x242   : > { %v2002_v13 = vadd.f32 %v9204_v6, %v1666_v10  ;;  %v1571_v27 = vpop.f32.mrf.mxu1  ;;  %v2015_v53 = vadd.f32 %v9133_v3, %v1522_v18 }
 0x243   : > { %v2129_v51 = vmax.f32 %v2001_v14, 0.0  ;;  %v2016_v26 = vadd.f32 %v9133_v3, %v1571_v27 }
 0x244   : > { %v2130_v41 = vmax.f32 %v2002_v13, 0.0  ;;  %7739 = vmatmul.msk.bf16.gmra.mxu0 %vm1086_vm0, %v9595_v46  ;;  %7747 = vmatmul.msk.bf16.gmra.mxu1 %vm1086_vm0, %v9595_v46  ;;  %v2143_v48 = vmax.f32 %v2015_v53, 0.0 }
 0x245   : > { %7755 = vmatmul.msk.bf16.gmra.mxu2 %vm1086_vm0, %v9595_v46  ;;  %v9845_v5 = vpack.c.bf16 %v2129_v51, %v2113_v38  ;;  %v2144_v57 = vmax.f32 %v2016_v26, 0.0 }
 0x246   : > { %7763 = vmatmul.msk.bf16.gmra.mxu3 %vm1086_vm0, %v9595_v46  ;;  %v9850_v1 = vpack.c.bf16 %v2130_v41, %v2114_v52 }
 0x248   : > { %v1620_v59 = vpop.f32.mrf.mxu2 }
 0x249   : > { %v1669_v35 = vpop.f32.mrf.mxu3  ;;  %v1524_v50 = vpop.f32.mrf.mxu0  ;;  %v2017_v46 = vadd.f32 %v9133_v3, %v1620_v59 }
 0x24a   : > { %v2031_v20 = vadd.f32 %v9148_v8, %v1524_v50  ;;  %v1573_v21 = vpop.f32.mrf.mxu1  ;;  %v2018_v13 = vadd.f32 %v9133_v3, %v1669_v35 }
 0x24b   : > { %v2032_v60 = vadd.f32 %v9148_v8, %v1573_v21  ;;  %v2145_v26 = vmax.f32 %v2017_v46, 0.0 }
 0x24c   : > { %v2159_v39 = vmax.f32 %v2031_v20, 0.0  ;;  %v2146_v20 = vmax.f32 %v2018_v13, 0.0 }
 0x24d   : > { %v2160_v14 = vmax.f32 %v2032_v60, 0.0 }
 0x24e   : > { %v9855_v10 = vpack.c.bf16 %v2159_v39, %v2143_v48 }
 0x24f   : > { %v9858_v18 = vpack.c.bf16 %v2160_v14, %v2144_v57 }
 0x250   : > { %v1622_v27 = vpop.f32.mrf.mxu2 }
 0x251   : > { %v2033_v38 = vadd.f32 %v9148_v8, %v1622_v27  ;;  %v1671_v51 = vpop.f32.mrf.mxu3  ;;  %v1527_v52 = vpop.f32.mrf.mxu0 }
 0x252   : > { %v2034_v41 = vadd.f32 %v9148_v8, %v1671_v51  ;;  %v1576_v53 = vpop.f32.mrf.mxu1  ;;  %v2047_v35 = vadd.f32 %v9131_v2, %v1527_v52 }
 0x253   : > { %v2161_v50 = vmax.f32 %v2033_v38, 0.0  ;;  %v2048_v57 = vadd.f32 %v9131_v2, %v1576_v53 }
 0x254   : > { %v2162_v21 = vmax.f32 %v2034_v41, 0.0  ;;  %7740 = vmatmul.msk.bf16.gmra.mxu0 %vm1086_vm0, %v9630_v61  ;;  %7748 = vmatmul.msk.bf16.gmra.mxu1 %vm1086_vm0, %v9630_v61  ;;  %v2175_v46 = vmax.f32 %v2047_v35, 0.0 }
 0x255   : > { %7756 = vmatmul.msk.bf16.gmra.mxu2 %vm1086_vm0, %v9630_v61  ;;  %v9869_v59 = vpack.c.bf16 %v2161_v50, %v2145_v26  ;;  %v2176_v38 = vmax.f32 %v2048_v57, 0.0 }
 0x256   : > { %7764 = vmatmul.msk.bf16.gmra.mxu3 %vm1086_vm0, %v9630_v61  ;;  %v9874_v48 = vpack.c.bf16 %v2162_v21, %v2146_v20 }
 0x258   : > { %v1625_v60 = vpop.f32.mrf.mxu2 }
 0x259   : > { %v1674_v39 = vpop.f32.mrf.mxu3  ;;  %v1529_v14 = vpop.f32.mrf.mxu0  ;;  %v2049_v61 = vadd.f32 %v9131_v2, %v1625_v60 }
 0x25a   : > { %v2063_v13 = vadd.f32 %v9143_v4, %v1529_v14  ;;  %v1578_v27 = vpop.f32.mrf.mxu1  ;;  %v2050_v53 = vadd.f32 %v9131_v2, %v1674_v39 }
 0x25b   : > { %v2064_v51 = vadd.f32 %v9143_v4, %v1578_v27 }
 0x25c   : > { %v2191_v41 = vmax.f32 %v2063_v13, 0.0  ;;  %v2177_v13 = vmax.f32 %v2049_v61, 0.0 }
 0x25d   : > { %v2192_v26 = vmax.f32 %v2064_v51, 0.0 }
 0x25e   : > { %v9879_v52 = vpack.c.bf16 %v2191_v41, %v2175_v46  ;;  %v2178_v46 = vmax.f32 %v2050_v53, 0.0 }
 0x25f   : > { %v9882_v50 = vpack.c.bf16 %v2192_v26, %v2176_v38 }
 0x260   : > { %v1627_v20 = vpop.f32.mrf.mxu2 }
 0x261   : > { %v2065_v21 = vadd.f32 %v9143_v4, %v1627_v20  ;;  %v1676_v35 = vpop.f32.mrf.mxu3  ;;  %v9886_v47 = vpop.f32.mrf.mxu0 }
 0x262   : > { %13816 = vst [vmem:[#allocation58_spill] sm:$0xff] %v9886_v47  ;;  %v2066_v57 = vadd.f32 %v9143_v4, %v1676_v35  ;;  %v9889_v14 = vpop.f32.mrf.mxu1 }
 0x263   : > { %13817 = vst [vmem:[#allocation59_spill] sm:$0xff] %v9889_v14  ;;  %v2193_v27 = vmax.f32 %v2065_v21, 0.0 }
 0x264   : > { %v2194_v51 = vmax.f32 %v2066_v57, 0.0  ;;  %7741 = vmatmul.msk.bf16.gmra.mxu0 %vm1086_vm0, %v9669_v33  ;;  %7749 = vmatmul.msk.bf16.gmra.mxu1 %vm1086_vm0, %v9669_v33 }
 0x265   : > { %v2265_v60 = vpack.c.bf16 %v2193_v27, %v2177_v13  ;;  %7757 = vmatmul.msk.bf16.gmra.mxu2 %vm1086_vm0, %v9669_v33 }
 0x266   : > { %v2266_v39 = vpack.c.bf16 %v2194_v51, %v2178_v46  ;;  %7765 = vmatmul.msk.bf16.gmra.mxu3 %vm1086_vm0, %v9669_v33 }
 0x268   : > { %v9899_v38 = vpop.f32.mrf.mxu2 }
 0x269   : > { %13818 = vst [vmem:[#allocation60_spill] sm:$0xff] %v9899_v38  ;;  %v9901_v41 = vpop.f32.mrf.mxu3  ;;  %v9903_v26 = vpop.f32.mrf.mxu0 }
 0x26a   : > { %13819 = vst [vmem:[#allocation61_spill] sm:$0xff] %v9901_v41  ;;  %v9905_v61 = vpop.f32.mrf.mxu1 }
 0x26b   : > { %13820 = vst [vmem:[#allocation62_spill] sm:$0xff] %v9903_v26 }
 0x26c   : > { %13821 = vst [vmem:[#allocation63_spill] sm:$0xff] %v9905_v61 }
 0x270   : > { %v9907_v53 = vpop.f32.mrf.mxu2 }
 0x271   : > { %13822 = vst [vmem:[#allocation64_spill] sm:$0xff] %v9907_v53  ;;  %v9909_v20 = vpop.f32.mrf.mxu3  ;;  %v9911_v21 = vpop.f32.mrf.mxu0 }
 0x272   : > { %13823 = vst [vmem:[#allocation65_spill] sm:$0xff] %v9909_v20  ;;  %v9913_v35 = vpop.f32.mrf.mxu1 }
 0x273   : > { %13824 = vst [vmem:[#allocation66_spill] sm:$0xff] %v9911_v21 }
 0x274   : > { %13825 = vst [vmem:[#allocation67_spill] sm:$0xff] %v9913_v35  ;;  %7742 = vmatmul.msk.bf16.gmra.mxu0 %vm1086_vm0, %v9701_v24  ;;  %7750 = vmatmul.msk.bf16.gmra.mxu1 %vm1086_vm0, %v9701_v24 }
 0x275   : > { %7758 = vmatmul.msk.bf16.gmra.mxu2 %vm1086_vm0, %v9701_v24 }
 0x276   : > { %7766 = vmatmul.msk.bf16.gmra.mxu3 %vm1086_vm0, %v9701_v24 }
 0x278   : > { %v9923_v33 = vpop.f32.mrf.mxu2 }
 0x279   : > { %13826 = vst [vmem:[#allocation68_spill] sm:$0xff] %v9923_v33  ;;  %v9925_v57 = vpop.f32.mrf.mxu3  ;;  %v9927_v13 = vpop.f32.mrf.mxu0 }
 0x27a   : > { %13827 = vst [vmem:[#allocation69_spill] sm:$0xff] %v9925_v57  ;;  %v9929_v27 = vpop.f32.mrf.mxu1 }
 0x27b   : > { %13828 = vst [vmem:[#allocation70_spill] sm:$0xff] %v9927_v13 }
 0x27c   : > { %13829 = vst [vmem:[#allocation71_spill] sm:$0xff] %v9929_v27 }
 0x280   : > { %v9931_v46 = vpop.f32.mrf.mxu2 }
 0x281   : > { %13830 = vst [vmem:[#allocation72_spill] sm:$0xff] %v9931_v46  ;;  %v9933_v51 = vpop.f32.mrf.mxu3  ;;  %v9935_v41 = vpop.f32.mrf.mxu0 }
 0x282   : > { %13831 = vst [vmem:[#allocation73_spill] sm:$0xff] %v9933_v51  ;;  %v9937_v38 = vpop.f32.mrf.mxu1 }
 0x283   : > { %13832 = vst [vmem:[#allocation74_spill] sm:$0xff] %v9935_v41 }
 0x284   : > { %13833 = vst [vmem:[#allocation75_spill] sm:$0xff] %v9937_v38  ;;  %7743 = vmatmul.msk.bf16.gmra.mxu0 %vm1086_vm0, %v9730_v12  ;;  %7751 = vmatmul.msk.bf16.gmra.mxu1 %vm1086_vm0, %v9730_v12 }
 0x285   : > { %7759 = vmatmul.msk.bf16.gmra.mxu2 %vm1086_vm0, %v9730_v12 }
 0x286   : > { %7767 = vmatmul.msk.bf16.gmra.mxu3 %vm1086_vm0, %v9730_v12 }
 0x288   : > { %v9947_v24 = vpop.f32.mrf.mxu2 }
 0x289   : > { %13834 = vst [vmem:[#allocation76_spill] sm:$0xff] %v9947_v24  ;;  %v9949_v20 = vpop.f32.mrf.mxu3  ;;  %v9951_v57 = vpop.f32.mrf.mxu0 }
 0x28a   : > { %13835 = vst [vmem:[#allocation77_spill] sm:$0xff] %v9949_v20  ;;  %v9953_v51 = vpop.f32.mrf.mxu1 }
 0x28b   : > { %13836 = vst [vmem:[#allocation78_spill] sm:$0xff] %v9951_v57 }
 0x28c   : > { %13837 = vst [vmem:[#allocation79_spill] sm:$0xff] %v9953_v51  ;;  %v9984_v51 = vld [vmem:[%s13685_s3] sm:$0xff] }
 0x290   : > { %v9955_v46 = vpop.f32.mrf.mxu2 }
 0x291   : > { %13838 = vst [vmem:[#allocation80_spill] sm:$0xff] %v9955_v46  ;;  %v9957_v33 = vpop.f32.mrf.mxu3  ;;  %v9959_v38 = vpop.f32.mrf.mxu0 }
 0x292   : > { %13839 = vst [vmem:[#allocation81_spill] sm:$0xff] %v9957_v33  ;;  %v9961_v41 = vpop.f32.mrf.mxu1 }
 0x293   : > { %13840 = vst [vmem:[#allocation82_spill] sm:$0xff] %v9959_v38 }
 0x294   : > { %13841 = vst [vmem:[#allocation83_spill] sm:$0xff] %v9961_v41  ;;  %7744 = vmatmul.msk.bf16.gmra.mxu0 %vm1086_vm0, %v9759_v56  ;;  %7752 = vmatmul.msk.bf16.gmra.mxu1 %vm1086_vm0, %v9759_v56 }
 0x295   : > { %7760 = vmatmul.msk.bf16.gmra.mxu2 %vm1086_vm0, %v9759_v56 }
 0x296   : > { %7768 = vmatmul.msk.bf16.gmra.mxu3 %vm1086_vm0, %v9759_v56 }
 0x298   : > { %v9971_v12 = vpop.f32.mrf.mxu2 }
 0x299   : > { %13842 = vst [vmem:[#allocation84_spill] sm:$0xff] %v9971_v12  ;;  %v9973_v20 = vpop.f32.mrf.mxu3  ;;  %v9975_v33 = vpop.f32.mrf.mxu0 }
 0x29a   : > { %13843 = vst [vmem:[#allocation85_spill] sm:$0xff] %v9973_v20  ;;  %v9977_v24 = vpop.f32.mrf.mxu1 }
 0x29b   : > { %13844 = vst [vmem:[#allocation86_spill] sm:$0xff] %v9975_v33 }
 0x29c   : > { %13845 = vst [vmem:[#allocation87_spill] sm:$0xff] %v9977_v24 }
 0x2a0   : > { %v9979_v46 = vpop.f32.mrf.mxu2 }
 0x2a1   : > { %13846 = vst [vmem:[#allocation88_spill] sm:$0xff] %v9979_v46  ;;  %v9986_v53 = vpop.f32.mrf.mxu3  ;;  %v1708_v57 = vpop.f32.mrf.mxu0 }
 0x2a2   : > { %13847 = vst [vmem:[#allocation89_spill] sm:$0xff] %v9986_v53  ;;  %v1757_v56 = vpop.f32.mrf.mxu1  ;;  %v1955_v53 = vadd.f32 %v9157_v15, %v1708_v57 }
 0x2a3   : > { %v1956_v20 = vadd.f32 %v9157_v15, %v1757_v56 }
 0x2a4   : > { %7785 = vmatmul.msk.bf16.vlgmr.msra.gmra.mxu0 %vm2339_vm1, %v9984_v51  ;;  %7789 = vmatmul.msk.bf16.vlgmr.msra.gmra.mxu1 %vm2339_vm1, %v9984_v51 }
 0x2a5   : > { %7793 = vmatmul.msk.bf16.vlgmr.msra.gmra.mxu2 %vm2339_vm1, %v9984_v51  ;;  %2588 = vmatpush.bf16.msra.mxu0 %v9879_v52 }
 0x2a6   : > { %7797 = vmatmul.msk.bf16.vlgmr.msra.gmra.mxu3 %vm2339_vm1, %v9984_v51  ;;  %2617 = vmatpush.bf16.msra.mxu1 %v9882_v50  ;;  %v2083_v50 = vmax.f32 %v1955_v53, 0.0 }
 0x2a7   : > { %2646 = vmatpush.bf16.msra.mxu2 %v2265_v60  ;;  %2675 = vmatpush.bf16.msra.mxu3 %v2266_v39  ;;  %v2084_v39 = vmax.f32 %v1956_v20, 0.0 }
 0x2a8   : > { %v9999_v46 = vpop.f32.mrf.mxu2 }
 0x2a9   : > { %v10002_v12 = vpop.f32.mrf.mxu3  ;;  %v1710_v24 = vpop.f32.mrf.mxu0  ;;  %2589 = vmatpush.bf16.msra.mxu0 %v9855_v10 }
 0x2aa   : > { %v1971_v33 = vadd.f32 %v9162_v17, %v1710_v24  ;;  %v1759_v41 = vpop.f32.mrf.mxu1  ;;  %2618 = vmatpush.bf16.msra.mxu1 %v9858_v18 }
 0x2ab   : > { %2647 = vmatpush.bf16.msra.mxu2 %v9869_v59  ;;  %v1972_v52 = vadd.f32 %v9162_v17, %v1759_v41  ;;  %2676 = vmatpush.bf16.msra.mxu3 %v9874_v48  ;;  %v10021_v59 = vld [vmem:[%s13685_s3 + $0x8] sm:$0xff] }
 0x2ac   : > { %v2099_v60 = vmax.f32 %v1971_v33, 0.0 }
 0x2ad   : > { %v2100_v57 = vmax.f32 %v1972_v52, 0.0  ;;  %2590 = vmatpush.bf16.msra.mxu0 %v9831_v23 }
 0x2ae   : > { %v10011_v56 = vpack.c.bf16 %v2099_v60, %v2083_v50  ;;  %2619 = vmatpush.bf16.msra.mxu1 %v9834_v42 }
 0x2af   : > { %2648 = vmatpush.bf16.msra.mxu2 %v9845_v5  ;;  %v10015_v10 = vpack.c.bf16 %v2100_v57, %v2084_v39  ;;  %2677 = vmatpush.bf16.msra.mxu3 %v9850_v1  ;;  %v10061_v39 = vld [vmem:[%s13685_s3 + $0x18] sm:$0xff] }
 0x2b0   : > { %v1808_v18 = vpop.f32.mrf.mxu2 }
 0x2b1   : > { %v10023_v48 = vpop.f32.mrf.mxu3  ;;  %v1713_v41 = vpop.f32.mrf.mxu0  ;;  %2591 = vmatpush.bf16.msra.mxu0 %v9800_v11  ;;  %v10073_v61 = vadd.f32 %v9162_v17, %v1808_v18 }
 0x2b2   : > { %v10026_v23 = vpop.f32.mrf.mxu1  ;;  %2620 = vmatpush.bf16.msra.mxu1 %v9805_v54  ;;  %v10077_v37 = vadd.f32 %v9169_v31, %v1713_v41 }
 0x2b3   : > { %2649 = vmatpush.bf16.msra.mxu2 %v9821_v19  ;;  %2678 = vmatpush.bf16.msra.mxu3 %v9826_v45  ;;  %v10046_v45 = vld [vmem:[%s13685_s3 + $0x10] sm:$0xff] }
 0x2b4   : > { %7786 = vmatmul.msk.bf16.gmra.mxu0 %vm2339_vm1, %v10021_v59  ;;  %7790 = vmatmul.msk.bf16.gmra.mxu1 %vm2339_vm1, %v10021_v59 }
 0x2b5   : > { %7794 = vmatmul.msk.bf16.gmra.mxu2 %vm2339_vm1, %v10021_v59 }
 0x2b6   : > { %7798 = vmatmul.msk.bf16.gmra.mxu3 %vm2339_vm1, %v10021_v59 }
 0x2b8   : > { %v10039_v11 = vpop.f32.mrf.mxu2 }
 0x2b9   : > { %v10041_v42 = vpop.f32.mrf.mxu3  ;;  %v1715_v54 = vpop.f32.mrf.mxu0 }
 0x2ba   : > { %v1764_v19 = vpop.f32.mrf.mxu1  ;;  %v10080_v43 = vadd.f32 %v9204_v6, %v1715_v54 }
 0x2bb   : > { %v10083_v22 = vadd.f32 %v9204_v6, %v1764_v19 }
 0x2c0   : > { %v1813_v5 = vpop.f32.mrf.mxu2 }
 0x2c1   : > { %v10048_v1 = vpop.f32.mrf.mxu3  ;;  %v1718_v53 = vpop.f32.mrf.mxu0  ;;  %v10087_v9 = vadd.f32 %v9204_v6, %v1813_v5 }
 0x2c2   : > { %v1767_v20 = vpop.f32.mrf.mxu1 }
 0x2c3   : > { %v2020_v41 = vadd.f32 %v9133_v3, %v1767_v20 }
 0x2c4   : > { %7787 = vmatmul.msk.bf16.gmra.mxu0 %vm2339_vm1, %v10046_v45  ;;  %7791 = vmatmul.msk.bf16.gmra.mxu1 %vm2339_vm1, %v10046_v45 }
 0x2c5   : > { %7795 = vmatmul.msk.bf16.gmra.mxu2 %vm2339_vm1, %v10046_v45 }
 0x2c6   : > { %7799 = vmatmul.msk.bf16.gmra.mxu3 %vm2339_vm1, %v10046_v45 }
 0x2c8   : > { %v1816_v33 = vpop.f32.mrf.mxu2 }
 0x2c9   : > { %v1865_v24 = vpop.f32.mrf.mxu3  ;;  %v1720_v52 = vpop.f32.mrf.mxu0 }
 0x2ca   : > { %v1769_v50 = vpop.f32.mrf.mxu1  ;;  %v2035_v40 = vadd.f32 %v9148_v8, %v1720_v52 }
 0x2cb   : > { %v2036_v32 = vadd.f32 %v9148_v8, %v1769_v50 }
 0x2d0   : > { %v1818_v60 = vpop.f32.mrf.mxu2 }
 0x2d1   : > { %v1867_v57 = vpop.f32.mrf.mxu3  ;;  %v1723_v38 = vpop.f32.mrf.mxu0 }
 0x2d2   : > { %v1772_v35 = vpop.f32.mrf.mxu1  ;;  %v2051_v0 = vadd.f32 %v9131_v2, %v1723_v38  ;;  %v2037_v38 = vadd.f32 %v9148_v8, %v1818_v60 }
 0x2d3   : > { %v2052_v18 = vadd.f32 %v9131_v2, %v1772_v35  ;;  %v2021_v35 = vadd.f32 %v9133_v3, %v1816_v33  ;;  %v2164_v33 = vmax.f32 %v2036_v32, 0.0  ;;  %v1988_v32 = vadd.f32 %v9169_v31, %v10026_v23 }
 0x2d4   : > { %7788 = vmatmul.msk.bf16.gmra.mxu0 %vm2339_vm1, %v10061_v39  ;;  %7792 = vmatmul.msk.bf16.gmra.mxu1 %vm2339_vm1, %v10061_v39  ;;  %v2179_v20 = vmax.f32 %v2051_v0, 0.0  ;;  %v2133_v23 = vmax.f32 %v10087_v9, 0.0 }
 0x2d5   : > { %7796 = vmatmul.msk.bf16.gmra.mxu2 %vm2339_vm1, %v10061_v39  ;;  %v2116_v9 = vmax.f32 %v1988_v32, 0.0 }
 0x2d6   : > { %7800 = vmatmul.msk.bf16.gmra.mxu3 %vm2339_vm1, %v10061_v39 }
 0x2d8   : > { %v1821_v27 = vpop.f32.mrf.mxu2 }
 0x2d9   : > { %v1870_v13 = vpop.f32.mrf.mxu3  ;;  %v1725_v14 = vpop.f32.mrf.mxu0 }
 0x2da   : > { %v1774_v21 = vpop.f32.mrf.mxu1  ;;  %v2067_v47 = vadd.f32 %v9143_v4, %v1725_v14  ;;  %v2019_v14 = vadd.f32 %v9133_v3, %v1718_v53  ;;  %v2054_v54 = vadd.f32 %v9131_v2, %v1870_v13  ;;  %v2180_v13 = vmax.f32 %v2052_v18, 0.0 }
 0x2db   : > { %v2068_v26 = vadd.f32 %v9143_v4, %v1774_v21  ;;  %v2053_v21 = vadd.f32 %v9131_v2, %v1821_v27  ;;  %v2038_v27 = vadd.f32 %v9148_v8, %v1867_v57  ;;  %v2149_v57 = vmax.f32 %v2021_v35, 0.0 }
 0x2dc   : > { %v2195_v63 = vmax.f32 %v2067_v47, 0.0  ;;  %v2022_v47 = vadd.f32 %v9133_v3, %v1865_v24  ;;  %v2182_v34 = vmax.f32 %v2054_v54, 0.0  ;;  %v2006_v3 = vadd.f32 %v9204_v6, %v10048_v1 }
 0x2dd   : > { %v2196_v5 = vmax.f32 %v2068_v26, 0.0  ;;  %v2181_v50 = vmax.f32 %v2053_v21, 0.0  ;;  %v2163_v26 = vmax.f32 %v2035_v40, 0.0  ;;  %v2166_v40 = vmax.f32 %v2038_v27, 0.0 }
 0x2de   : > { %v2148_v24 = vmax.f32 %v2020_v41, 0.0  ;;  %v1990_v6 = vadd.f32 %v9169_v31, %v10041_v42  ;;  %v2131_v1 = vmax.f32 %v10080_v43, 0.0  ;;  %v2132_v18 = vmax.f32 %v10083_v22, 0.0 }
 0x2df   : > { %v2268_v8 = vpack.c.bf16 %v2196_v5, %v2180_v13  ;;  %v2115_v43 = vmax.f32 %v10077_v37, 0.0  ;;  %v2134_v42 = vmax.f32 %v2006_v3, 0.0  ;;  %v1957_v22 = vadd.f32 %v9157_v15, %v9999_v46 }
 0x2e0   : > { %v1823_v19 = vpop.f32.mrf.mxu2  ;;  %v2118_v35 = vmax.f32 %v1990_v6, 0.0  ;;  %v2101_v37 = vmax.f32 %v10073_v61, 0.0 }
 0x2e1   : > { %v2069_v44 = vadd.f32 %v9143_v4, %v1823_v19  ;;  %v1872_v53 = vpop.f32.mrf.mxu3  ;;  %v10098_v58 = vpop.f32.mrf.mxu0  ;;  %v2267_v19 = vpack.c.bf16 %v2195_v63, %v2179_v20  ;;  %v1989_v63 = vadd.f32 %v9169_v31, %v10039_v11  ;;  %v2252_v11 = vpack.c.bf16 %v2164_v33, %v2148_v24 }
 0x2e2   : > { %13848 = vst [vmem:[#allocation90_spill] sm:$0xff] %v10098_v58  ;;  %v2070_v52 = vadd.f32 %v9143_v4, %v1872_v53  ;;  %v10103_v2 = vpop.f32.mrf.mxu1  ;;  %v2165_v58 = vmax.f32 %v2037_v38, 0.0  ;;  %v2147_v4 = vmax.f32 %v2019_v14, 0.0  ;;  %v1974_v31 = vadd.f32 %v9162_v17, %v10023_v48 }
 0x2e3   : > { %13849 = vst [vmem:[#allocation91_spill] sm:$0xff] %v10103_v2  ;;  %v2197_v60 = vmax.f32 %v2069_v44, 0.0  ;;  %v2117_v53 = vmax.f32 %v1989_v63, 0.0  ;;  %v2235_v17 = vpack.c.bf16 %v2131_v1, %v2115_v43  ;;  %v2236_v48 = vpack.c.bf16 %v2132_v18, %v2116_v9 }
 0x2e4   : > { %v2198_v29 = vmax.f32 %v2070_v52, 0.0  ;;  %7801 = vmatmul.msk.bf16.vlgmr.msrb.gmra.mxu0 %vm2339_vm1, %v9984_v51  ;;  %7805 = vmatmul.msk.bf16.vlgmr.msrb.gmra.mxu1 %vm2339_vm1, %v9984_v51  ;;  %v2251_v14 = vpack.c.bf16 %v2163_v26, %v2147_v4  ;;  %v2253_v54 = vpack.c.bf16 %v2165_v58, %v2149_v57  ;;  %v1958_v58 = vadd.f32 %v9157_v15, %v10002_v12 }
 0x2e5   : > { %v2269_v0 = vpack.c.bf16 %v2197_v60, %v2181_v50  ;;  %7809 = vmatmul.msk.bf16.vlgmr.msrb.gmra.mxu2 %vm2339_vm1, %v9984_v51  ;;  %2704 = vmatpush.bf16.msrb.mxu0 %v2267_v19  ;;  %v2237_v27 = vpack.c.bf16 %v2133_v23, %v2117_v53  ;;  %v2102_v20 = vmax.f32 %v1974_v31, 0.0  ;;  %v2238_v52 = vpack.c.bf16 %v2134_v42, %v2118_v35 }
 0x2e6   : > { %v2270_v44 = vpack.c.bf16 %v2198_v29, %v2182_v34  ;;  %7813 = vmatmul.msk.bf16.vlgmr.msrb.gmra.mxu3 %vm2339_vm1, %v9984_v51  ;;  %2733 = vmatpush.bf16.msrb.mxu1 %v2268_v8  ;;  %v2150_v34 = vmax.f32 %v2022_v47, 0.0  ;;  %v2085_v47 = vmax.f32 %v1957_v22, 0.0  ;;  %v2086_v46 = vmax.f32 %v1958_v58, 0.0 }
 0x2e7   : > { %2762 = vmatpush.bf16.msrb.mxu2 %v2269_v0 }
 0x2e8   : > { %2791 = vmatpush.bf16.msrb.mxu3 %v2270_v44  ;;  %v10123_v29 = vpop.f32.mrf.mxu2  ;;  %v2254_v5 = vpack.c.bf16 %v2166_v40, %v2150_v34  ;;  %v2221_v12 = vpack.c.bf16 %v2101_v37, %v2085_v47  ;;  %v2222_v60 = vpack.c.bf16 %v2102_v20, %v2086_v46 }
 0x2e9   : > { %13850 = vst [vmem:[#allocation92_spill] sm:$0xff] %v10123_v29  ;;  %v10127_v21 = vpop.f32.mrf.mxu3  ;;  %v10129_v41 = vpop.f32.mrf.mxu0  ;;  %2705 = vmatpush.bf16.msrb.mxu0 %v2251_v14 }
 0x2ea   : > { %13851 = vst [vmem:[#allocation93_spill] sm:$0xff] %v10127_v21  ;;  %v10134_v38 = vpop.f32.mrf.mxu1  ;;  %2734 = vmatpush.bf16.msrb.mxu1 %v2252_v11 }
 0x2eb   : > { %13852 = vst [vmem:[#allocation94_spill] sm:$0xff] %v10134_v38  ;;  %2763 = vmatpush.bf16.msrb.mxu2 %v2253_v54 }
 0x2ec   : > { %2792 = vmatpush.bf16.msrb.mxu3 %v2254_v5 }
 0x2ed   : > { %2706 = vmatpush.bf16.msrb.mxu0 %v2235_v17 }
 0x2ee   : > { %2735 = vmatpush.bf16.msrb.mxu1 %v2236_v48 }
 0x2ef   : > { %2764 = vmatpush.bf16.msrb.mxu2 %v2237_v27 }
 0x2f0   : > { %2793 = vmatpush.bf16.msrb.mxu3 %v2238_v52  ;;  %v10141_v13 = vpop.f32.mrf.mxu2 }
 0x2f1   : > { %13853 = vst [vmem:[#allocation95_spill] sm:$0xff] %v10141_v13  ;;  %v10143_v50 = vpop.f32.mrf.mxu3  ;;  %v10145_v15 = vpop.f32.mrf.mxu0  ;;  %2707 = vmatpush.bf16.msrb.mxu0 %v10011_v56 }
 0x2f2   : > { %13854 = vst [vmem:[#allocation96_spill] sm:$0xff] %v10143_v50  ;;  %v10148_v61 = vpop.f32.mrf.mxu1  ;;  %2736 = vmatpush.bf16.msrb.mxu1 %v10015_v10 }
 0x2f3   : > { %13855 = vst [vmem:[#allocation97_spill] sm:$0xff] %v10145_v15  ;;  %2765 = vmatpush.bf16.msrb.mxu2 %v2221_v12  ;;  %v10261_v12 = vpop.permute.xlu2 %2311 }
 0x2f4   : > { %13856 = vst [vmem:[#allocation98_spill] sm:$0xff] %v10148_v61  ;;  %2794 = vmatpush.bf16.msrb.mxu3 %v2222_v60  ;;  %7802 = vmatmul.msk.bf16.gmra.mxu0 %vm2339_vm1, %v10021_v59  ;;  %v10265_v60 = vpop.permute.xlu0 %2316 }
 0x2f5   : > { %7806 = vmatmul.msk.bf16.gmra.mxu1 %vm2339_vm1, %v10021_v59  ;;  %7810 = vmatmul.msk.bf16.gmra.mxu2 %vm2339_vm1, %v10021_v59 }
 0x2f6   : > { %7814 = vmatmul.msk.bf16.gmra.mxu3 %vm2339_vm1, %v10021_v59 }
 0x2f8   : > { %v10159_v56 = vpop.f32.mrf.mxu2 }
 0x2f9   : > { %13857 = vst [vmem:[#allocation99_spill] sm:$0xff] %v10159_v56  ;;  %v10161_v26 = vpop.f32.mrf.mxu3  ;;  %v10163_v19 = vpop.f32.mrf.mxu0 }
 0x2fa   : > { %13858 = vst [vmem:[#allocation100_spill] sm:$0xff] %v10161_v26  ;;  %v10165_v10 = vpop.f32.mrf.mxu1 }
 0x2fb   : > { %13859 = vst [vmem:[#allocation101_spill] sm:$0xff] %v10163_v19 }
 0x2fc   : > { %13860 = vst [vmem:[#allocation102_spill] sm:$0xff] %v10165_v10 }
 0x300   : > { %v10167_v33 = vpop.f32.mrf.mxu2 }
 0x301   : > { %13861 = vst [vmem:[#allocation103_spill] sm:$0xff] %v10167_v33  ;;  %v10169_v8 = vpop.f32.mrf.mxu3  ;;  %v10171_v0 = vpop.f32.mrf.mxu0 }
 0x302   : > { %13862 = vst [vmem:[#allocation104_spill] sm:$0xff] %v10169_v8  ;;  %v10173_v3 = vpop.f32.mrf.mxu1  ;;  %v10269_v8 = vpop.permute.xlu2 %2306 }
 0x303   : > { %13863 = vst [vmem:[#allocation105_spill] sm:$0xff] %v10171_v0 }
 0x304   : > { %13864 = vst [vmem:[#allocation106_spill] sm:$0xff] %v10173_v3  ;;  %7803 = vmatmul.msk.bf16.gmra.mxu0 %vm2339_vm1, %v10046_v45 }
 0x305   : > { %7807 = vmatmul.msk.bf16.gmra.mxu1 %vm2339_vm1, %v10046_v45  ;;  %7811 = vmatmul.msk.bf16.gmra.mxu2 %vm2339_vm1, %v10046_v45 }
 0x306   : > { %7815 = vmatmul.msk.bf16.gmra.mxu3 %vm2339_vm1, %v10046_v45 }
 0x308   : > { %v10183_v4 = vpop.f32.mrf.mxu2 }
 0x309   : > { %13865 = vst [vmem:[#allocation107_spill] sm:$0xff] %v10183_v4  ;;  %v10185_v40 = vpop.f32.mrf.mxu3  ;;  %v10187_v44 = vpop.f32.mrf.mxu0 }
 0x30a   : > { %13866 = vst [vmem:[#allocation108_spill] sm:$0xff] %v10185_v40  ;;  %v10189_v32 = vpop.f32.mrf.mxu1  ;;  %v10273_v4 = vpop.permute.xlu0 %2291 }
 0x30b   : > { %13867 = vst [vmem:[#allocation109_spill] sm:$0xff] %v10187_v44  ;;  %v10285_v3 = vpop.permute.xlu2 %2281 }
 0x30c   : > { %13868 = vst [vmem:[#allocation110_spill] sm:$0xff] %v10189_v32 }
 0x310   : > { %v10191_v63 = vpop.f32.mrf.mxu2 }
 0x311   : > { %13869 = vst [vmem:[#allocation111_spill] sm:$0xff] %v10191_v63  ;;  %v10193_v24 = vpop.f32.mrf.mxu3  ;;  %v10195_v57 = vpop.f32.mrf.mxu0 }
 0x312   : > { %13870 = vst [vmem:[#allocation112_spill] sm:$0xff] %v10193_v24  ;;  %v10197_v6 = vpop.f32.mrf.mxu1  ;;  %v10298_v61 = vpop.permute.xlu0 %2286 }
 0x313   : > { %13871 = vst [vmem:[#allocation113_spill] sm:$0xff] %v10195_v57 }
 0x314   : > { %13872 = vst [vmem:[#allocation114_spill] sm:$0xff] %v10197_v6  ;;  %7804 = vmatmul.msk.bf16.gmra.mxu0 %vm2339_vm1, %v10061_v39 }
 0x315   : > { %7808 = vmatmul.msk.bf16.gmra.mxu1 %vm2339_vm1, %v10061_v39  ;;  %7812 = vmatmul.msk.bf16.gmra.mxu2 %vm2339_vm1, %v10061_v39 }
 0x316   : > { %7816 = vmatmul.msk.bf16.gmra.mxu3 %vm2339_vm1, %v10061_v39 }
 0x318   : > { %v10207_v1 = vpop.f32.mrf.mxu2 }
 0x319   : > { %13873 = vst [vmem:[#allocation115_spill] sm:$0xff] %v10207_v1  ;;  %v10209_v34 = vpop.f32.mrf.mxu3  ;;  %v10211_v14 = vpop.f32.mrf.mxu0 }
 0x31a   : > { %13874 = vst [vmem:[#allocation116_spill] sm:$0xff] %v10209_v34  ;;  %v10213_v18 = vpop.f32.mrf.mxu1 }
 0x31b   : > { %13875 = vst [vmem:[#allocation117_spill] sm:$0xff] %v10211_v14 }
 0x31c   : > { %13876 = vst [vmem:[#allocation118_spill] sm:$0xff] %v10213_v18 }
 0x320   : > { %v10215_v23 = vpop.f32.mrf.mxu2 }
 0x321   : > { %13877 = vst [vmem:[#allocation119_spill] sm:$0xff] %v10215_v23  ;;  %v10217_v11 = vpop.f32.mrf.mxu3  ;;  %v2361_v54 = vpop.f32.mrf.mxu0 }
 0x322   : > { %13878 = vst [vmem:[#allocation120_spill] sm:$0xff] %v10217_v11  ;;  %v2390_v31 = vpop.f32.mrf.mxu1  ;;  %v10271_v23 = vpop.permute.xlu1 %2301  ;;  %v10289_v32 = vadd.f32 %v2361_v54, %v10285_v3 }
 0x323   : > { %v10295_v6 = vadd.f32 %v2390_v31, %v10285_v3 }
 0x324   : > { %7817 = vmatmul.msk.bf16.vlgmr.msra.gmra.mxu0 %vm2339_vm1, %v9984_v51 }
 0x325   : > { %7821 = vmatmul.msk.bf16.vlgmr.msra.gmra.mxu1 %vm2339_vm1, %v9984_v51  ;;  %7825 = vmatmul.msk.bf16.vlgmr.msra.gmra.mxu2 %vm2339_vm1, %v9984_v51 }
 0x326   : > { %7829 = vmatmul.msk.bf16.vlgmr.msra.gmra.mxu3 %vm2339_vm1, %v9984_v51 }
 0x328   : > { %v10227_v43 = vpop.f32.mrf.mxu2 }
 0x329   : > { %v10229_v42 = vpop.f32.mrf.mxu3  ;;  %v2363_v5 = vpop.f32.mrf.mxu0 }
 0x32a   : > { %v2392_v22 = vpop.f32.mrf.mxu1  ;;  %v10292_v44 = vpop.permute.xlu1 %2296 }
 0x330   : > { %v10231_v9 = vpop.f32.mrf.mxu2 }
 0x331   : > { %v10233_v53 = vpop.f32.mrf.mxu3  ;;  %v10235_v58 = vpop.f32.mrf.mxu0 }
 0x332   : > { %v10237_v35 = vpop.f32.mrf.mxu1 }
 0x334   : > { %7818 = vmatmul.msk.bf16.gmra.mxu0 %vm2339_vm1, %v10021_v59 }
 0x335   : > { %7822 = vmatmul.msk.bf16.gmra.mxu1 %vm2339_vm1, %v10021_v59  ;;  %7826 = vmatmul.msk.bf16.gmra.mxu2 %vm2339_vm1, %v10021_v59 }
 0x336   : > { %7830 = vmatmul.msk.bf16.gmra.mxu3 %vm2339_vm1, %v10021_v59 }
 0x338   : > { %v10247_v17 = vpop.f32.mrf.mxu2 }
 0x339   : > { %v10249_v37 = vpop.f32.mrf.mxu3  ;;  %v2368_v48 = vpop.f32.mrf.mxu0 }
 0x33a   : > { %v2397_v27 = vpop.f32.mrf.mxu1  ;;  %v10301_v10 = vadd.f32 %v2368_v48, %v10292_v44 }
 0x33b   : > { %v2398_v2 = vadd.f32 %v2397_v27, %v10292_v44 }
 0x340   : > { %v10251_v20 = vpop.f32.mrf.mxu2 }
 0x341   : > { %v10253_v52 = vpop.f32.mrf.mxu3  ;;  %v2371_v47 = vpop.f32.mrf.mxu0 }
 0x342   : > { %v2400_v46 = vpop.f32.mrf.mxu1  ;;  %v2372_v31 = vadd.f32 %v2371_v47, %v10271_v23 }
 0x344   : > { %7819 = vmatmul.msk.bf16.gmra.mxu0 %vm2339_vm1, %v10046_v45 }
 0x345   : > { %7823 = vmatmul.msk.bf16.gmra.mxu1 %vm2339_vm1, %v10046_v45  ;;  %7827 = vmatmul.msk.bf16.gmra.mxu2 %vm2339_vm1, %v10046_v45 }
 0x346   : > { %7831 = vmatmul.msk.bf16.gmra.mxu3 %vm2339_vm1, %v10046_v45 }
 0x348   : > { %v2429_v21 = vpop.f32.mrf.mxu2 }
 0x349   : > { %v10267_v29 = vpop.f32.mrf.mxu3  ;;  %v2373_v50 = vpop.f32.mrf.mxu0 }
 0x34a   : > { %v2402_v26 = vpop.f32.mrf.mxu1 }
 0x350   : > { %v2431_v33 = vpop.f32.mrf.mxu2 }
 0x351   : > { %v2460_v11 = vpop.f32.mrf.mxu3  ;;  %v2376_v40 = vpop.f32.mrf.mxu0  ;;  %v2432_v47 = vadd.f32 %v2431_v33, %v10269_v8  ;;  %v2459_v33 = vadd.f32 %v10267_v29, %v10271_v23  ;;  %v2456_v29 = vadd.f32 %v10253_v52, %v10292_v44  ;;  %v2454_v52 = vadd.f32 %v10249_v37, %v10273_v4 }
 0x352   : > { %v2405_v24 = vpop.f32.mrf.mxu1  ;;  %v2377_v63 = vadd.f32 %v2376_v40, %v10261_v12  ;;  %v2374_v40 = vadd.f32 %v2373_v50, %v10269_v8  ;;  %v10310_v50 = vadd.f32 %v2392_v22, %v10298_v61  ;;  %v2451_v37 = vadd.f32 %v10233_v53, %v10298_v61 }
 0x353   : > { %v2406_v1 = vadd.f32 %v2405_v24, %v10261_v12 }
 0x354   : > { %7820 = vmatmul.msk.bf16.gmra.mxu0 %vm2339_vm1, %v10061_v39  ;;  %v2912_v24 = vmax.f32 %v2377_v63, 0.0  ;;  %v2401_v63 = vadd.f32 %v2400_v46, %v10271_v23 }
 0x355   : > { %7824 = vmatmul.msk.bf16.gmra.mxu1 %vm2339_vm1, %v10061_v39  ;;  %7828 = vmatmul.msk.bf16.gmra.mxu2 %vm2339_vm1, %v10061_v39  ;;  %v2913_v54 = vmax.f32 %v2406_v1, 0.0  ;;  %v2896_v1 = vmax.f32 %v2374_v40, 0.0 }
 0x356   : > { %7832 = vmatmul.msk.bf16.gmra.mxu3 %vm2339_vm1, %v10061_v39 }
 0x358   : > { %v2434_v34 = vpop.f32.mrf.mxu2 }
 0x359   : > { %v2463_v56 = vpop.f32.mrf.mxu3  ;;  %v2378_v18 = vpop.f32.mrf.mxu0 }
 0x35a   : > { %v2379_v14 = vadd.f32 %v2378_v18, %v10265_v60  ;;  %v2407_v0 = vpop.f32.mrf.mxu1  ;;  %v2403_v18 = vadd.f32 %v2402_v26, %v10269_v8  ;;  %v2367_v26 = vadd.f32 %v10235_v58, %v10273_v4  ;;  %v2865_v58 = vmax.f32 %v2398_v2, 0.0 }
 0x35b   : > { %v2408_v13 = vadd.f32 %v2407_v0, %v10265_v60  ;;  %v10305_v0 = vadd.f32 %v2363_v5, %v10298_v61  ;;  %v2464_v5 = vadd.f32 %v2463_v56, %v10261_v12 }
 0x35c   : > { %v2928_v57 = vmax.f32 %v2379_v14, 0.0  ;;  %v2435_v14 = vadd.f32 %v2434_v34, %v10261_v12  ;;  %v2897_v22 = vmax.f32 %v2403_v18, 0.0 }
 0x35d   : > { %v2929_v19 = vmax.f32 %v2408_v13, 0.0  ;;  %v2396_v13 = vadd.f32 %v10237_v35, %v10273_v4  ;;  %v2461_v35 = vadd.f32 %v2460_v11, %v10269_v8  ;;  %v2427_v11 = vadd.f32 %v10251_v20, %v10292_v44 }
 0x35e   : > { %v3000_v15 = vpack.c.bf16 %v2928_v57, %v2912_v24  ;;  %v2864_v57 = vmax.f32 %v10301_v10, 0.0  ;;  %v2880_v24 = vmax.f32 %v2372_v31, 0.0  ;;  %v2430_v10 = vadd.f32 %v2429_v21, %v10271_v23 }
 0x35f   : > { %v3001_v48 = vpack.c.bf16 %v2929_v19, %v2913_v54  ;;  %v2914_v18 = vmax.f32 %v2435_v14, 0.0  ;;  %v2898_v31 = vmax.f32 %v2432_v47, 0.0  ;;  %v2899_v14 = vmax.f32 %v2461_v35, 0.0 }
 0x360   : > { %v2436_v27 = vpop.f32.mrf.mxu2  ;;  %3052 = vmatpush.bf16.msra.mxu0 %v3000_v15  ;;  %v2881_v15 = vmax.f32 %v2401_v63, 0.0  ;;  %v2984_v2 = vpack.c.bf16 %v2896_v1, %v2880_v24  ;;  %v2848_v63 = vmax.f32 %v2367_v26, 0.0  ;;  %v2832_v20 = vmax.f32 %v10305_v0, 0.0 }
 0x361   : > { %v2437_v46 = vadd.f32 %v2436_v27, %v10265_v60  ;;  %v2465_v34 = vpop.f32.mrf.mxu3  ;;  %3081 = vmatpush.bf16.msra.mxu1 %v3001_v48  ;;  %v10322_v19 = vpop.f32.mrf.mxu0  ;;  %v2915_v27 = vmax.f32 %v2464_v5, 0.0  ;;  %v2849_v1 = vmax.f32 %v2396_v13, 0.0  ;;  %v2425_v47 = vadd.f32 %v10247_v17, %v10273_v4 }
 0x362   : > { %v2466_v40 = vadd.f32 %v2465_v34, %v10265_v60  ;;  %v10326_v56 = vpop.f32.mrf.mxu1  ;;  %v2985_v21 = vpack.c.bf16 %v2897_v22, %v2881_v15  ;;  %v2833_v26 = vmax.f32 %v10310_v50, 0.0  ;;  %v2883_v22 = vmax.f32 %v2459_v33, 0.0 }
 0x363   : > { %v2930_v54 = vmax.f32 %v2437_v46, 0.0  ;;  %v2882_v46 = vmax.f32 %v2430_v10, 0.0  ;;  %v2422_v0 = vadd.f32 %v10231_v9, %v10298_v61  ;;  %v2866_v13 = vmax.f32 %v2427_v11, 0.0 }
 0x364   : > { %v2931_v48 = vmax.f32 %v2466_v40, 0.0  ;;  %7833 = vmatmul.msk.bf16.vlgmr.msrb.gmra.mxu0 %vm2339_vm1, %v9984_v51  ;;  %v2969_v17 = vpack.c.bf16 %v2865_v58, %v2849_v1  ;;  %v2816_v50 = vmax.f32 %v10289_v32, 0.0  ;;  %v2867_v10 = vmax.f32 %v2456_v29, 0.0 }
 0x365   : > { %v3002_v34 = vpack.c.bf16 %v2930_v54, %v2914_v18  ;;  %7837 = vmatmul.msk.bf16.vlgmr.msrb.gmra.mxu1 %vm2339_vm1, %v9984_v51  ;;  %7841 = vmatmul.msk.bf16.vlgmr.msrb.gmra.mxu2 %vm2339_vm1, %v9984_v51  ;;  %v2986_v15 = vpack.c.bf16 %v2898_v31, %v2882_v46  ;;  %v2817_v54 = vmax.f32 %v10295_v6, 0.0  ;;  %v2420_v9 = vadd.f32 %v10227_v43, %v10285_v3 }
 0x366   : > { %v3003_v5 = vpack.c.bf16 %v2931_v48, %v2915_v27  ;;  %7845 = vmatmul.msk.bf16.vlgmr.msrb.gmra.mxu3 %vm2339_vm1, %v9984_v51  ;;  %3053 = vmatpush.bf16.msra.mxu0 %v2984_v2  ;;  %v2968_v51 = vpack.c.bf16 %v2864_v57, %v2848_v63  ;;  %v2987_v57 = vpack.c.bf16 %v2899_v14, %v2883_v22  ;;  %v2850_v33 = vmax.f32 %v2425_v47, 0.0 }
 0x367   : > { %3082 = vmatpush.bf16.msra.mxu1 %v2985_v21  ;;  %3110 = vmatpush.bf16.msra.mxu2 %v3002_v34  ;;  %v2449_v58 = vadd.f32 %v10229_v42, %v10285_v3  ;;  %v2851_v32 = vmax.f32 %v2454_v52, 0.0  ;;  %v2952_v27 = vpack.c.bf16 %v2832_v20, %v2816_v50  ;;  %v2834_v53 = vmax.f32 %v2422_v0, 0.0 }
 0x368   : > { %3139 = vmatpush.bf16.msra.mxu3 %v3003_v5  ;;  %v10349_v24 = vpop.f32.mrf.mxu2  ;;  %v2953_v48 = vpack.c.bf16 %v2833_v26, %v2817_v54  ;;  %v2970_v2 = vpack.c.bf16 %v2866_v13, %v2850_v33  ;;  %v2835_v11 = vmax.f32 %v2451_v37, 0.0  ;;  %v2818_v34 = vmax.f32 %v2420_v9, 0.0 }
 0x369   : > { %v10353_v35 = vpop.f32.mrf.mxu3  ;;  %v10355_v40 = vpop.f32.mrf.mxu0  ;;  %v2971_v31 = vpack.c.bf16 %v2867_v10, %v2851_v32  ;;  %v2819_v6 = vmax.f32 %v2449_v58, 0.0  ;;  %v10408_v32 = vadd.f32 %v10322_v19, %v10285_v3 }
 0x36a   : > { %3054 = vmatpush.bf16.msra.mxu0 %v2968_v51  ;;  %v10360_v18 = vpop.f32.mrf.mxu1  ;;  %v2954_v42 = vpack.c.bf16 %v2834_v53, %v2818_v34  ;;  %v10413_v53 = vadd.f32 %v10326_v56, %v10285_v3  ;;  %v10422_v19 = vadd.f32 %v10355_v40, %v10298_v61 }
 0x36b   : > { %3083 = vmatpush.bf16.msra.mxu1 %v2969_v17  ;;  %3111 = vmatpush.bf16.msra.mxu2 %v2986_v15  ;;  %v2955_v14 = vpack.c.bf16 %v2835_v11, %v2819_v6 }
 0x36c   : > { %3140 = vmatpush.bf16.msra.mxu3 %v2987_v57 }
 0x36e   : > { %3055 = vmatpush.bf16.msra.mxu0 %v2952_v27 }
 0x36f   : > { %3084 = vmatpush.bf16.msra.mxu1 %v2953_v48  ;;  %3112 = vmatpush.bf16.msra.mxu2 %v2970_v2 }
 0x370   : > { %3141 = vmatpush.bf16.msra.mxu3 %v2971_v31  ;;  %v10367_v43 = vpop.f32.mrf.mxu2 }
 0x371   : > { %v10369_v21 = vpop.f32.mrf.mxu3  ;;  %v2482_v63 = vpop.f32.mrf.mxu0 }
 0x372   : > { %v2511_v29 = vpop.f32.mrf.mxu1 }
 0x373   : > { %3113 = vmatpush.bf16.msra.mxu2 %v2954_v42  ;;  %v2512_v40 = vadd.f32 %v2511_v29, %v10273_v4 }
 0x374   : > { %3142 = vmatpush.bf16.msra.mxu3 %v2955_v14  ;;  %7834 = vmatmul.msk.bf16.gmra.mxu0 %vm2339_vm1, %v10021_v59 }
 0x375   : > { %7838 = vmatmul.msk.bf16.gmra.mxu1 %vm2339_vm1, %v10021_v59  ;;  %7842 = vmatmul.msk.bf16.gmra.mxu2 %vm2339_vm1, %v10021_v59 }
 0x376   : > { %7846 = vmatmul.msk.bf16.gmra.mxu3 %vm2339_vm1, %v10021_v59 }
 0x378   : > { %v10379_v5 = vpop.f32.mrf.mxu2 }
 0x379   : > { %v10381_v20 = vpop.f32.mrf.mxu3  ;;  %v2484_v1 = vpop.f32.mrf.mxu0 }
 0x37a   : > { %v2513_v47 = vpop.f32.mrf.mxu1  ;;  %v10417_v11 = vadd.f32 %v2484_v1, %v10292_v44 }
 0x37b   : > { %v10425_v42 = vadd.f32 %v2513_v47, %v10292_v44 }
 0x380   : > { %v10383_v46 = vpop.f32.mrf.mxu2 }
 0x381   : > { %v10385_v26 = vpop.f32.mrf.mxu3  ;;  %v2487_v52 = vpop.f32.mrf.mxu0 }
 0x382   : > { %v2516_v22 = vpop.f32.mrf.mxu1  ;;  %v2488_v56 = vadd.f32 %v2487_v52, %v10271_v23  ;;  %v10440_v52 = vld [vmem:[%s13685_s3 + $0x20] sm:$0xff] }
 0x383   : > { %v2517_v1 = vadd.f32 %v2516_v22, %v10271_v23 }
 0x384   : > { %7835 = vmatmul.msk.bf16.gmra.mxu0 %vm2339_vm1, %v10046_v45 }
 0x385   : > { %7839 = vmatmul.msk.bf16.gmra.mxu1 %vm2339_vm1, %v10046_v45  ;;  %7843 = vmatmul.msk.bf16.gmra.mxu2 %vm2339_vm1, %v10046_v45 }
 0x386   : > { %7847 = vmatmul.msk.bf16.gmra.mxu3 %vm2339_vm1, %v10046_v45 }
 0x388   : > { %v2545_v59 = vpop.f32.mrf.mxu2 }
 0x389   : > { %v2574_v51 = vpop.f32.mrf.mxu3  ;;  %v2489_v0 = vpop.f32.mrf.mxu0 }
 0x38a   : > { %v2518_v13 = vpop.f32.mrf.mxu1 }
 0x38b   : > { %v2519_v31 = vadd.f32 %v2518_v13, %v10269_v8 }
 0x38d   : > { %v2901_v22 = vmax.f32 %v2519_v31, 0.0  ;;  %v2575_v31 = vadd.f32 %v2574_v51, %v10271_v23  ;;  %v2572_v51 = vadd.f32 %v10385_v26, %v10292_v44  ;;  %v2570_v26 = vadd.f32 %v10381_v20, %v10273_v4 }
 0x38e   : > { %v2567_v20 = vadd.f32 %v10369_v21, %v10298_v61 }
 0x390   : > { %v2547_v17 = vpop.f32.mrf.mxu2 }
 0x391   : > { %v2576_v15 = vpop.f32.mrf.mxu3  ;;  %v2492_v50 = vpop.f32.mrf.mxu0 }
 0x392   : > { %v2521_v37 = vpop.f32.mrf.mxu1  ;;  %v2493_v45 = vadd.f32 %v2492_v50, %v10261_v12 }
 0x393   : > { %v2522_v57 = vadd.f32 %v2521_v37, %v10261_v12  ;;  %v2483_v37 = vadd.f32 %v2482_v63, %v10273_v4 }
 0x394   : > { %7836 = vmatmul.msk.bf16.gmra.mxu0 %vm2339_vm1, %v10061_v39  ;;  %v2916_v48 = vmax.f32 %v2493_v45, 0.0 }
 0x395   : > { %7840 = vmatmul.msk.bf16.gmra.mxu1 %vm2339_vm1, %v10061_v39  ;;  %7844 = vmatmul.msk.bf16.gmra.mxu2 %vm2339_vm1, %v10061_v39  ;;  %v2917_v34 = vmax.f32 %v2522_v57, 0.0 }
 0x396   : > { %7848 = vmatmul.msk.bf16.gmra.mxu3 %vm2339_vm1, %v10061_v39  ;;  %v2490_v39 = vadd.f32 %v2489_v0, %v10269_v8  ;;  %v10430_v0 = vadd.f32 %v10360_v18, %v10298_v61  ;;  %v2868_v18 = vmax.f32 %v10417_v11, 0.0 }
 0x398   : > { %v2550_v10 = vpop.f32.mrf.mxu2  ;;  %v2900_v45 = vmax.f32 %v2490_v39, 0.0 }
 0x399   : > { %v2579_v54 = vpop.f32.mrf.mxu3  ;;  %v2494_v9 = vpop.f32.mrf.mxu0  ;;  %v2551_v13 = vadd.f32 %v2550_v10, %v10261_v12  ;;  %v2548_v10 = vadd.f32 %v2547_v17, %v10269_v8 }
 0x39a   : > { %v2495_v33 = vadd.f32 %v2494_v9, %v10265_v60  ;;  %v2523_v58 = vpop.f32.mrf.mxu1  ;;  %v2580_v47 = vadd.f32 %v2579_v54, %v10261_v12  ;;  %v2869_v54 = vmax.f32 %v10425_v42, 0.0 }
 0x39b   : > { %v2524_v27 = vadd.f32 %v2523_v58, %v10265_v60  ;;  %v2577_v58 = vadd.f32 %v2576_v15, %v10269_v8  ;;  %v2918_v11 = vmax.f32 %v2551_v13, 0.0  ;;  %v2543_v15 = vadd.f32 %v10383_v46, %v10292_v44 }
 0x39c   : > { %v2932_v2 = vmax.f32 %v2495_v33, 0.0  ;;  %v2884_v33 = vmax.f32 %v2488_v56, 0.0  ;;  %v2902_v56 = vmax.f32 %v2548_v10, 0.0  ;;  %v2836_v46 = vmax.f32 %v10422_v19, 0.0 }
 0x39d   : > { %v2933_v6 = vmax.f32 %v2524_v27, 0.0  ;;  %v2903_v13 = vmax.f32 %v2577_v58, 0.0  ;;  %v2538_v19 = vadd.f32 %v10367_v43, %v10298_v61  ;;  %v2536_v43 = vadd.f32 %v10349_v24, %v10285_v3 }
 0x39e   : > { %v3004_v14 = vpack.c.bf16 %v2932_v2, %v2916_v48  ;;  %v2885_v48 = vmax.f32 %v2517_v1, 0.0  ;;  %v2546_v2 = vadd.f32 %v2545_v59, %v10271_v23  ;;  %v2988_v42 = vpack.c.bf16 %v2900_v45, %v2884_v33 }
 0x39f   : > { %v3005_v50 = vpack.c.bf16 %v2933_v6, %v2917_v34  ;;  %v2919_v34 = vmax.f32 %v2580_v47, 0.0  ;;  %v2852_v1 = vmax.f32 %v2483_v37, 0.0  ;;  %v2853_v45 = vmax.f32 %v2512_v40, 0.0 }
 0x3a0   : > { %v2552_v57 = vpop.f32.mrf.mxu2  ;;  %3168 = vmatpush.bf16.msrb.mxu0 %v3004_v14  ;;  %v2989_v59 = vpack.c.bf16 %v2901_v22, %v2885_v48  ;;  %v2541_v47 = vadd.f32 %v10379_v5, %v10273_v4  ;;  %v2837_v37 = vmax.f32 %v10430_v0, 0.0  ;;  %v2887_v22 = vmax.f32 %v2575_v31, 0.0 }
 0x3a1   : > { %v2553_v9 = vadd.f32 %v2552_v57, %v10265_v60  ;;  %v2581_v63 = vpop.f32.mrf.mxu3  ;;  %3197 = vmatpush.bf16.msrb.mxu1 %v3005_v50  ;;  %v10445_v29 = vpop.f32.mrf.mxu0  ;;  %v2886_v57 = vmax.f32 %v2546_v2, 0.0  ;;  %v2870_v40 = vmax.f32 %v2543_v15, 0.0  ;;  %v2973_v5 = vpack.c.bf16 %v2869_v54, %v2853_v45 }
 0x3a2   : > { %v2582_v27 = vadd.f32 %v2581_v63, %v10265_v60  ;;  %v10450_v39 = vpop.f32.mrf.mxu1  ;;  %v2820_v0 = vmax.f32 %v10408_v32, 0.0  ;;  %v2821_v2 = vmax.f32 %v10413_v53, 0.0  ;;  %v2565_v54 = vadd.f32 %v10353_v35, %v10285_v3  ;;  %v10495_v35 = vld [vmem:[%s13685_s3 + $0x28] sm:$0xff] }
 0x3a3   : > { %v2934_v17 = vmax.f32 %v2553_v9, 0.0  ;;  %v2972_v9 = vpack.c.bf16 %v2868_v18, %v2852_v1  ;;  %v2990_v58 = vpack.c.bf16 %v2902_v56, %v2886_v57  ;;  %v2991_v18 = vpack.c.bf16 %v2903_v13, %v2887_v22  ;;  %v10516_v57 = vld [vmem:[%s13685_s3 + $0x30] sm:$0xff] }
 0x3a4   : > { %v2935_v6 = vmax.f32 %v2582_v27, 0.0  ;;  %7865 = vmatmul.msk.bf16.vlgmr.msra.gmra.mxu0 %vm2339_vm1, %v10440_v52  ;;  %v2871_v27 = vmax.f32 %v2572_v51, 0.0  ;;  %v2855_v32 = vmax.f32 %v2570_v26, 0.0  ;;  %v2838_v21 = vmax.f32 %v2538_v19, 0.0 }
 0x3a5   : > { %v3006_v14 = vpack.c.bf16 %v2934_v17, %v2918_v11  ;;  %7869 = vmatmul.msk.bf16.vlgmr.msra.gmra.mxu1 %vm2339_vm1, %v10440_v52  ;;  %7873 = vmatmul.msk.bf16.vlgmr.msra.gmra.mxu2 %vm2339_vm1, %v10440_v52  ;;  %v2854_v11 = vmax.f32 %v2541_v47, 0.0  ;;  %v2956_v17 = vpack.c.bf16 %v2836_v46, %v2820_v0  ;;  %v2957_v31 = vpack.c.bf16 %v2837_v37, %v2821_v2  ;;  %v10531_v0 = vld [vmem:[%s13685_s3 + $0x38] sm:$0xff] }
 0x3a6   : > { %v3007_v50 = vpack.c.bf16 %v2935_v6, %v2919_v34  ;;  %7877 = vmatmul.msk.bf16.vlgmr.msra.gmra.mxu3 %vm2339_vm1, %v10440_v52  ;;  %3169 = vmatpush.bf16.msrb.mxu0 %v2988_v42  ;;  %v2839_v6 = vmax.f32 %v2567_v20, 0.0  ;;  %v2975_v42 = vpack.c.bf16 %v2871_v27, %v2855_v32  ;;  %v2822_v15 = vmax.f32 %v2536_v43, 0.0 }
 0x3a7   : > { %3198 = vmatpush.bf16.msrb.mxu1 %v2989_v59  ;;  %3226 = vmatpush.bf16.msrb.mxu2 %v3006_v14  ;;  %v2974_v34 = vpack.c.bf16 %v2870_v40, %v2854_v11  ;;  %v2823_v53 = vmax.f32 %v2565_v54, 0.0 }
 0x3a8   : > { %3255 = vmatpush.bf16.msrb.mxu3 %v3007_v50  ;;  %v10472_v10 = vpop.f32.mrf.mxu2  ;;  %v2958_v59 = vpack.c.bf16 %v2838_v21, %v2822_v15 }
 0x3a9   : > { %v10476_v63 = vpop.f32.mrf.mxu3  ;;  %v10478_v33 = vpop.f32.mrf.mxu0  ;;  %v2959_v51 = vpack.c.bf16 %v2839_v6, %v2823_v53  ;;  %v10551_v6 = vadd.f32 %v10450_v39, %v10285_v3 }
 0x3aa   : > { %3170 = vmatpush.bf16.msrb.mxu0 %v2972_v9  ;;  %v10483_v48 = vpop.f32.mrf.mxu1 }
 0x3ab   : > { %3199 = vmatpush.bf16.msrb.mxu1 %v2973_v5  ;;  %3227 = vmatpush.bf16.msrb.mxu2 %v2990_v58 }
 0x3ac   : > { %3256 = vmatpush.bf16.msrb.mxu3 %v2991_v18 }
 0x3ae   : > { %3171 = vmatpush.bf16.msrb.mxu0 %v2956_v17 }
 0x3af   : > { %3200 = vmatpush.bf16.msrb.mxu1 %v2957_v31  ;;  %3228 = vmatpush.bf16.msrb.mxu2 %v2974_v34  ;;  %v10546_v31 = vadd.f32 %v10445_v29, %v10285_v3  ;;  %v10560_v29 = vadd.f32 %v10478_v33, %v10298_v61 }
 0x3b0   : > { %3257 = vmatpush.bf16.msrb.mxu3 %v2975_v42  ;;  %v10490_v24 = vpop.f32.mrf.mxu2 }
 0x3b1   : > { %v10497_v56 = vpop.f32.mrf.mxu3  ;;  %v2598_v14 = vpop.f32.mrf.mxu0 }
 0x3b2   : > { %v2627_v1 = vpop.f32.mrf.mxu1 }
 0x3b3   : > { %3229 = vmatpush.bf16.msrb.mxu2 %v2958_v59 }
 0x3b4   : > { %3258 = vmatpush.bf16.msrb.mxu3 %v2959_v51  ;;  %7866 = vmatmul.msk.bf16.gmra.mxu0 %vm2339_vm1, %v10495_v35 }
 0x3b5   : > { %7870 = vmatmul.msk.bf16.gmra.mxu1 %vm2339_vm1, %v10495_v35  ;;  %7874 = vmatmul.msk.bf16.gmra.mxu2 %vm2339_vm1, %v10495_v35 }
 0x3b6   : > { %7878 = vmatmul.msk.bf16.gmra.mxu3 %vm2339_vm1, %v10495_v35 }
 0x3b8   : > { %v10507_v13 = vpop.f32.mrf.mxu2 }
 0x3b9   : > { %v10509_v50 = vpop.f32.mrf.mxu3  ;;  %v2600_v46 = vpop.f32.mrf.mxu0 }
 0x3ba   : > { %v2629_v45 = vpop.f32.mrf.mxu1  ;;  %v10555_v59 = vadd.f32 %v2600_v46, %v10292_v44 }
 0x3c0   : > { %v10511_v47 = vpop.f32.mrf.mxu2 }
 0x3c1   : > { %v10518_v37 = vpop.f32.mrf.mxu3  ;;  %v2603_v26 = vpop.f32.mrf.mxu0 }
 0x3c2   : > { %v2632_v22 = vpop.f32.mrf.mxu1  ;;  %v2604_v39 = vadd.f32 %v2603_v26, %v10271_v23  ;;  %v2872_v26 = vmax.f32 %v10555_v59, 0.0 }
 0x3c3   : > { %v2633_v46 = vadd.f32 %v2632_v22, %v10271_v23 }
 0x3c4   : > { %7867 = vmatmul.msk.bf16.gmra.mxu0 %vm2339_vm1, %v10516_v57 }
 0x3c5   : > { %7871 = vmatmul.msk.bf16.gmra.mxu1 %vm2339_vm1, %v10516_v57  ;;  %7875 = vmatmul.msk.bf16.gmra.mxu2 %vm2339_vm1, %v10516_v57 }
 0x3c6   : > { %7879 = vmatmul.msk.bf16.gmra.mxu3 %vm2339_vm1, %v10516_v57 }
 0x3c8   : > { %v2661_v9 = vpop.f32.mrf.mxu2 }
 0x3c9   : > { %v2690_v19 = vpop.f32.mrf.mxu3  ;;  %v2605_v40 = vpop.f32.mrf.mxu0  ;;  %v2662_v59 = vadd.f32 %v2661_v9, %v10271_v23 }
 0x3ca   : > { %v2634_v5 = vpop.f32.mrf.mxu1  ;;  %v2606_v42 = vadd.f32 %v2605_v40, %v10269_v8  ;;  %v10566_v40 = vadd.f32 %v10483_v48, %v10298_v61 }
 0x3cb   : > { %v2635_v51 = vadd.f32 %v2634_v5, %v10269_v8 }
 0x3cc   : > { %v2904_v33 = vmax.f32 %v2606_v42, 0.0 }
 0x3d0   : > { %v2663_v58 = vpop.f32.mrf.mxu2 }
 0x3d1   : > { %v2692_v20 = vpop.f32.mrf.mxu3  ;;  %v2608_v27 = vpop.f32.mrf.mxu0  ;;  %v2664_v48 = vadd.f32 %v2663_v58, %v10269_v8  ;;  %v2691_v58 = vadd.f32 %v2690_v19, %v10271_v23  ;;  %v2688_v19 = vadd.f32 %v10518_v37, %v10292_v44  ;;  %v2686_v37 = vadd.f32 %v10509_v50, %v10273_v4 }
 0x3d2   : > { %v2637_v18 = vpop.f32.mrf.mxu1  ;;  %v2609_v2 = vadd.f32 %v2608_v27, %v10261_v12  ;;  %v2683_v50 = vadd.f32 %v10497_v56, %v10298_v61 }
 0x3d3   : > { %v2638_v11 = vadd.f32 %v2637_v18, %v10261_v12 }
 0x3d4   : > { %7868 = vmatmul.msk.bf16.gmra.mxu0 %vm2339_vm1, %v10531_v0  ;;  %v2920_v15 = vmax.f32 %v2609_v2, 0.0 }
 0x3d5   : > { %7872 = vmatmul.msk.bf16.gmra.mxu1 %vm2339_vm1, %v10531_v0  ;;  %7876 = vmatmul.msk.bf16.gmra.mxu2 %vm2339_vm1, %v10531_v0  ;;  %v2921_v27 = vmax.f32 %v2638_v11, 0.0  ;;  %v2599_v11 = vadd.f32 %v2598_v14, %v10273_v4  ;;  %v2888_v14 = vmax.f32 %v2604_v39, 0.0  ;;  %v2906_v39 = vmax.f32 %v2664_v48, 0.0 }
 0x3d6   : > { %7880 = vmatmul.msk.bf16.gmra.mxu3 %vm2339_vm1, %v10531_v0  ;;  %v2657_v48 = vadd.f32 %v10507_v13, %v10273_v4 }
 0x3d8   : > { %v2666_v43 = vpop.f32.mrf.mxu2 }
 0x3d9   : > { %v2695_v54 = vpop.f32.mrf.mxu3  ;;  %v2610_v32 = vpop.f32.mrf.mxu0  ;;  %v2667_v2 = vadd.f32 %v2666_v43, %v10261_v12 }
 0x3da   : > { %v2611_v17 = vadd.f32 %v2610_v32, %v10265_v60  ;;  %v2639_v21 = vpop.f32.mrf.mxu1  ;;  %v2630_v32 = vadd.f32 %v2629_v45, %v10292_v44 }
 0x3db   : > { %v2640_v34 = vadd.f32 %v2639_v21, %v10265_v60 }
 0x3dc   : > { %v2936_v53 = vmax.f32 %v2611_v17, 0.0  ;;  %v2628_v17 = vadd.f32 %v2627_v1, %v10273_v4  ;;  %v2693_v1 = vadd.f32 %v2692_v20, %v10269_v8  ;;  %v2659_v20 = vadd.f32 %v10511_v47, %v10292_v44 }
 0x3dd   : > { %v2937_v18 = vmax.f32 %v2640_v34, 0.0  ;;  %v2696_v34 = vadd.f32 %v2695_v54, %v10261_v12  ;;  %v2840_v47 = vmax.f32 %v10560_v29, 0.0  ;;  %v2654_v29 = vadd.f32 %v10490_v24, %v10298_v61 }
 0x3de   : > { %v3008_v21 = vpack.c.bf16 %v2936_v53, %v2920_v15  ;;  %v2905_v15 = vmax.f32 %v2635_v51, 0.0  ;;  %v2922_v51 = vmax.f32 %v2667_v2, 0.0  ;;  %v2907_v2 = vmax.f32 %v2693_v1, 0.0 }
 0x3df   : > { %v3009_v5 = vpack.c.bf16 %v2937_v18, %v2921_v27  ;;  %v2873_v27 = vmax.f32 %v2630_v32, 0.0  ;;  %v2889_v18 = vmax.f32 %v2633_v46, 0.0  ;;  %v2992_v32 = vpack.c.bf16 %v2904_v33, %v2888_v14 }
 0x3e0   : > { %v2668_v45 = vpop.f32.mrf.mxu2  ;;  %3284 = vmatpush.bf16.msra.mxu0 %v3008_v21  ;;  %v2856_v46 = vmax.f32 %v2599_v11, 0.0  ;;  %v2857_v33 = vmax.f32 %v2628_v17, 0.0  ;;  %v2841_v11 = vmax.f32 %v10566_v40, 0.0  ;;  %v2874_v17 = vmax.f32 %v2659_v20, 0.0 }
 0x3e1   : > { %v2669_v53 = vadd.f32 %v2668_v45, %v10265_v60  ;;  %v2697_v22 = vpop.f32.mrf.mxu3  ;;  %3313 = vmatpush.bf16.msra.mxu1 %v3009_v5  ;;  %v10576_v43 = vpop.f32.mrf.mxu0  ;;  %v2923_v45 = vmax.f32 %v2696_v34, 0.0  ;;  %v2993_v9 = vpack.c.bf16 %v2905_v15, %v2889_v18  ;;  %v2891_v15 = vmax.f32 %v2691_v58, 0.0 }
 0x3e2   : > { %v2698_v42 = vadd.f32 %v2697_v22, %v10265_v60  ;;  %v10580_v54 = vpop.f32.mrf.mxu1  ;;  %v2976_v22 = vpack.c.bf16 %v2872_v26, %v2856_v46  ;;  %v2977_v13 = vpack.c.bf16 %v2873_v27, %v2857_v33  ;;  %v2824_v40 = vmax.f32 %v10546_v31, 0.0 }
 0x3e3   : > { %v2938_v21 = vmax.f32 %v2669_v53, 0.0  ;;  %v2890_v53 = vmax.f32 %v2662_v59, 0.0  ;;  %v2875_v18 = vmax.f32 %v2688_v19, 0.0  ;;  %v2995_v26 = vpack.c.bf16 %v2907_v2, %v2891_v15 }
 0x3e4   : > { %v2939_v38 = vmax.f32 %v2698_v42, 0.0  ;;  %7881 = vmatmul.msk.bf16.vlgmr.msrb.gmra.mxu0 %vm2339_vm1, %v10440_v52  ;;  %v2652_v24 = vadd.f32 %v10472_v10, %v10285_v3  ;;  %v2681_v27 = vadd.f32 %v10476_v63, %v10285_v3  ;;  %v2859_v31 = vmax.f32 %v2686_v37, 0.0 }
 0x3e5   : > { %v3010_v5 = vpack.c.bf16 %v2938_v21, %v2922_v51  ;;  %7885 = vmatmul.msk.bf16.vlgmr.msrb.gmra.mxu1 %vm2339_vm1, %v10440_v52  ;;  %7889 = vmatmul.msk.bf16.vlgmr.msrb.gmra.mxu2 %vm2339_vm1, %v10440_v52  ;;  %v2994_v42 = vpack.c.bf16 %v2906_v39, %v2890_v53  ;;  %v2825_v51 = vmax.f32 %v10551_v6, 0.0  ;;  %v2858_v21 = vmax.f32 %v2657_v48, 0.0 }
 0x3e6   : > { %v3011_v34 = vpack.c.bf16 %v2939_v38, %v2923_v45  ;;  %7893 = vmatmul.msk.bf16.vlgmr.msrb.gmra.mxu3 %vm2339_vm1, %v10440_v52  ;;  %3285 = vmatpush.bf16.msra.mxu0 %v2992_v32  ;;  %v2960_v58 = vpack.c.bf16 %v2840_v47, %v2824_v40  ;;  %v2842_v56 = vmax.f32 %v2654_v29, 0.0  ;;  %v2843_v20 = vmax.f32 %v2683_v50, 0.0 }
 0x3e7   : > { %3314 = vmatpush.bf16.msra.mxu1 %v2993_v9  ;;  %3342 = vmatpush.bf16.msra.mxu2 %v3010_v5  ;;  %v2961_v45 = vpack.c.bf16 %v2841_v11, %v2825_v51  ;;  %v2978_v32 = vpack.c.bf16 %v2874_v17, %v2858_v21  ;;  %v2979_v39 = vpack.c.bf16 %v2875_v18, %v2859_v31  ;;  %v2826_v5 = vmax.f32 %v2652_v24, 0.0 }
 0x3e8   : > { %3371 = vmatpush.bf16.msra.mxu3 %v3011_v34  ;;  %v10602_v38 = vpop.f32.mrf.mxu2  ;;  %v2827_v6 = vmax.f32 %v2681_v27, 0.0 }
 0x3e9   : > { %v10606_v14 = vpop.f32.mrf.mxu3  ;;  %v10608_v1 = vpop.f32.mrf.mxu0  ;;  %v2962_v63 = vpack.c.bf16 %v2842_v56, %v2826_v5  ;;  %v10661_v56 = vadd.f32 %v10576_v43, %v10285_v3 }
 0x3ea   : > { %3286 = vmatpush.bf16.msra.mxu0 %v2976_v22  ;;  %v10613_v59 = vpop.f32.mrf.mxu1  ;;  %v2963_v2 = vpack.c.bf16 %v2843_v20, %v2827_v6  ;;  %v10675_v43 = vadd.f32 %v10608_v1, %v10298_v61 }
 0x3eb   : > { %3315 = vmatpush.bf16.msra.mxu1 %v2977_v13  ;;  %3343 = vmatpush.bf16.msra.mxu2 %v2994_v42 }
 0x3ec   : > { %3372 = vmatpush.bf16.msra.mxu3 %v2995_v26 }
 0x3ee   : > { %3287 = vmatpush.bf16.msra.mxu0 %v2960_v58 }
 0x3ef   : > { %3316 = vmatpush.bf16.msra.mxu1 %v2961_v45  ;;  %3344 = vmatpush.bf16.msra.mxu2 %v2978_v32  ;;  %v10666_v32 = vadd.f32 %v10580_v54, %v10285_v3 }
 0x3f0   : > { %3373 = vmatpush.bf16.msra.mxu3 %v2979_v39  ;;  %v10620_v10 = vpop.f32.mrf.mxu2 }
 0x3f1   : > { %v10622_v9 = vpop.f32.mrf.mxu3  ;;  %v2714_v46 = vpop.f32.mrf.mxu0 }
 0x3f2   : > { %v2743_v19 = vpop.f32.mrf.mxu1 }
 0x3f3   : > { %3345 = vmatpush.bf16.msra.mxu2 %v2962_v63 }
 0x3f4   : > { %3374 = vmatpush.bf16.msra.mxu3 %v2963_v2  ;;  %7882 = vmatmul.msk.bf16.gmra.mxu0 %vm2339_vm1, %v10495_v35 }
 0x3f5   : > { %7886 = vmatmul.msk.bf16.gmra.mxu1 %vm2339_vm1, %v10495_v35  ;;  %7890 = vmatmul.msk.bf16.gmra.mxu2 %vm2339_vm1, %v10495_v35 }
 0x3f6   : > { %7894 = vmatmul.msk.bf16.gmra.mxu3 %vm2339_vm1, %v10495_v35 }
 0x3f8   : > { %v10632_v34 = vpop.f32.mrf.mxu2 }
 0x3f9   : > { %v10634_v47 = vpop.f32.mrf.mxu3  ;;  %v2716_v33 = vpop.f32.mrf.mxu0 }
 0x3fa   : > { %v2745_v48 = vpop.f32.mrf.mxu1  ;;  %v10670_v6 = vadd.f32 %v2716_v33, %v10292_v44 }
 0x400   : > { %v10636_v53 = vpop.f32.mrf.mxu2 }
 0x401   : > { %v10638_v11 = vpop.f32.mrf.mxu3  ;;  %v2719_v37 = vpop.f32.mrf.mxu0 }
 0x402   : > { %v2748_v15 = vpop.f32.mrf.mxu1  ;;  %v2720_v54 = vadd.f32 %v2719_v37, %v10271_v23  ;;  %v2876_v37 = vmax.f32 %v10670_v6, 0.0 }
 0x403   : > { %v2749_v33 = vadd.f32 %v2748_v15, %v10271_v23 }
 0x404   : > { %7883 = vmatmul.msk.bf16.gmra.mxu0 %vm2339_vm1, %v10516_v57 }
 0x405   : > { %7887 = vmatmul.msk.bf16.gmra.mxu1 %vm2339_vm1, %v10516_v57  ;;  %7891 = vmatmul.msk.bf16.gmra.mxu2 %vm2339_vm1, %v10516_v57 }
 0x406   : > { %7895 = vmatmul.msk.bf16.gmra.mxu3 %vm2339_vm1, %v10516_v57 }
 0x408   : > { %v2777_v22 = vpop.f32.mrf.mxu2 }
 0x409   : > { %v2806_v29 = vpop.f32.mrf.mxu3  ;;  %v2721_v17 = vpop.f32.mrf.mxu0  ;;  %v2778_v6 = vadd.f32 %v2777_v22, %v10271_v23 }
 0x40a   : > { %v2750_v13 = vpop.f32.mrf.mxu1  ;;  %v2722_v20 = vadd.f32 %v2721_v17, %v10269_v8  ;;  %v10681_v17 = vadd.f32 %v10613_v59, %v10298_v61 }
 0x40b   : > { %v2751_v63 = vadd.f32 %v2750_v13, %v10269_v8 }
 0x40c   : > { %v2908_v1 = vmax.f32 %v2722_v20, 0.0 }
 0x410   : > { %v2779_v42 = vpop.f32.mrf.mxu2 }
 0x411   : > { %v2808_v40 = vpop.f32.mrf.mxu3  ;;  %v2724_v50 = vpop.f32.mrf.mxu0  ;;  %v2780_v59 = vadd.f32 %v2779_v42, %v10269_v8  ;;  %v2807_v42 = vadd.f32 %v2806_v29, %v10271_v23  ;;  %v2804_v23 = vadd.f32 %v10638_v11, %v10292_v44 }
 0x412   : > { %v2753_v18 = vpop.f32.mrf.mxu1  ;;  %v2725_v26 = vadd.f32 %v2724_v50, %v10261_v12 }
 0x413   : > { %v2754_v24 = vadd.f32 %v2753_v18, %v10261_v12  ;;  %v2746_v18 = vadd.f32 %v2745_v48, %v10292_v44  ;;  %v2895_v11 = vmax.f32 %v2807_v42, 0.0 }
 0x414   : > { %7884 = vmatmul.msk.bf16.gmra.mxu0 %vm2339_vm1, %v10531_v0  ;;  %v2924_v39 = vmax.f32 %v2725_v26, 0.0 }
 0x415   : > { %7888 = vmatmul.msk.bf16.gmra.mxu1 %vm2339_vm1, %v10531_v0  ;;  %7892 = vmatmul.msk.bf16.gmra.mxu2 %vm2339_vm1, %v10531_v0  ;;  %v2925_v2 = vmax.f32 %v2754_v24, 0.0  ;;  %v2715_v24 = vadd.f32 %v2714_v46, %v10273_v4  ;;  %v2892_v46 = vmax.f32 %v2720_v54, 0.0 }
 0x416   : > { %7896 = vmatmul.msk.bf16.gmra.mxu3 %vm2339_vm1, %v10531_v0 }
 0x417   : > { %v2860_v54 = vmax.f32 %v2715_v24, 0.0  ;;  %v2845_v24 = vmax.f32 %v10681_v17, 0.0  ;;  %v2799_v17 = vadd.f32 %v10622_v9, %v10298_v61 }
 0x418   : > { %v2782_v51 = vpop.f32.mrf.mxu2 }
 0x419   : > { %v2811_v21 = vpop.f32.mrf.mxu3  ;;  %v2726_v27 = vpop.f32.mrf.mxu0  ;;  %v2783_v26 = vadd.f32 %v2782_v51, %v10261_v12 }
 0x41a   : > { %v2727_v31 = vadd.f32 %v2726_v27, %v10265_v60  ;;  %v2755_v58 = vpop.f32.mrf.mxu1 }
 0x41b   : > { %v2756_v45 = vadd.f32 %v2755_v58, %v10265_v60  ;;  %v2812_v58 = vadd.f32 %v2811_v21, %v10261_v12  ;;  %v2893_v21 = vmax.f32 %v2749_v33, 0.0 }
 0x41c   : > { %v2940_v5 = vmax.f32 %v2727_v31, 0.0  ;;  %v2744_v31 = vadd.f32 %v2743_v19, %v10273_v4  ;;  %v2809_v19 = vadd.f32 %v2808_v40, %v10269_v8  ;;  %v2775_v8 = vadd.f32 %v10636_v53, %v10292_v44 }
 0x41d   : > { %v2941_v50 = vmax.f32 %v2756_v45, 0.0  ;;  %v2909_v45 = vmax.f32 %v2751_v63, 0.0  ;;  %v2926_v63 = vmax.f32 %v2783_v26, 0.0  ;;  %v2910_v40 = vmax.f32 %v2780_v59, 0.0 }
 0x41e   : > { %v3012_v27 = vpack.c.bf16 %v2940_v5, %v2924_v39  ;;  %v2877_v5 = vmax.f32 %v2746_v18, 0.0  ;;  %v2996_v18 = vpack.c.bf16 %v2908_v1, %v2892_v46  ;;  %v2911_v29 = vmax.f32 %v2809_v19, 0.0 }
 0x41f   : > { %v3013_v13 = vpack.c.bf16 %v2941_v50, %v2925_v2  ;;  %v2927_v50 = vmax.f32 %v2812_v58, 0.0  ;;  %v2997_v22 = vpack.c.bf16 %v2909_v45, %v2893_v21  ;;  %v2844_v53 = vmax.f32 %v10675_v43, 0.0 }
 0x420   : > { %v2784_v48 = vpop.f32.mrf.mxu2  ;;  %3400 = vmatpush.bf16.msrb.mxu0 %v3012_v27  ;;  %v2861_v26 = vmax.f32 %v2744_v31, 0.0  ;;  %v2894_v1 = vmax.f32 %v2778_v6, 0.0  ;;  %v2802_v44 = vadd.f32 %v10634_v47, %v10273_v4  ;;  %v2770_v43 = vadd.f32 %v10620_v10, %v10298_v61 }
 0x421   : > { %v2785_v39 = vadd.f32 %v2784_v48, %v10265_v60  ;;  %v2813_v15 = vpop.f32.mrf.mxu3  ;;  %3429 = vmatpush.bf16.msrb.mxu1 %v3013_v13  ;;  %v10691_v51 = vpop.f32.mrf.mxu0  ;;  %v2773_v13 = vadd.f32 %v10632_v34, %v10273_v4  ;;  %v2980_v48 = vpack.c.bf16 %v2876_v37, %v2860_v54  ;;  %v2878_v31 = vmax.f32 %v2775_v8, 0.0 }
 0x422   : > { %v2814_v20 = vadd.f32 %v2813_v15, %v10265_v60  ;;  %v10695_v12 = vpop.f32.mrf.mxu1  ;;  %v2981_v34 = vpack.c.bf16 %v2877_v5, %v2861_v26  ;;  %v2828_v15 = vmax.f32 %v10661_v56, 0.0  ;;  %v2879_v4 = vmax.f32 %v2804_v23, 0.0 }
 0x423   : > { %v2942_v2 = vmax.f32 %v2785_v39, 0.0  ;;  %v2998_v39 = vpack.c.bf16 %v2910_v40, %v2894_v1  ;;  %v2999_v46 = vpack.c.bf16 %v2911_v29, %v2895_v11  ;;  %v2829_v37 = vmax.f32 %v10666_v32, 0.0 }
 0x424   : > { %v2943_v27 = vmax.f32 %v2814_v20, 0.0  ;;  %7897 = vmatmul.msk.bf16.vlgmr.msra.gmra.mxu0 %vm2339_vm1, %v10440_v52  ;;  %v2768_v10 = vadd.f32 %v10602_v38, %v10285_v3  ;;  %v2862_v19 = vmax.f32 %v2773_v13, 0.0  ;;  %v2797_v5 = vadd.f32 %v10606_v14, %v10285_v3 }
 0x425   : > { %v3014_v60 = vpack.c.bf16 %v2942_v2, %v2926_v63  ;;  %7901 = vmatmul.msk.bf16.vlgmr.msra.gmra.mxu1 %vm2339_vm1, %v10440_v52  ;;  %7905 = vmatmul.msk.bf16.vlgmr.msra.gmra.mxu2 %vm2339_vm1, %v10440_v52  ;;  %v2863_v20 = vmax.f32 %v2802_v44, 0.0  ;;  %v2964_v56 = vpack.c.bf16 %v2844_v53, %v2828_v15  ;;  %v2846_v21 = vmax.f32 %v2770_v43, 0.0 }
 0x426   : > { %v3015_v33 = vpack.c.bf16 %v2943_v27, %v2927_v50  ;;  %7909 = vmatmul.msk.bf16.vlgmr.msra.gmra.mxu3 %vm2339_vm1, %v10440_v52  ;;  %3401 = vmatpush.bf16.msrb.mxu0 %v2996_v18  ;;  %v2965_v61 = vpack.c.bf16 %v2845_v24, %v2829_v37  ;;  %v2982_v9 = vpack.c.bf16 %v2878_v31, %v2862_v19  ;;  %v2847_v6 = vmax.f32 %v2799_v17, 0.0 }
 0x427   : > { %3430 = vmatpush.bf16.msrb.mxu1 %v2997_v22  ;;  %3458 = vmatpush.bf16.msrb.mxu2 %v3014_v60  ;;  %v2983_v63 = vpack.c.bf16 %v2879_v4, %v2863_v20  ;;  %v2830_v2 = vmax.f32 %v2768_v10, 0.0  ;;  %v2831_v32 = vmax.f32 %v2797_v5, 0.0  ;;  %v10747_v22 = vpop.permute.xlu2 %3557  ;;  %v3087_v10 = vadd.f32 %v10695_v12, %v9300_v28  ;;  %v13879_v12 = vld [vmem:[#allocation19_spill] sm:$0xff] }
 0x428   : > { %3487 = vmatpush.bf16.msrb.mxu3 %v3015_v33  ;;  %v10717_v58 = vpop.f32.mrf.mxu2  ;;  %v10753_v33 = vpop.permute.xlu1 %3552  ;;  %v13880_v20 = vld [vmem:[#allocation15_spill] sm:$0xff] }
 0x429   : > { %v10721_v45 = vpop.f32.mrf.mxu3  ;;  %v3059_v59 = vpop.f32.mrf.mxu0  ;;  %v2966_v3 = vpack.c.bf16 %v2846_v21, %v2830_v2  ;;  %v2967_v27 = vpack.c.bf16 %v2847_v6, %v2831_v32  ;;  %v13882_v2 = vld [vmem:[#allocation16_spill] sm:$0xff] }
 0x42a   : > { %3402 = vmatpush.bf16.msrb.mxu0 %v2980_v48  ;;  %v3088_v47 = vpop.f32.mrf.mxu1  ;;  %v10771_v48 = vpop.permute.xlu0 %3542  ;;  %v3060_v43 = vadd.f32 %v3059_v59, %v9328_v55 }
 0x42b   : > { %3431 = vmatpush.bf16.msrb.mxu1 %v2981_v34  ;;  %3459 = vmatpush.bf16.msrb.mxu2 %v2998_v39  ;;  %v3089_v34 = vadd.f32 %v3088_v47, %v9330_v36 }
 0x42c   : > { %3488 = vmatpush.bf16.msrb.mxu3 %v2999_v46  ;;  %v3058_v46 = vadd.f32 %v10691_v51, %v9297_v25 }
 0x42e   : > { %3403 = vmatpush.bf16.msrb.mxu0 %v2964_v56 }
 0x42f   : > { %3432 = vmatpush.bf16.msrb.mxu1 %v2965_v61  ;;  %3460 = vmatpush.bf16.msrb.mxu2 %v2982_v9  ;;  %v10763_v26 = vpop.permute.xlu2 %3532  ;;  %v13881_v9 = vld [vmem:[#allocation5_spill] sm:$0xff]  ;;  %v13892_v61 = vld [vmem:[#allocation18_spill] sm:$0xff] }
 0x430   : > { %3489 = vmatpush.bf16.msrb.mxu3 %v2983_v63  ;;  %v10731_v38 = vpop.f32.mrf.mxu2  ;;  %v10769_v11 = vpop.permute.xlu1 %3547 }
 0x431   : > { %v10733_v42 = vpop.f32.mrf.mxu3  ;;  %v3062_v50 = vpop.f32.mrf.mxu0  ;;  %v10822_v6 = vadd.f32 %v10731_v38, %v13881_v9 }
 0x432   : > { %v3091_v14 = vpop.f32.mrf.mxu1  ;;  %v3063_v37 = vadd.f32 %v3062_v50, %v9342_v62 }
 0x433   : > { %3461 = vmatpush.bf16.msrb.mxu2 %v2966_v3  ;;  %v3092_v28 = vadd.f32 %v3091_v14, %v9347_v7 }
 0x434   : > { %3490 = vmatpush.bf16.msrb.mxu3 %v2967_v27  ;;  %7898 = vmatmul.msk.bf16.gmra.mxu0 %vm2339_vm1, %v10495_v35  ;;  %v13883_v27 = vld [vmem:[#allocation11_spill] sm:$0xff] }
 0x435   : > { %7902 = vmatmul.msk.bf16.gmra.mxu1 %vm2339_vm1, %v10495_v35  ;;  %7906 = vmatmul.msk.bf16.gmra.mxu2 %vm2339_vm1, %v10495_v35  ;;  %v10829_v14 = vadd.f32 %v10763_v26, %v3092_v28 }
 0x436   : > { %7910 = vmatmul.msk.bf16.gmra.mxu3 %vm2339_vm1, %v10495_v35 }
 0x437   : > { %v10775_v4 = vpop.permute.xlu2 %3527 }
 0x438   : > { %v10743_v18 = vpop.f32.mrf.mxu2  ;;  %v10783_v19 = vadd.f32 %v10775_v4, %v3060_v43  ;;  %v10789_v36 = vadd.f32 %v10775_v4, %v3089_v34  ;;  %v10796_v25 = vpop.permute.xlu1 %3522 }
 0x439   : > { %v10745_v8 = vpop.f32.mrf.mxu3  ;;  %v3064_v40 = vpop.f32.mrf.mxu0  ;;  %v10805_v51 = vadd.f32 %v10796_v25, %v3058_v46  ;;  %v10812_v5 = vadd.f32 %v10796_v25, %v3087_v10  ;;  %v13887_v10 = vld [vmem:[#allocation7_spill] sm:$0xff] }
 0x43a   : > { %v3093_v60 = vpop.f32.mrf.mxu1  ;;  %v3065_v55 = vadd.f32 %v3064_v40, %v9386_v16  ;;  %v10802_v16 = vpop.permute.xlu0 %3537 }
 0x43b   : > { %v3094_v59 = vadd.f32 %v3093_v60, %v9390_v30  ;;  %v10808_v30 = vadd.f32 %v10763_v26, %v3063_v37  ;;  %v13886_v37 = vld [vmem:[#allocation23_spill] sm:$0xff] }
 0x43d   : > { %v10825_v63 = vadd.f32 %v10802_v16, %v3094_v59  ;;  %v3720_v38 = vmax.f32 %v10808_v30, 0.0  ;;  %v3688_v30 = vmax.f32 %v10805_v51, 0.0  ;;  %v3578_v51 = vadd.f32 %v10775_v4, %v10822_v6 }
 0x440   : > { %v10749_v54 = vpop.f32.mrf.mxu2 }
 0x441   : > { %v10751_v23 = vpop.f32.mrf.mxu3  ;;  %v3067_v29 = vpop.f32.mrf.mxu0 }
 0x442   : > { %v3096_v53 = vpop.f32.mrf.mxu1  ;;  %v3068_v40 = vadd.f32 %v3067_v29, %v13883_v27 }
 0x444   : > { %7899 = vmatmul.msk.bf16.gmra.mxu0 %vm2339_vm1, %v10516_v57  ;;  %v3624_v9 = vadd.f32 %v10771_v48, %v3068_v40 }
 0x445   : > { %7903 = vmatmul.msk.bf16.gmra.mxu1 %vm2339_vm1, %v10516_v57  ;;  %7907 = vmatmul.msk.bf16.gmra.mxu2 %vm2339_vm1, %v10516_v57 }
 0x446   : > { %7911 = vmatmul.msk.bf16.gmra.mxu3 %vm2339_vm1, %v10516_v57 }
 0x448   : > { %v10765_v13 = vpop.f32.mrf.mxu2 }
 0x449   : > { %v10767_v1 = vpop.f32.mrf.mxu3  ;;  %v3069_v24 = vpop.f32.mrf.mxu0 }
 0x44a   : > { %v3098_v44 = vpop.f32.mrf.mxu1  ;;  %v3070_v56 = vadd.f32 %v3069_v24, %v13880_v20  ;;  %v13884_v24 = vld [vmem:[#allocation22_spill] sm:$0xff]  ;;  %v13888_v20 = vld [vmem:[#allocation20_spill] sm:$0xff] }
 0x44b   : > { %v3099_v32 = vadd.f32 %v3098_v44, %v13882_v2 }
 0x44c   : > { %v3640_v29 = vadd.f32 %v10769_v11, %v3070_v56 }
 0x450   : > { %v3127_v31 = vpop.f32.mrf.mxu2 }
 0x451   : > { %v3156_v39 = vpop.f32.mrf.mxu3  ;;  %v3072_v15 = vpop.f32.mrf.mxu0 }
 0x452   : > { %v3101_v17 = vpop.f32.mrf.mxu1  ;;  %v3073_v62 = vadd.f32 %v3072_v15, %v9465_v49  ;;  %v10816_v49 = vadd.f32 %v10802_v16, %v3065_v55  ;;  %v13885_v15 = vld [vmem:[#allocation12_spill] sm:$0xff]  ;;  %v10840_v55 = vadd.f32 %v10743_v18, %v13887_v10 }
 0x453   : > { %v3102_v47 = vadd.f32 %v3101_v17, %v13879_v12  ;;  %v3097_v17 = vadd.f32 %v3096_v53, %v13885_v15  ;;  %v3641_v12 = vadd.f32 %v10769_v11, %v3099_v32  ;;  %v3768_v32 = vmax.f32 %v3640_v29, 0.0  ;;  %v13895_v29 = vld [vmem:[#allocation25_spill] sm:$0xff] }
 0x454   : > { %7900 = vmatmul.msk.bf16.gmra.mxu0 %vm2339_vm1, %v10531_v0  ;;  %v3656_v60 = vadd.f32 %v10753_v33, %v3073_v62  ;;  %v3736_v59 = vmax.f32 %v10816_v49, 0.0  ;;  %v3737_v62 = vmax.f32 %v10825_v63, 0.0 }
 0x455   : > { %7904 = vmatmul.msk.bf16.gmra.mxu1 %vm2339_vm1, %v10531_v0  ;;  %7908 = vmatmul.msk.bf16.gmra.mxu2 %vm2339_vm1, %v10531_v0  ;;  %v3657_v46 = vadd.f32 %v10753_v33, %v3102_v47  ;;  %v3769_v7 = vmax.f32 %v3641_v12, 0.0 }
 0x456   : > { %7912 = vmatmul.msk.bf16.gmra.mxu3 %vm2339_vm1, %v10531_v0  ;;  %v3784_v2 = vmax.f32 %v3656_v60, 0.0 }
 0x457   : > { %v3785_v15 = vmax.f32 %v3657_v46, 0.0  ;;  %v13894_v46 = vld [vmem:[#allocation14_spill] sm:$0xff] }
 0x458   : > { %v3130_v21 = vpop.f32.mrf.mxu2 }
 0x459   : > { %v3159_v50 = vpop.f32.mrf.mxu3  ;;  %v3074_v3 = vpop.f32.mrf.mxu0  ;;  %v3131_v53 = vadd.f32 %v3130_v21, %v13888_v20  ;;  %v3157_v21 = vadd.f32 %v3156_v39, %v13892_v61  ;;  %v13896_v61 = vld [vmem:[#allocation9_spill] sm:$0xff] }
 0x45a   : > { %v3075_v43 = vadd.f32 %v3074_v3, %v13884_v24  ;;  %v3103_v34 = vpop.f32.mrf.mxu1  ;;  %v13889_v3 = vld [vmem:[#allocation21_spill] sm:$0xff]  ;;  %v3625_v24 = vadd.f32 %v10771_v48, %v3097_v17  ;;  %v3123_v12 = vadd.f32 %v10749_v54, %v13896_v61  ;;  %v13900_v61 = vld [vmem:[#allocation3_spill] sm:$0xff] }
 0x45b   : > { %v3104_v44 = vadd.f32 %v3103_v34, %v13886_v37  ;;  %v3160_v18 = vadd.f32 %v3159_v50, %v13889_v3  ;;  %v13890_v34 = vld [vmem:[#allocation17_spill] sm:$0xff]  ;;  %v3658_v40 = vadd.f32 %v10753_v33, %v3131_v53  ;;  %v13893_v50 = vld [vmem:[#allocation24_spill] sm:$0xff]  ;;  %v3116_v49 = vadd.f32 %v10717_v58, %v13900_v61 }
 0x45c   : > { %v3672_v28 = vadd.f32 %v10747_v22, %v3075_v43  ;;  %v3128_v56 = vadd.f32 %v3127_v31, %v13890_v34  ;;  %v13891_v37 = vld [vmem:[#allocation13_spill] sm:$0xff]  ;;  %v3752_v31 = vmax.f32 %v3624_v9, 0.0  ;;  %v3753_v53 = vmax.f32 %v3625_v24, 0.0  ;;  %v13897_v9 = vld [vmem:[#allocation10_spill] sm:$0xff] }
 0x45d   : > { %v3673_v47 = vadd.f32 %v10747_v22, %v3104_v44  ;;  %v3126_v10 = vadd.f32 %v10765_v13, %v13891_v37  ;;  %v3659_v13 = vadd.f32 %v10753_v33, %v3160_v18  ;;  %v3786_v54 = vmax.f32 %v3658_v40, 0.0 }
 0x45e   : > { %v3800_v27 = vmax.f32 %v3672_v28, 0.0  ;;  %v13902_v58 = vmax.f32 %v10783_v19, 0.0 }
 0x45f   : > { %v3801_v43 = vmax.f32 %v3673_v47, 0.0  ;;  %v3155_v47 = vadd.f32 %v10767_v1, %v13894_v46  ;;  %v3643_v1 = vadd.f32 %v10769_v11, %v3157_v21  ;;  %v3626_v37 = vadd.f32 %v10771_v48, %v3126_v10 }
 0x460   : > { %v3872_v20 = vpack.c.bf16 %v3800_v27, %v3784_v2  ;;  %v3132_v44 = vpop.f32.mrf.mxu2  ;;  %v3642_v2 = vadd.f32 %v10769_v11, %v3128_v56  ;;  %v3857_v56 = vpack.c.bf16 %v3769_v7, %v3753_v53  ;;  %v3721_v10 = vmax.f32 %v10829_v14, 0.0 }
 0x461   : > { %v3873_v60 = vpack.c.bf16 %v3801_v43, %v3785_v15  ;;  %v3133_v28 = vadd.f32 %v3132_v44, %v13893_v50  ;;  %v3161_v3 = vpop.f32.mrf.mxu3  ;;  %v10858_v17 = vpop.f32.mrf.mxu0  ;;  %v3152_v15 = vadd.f32 %v10751_v23, %v13897_v9  ;;  %v3856_v43 = vpack.c.bf16 %v3768_v32, %v3752_v31  ;;  %v13898_v23 = vld [vmem:[#allocation8_spill] sm:$0xff] }
 0x462   : > { %v3162_v34 = vadd.f32 %v3161_v3, %v13895_v29  ;;  %v10864_v39 = vpop.f32.mrf.mxu1  ;;  %3972 = vmatpush.bf16.msra.mxu0 %v3872_v20  ;;  %v3150_v21 = vadd.f32 %v10745_v8, %v13898_v23  ;;  %v3627_v20 = vadd.f32 %v10771_v48, %v3155_v47  ;;  %v3787_v44 = vmax.f32 %v3659_v13, 0.0 }
 0x463   : > { %v3674_v27 = vadd.f32 %v10747_v22, %v3133_v28  ;;  %4001 = vmatpush.bf16.msra.mxu1 %v3873_v60  ;;  %v3610_v32 = vadd.f32 %v10802_v16, %v3123_v12  ;;  %v3770_v40 = vmax.f32 %v3642_v2, 0.0  ;;  %v3611_v7 = vadd.f32 %v10802_v16, %v3152_v15  ;;  %v13901_v12 = vld [vmem:[#allocation4_spill] sm:$0xff] }
 0x464   : > { %v3675_v18 = vadd.f32 %v10747_v22, %v3162_v34  ;;  %7913 = vmatmul.msk.bf16.vlgmr.msrb.gmra.mxu0 %vm2339_vm1, %v10440_v52  ;;  %v3771_v28 = vmax.f32 %v3643_v1, 0.0  ;;  %v3840_v31 = vpack.c.bf16 %v3736_v59, %v3720_v38  ;;  %v3594_v14 = vadd.f32 %v10763_v26, %v10840_v55 }
 0x465   : > { %v3802_v24 = vmax.f32 %v3674_v27, 0.0  ;;  %7917 = vmatmul.msk.bf16.vlgmr.msrb.gmra.mxu1 %vm2339_vm1, %v10440_v52  ;;  %7921 = vmatmul.msk.bf16.vlgmr.msrb.gmra.mxu2 %vm2339_vm1, %v10440_v52  ;;  %v3754_v47 = vmax.f32 %v3626_v37, 0.0  ;;  %v3841_v34 = vpack.c.bf16 %v3737_v62, %v3721_v10  ;;  %v3595_v38 = vadd.f32 %v10763_v26, %v3150_v21 }
 0x466   : > { %v3803_v60 = vmax.f32 %v3675_v18, 0.0  ;;  %7925 = vmatmul.msk.bf16.vlgmr.msrb.gmra.mxu3 %vm2339_vm1, %v10440_v52  ;;  %3973 = vmatpush.bf16.msra.mxu0 %v3856_v43  ;;  %v13899_v52 = vld [vmem:[#allocation6_spill] sm:$0xff]  ;;  %v3689_v55 = vmax.f32 %v10812_v5, 0.0  ;;  %v3145_v53 = vadd.f32 %v10721_v45, %v13901_v12  ;;  %v3738_v2 = vmax.f32 %v3610_v32, 0.0 }
 0x467   : > { %v3874_v50 = vpack.c.bf16 %v3802_v24, %v3786_v54  ;;  %4002 = vmatpush.bf16.msra.mxu1 %v3857_v56  ;;  %v3147_v46 = vadd.f32 %v10733_v42, %v13899_v52  ;;  %v3755_v42 = vmax.f32 %v3627_v20, 0.0  ;;  %v3858_v63 = vpack.c.bf16 %v3770_v40, %v3754_v47 }
 0x468   : > { %v3875_v3 = vpack.c.bf16 %v3803_v60, %v3787_v44  ;;  %v10889_v8 = vpop.f32.mrf.mxu2  ;;  %v3739_v62 = vmax.f32 %v3611_v7, 0.0  ;;  %v3824_v9 = vpack.c.bf16 %v13902_v58, %v3688_v30  ;;  %v3722_v1 = vmax.f32 %v3594_v14, 0.0  ;;  %v13909_v58 = vld [vmem:[#allocation38_spill] sm:$0xff] }
 0x469   : > { %v10899_v13 = vpop.f32.mrf.mxu3  ;;  %4030 = vmatpush.bf16.msra.mxu2 %v3874_v50  ;;  %v10901_v29 = vpop.f32.mrf.mxu0  ;;  %v3859_v27 = vpack.c.bf16 %v3771_v28, %v3755_v42  ;;  %v3579_v15 = vadd.f32 %v10775_v4, %v3147_v46  ;;  %v13903_v5 = vmax.f32 %v10789_v36, 0.0  ;;  %v3562_v45 = vadd.f32 %v10796_v25, %v3116_v49  ;;  %v13905_v49 = vld [vmem:[#allocation31_spill] sm:$0xff] }
 0x46a   : > { %4059 = vmatpush.bf16.msra.mxu3 %v3875_v3  ;;  %v3204_v59 = vpop.f32.mrf.mxu1  ;;  %3974 = vmatpush.bf16.msra.mxu0 %v3840_v31  ;;  %v3723_v43 = vmax.f32 %v3595_v38, 0.0  ;;  %v3563_v37 = vadd.f32 %v10796_v25, %v3145_v53  ;;  %v3842_v6 = vpack.c.bf16 %v3738_v2, %v3722_v1  ;;  %v3706_v54 = vmax.f32 %v3578_v51, 0.0  ;;  %v13906_v53 = vld [vmem:[#allocation26_spill] sm:$0xff] }
 0x46b   : > { %4003 = vmatpush.bf16.msra.mxu1 %v3841_v34  ;;  %v3825_v18 = vpack.c.bf16 %v13903_v5, %v3689_v55  ;;  %v3707_v56 = vmax.f32 %v3579_v15, 0.0  ;;  %v3690_v20 = vmax.f32 %v3562_v45, 0.0  ;;  %v13904_v34 = vld [vmem:[#allocation30_spill] sm:$0xff]  ;;  %v3205_v38 = vadd.f32 %v3204_v59, %v13905_v49  ;;  %v13910_v59 = vld [vmem:[#allocation39_spill] sm:$0xff] }
 0x46c   : > { %v3843_v19 = vpack.c.bf16 %v3739_v62, %v3723_v43  ;;  %v3691_v44 = vmax.f32 %v3563_v37, 0.0  ;;  %v3176_v30 = vadd.f32 %v10901_v29, %v13904_v34  ;;  %v3174_v2 = vadd.f32 %v10858_v17, %v13906_v53  ;;  %v13911_v17 = vld [vmem:[#allocation35_spill] sm:$0xff]  ;;  %v13912_v1 = vld [vmem:[#allocation50_spill] sm:$0xff] }
 0x46d   : > { %4031 = vmatpush.bf16.msra.mxu2 %v3858_v63  ;;  %v3826_v60 = vpack.c.bf16 %v3706_v54, %v3690_v20  ;;  %v13907_v63 = vld [vmem:[#allocation34_spill] sm:$0xff]  ;;  %v10962_v29 = vadd.f32 %v10775_v4, %v3205_v38  ;;  %v13913_v43 = vld [vmem:[#allocation51_spill] sm:$0xff] }
 0x46e   : > { %4060 = vmatpush.bf16.msra.mxu3 %v3859_v27  ;;  %3975 = vmatpush.bf16.msra.mxu0 %v3824_v9  ;;  %v3827_v10 = vpack.c.bf16 %v3707_v56, %v3691_v44  ;;  %v10956_v27 = vadd.f32 %v10775_v4, %v3176_v30  ;;  %v13914_v56 = vld [vmem:[#allocation46_spill] sm:$0xff] }
 0x46f   : > { %4004 = vmatpush.bf16.msra.mxu1 %v3825_v18  ;;  %v10974_v18 = vadd.f32 %v10796_v25, %v3174_v2  ;;  %v13917_v49 = vld [vmem:[#allocation42_spill] sm:$0xff]  ;;  %v13919_v2 = vld [vmem:[#allocation43_spill] sm:$0xff] }
 0x470   : > { %v3233_v24 = vpop.f32.mrf.mxu2  ;;  %v3708_v54 = vmax.f32 %v10956_v27, 0.0 }
 0x471   : > { %v10921_v23 = vpop.f32.mrf.mxu3  ;;  %4032 = vmatpush.bf16.msra.mxu2 %v3842_v6  ;;  %v3178_v21 = vpop.f32.mrf.mxu0 }
 0x472   : > { %4061 = vmatpush.bf16.msra.mxu3 %v3843_v19  ;;  %v3207_v36 = vpop.f32.mrf.mxu1  ;;  %v3179_v51 = vadd.f32 %v3178_v21, %v13907_v63 }
 0x474   : > { %7914 = vmatmul.msk.bf16.gmra.mxu0 %vm2339_vm1, %v10495_v35  ;;  %v10977_v45 = vadd.f32 %v10763_v26, %v3179_v51 }
 0x475   : > { %7918 = vmatmul.msk.bf16.gmra.mxu1 %vm2339_vm1, %v10495_v35  ;;  %7922 = vmatmul.msk.bf16.gmra.mxu2 %vm2339_vm1, %v10495_v35 }
 0x476   : > { %7926 = vmatmul.msk.bf16.gmra.mxu3 %vm2339_vm1, %v10495_v35  ;;  %4033 = vmatpush.bf16.msra.mxu2 %v3826_v60 }
 0x477   : > { %4062 = vmatpush.bf16.msra.mxu3 %v3827_v10  ;;  %v13916_v10 = vld [vmem:[#allocation47_spill] sm:$0xff] }
 0x478   : > { %v3236_v32 = vpop.f32.mrf.mxu2 }
 0x479   : > { %v10931_v40 = vpop.f32.mrf.mxu3  ;;  %v3180_v50 = vpop.f32.mrf.mxu0 }
 0x47a   : > { %v3209_v7 = vpop.f32.mrf.mxu1  ;;  %v3181_v9 = vadd.f32 %v3180_v50, %v13909_v58 }
 0x47b   : > { %v3210_v15 = vadd.f32 %v3209_v7, %v13910_v59 }
 0x47c   : > { %v10985_v19 = vadd.f32 %v10802_v16, %v3181_v9 }
 0x47d   : > { %v10993_v60 = vadd.f32 %v10802_v16, %v3210_v15 }
 0x47e   : > { %v3740_v9 = vmax.f32 %v10985_v19, 0.0 }
 0x47f   : > { %v3741_v15 = vmax.f32 %v10993_v60, 0.0 }
 0x480   : > { %v10933_v28 = vpop.f32.mrf.mxu2 }
 0x481   : > { %v10935_v3 = vpop.f32.mrf.mxu3  ;;  %v3183_v31 = vpop.f32.mrf.mxu0 }
 0x482   : > { %v3212_v52 = vpop.f32.mrf.mxu1  ;;  %v3184_v38 = vadd.f32 %v3183_v31, %v13917_v49 }
 0x483   : > { %v3213_v63 = vadd.f32 %v3212_v52, %v13919_v2 }
 0x484   : > { %7915 = vmatmul.msk.bf16.gmra.mxu0 %vm2339_vm1, %v10516_v57 }
 0x485   : > { %7919 = vmatmul.msk.bf16.gmra.mxu1 %vm2339_vm1, %v10516_v57  ;;  %7923 = vmatmul.msk.bf16.gmra.mxu2 %vm2339_vm1, %v10516_v57 }
 0x486   : > { %7927 = vmatmul.msk.bf16.gmra.mxu3 %vm2339_vm1, %v10516_v57  ;;  %v13908_v57 = vld [vmem:[#allocation27_spill] sm:$0xff] }
 0x487   : > { %v3203_v62 = vadd.f32 %v10864_v39, %v13908_v57  ;;  %v3208_v39 = vadd.f32 %v3207_v36, %v13911_v17  ;;  %v13915_v36 = vld [vmem:[#allocation32_spill] sm:$0xff]  ;;  %v13920_v57 = vld [vmem:[#allocation55_spill] sm:$0xff] }
 0x488   : > { %v3241_v35 = vpop.f32.mrf.mxu2  ;;  %v10990_v44 = vadd.f32 %v3233_v24, %v13915_v36  ;;  %v3724_v24 = vmax.f32 %v10977_v45, 0.0  ;;  %v3629_v36 = vadd.f32 %v10771_v48, %v3213_v63  ;;  %v3692_v45 = vmax.f32 %v10974_v18, 0.0 }
 0x489   : > { %v10945_v46 = vpop.f32.mrf.mxu3  ;;  %v3185_v14 = vpop.f32.mrf.mxu0  ;;  %v10981_v6 = vadd.f32 %v10796_v25, %v3203_v62  ;;  %v10997_v30 = vadd.f32 %v10763_v26, %v3208_v39  ;;  %v13921_v62 = vld [vmem:[#allocation36_spill] sm:$0xff] }
 0x48a   : > { %v3214_v47 = vpop.f32.mrf.mxu1  ;;  %v3186_v21 = vadd.f32 %v3185_v14, %v13914_v56  ;;  %v11007_v58 = vadd.f32 %v3236_v32, %v13921_v62  ;;  %v13922_v39 = vld [vmem:[#allocation52_spill] sm:$0xff]  ;;  %v3582_v18 = vadd.f32 %v10775_v4, %v10990_v44 }
 0x48b   : > { %v3215_v50 = vadd.f32 %v3214_v47, %v13916_v10  ;;  %v13924_v10 = vld [vmem:[#allocation48_spill] sm:$0xff] }
 0x48c   : > { %v3644_v31 = vadd.f32 %v10769_v11, %v3186_v21 }
 0x48d   : > { %v3645_v17 = vadd.f32 %v10769_v11, %v3215_v50  ;;  %v13926_v50 = vld [vmem:[#allocation49_spill] sm:$0xff] }
 0x490   : > { %v3243_v61 = vpop.f32.mrf.mxu2 }
 0x491   : > { %v3272_v42 = vpop.f32.mrf.mxu3  ;;  %v3188_v55 = vpop.f32.mrf.mxu0  ;;  %v3244_v21 = vadd.f32 %v3243_v61, %v13924_v10 }
 0x492   : > { %v3217_v12 = vpop.f32.mrf.mxu1  ;;  %v3189_v5 = vadd.f32 %v3188_v55, %v13912_v1  ;;  %v13918_v55 = vld [vmem:[#allocation54_spill] sm:$0xff]  ;;  %v3273_v2 = vadd.f32 %v3272_v42, %v13926_v50 }
 0x493   : > { %v3218_v37 = vadd.f32 %v3217_v12, %v13913_v43 }
 0x494   : > { %7916 = vmatmul.msk.bf16.gmra.mxu0 %vm2339_vm1, %v10531_v0  ;;  %v3660_v14 = vadd.f32 %v10753_v33, %v3189_v5  ;;  %v3628_v5 = vadd.f32 %v10771_v48, %v3184_v38  ;;  %v11025_v38 = vld [vmem:[%s13685_s3 + $0x40] sm:$0xff] }
 0x495   : > { %7920 = vmatmul.msk.bf16.gmra.mxu1 %vm2339_vm1, %v10531_v0  ;;  %7924 = vmatmul.msk.bf16.gmra.mxu2 %vm2339_vm1, %v10531_v0  ;;  %v3661_v51 = vadd.f32 %v10753_v33, %v3218_v37  ;;  %v13923_v37 = vld [vmem:[#allocation53_spill] sm:$0xff] }
 0x496   : > { %7928 = vmatmul.msk.bf16.gmra.mxu3 %vm2339_vm1, %v10531_v0  ;;  %v3709_v0 = vmax.f32 %v10962_v29, 0.0  ;;  %v3788_v43 = vmax.f32 %v3660_v14, 0.0 }
 0x498   : > { %v3246_v20 = vpop.f32.mrf.mxu2 }
 0x499   : > { %v3275_v7 = vpop.f32.mrf.mxu3  ;;  %v3190_v34 = vpop.f32.mrf.mxu0  ;;  %v3247_v1 = vadd.f32 %v3246_v20, %v13922_v39  ;;  %v13929_v39 = vld [vmem:[#allocation57_spill] sm:$0xff] }
 0x49a   : > { %v3191_v12 = vadd.f32 %v3190_v34, %v13918_v55  ;;  %v3219_v53 = vpop.f32.mrf.mxu1  ;;  %v3276_v32 = vadd.f32 %v3275_v7, %v13923_v37  ;;  %v3789_v34 = vmax.f32 %v3661_v51, 0.0  ;;  %v13925_v55 = vld [vmem:[#allocation44_spill] sm:$0xff]  ;;  %v3773_v7 = vmax.f32 %v3645_v17, 0.0 }
 0x49b   : > { %v3220_v47 = vadd.f32 %v3219_v53, %v13920_v57  ;;  %v3772_v53 = vmax.f32 %v3644_v31, 0.0  ;;  %v3662_v14 = vadd.f32 %v10753_v33, %v3247_v1  ;;  %v13928_v31 = vld [vmem:[#allocation45_spill] sm:$0xff]  ;;  %v13930_v17 = vld [vmem:[#allocation40_spill] sm:$0xff]  ;;  %v3757_v37 = vmax.f32 %v3629_v36, 0.0 }
 0x49c   : > { %v3676_v59 = vadd.f32 %v10747_v22, %v3191_v12  ;;  %v3242_v12 = vadd.f32 %v3241_v35, %v13925_v55  ;;  %v3756_v35 = vmax.f32 %v3628_v5, 0.0  ;;  %v3271_v42 = vadd.f32 %v10945_v46, %v13928_v31  ;;  %v13931_v5 = vld [vmem:[#allocation41_spill] sm:$0xff] }
 0x49d   : > { %v3677_v52 = vadd.f32 %v10747_v22, %v3220_v47  ;;  %v13927_v47 = vld [vmem:[#allocation56_spill] sm:$0xff]  ;;  %v3239_v1 = vadd.f32 %v10933_v28, %v13930_v17  ;;  %v3647_v46 = vadd.f32 %v10769_v11, %v3273_v2  ;;  %v3790_v28 = vmax.f32 %v3662_v14, 0.0 }
 0x49e   : > { %v3804_v56 = vmax.f32 %v3676_v59, 0.0  ;;  %v3663_v59 = vadd.f32 %v10753_v33, %v3276_v32  ;;  %v3630_v55 = vadd.f32 %v10771_v48, %v3242_v12  ;;  %v3631_v2 = vadd.f32 %v10771_v48, %v3271_v42  ;;  %v13934_v17 = vld [vmem:[#allocation28_spill] sm:$0xff] }
 0x49f   : > { %v3805_v49 = vmax.f32 %v3677_v52, 0.0  ;;  %v3725_v12 = vmax.f32 %v10997_v30, 0.0  ;;  %v3598_v30 = vadd.f32 %v10763_v26, %v11007_v58  ;;  %v3232_v19 = vadd.f32 %v10889_v8, %v13934_v17  ;;  %v11137_v17 = vld [vmem:[%s13685_s3 + $0x58] sm:$0xff] }
 0x4a0   : > { %v3876_v20 = vpack.c.bf16 %v3804_v56, %v3788_v43  ;;  %v3248_v57 = vpop.f32.mrf.mxu2  ;;  %v3646_v56 = vadd.f32 %v10769_v11, %v3244_v21  ;;  %v3861_v21 = vpack.c.bf16 %v3773_v7, %v3757_v37  ;;  %v3758_v42 = vmax.f32 %v3630_v55, 0.0 }
 0x4a1   : > { %v3877_v63 = vpack.c.bf16 %v3805_v49, %v3789_v34  ;;  %v3249_v61 = vadd.f32 %v3248_v57, %v13927_v47  ;;  %v3277_v51 = vpop.f32.mrf.mxu3  ;;  %v11029_v62 = vpop.f32.mrf.mxu0  ;;  %v3268_v34 = vadd.f32 %v10935_v3, %v13931_v5  ;;  %v3860_v49 = vpack.c.bf16 %v3772_v53, %v3756_v35  ;;  %v13932_v3 = vld [vmem:[#allocation37_spill] sm:$0xff] }
 0x4a2   : > { %v3278_v52 = vadd.f32 %v3277_v51, %v13929_v39  ;;  %v11035_v43 = vpop.f32.mrf.mxu1  ;;  %4088 = vmatpush.bf16.msrb.mxu0 %v3876_v20  ;;  %v3266_v50 = vadd.f32 %v10931_v40, %v13932_v3  ;;  %v3791_v20 = vmax.f32 %v3663_v59, 0.0  ;;  %v3614_v53 = vadd.f32 %v10802_v16, %v3239_v1  ;;  %v13933_v35 = vld [vmem:[#allocation33_spill] sm:$0xff] }
 0x4a3   : > { %v3678_v10 = vadd.f32 %v10747_v22, %v3249_v61  ;;  %4117 = vmatpush.bf16.msrb.mxu1 %v3877_v63  ;;  %v3774_v14 = vmax.f32 %v3646_v56, 0.0  ;;  %v3615_v7 = vadd.f32 %v10802_v16, %v3268_v34  ;;  %v3775_v47 = vmax.f32 %v3647_v46, 0.0  ;;  %v13935_v1 = vld [vmem:[#allocation29_spill] sm:$0xff] }
 0x4a4   : > { %v3679_v32 = vadd.f32 %v10747_v22, %v3278_v52  ;;  %7945 = vmatmul.msk.bf16.vlgmr.msra.gmra.mxu0 %vm2339_vm1, %v11025_v38  ;;  %v3844_v51 = vpack.c.bf16 %v3740_v9, %v3724_v24  ;;  %v3263_v31 = vadd.f32 %v10921_v23, %v13933_v35  ;;  %v3845_v52 = vpack.c.bf16 %v3741_v15, %v3725_v12 }
 0x4a5   : > { %v3806_v36 = vmax.f32 %v3678_v10, 0.0  ;;  %7949 = vmatmul.msk.bf16.vlgmr.msra.gmra.mxu1 %vm2339_vm1, %v11025_v38  ;;  %7953 = vmatmul.msk.bf16.vlgmr.msra.gmra.mxu2 %vm2339_vm1, %v11025_v38  ;;  %v3599_v24 = vadd.f32 %v10763_v26, %v3266_v50  ;;  %v3759_v23 = vmax.f32 %v3631_v2, 0.0  ;;  %v3693_v58 = vmax.f32 %v10981_v6, 0.0 }
 0x4a6   : > { %v3807_v57 = vmax.f32 %v3679_v32, 0.0  ;;  %7957 = vmatmul.msk.bf16.vlgmr.msra.gmra.mxu3 %vm2339_vm1, %v11025_v38  ;;  %4089 = vmatpush.bf16.msrb.mxu0 %v3860_v49  ;;  %v3261_v37 = vadd.f32 %v10899_v13, %v13935_v1  ;;  %v3742_v56 = vmax.f32 %v3614_v53, 0.0  ;;  %v3862_v60 = vpack.c.bf16 %v3774_v14, %v3758_v42  ;;  %v13936_v42 = vld [vmem:[#allocation62_spill] sm:$0xff] }
 0x4a7   : > { %v3878_v63 = vpack.c.bf16 %v3806_v36, %v3790_v28  ;;  %4118 = vmatpush.bf16.msrb.mxu1 %v3861_v21  ;;  %v3743_v15 = vmax.f32 %v3615_v7, 0.0  ;;  %v3863_v10 = vpack.c.bf16 %v3775_v47, %v3759_v23  ;;  %v3828_v8 = vpack.c.bf16 %v3708_v54, %v3692_v45  ;;  %v11097_v54 = vld [vmem:[%s13685_s3 + $0x48] sm:$0xff] }
 0x4a8   : > { %v3879_v61 = vpack.c.bf16 %v3807_v57, %v3791_v20  ;;  %v11060_v40 = vpop.f32.mrf.mxu2  ;;  %v3583_v5 = vadd.f32 %v10775_v4, %v3263_v31  ;;  %v3726_v34 = vmax.f32 %v3598_v30, 0.0  ;;  %v3829_v6 = vpack.c.bf16 %v3709_v0, %v3693_v58 }
 0x4a9   : > { %v11070_v59 = vpop.f32.mrf.mxu3  ;;  %4146 = vmatpush.bf16.msrb.mxu2 %v3878_v63  ;;  %v11072_v39 = vpop.f32.mrf.mxu0  ;;  %v3566_v13 = vadd.f32 %v10796_v25, %v3232_v19  ;;  %v3727_v46 = vmax.f32 %v3599_v24, 0.0  ;;  %v3567_v32 = vadd.f32 %v10796_v25, %v3261_v37  ;;  %v3710_v49 = vmax.f32 %v3582_v18, 0.0  ;;  %v11116_v63 = vld [vmem:[%s13685_s3 + $0x50] sm:$0xff]  ;;  %v13937_v19 = vld [vmem:[#allocation63_spill] sm:$0xff]  ;;  %v13938_v37 = vld [vmem:[#allocation58_spill] sm:$0xff] }
 0x4aa   : > { %4175 = vmatpush.bf16.msrb.mxu3 %v3879_v61  ;;  %v3320_v9 = vpop.f32.mrf.mxu1  ;;  %4090 = vmatpush.bf16.msrb.mxu0 %v3844_v51  ;;  %v3846_v44 = vpack.c.bf16 %v3742_v56, %v3726_v34  ;;  %v3711_v29 = vmax.f32 %v3583_v5, 0.0  ;;  %v3290_v56 = vadd.f32 %v11029_v62, %v13938_v37  ;;  %v13942_v34 = vld [vmem:[#allocation71_spill] sm:$0xff]  ;;  %v13949_v37 = vld [vmem:[#allocation74_spill] sm:$0xff] }
 0x4ab   : > { %4119 = vmatpush.bf16.msrb.mxu1 %v3845_v52  ;;  %v3847_v27 = vpack.c.bf16 %v3743_v15, %v3727_v46  ;;  %v3694_v36 = vmax.f32 %v3566_v13, 0.0  ;;  %v3695_v3 = vmax.f32 %v3567_v32, 0.0  ;;  %v3292_v52 = vadd.f32 %v11072_v39, %v13936_v42  ;;  %v13940_v15 = vld [vmem:[#allocation59_spill] sm:$0xff]  ;;  %v13944_v13 = vld [vmem:[#allocation82_spill] sm:$0xff] }
 0x4ac   : > { %v3321_v24 = vadd.f32 %v3320_v9, %v13937_v19  ;;  %v13943_v62 = vld [vmem:[#allocation67_spill] sm:$0xff]  ;;  %v11164_v32 = vadd.f32 %v10796_v25, %v3290_v56 }
 0x4ad   : > { %4147 = vmatpush.bf16.msrb.mxu2 %v3862_v60  ;;  %v3830_v50 = vpack.c.bf16 %v3710_v49, %v3694_v36  ;;  %v3831_v2 = vpack.c.bf16 %v3711_v29, %v3695_v3  ;;  %v13939_v60 = vld [vmem:[#allocation66_spill] sm:$0xff]  ;;  %v11146_v39 = vadd.f32 %v10775_v4, %v3292_v52  ;;  %v13945_v49 = vld [vmem:[#allocation83_spill] sm:$0xff] }
 0x4ae   : > { %4176 = vmatpush.bf16.msrb.mxu3 %v3863_v10  ;;  %4091 = vmatpush.bf16.msrb.mxu0 %v3828_v8  ;;  %v3319_v10 = vadd.f32 %v11035_v43, %v13940_v15  ;;  %v13941_v8 = vld [vmem:[#allocation70_spill] sm:$0xff]  ;;  %v11152_v9 = vadd.f32 %v10775_v4, %v3321_v24  ;;  %v13948_v52 = vld [vmem:[#allocation79_spill] sm:$0xff] }
 0x4af   : > { %4120 = vmatpush.bf16.msrb.mxu1 %v3829_v6 }
 0x4b0   : > { %v11092_v55 = vpop.f32.mrf.mxu2  ;;  %v11171_v29 = vadd.f32 %v10796_v25, %v3319_v10  ;;  %v13951_v10 = vld [vmem:[#allocation75_spill] sm:$0xff] }
 0x4b1   : > { %v11099_v0 = vpop.f32.mrf.mxu3  ;;  %4148 = vmatpush.bf16.msrb.mxu2 %v3846_v44  ;;  %v3294_v28 = vpop.f32.mrf.mxu0 }
 0x4b2   : > { %4177 = vmatpush.bf16.msrb.mxu3 %v3847_v27  ;;  %v3323_v21 = vpop.f32.mrf.mxu1  ;;  %v3295_v18 = vadd.f32 %v3294_v28, %v13939_v60  ;;  %v13950_v60 = vld [vmem:[#allocation86_spill] sm:$0xff] }
 0x4b3   : > { %v3324_v43 = vadd.f32 %v3323_v21, %v13943_v62  ;;  %v13946_v21 = vld [vmem:[#allocation78_spill] sm:$0xff] }
 0x4b4   : > { %7946 = vmatmul.msk.bf16.gmra.mxu0 %vm2339_vm1, %v11097_v54  ;;  %v11167_v44 = vadd.f32 %v10763_v26, %v3295_v18 }
 0x4b5   : > { %7950 = vmatmul.msk.bf16.gmra.mxu1 %vm2339_vm1, %v11097_v54  ;;  %7954 = vmatmul.msk.bf16.gmra.mxu2 %vm2339_vm1, %v11097_v54 }
 0x4b6   : > { %7958 = vmatmul.msk.bf16.gmra.mxu3 %vm2339_vm1, %v11097_v54  ;;  %4149 = vmatpush.bf16.msrb.mxu2 %v3830_v50 }
 0x4b7   : > { %4178 = vmatpush.bf16.msrb.mxu3 %v3831_v2  ;;  %v13958_v2 = vld [vmem:[#allocation81_spill] sm:$0xff] }
 0x4b8   : > { %v3352_v20 = vpop.f32.mrf.mxu2 }
 0x4b9   : > { %v11109_v57 = vpop.f32.mrf.mxu3  ;;  %v3296_v12 = vpop.f32.mrf.mxu0 }
 0x4ba   : > { %v3325_v53 = vpop.f32.mrf.mxu1  ;;  %v3297_v5 = vadd.f32 %v3296_v12, %v13941_v8  ;;  %v13947_v12 = vld [vmem:[#allocation64_spill] sm:$0xff] }
 0x4bb   : > { %v3326_v6 = vadd.f32 %v3325_v53, %v13942_v34  ;;  %v11181_v53 = vadd.f32 %v11092_v55, %v13947_v12  ;;  %v3728_v55 = vmax.f32 %v11167_v44, 0.0  ;;  %v13952_v34 = vld [vmem:[#allocation87_spill] sm:$0xff]  ;;  %v3696_v44 = vmax.f32 %v11164_v32, 0.0 }
 0x4bc   : > { %v11175_v36 = vadd.f32 %v10802_v16, %v3297_v5 }
 0x4bd   : > { %v11184_v42 = vadd.f32 %v10802_v16, %v3326_v6  ;;  %v13953_v6 = vld [vmem:[#allocation68_spill] sm:$0xff]  ;;  %v3586_v32 = vadd.f32 %v10775_v4, %v11181_v53 }
 0x4be   : > { %v11198_v62 = vadd.f32 %v3352_v20, %v13953_v6 }
 0x4c0   : > { %v11111_v14 = vpop.f32.mrf.mxu2 }
 0x4c1   : > { %v11118_v7 = vpop.f32.mrf.mxu3  ;;  %v3299_v47 = vpop.f32.mrf.mxu0 }
 0x4c2   : > { %v3328_v61 = vpop.f32.mrf.mxu1  ;;  %v3300_v56 = vadd.f32 %v3299_v47, %v13949_v37 }
 0x4c3   : > { %v3329_v8 = vadd.f32 %v3328_v61, %v13951_v10 }
 0x4c4   : > { %7947 = vmatmul.msk.bf16.gmra.mxu0 %vm2339_vm1, %v11116_v63 }
 0x4c5   : > { %7951 = vmatmul.msk.bf16.gmra.mxu1 %vm2339_vm1, %v11116_v63  ;;  %7955 = vmatmul.msk.bf16.gmra.mxu2 %vm2339_vm1, %v11116_v63 }
 0x4c6   : > { %7959 = vmatmul.msk.bf16.gmra.mxu3 %vm2339_vm1, %v11116_v63 }
 0x4c8   : > { %v11128_v51 = vpop.f32.mrf.mxu2 }
 0x4c9   : > { %v11130_v35 = vpop.f32.mrf.mxu3  ;;  %v3301_v31 = vpop.f32.mrf.mxu0 }
 0x4ca   : > { %v3330_v30 = vpop.f32.mrf.mxu1  ;;  %v3302_v3 = vadd.f32 %v3301_v31, %v13946_v21  ;;  %v13954_v21 = vld [vmem:[#allocation84_spill] sm:$0xff] }
 0x4cb   : > { %v3331_v19 = vadd.f32 %v3330_v30, %v13948_v52 }
 0x4cc   : > { %v3648_v47 = vadd.f32 %v10769_v11, %v3302_v3 }
 0x4d0   : > { %v3359_v45 = vpop.f32.mrf.mxu2 }
 0x4d1   : > { %v3388_v23 = vpop.f32.mrf.mxu3  ;;  %v3304_v58 = vpop.f32.mrf.mxu0 }
 0x4d2   : > { %v3333_v1 = vpop.f32.mrf.mxu1  ;;  %v3305_v46 = vadd.f32 %v3304_v58, %v13944_v13 }
 0x4d3   : > { %v3334_v27 = vadd.f32 %v3333_v1, %v13945_v49  ;;  %v11188_v1 = vadd.f32 %v10763_v26, %v3324_v43  ;;  %v3744_v43 = vmax.f32 %v11175_v36, 0.0  ;;  %v3649_v49 = vadd.f32 %v10769_v11, %v3331_v19 }
 0x4d4   : > { %7948 = vmatmul.msk.bf16.gmra.mxu0 %vm2339_vm1, %v11137_v17  ;;  %v3664_v31 = vadd.f32 %v10753_v33, %v3305_v46  ;;  %v3745_v46 = vmax.f32 %v11184_v42, 0.0  ;;  %v3776_v19 = vmax.f32 %v3648_v47, 0.0  ;;  %v13961_v47 = vld [vmem:[#allocation89_spill] sm:$0xff] }
 0x4d5   : > { %7952 = vmatmul.msk.bf16.gmra.mxu1 %vm2339_vm1, %v11137_v17  ;;  %7956 = vmatmul.msk.bf16.gmra.mxu2 %vm2339_vm1, %v11137_v17  ;;  %v3665_v5 = vadd.f32 %v10753_v33, %v3334_v27  ;;  %v3632_v27 = vadd.f32 %v10771_v48, %v3300_v56  ;;  %v3777_v28 = vmax.f32 %v3649_v49, 0.0 }
 0x4d6   : > { %7960 = vmatmul.msk.bf16.gmra.mxu3 %vm2339_vm1, %v11137_v17  ;;  %v3792_v52 = vmax.f32 %v3664_v31, 0.0 }
 0x4d7   : > { %v3793_v10 = vmax.f32 %v3665_v5, 0.0  ;;  %v13960_v5 = vld [vmem:[#allocation77_spill] sm:$0xff] }
 0x4d8   : > { %v3362_v50 = vpop.f32.mrf.mxu2 }
 0x4d9   : > { %v3391_v24 = vpop.f32.mrf.mxu3  ;;  %v3306_v58 = vpop.f32.mrf.mxu0  ;;  %v3363_v12 = vadd.f32 %v3362_v50, %v13954_v21  ;;  %v3389_v50 = vadd.f32 %v3388_v23, %v13958_v2  ;;  %v13962_v2 = vld [vmem:[#allocation72_spill] sm:$0xff] }
 0x4da   : > { %v3307_v18 = vadd.f32 %v3306_v58, %v13950_v60  ;;  %v3335_v15 = vpop.f32.mrf.mxu1  ;;  %v13955_v58 = vld [vmem:[#allocation85_spill] sm:$0xff]  ;;  %v3633_v60 = vadd.f32 %v10771_v48, %v3329_v8  ;;  %v3355_v49 = vadd.f32 %v11111_v14, %v13962_v2 }
 0x4db   : > { %v3336_v30 = vadd.f32 %v3335_v15, %v13952_v34  ;;  %v3392_v20 = vadd.f32 %v3391_v24, %v13955_v58  ;;  %v13956_v15 = vld [vmem:[#allocation80_spill] sm:$0xff]  ;;  %v3666_v56 = vadd.f32 %v10753_v33, %v3363_v12 }
 0x4dc   : > { %v3680_v13 = vadd.f32 %v10747_v22, %v3307_v18  ;;  %v3360_v3 = vadd.f32 %v3359_v45, %v13956_v15  ;;  %v13957_v34 = vld [vmem:[#allocation76_spill] sm:$0xff]  ;;  %v3760_v45 = vmax.f32 %v3632_v27, 0.0  ;;  %v3761_v12 = vmax.f32 %v3633_v60, 0.0  ;;  %v13963_v27 = vld [vmem:[#allocation73_spill] sm:$0xff] }
 0x4dd   : > { %v3681_v61 = vadd.f32 %v10747_v22, %v3336_v30  ;;  %v3358_v6 = vadd.f32 %v11128_v51, %v13957_v34  ;;  %v13959_v24 = vld [vmem:[#allocation88_spill] sm:$0xff]  ;;  %v3667_v51 = vadd.f32 %v10753_v33, %v3392_v20  ;;  %v3794_v14 = vmax.f32 %v3666_v56, 0.0 }
 0x4de   : > { %v3808_v37 = vmax.f32 %v3680_v13, 0.0 }
 0x4df   : > { %v3809_v18 = vmax.f32 %v3681_v61, 0.0  ;;  %v3387_v61 = vadd.f32 %v11130_v35, %v13960_v5  ;;  %v3651_v35 = vadd.f32 %v10769_v11, %v3389_v50  ;;  %v3634_v34 = vadd.f32 %v10771_v48, %v3358_v6  ;;  %v13965_v5 = vld [vmem:[#allocation65_spill] sm:$0xff] }
 0x4e0   : > { %v3880_v21 = vpack.c.bf16 %v3808_v37, %v3792_v52  ;;  %v3364_v30 = vpop.f32.mrf.mxu2  ;;  %v3650_v52 = vadd.f32 %v10769_v11, %v3360_v3  ;;  %v3865_v3 = vpack.c.bf16 %v3777_v28, %v3761_v12  ;;  %v3729_v6 = vmax.f32 %v11188_v1, 0.0  ;;  %v13967_v12 = vld [vmem:[#allocation61_spill] sm:$0xff] }
 0x4e1   : > { %v3881_v31 = vpack.c.bf16 %v3809_v18, %v3793_v10  ;;  %v3365_v13 = vadd.f32 %v3364_v30, %v13959_v24  ;;  %v3393_v58 = vpop.f32.mrf.mxu3  ;;  %v11216_v8 = vpop.f32.mrf.mxu0  ;;  %v3384_v10 = vadd.f32 %v11118_v7, %v13963_v27  ;;  %v3864_v18 = vpack.c.bf16 %v3776_v19, %v3760_v45  ;;  %v13964_v7 = vld [vmem:[#allocation69_spill] sm:$0xff] }
 0x4e2   : > { %v3394_v15 = vadd.f32 %v3393_v58, %v13961_v47  ;;  %v11222_v23 = vpop.f32.mrf.mxu1  ;;  %4204 = vmatpush.bf16.msra.mxu0 %v3880_v21  ;;  %v3382_v50 = vadd.f32 %v11109_v57, %v13964_v7  ;;  %v3635_v21 = vadd.f32 %v10771_v48, %v3387_v61  ;;  %v3795_v30 = vmax.f32 %v3667_v51, 0.0 }
 0x4e3   : > { %v3682_v37 = vadd.f32 %v10747_v22, %v3365_v13  ;;  %4233 = vmatpush.bf16.msra.mxu1 %v3881_v31  ;;  %v3618_v19 = vadd.f32 %v10802_v16, %v3355_v49  ;;  %v3778_v56 = vmax.f32 %v3650_v52, 0.0  ;;  %v3619_v28 = vadd.f32 %v10802_v16, %v3384_v10  ;;  %v13966_v49 = vld [vmem:[#allocation60_spill] sm:$0xff] }
 0x4e4   : > { %v3683_v20 = vadd.f32 %v10747_v22, %v3394_v15  ;;  %7961 = vmatmul.msk.bf16.vlgmr.msrb.gmra.mxu0 %vm2339_vm1, %v11025_v38  ;;  %v3779_v13 = vmax.f32 %v3651_v35, 0.0  ;;  %v3848_v45 = vpack.c.bf16 %v3744_v43, %v3728_v55  ;;  %v3379_v61 = vadd.f32 %v11099_v0, %v13965_v5 }
 0x4e5   : > { %v3810_v60 = vmax.f32 %v3682_v37, 0.0  ;;  %7965 = vmatmul.msk.bf16.vlgmr.msrb.gmra.mxu1 %vm2339_vm1, %v11025_v38  ;;  %7969 = vmatmul.msk.bf16.vlgmr.msrb.gmra.mxu2 %vm2339_vm1, %v11025_v38  ;;  %v3602_v1 = vadd.f32 %v10763_v26, %v11198_v62  ;;  %v3762_v51 = vmax.f32 %v3634_v34, 0.0  ;;  %v3849_v2 = vpack.c.bf16 %v3745_v46, %v3729_v6 }
 0x4e6   : > { %v3811_v31 = vmax.f32 %v3683_v20, 0.0  ;;  %7973 = vmatmul.msk.bf16.vlgmr.msrb.gmra.mxu3 %vm2339_vm1, %v11025_v38  ;;  %4205 = vmatpush.bf16.msra.mxu0 %v3864_v18  ;;  %v3348_v36 = vadd.f32 %v11060_v40, %v13966_v49  ;;  %v3603_v55 = vadd.f32 %v10763_v26, %v3382_v50  ;;  %v3763_v0 = vmax.f32 %v3635_v21, 0.0 }
 0x4e7   : > { %v3882_v24 = vpack.c.bf16 %v3810_v60, %v3794_v14  ;;  %4234 = vmatpush.bf16.msra.mxu1 %v3865_v3  ;;  %v3697_v62 = vmax.f32 %v11171_v29, 0.0  ;;  %v3377_v52 = vadd.f32 %v11070_v59, %v13967_v12  ;;  %v3746_v37 = vmax.f32 %v3618_v19, 0.0 }
 0x4e8   : > { %v3883_v58 = vpack.c.bf16 %v3811_v31, %v3795_v30  ;;  %v11247_v57 = vpop.f32.mrf.mxu2  ;;  %v3866_v42 = vpack.c.bf16 %v3778_v56, %v3762_v51  ;;  %v3747_v46 = vmax.f32 %v3619_v28, 0.0  ;;  %v3867_v27 = vpack.c.bf16 %v3779_v13, %v3763_v0 }
 0x4e9   : > { %v11257_v47 = vpop.f32.mrf.mxu3  ;;  %4262 = vmatpush.bf16.msra.mxu2 %v3882_v24  ;;  %v11259_v15 = vpop.f32.mrf.mxu0  ;;  %v13968_v40 = vmax.f32 %v11146_v39, 0.0  ;;  %v3587_v35 = vadd.f32 %v10775_v4, %v3379_v61  ;;  %v3730_v20 = vmax.f32 %v3602_v1, 0.0  ;;  %v13969_v29 = vmax.f32 %v11152_v9, 0.0 }
 0x4ea   : > { %4291 = vmatpush.bf16.msra.mxu3 %v3883_v58  ;;  %v3436_v43 = vpop.f32.mrf.mxu1  ;;  %4206 = vmatpush.bf16.msra.mxu0 %v3848_v45  ;;  %v3570_v59 = vadd.f32 %v10796_v25, %v3348_v36  ;;  %v3731_v34 = vmax.f32 %v3603_v55, 0.0  ;;  %v3571_v14 = vadd.f32 %v10796_v25, %v3377_v52  ;;  %v3714_v60 = vmax.f32 %v3586_v32, 0.0  ;;  %v13970_v55 = vld [vmem:[#allocation94_spill] sm:$0xff]  ;;  %v13972_v32 = vld [vmem:[#allocation97_spill] sm:$0xff] }
 0x4eb   : > { %4235 = vmatpush.bf16.msra.mxu1 %v3849_v2  ;;  %v3832_v10 = vpack.c.bf16 %v13968_v40, %v3696_v44  ;;  %v3833_v18 = vpack.c.bf16 %v13969_v29, %v3697_v62  ;;  %v3850_v53 = vpack.c.bf16 %v3746_v37, %v3730_v20  ;;  %v3715_v7 = vmax.f32 %v3587_v35, 0.0  ;;  %v13971_v37 = vld [vmem:[#allocation90_spill] sm:$0xff]  ;;  %v13974_v35 = vld [vmem:[#allocation101_spill] sm:$0xff] }
 0x4ec   : > { %v3851_v39 = vpack.c.bf16 %v3747_v46, %v3731_v34  ;;  %v3698_v30 = vmax.f32 %v3570_v59, 0.0  ;;  %v3699_v31 = vmax.f32 %v3571_v14, 0.0  ;;  %v3408_v49 = vadd.f32 %v11259_v15, %v10129_v41  ;;  %v13975_v15 = vld [vmem:[#allocation102_spill] sm:$0xff]  ;;  %v13977_v29 = vld [vmem:[#allocation113_spill] sm:$0xff] }
 0x4ed   : > { %4263 = vmatpush.bf16.msra.mxu2 %v3866_v42  ;;  %v3437_v0 = vadd.f32 %v3436_v43, %v13970_v55  ;;  %v3406_v42 = vadd.f32 %v11216_v8, %v13971_v37  ;;  %v13976_v8 = vld [vmem:[#allocation98_spill] sm:$0xff] }
 0x4ee   : > { %4292 = vmatpush.bf16.msra.mxu3 %v3867_v27  ;;  %4207 = vmatpush.bf16.msra.mxu0 %v3832_v10  ;;  %v3834_v6 = vpack.c.bf16 %v3714_v60, %v3698_v30  ;;  %v3835_v19 = vpack.c.bf16 %v3715_v7, %v3699_v31  ;;  %v13973_v27 = vld [vmem:[#allocation91_spill] sm:$0xff]  ;;  %v11314_v10 = vadd.f32 %v10775_v4, %v3408_v49  ;;  %v13978_v14 = vld [vmem:[#allocation114_spill] sm:$0xff] }
 0x4ef   : > { %4236 = vmatpush.bf16.msra.mxu1 %v3833_v18  ;;  %v3435_v40 = vadd.f32 %v11222_v23, %v13973_v27  ;;  %v11320_v41 = vadd.f32 %v10775_v4, %v3437_v0  ;;  %v11332_v59 = vadd.f32 %v10796_v25, %v3406_v42  ;;  %v13983_v42 = vld [vmem:[#allocation117_spill] sm:$0xff]  ;;  %v13984_v27 = vld [vmem:[#allocation106_spill] sm:$0xff] }
 0x4f0   : > { %v3465_v3 = vpop.f32.mrf.mxu2 }
 0x4f1   : > { %v11279_v50 = vpop.f32.mrf.mxu3  ;;  %4264 = vmatpush.bf16.msra.mxu2 %v3850_v53  ;;  %v3410_v21 = vpop.f32.mrf.mxu0  ;;  %v11339_v60 = vadd.f32 %v10796_v25, %v3435_v40 }
 0x4f2   : > { %4293 = vmatpush.bf16.msra.mxu3 %v3851_v39  ;;  %v3439_v9 = vpop.f32.mrf.mxu1  ;;  %v3411_v46 = vadd.f32 %v3410_v21, %v13972_v32  ;;  %v13979_v21 = vld [vmem:[#allocation109_spill] sm:$0xff]  ;;  %v13992_v39 = vld [vmem:[#allocation119_spill] sm:$0xff] }
 0x4f3   : > { %v3440_v23 = vadd.f32 %v3439_v9, %v13976_v8 }
 0x4f4   : > { %7962 = vmatmul.msk.bf16.gmra.mxu0 %vm2339_vm1, %v11097_v54  ;;  %v11335_v34 = vadd.f32 %v10763_v26, %v3411_v46 }
 0x4f5   : > { %7966 = vmatmul.msk.bf16.gmra.mxu1 %vm2339_vm1, %v11097_v54  ;;  %7970 = vmatmul.msk.bf16.gmra.mxu2 %vm2339_vm1, %v11097_v54 }
 0x4f6   : > { %7974 = vmatmul.msk.bf16.gmra.mxu3 %vm2339_vm1, %v11097_v54  ;;  %4265 = vmatpush.bf16.msra.mxu2 %v3834_v6  ;;  %v13980_v6 = vld [vmem:[#allocation95_spill] sm:$0xff] }
 0x4f7   : > { %4294 = vmatpush.bf16.msra.mxu3 %v3835_v19  ;;  %v11348_v19 = vadd.f32 %v3465_v3, %v13980_v6  ;;  %v3732_v3 = vmax.f32 %v11335_v34, 0.0  ;;  %v3700_v34 = vmax.f32 %v11332_v59, 0.0 }
 0x4f8   : > { %v3468_v56 = vpop.f32.mrf.mxu2 }
 0x4f9   : > { %v11289_v24 = vpop.f32.mrf.mxu3  ;;  %v3412_v28 = vpop.f32.mrf.mxu0  ;;  %v3590_v59 = vadd.f32 %v10775_v4, %v11348_v19 }
 0x4fa   : > { %v3441_v13 = vpop.f32.mrf.mxu1  ;;  %v3413_v20 = vadd.f32 %v3412_v28, %v13974_v35 }
 0x4fb   : > { %v3442_v43 = vadd.f32 %v3441_v13, %v13975_v15  ;;  %v13981_v13 = vld [vmem:[#allocation110_spill] sm:$0xff]  ;;  %v13986_v15 = vld [vmem:[#allocation99_spill] sm:$0xff] }
 0x4fc   : > { %v11343_v7 = vadd.f32 %v10802_v16, %v3413_v20  ;;  %v13985_v20 = vld [vmem:[#allocation118_spill] sm:$0xff] }
 0x4fd   : > { %v11351_v28 = vadd.f32 %v10802_v16, %v3442_v43  ;;  %v11365_v43 = vadd.f32 %v3468_v56, %v13986_v15 }
 0x4fe   : > { %v3748_v8 = vmax.f32 %v11343_v7, 0.0 }
 0x500   : > { %v11291_v58 = vpop.f32.mrf.mxu2 }
 0x501   : > { %v11293_v45 = vpop.f32.mrf.mxu3  ;;  %v3415_v5 = vpop.f32.mrf.mxu0 }
 0x502   : > { %v3444_v61 = vpop.f32.mrf.mxu1 }
 0x503   : > { %v3445_v40 = vadd.f32 %v3444_v61, %v13984_v27  ;;  %v13990_v27 = vld [vmem:[#allocation107_spill] sm:$0xff] }
 0x504   : > { %7963 = vmatmul.msk.bf16.gmra.mxu0 %vm2339_vm1, %v11116_v63 }
 0x505   : > { %7967 = vmatmul.msk.bf16.gmra.mxu1 %vm2339_vm1, %v11116_v63  ;;  %7971 = vmatmul.msk.bf16.gmra.mxu2 %vm2339_vm1, %v11116_v63 }
 0x506   : > { %7975 = vmatmul.msk.bf16.gmra.mxu3 %vm2339_vm1, %v11116_v63 }
 0x508   : > { %v3473_v1 = vpop.f32.mrf.mxu2 }
 0x509   : > { %v11303_v51 = vpop.f32.mrf.mxu3  ;;  %v3417_v2 = vpop.f32.mrf.mxu0 }
 0x50a   : > { %v3446_v44 = vpop.f32.mrf.mxu1  ;;  %v3418_v30 = vadd.f32 %v3417_v2, %v13979_v21 }
 0x50b   : > { %v3447_v49 = vadd.f32 %v3446_v44, %v13981_v13  ;;  %v13988_v13 = vld [vmem:[#allocation116_spill] sm:$0xff] }
 0x510   : > { %v3475_v36 = vpop.f32.mrf.mxu2 }
 0x511   : > { %v3504_v62 = vpop.f32.mrf.mxu3  ;;  %v3420_v12 = vpop.f32.mrf.mxu0 }
 0x512   : > { %v3449_v52 = vpop.f32.mrf.mxu1  ;;  %v3421_v18 = vadd.f32 %v3420_v12, %v13977_v29  ;;  %v11355_v12 = vadd.f32 %v10763_v26, %v3440_v23  ;;  %v3749_v29 = vmax.f32 %v11351_v28, 0.0 }
 0x513   : > { %v3450_v53 = vadd.f32 %v3449_v52, %v13978_v14  ;;  %v13982_v52 = vld [vmem:[#allocation105_spill] sm:$0xff]  ;;  %v13987_v14 = vld [vmem:[#allocation115_spill] sm:$0xff] }
 0x514   : > { %7964 = vmatmul.msk.bf16.gmra.mxu0 %vm2339_vm1, %v11137_v17  ;;  %v3416_v37 = vadd.f32 %v3415_v5, %v13982_v52  ;;  %v3668_v2 = vadd.f32 %v10753_v33, %v3421_v18  ;;  %v3652_v5 = vadd.f32 %v10769_v11, %v3418_v30  ;;  %v3653_v18 = vadd.f32 %v10769_v11, %v3447_v49  ;;  %v13991_v49 = vld [vmem:[#allocation112_spill] sm:$0xff] }
 0x515   : > { %7968 = vmatmul.msk.bf16.gmra.mxu1 %vm2339_vm1, %v11137_v17  ;;  %7972 = vmatmul.msk.bf16.gmra.mxu2 %vm2339_vm1, %v11137_v17  ;;  %v3669_v35 = vadd.f32 %v10753_v33, %v3450_v53  ;;  %v3637_v52 = vadd.f32 %v10771_v48, %v3445_v40  ;;  %v3505_v31 = vadd.f32 %v3504_v62, %v13991_v49 }
 0x516   : > { %7976 = vmatmul.msk.bf16.gmra.mxu3 %vm2339_vm1, %v11137_v17  ;;  %v3636_v53 = vadd.f32 %v10771_v48, %v3416_v37  ;;  %v3796_v6 = vmax.f32 %v3668_v2, 0.0  ;;  %v3780_v15 = vmax.f32 %v3652_v5, 0.0  ;;  %v13994_v5 = vld [vmem:[#allocation120_spill] sm:$0xff] }
 0x518   : > { %v3478_v9 = vpop.f32.mrf.mxu2  ;;  %v3764_v40 = vmax.f32 %v3636_v53, 0.0  ;;  %v13996_v53 = vld [vmem:[#allocation104_spill] sm:$0xff] }
 0x519   : > { %v3507_v55 = vpop.f32.mrf.mxu3  ;;  %v3422_v0 = vpop.f32.mrf.mxu0  ;;  %v3479_v21 = vadd.f32 %v3478_v9, %v13987_v14 }
 0x51a   : > { %v3423_v32 = vadd.f32 %v3422_v0, %v13983_v42  ;;  %v3451_v46 = vpop.f32.mrf.mxu1  ;;  %v3508_v56 = vadd.f32 %v3507_v55, %v13988_v13  ;;  %v13989_v42 = vld [vmem:[#allocation111_spill] sm:$0xff] }
 0x51b   : > { %v3452_v44 = vadd.f32 %v3451_v46, %v13985_v20  ;;  %v3476_v30 = vadd.f32 %v3475_v36, %v13989_v42  ;;  %v3797_v46 = vmax.f32 %v3669_v35, 0.0  ;;  %v3474_v20 = vadd.f32 %v3473_v1, %v13990_v27  ;;  %v13993_v36 = vld [vmem:[#allocation108_spill] sm:$0xff] }
 0x51c   : > { %v3684_v23 = vadd.f32 %v10747_v22, %v3423_v32  ;;  %v3670_v37 = vadd.f32 %v10753_v33, %v3479_v21  ;;  %v3503_v35 = vadd.f32 %v11303_v51, %v13993_v36  ;;  %v3671_v1 = vadd.f32 %v10753_v33, %v3508_v56  ;;  %v14000_v36 = vld [vmem:[#allocation93_spill] sm:$0xff] }
 0x51d   : > { %v3685_v61 = vadd.f32 %v10747_v22, %v3452_v44  ;;  %v3781_v44 = vmax.f32 %v3653_v18, 0.0  ;;  %v13995_v18 = vld [vmem:[#allocation103_spill] sm:$0xff]  ;;  %v3500_v42 = vadd.f32 %v11293_v45, %v13996_v53  ;;  %v3655_v51 = vadd.f32 %v10769_v11, %v3505_v31  ;;  %v13997_v45 = vld [vmem:[#allocation100_spill] sm:$0xff] }
 0x51e   : > { %v3812_v0 = vmax.f32 %v3684_v23, 0.0  ;;  %v3471_v21 = vadd.f32 %v11291_v58, %v13995_v18  ;;  %v3868_v56 = vpack.c.bf16 %v3780_v15, %v3764_v40  ;;  %v3798_v58 = vmax.f32 %v3670_v37, 0.0  ;;  %v13999_v40 = vld [vmem:[#allocation92_spill] sm:$0xff] }
 0x51f   : > { %v3813_v32 = vmax.f32 %v3685_v61, 0.0  ;;  %v3799_v31 = vmax.f32 %v3671_v1, 0.0  ;;  %v3733_v27 = vmax.f32 %v11355_v12, 0.0  ;;  %v3606_v12 = vadd.f32 %v10763_v26, %v11365_v43 }
 0x520   : > { %v3884_v9 = vpack.c.bf16 %v3812_v0, %v3796_v6  ;;  %v3480_v14 = vpop.f32.mrf.mxu2  ;;  %v3765_v6 = vmax.f32 %v3637_v52, 0.0  ;;  %v3464_v7 = vadd.f32 %v11247_v57, %v13999_v40  ;;  %v3701_v43 = vmax.f32 %v11339_v60, 0.0 }
 0x521   : > { %v3885_v2 = vpack.c.bf16 %v3813_v32, %v3797_v46  ;;  %v3481_v55 = vadd.f32 %v3480_v14, %v13992_v39  ;;  %v3509_v23 = vpop.f32.mrf.mxu3  ;;  %v11382_v13 = vpop.f32.mrf.mxu0  ;;  %v3654_v39 = vadd.f32 %v10769_v11, %v3476_v30  ;;  %v3638_v46 = vadd.f32 %v10771_v48, %v3474_v20 }
 0x522   : > { %v3510_v61 = vadd.f32 %v3509_v23, %v13994_v5  ;;  %v11388_v62 = vpop.f32.mrf.mxu1  ;;  %4320 = vmatpush.bf16.msrb.mxu0 %v3884_v9  ;;  %v3869_v30 = vpack.c.bf16 %v3781_v44, %v3765_v6  ;;  %v3498_v11 = vadd.f32 %v11289_v24, %v13997_v45  ;;  %v3622_v20 = vadd.f32 %v10802_v16, %v3471_v21 }
 0x523   : > { %v3686_v0 = vadd.f32 %v10747_v22, %v3481_v55  ;;  %4349 = vmatpush.bf16.msrb.mxu1 %v3885_v2  ;;  %v3782_v15 = vmax.f32 %v3654_v39, 0.0  ;;  %v3623_v9 = vadd.f32 %v10802_v16, %v3500_v42  ;;  %v3783_v14 = vmax.f32 %v3655_v51, 0.0 }
 0x524   : > { %v3687_v33 = vadd.f32 %v10747_v22, %v3510_v61  ;;  %7977 = vmatmul.msk.bf16.vlgmr.msra.gmra.mxu0 %vm2339_vm1, %v11025_v38  ;;  %v3639_v22 = vadd.f32 %v10771_v48, %v3503_v35  ;;  %v3852_v48 = vpack.c.bf16 %v3748_v8, %v3732_v3  ;;  %v3766_v2 = vmax.f32 %v3638_v46, 0.0 }
 0x525   : > { %v3814_v52 = vmax.f32 %v3686_v0, 0.0  ;;  %7981 = vmatmul.msk.bf16.vlgmr.msra.gmra.mxu1 %vm2339_vm1, %v11025_v38  ;;  %7985 = vmatmul.msk.bf16.vlgmr.msra.gmra.mxu2 %vm2339_vm1, %v11025_v38  ;;  %v3853_v23 = vpack.c.bf16 %v3749_v29, %v3733_v27  ;;  %v3607_v3 = vadd.f32 %v10763_v26, %v3498_v11  ;;  %v3493_v35 = vadd.f32 %v11257_v47, %v14000_v36  ;;  %v11481_v27 = vpop.permute.xlu1 %3933 }
 0x526   : > { %v3815_v32 = vmax.f32 %v3687_v33, 0.0  ;;  %7989 = vmatmul.msk.bf16.vlgmr.msra.gmra.mxu3 %vm2339_vm1, %v11025_v38  ;;  %4321 = vmatpush.bf16.msrb.mxu0 %v3868_v56  ;;  %v13998_v38 = vld [vmem:[#allocation96_spill] sm:$0xff]  ;;  %v3750_v1 = vmax.f32 %v3622_v20, 0.0  ;;  %v3870_v28 = vpack.c.bf16 %v3782_v15, %v3766_v2  ;;  %v3751_v29 = vmax.f32 %v3623_v9, 0.0 }
 0x527   : > { %v3886_v49 = vpack.c.bf16 %v3814_v52, %v3798_v58  ;;  %4350 = vmatpush.bf16.msrb.mxu1 %v3869_v30  ;;  %v3495_v37 = vadd.f32 %v11279_v50, %v13998_v38  ;;  %v3767_v50 = vmax.f32 %v3639_v22, 0.0  ;;  %v14001_v26 = vmax.f32 %v11314_v10, 0.0 }
 0x528   : > { %v3887_v44 = vpack.c.bf16 %v3815_v32, %v3799_v31  ;;  %v11413_v24 = vpop.f32.mrf.mxu2  ;;  %v3734_v18 = vmax.f32 %v3606_v12, 0.0  ;;  %v14002_v60 = vmax.f32 %v11320_v41, 0.0  ;;  %v3574_v47 = vadd.f32 %v10796_v25, %v3464_v7 }
 0x529   : > { %v11423_v55 = vpop.f32.mrf.mxu3  ;;  %4378 = vmatpush.bf16.msrb.mxu2 %v3886_v49  ;;  %v11425_v16 = vpop.f32.mrf.mxu0  ;;  %v3871_v57 = vpack.c.bf16 %v3783_v14, %v3767_v50  ;;  %v3836_v5 = vpack.c.bf16 %v14001_v26, %v3700_v34  ;;  %v3591_v61 = vadd.f32 %v10775_v4, %v3495_v37  ;;  %v3735_v6 = vmax.f32 %v3607_v3, 0.0 }
 0x52a   : > { %4407 = vmatpush.bf16.msrb.mxu3 %v3887_v44  ;;  %v11433_v8 = vpop.f32.mrf.mxu1  ;;  %4322 = vmatpush.bf16.msrb.mxu0 %v3852_v48  ;;  %v3837_v21 = vpack.c.bf16 %v14002_v60, %v3701_v43  ;;  %v3575_v39 = vadd.f32 %v10796_v25, %v3493_v35  ;;  %v3854_v19 = vpack.c.bf16 %v3750_v1, %v3734_v18  ;;  %v3718_v0 = vmax.f32 %v3590_v59, 0.0  ;;  %v11487_v37 = vpop.permute.xlu2 %3918 }
 0x52b   : > { %4351 = vmatpush.bf16.msrb.mxu1 %v3853_v23  ;;  %v3855_v10 = vpack.c.bf16 %v3751_v29, %v3735_v6  ;;  %v3719_v42 = vmax.f32 %v3591_v61, 0.0  ;;  %v3702_v41 = vmax.f32 %v3574_v47, 0.0 }
 0x52c   : > { %v3703_v56 = vmax.f32 %v3575_v39, 0.0 }
 0x52d   : > { %4379 = vmatpush.bf16.msrb.mxu2 %v3870_v28  ;;  %v3838_v25 = vpack.c.bf16 %v3718_v0, %v3702_v41  ;;  %v11489_v2 = vpop.permute.xlu1 %3908 }
 0x52e   : > { %4408 = vmatpush.bf16.msrb.mxu3 %v3871_v57  ;;  %4323 = vmatpush.bf16.msrb.mxu0 %v3836_v5  ;;  %v3839_v46 = vpack.c.bf16 %v3719_v42, %v3703_v56 }
 0x52f   : > { %4352 = vmatpush.bf16.msrb.mxu1 %v3837_v21 }
 0x530   : > { %v11447_v53 = vpop.f32.mrf.mxu2 }
 0x531   : > { %v11449_v4 = vpop.f32.mrf.mxu3  ;;  %4380 = vmatpush.bf16.msrb.mxu2 %v3854_v19  ;;  %v11451_v51 = vpop.f32.mrf.mxu0 }
 0x532   : > { %4409 = vmatpush.bf16.msrb.mxu3 %v3855_v10  ;;  %v11453_v33 = vpop.f32.mrf.mxu1  ;;  %v11509_v28 = vpop.permute.xlu2 %3913  ;;  %v3983_v42 = vadd.f32 %v11451_v51, %v11489_v2 }
 0x534   : > { %7978 = vmatmul.msk.bf16.gmra.mxu0 %vm2339_vm1, %v11097_v54 }
 0x535   : > { %7982 = vmatmul.msk.bf16.gmra.mxu1 %vm2339_vm1, %v11097_v54  ;;  %7986 = vmatmul.msk.bf16.gmra.mxu2 %vm2339_vm1, %v11097_v54  ;;  %v11516_v5 = vpop.permute.xlu1 %3903 }
 0x536   : > { %7990 = vmatmul.msk.bf16.gmra.mxu3 %vm2339_vm1, %v11097_v54  ;;  %4381 = vmatpush.bf16.msrb.mxu2 %v3838_v25  ;;  %v11477_v54 = vpop.permute.xlu0 %3928  ;;  %v11524_v21 = vadd.f32 %v11425_v16, %v11516_v5  ;;  %v11532_v39 = vadd.f32 %v11433_v8, %v11516_v5  ;;  %v4012_v16 = vadd.f32 %v11453_v33, %v11489_v2 }
 0x537   : > { %4410 = vmatpush.bf16.msrb.mxu3 %v3839_v46 }
 0x538   : > { %v11463_v58 = vpop.f32.mrf.mxu2 }
 0x539   : > { %v11465_v52 = vpop.f32.mrf.mxu3  ;;  %v3984_v30 = vpop.f32.mrf.mxu0 }
 0x53a   : > { %v4013_v45 = vpop.f32.mrf.mxu1  ;;  %v11519_v61 = vadd.f32 %v3984_v30, %v11509_v28 }
 0x53c   : > { %v4480_v46 = vmax.f32 %v11519_v61, 0.0 }
 0x53e   : > { %v11485_v14 = vpop.permute.xlu0 %3923 }
 0x540   : > { %v11467_v11 = vpop.f32.mrf.mxu2 }
 0x541   : > { %v11469_v22 = vpop.f32.mrf.mxu3  ;;  %v3987_v31 = vpop.f32.mrf.mxu0 }
 0x542   : > { %v4016_v32 = vpop.f32.mrf.mxu1  ;;  %v3988_v47 = vadd.f32 %v3987_v31, %v11487_v37 }
 0x543   : > { %v4017_v19 = vadd.f32 %v4016_v32, %v11487_v37 }
 0x544   : > { %7979 = vmatmul.msk.bf16.gmra.mxu0 %vm2339_vm1, %v11116_v63 }
 0x545   : > { %7983 = vmatmul.msk.bf16.gmra.mxu1 %vm2339_vm1, %v11116_v63  ;;  %7987 = vmatmul.msk.bf16.gmra.mxu2 %vm2339_vm1, %v11116_v63 }
 0x546   : > { %7991 = vmatmul.msk.bf16.gmra.mxu3 %vm2339_vm1, %v11116_v63  ;;  %v11501_v50 = vpop.permute.xlu0 %3898 }
 0x547   : > { %v11506_v35 = vadd.f32 %v11382_v13, %v11501_v50  ;;  %v11513_v59 = vadd.f32 %v11388_v62, %v11501_v50  ;;  %v11527_v62 = vadd.f32 %v4013_v45, %v11509_v28 }
 0x548   : > { %v4045_v20 = vpop.f32.mrf.mxu2 }
 0x549   : > { %v11483_v15 = vpop.f32.mrf.mxu3  ;;  %v3989_v49 = vpop.f32.mrf.mxu0  ;;  %v4481_v51 = vmax.f32 %v11527_v62, 0.0  ;;  %v4449_v62 = vmax.f32 %v11532_v39, 0.0  ;;  %v4432_v39 = vmax.f32 %v11506_v35, 0.0 }
 0x54a   : > { %v4018_v9 = vpop.f32.mrf.mxu1  ;;  %v3990_v29 = vadd.f32 %v3989_v49, %v11485_v14  ;;  %v4496_v49 = vmax.f32 %v3988_v47, 0.0  ;;  %v4070_v47 = vadd.f32 %v11465_v52, %v11489_v2  ;;  %v4067_v52 = vadd.f32 %v11449_v4, %v11516_v5 }
 0x54b   : > { %v4019_v13 = vadd.f32 %v4018_v9, %v11485_v14 }
 0x54c   : > { %v4512_v41 = vmax.f32 %v3990_v29, 0.0  ;;  %v4467_v35 = vmax.f32 %v4070_v47, 0.0 }
 0x54d   : > { %v4513_v8 = vmax.f32 %v4019_v13, 0.0  ;;  %v4448_v13 = vmax.f32 %v11524_v21, 0.0  ;;  %v4038_v21 = vadd.f32 %v11447_v53, %v11516_v5  ;;  %v4036_v53 = vadd.f32 %v11413_v24, %v11501_v50 }
 0x54f   : > { %v4450_v4 = vmax.f32 %v4038_v21, 0.0 }
 0x550   : > { %v4047_v44 = vpop.f32.mrf.mxu2 }
 0x551   : > { %v4076_v48 = vpop.f32.mrf.mxu3  ;;  %v3992_v38 = vpop.f32.mrf.mxu0  ;;  %v4048_v30 = vadd.f32 %v4047_v44, %v11485_v14 }
 0x552   : > { %v4021_v12 = vpop.f32.mrf.mxu1  ;;  %v3993_v23 = vadd.f32 %v3992_v38, %v11477_v54  ;;  %v4077_v33 = vadd.f32 %v4076_v48, %v11485_v14  ;;  %v4601_v48 = vpack.c.bf16 %v4512_v41, %v4496_v49  ;;  %v4451_v49 = vmax.f32 %v4067_v52, 0.0 }
 0x553   : > { %v4022_v40 = vadd.f32 %v4021_v12, %v11477_v54  ;;  %v4497_v12 = vmax.f32 %v4017_v19, 0.0 }
 0x554   : > { %7980 = vmatmul.msk.bf16.gmra.mxu0 %vm2339_vm1, %v11137_v17  ;;  %v4528_v57 = vmax.f32 %v3993_v23, 0.0  ;;  %v4046_v23 = vadd.f32 %v4045_v20, %v11487_v37 }
 0x555   : > { %7984 = vmatmul.msk.bf16.gmra.mxu1 %vm2339_vm1, %v11137_v17  ;;  %7988 = vmatmul.msk.bf16.gmra.mxu2 %vm2339_vm1, %v11137_v17  ;;  %v4529_v18 = vmax.f32 %v4022_v40, 0.0  ;;  %v4075_v40 = vadd.f32 %v11483_v15, %v11487_v37  ;;  %v4602_v20 = vpack.c.bf16 %v4513_v8, %v4497_v12  ;;  %v4464_v15 = vmax.f32 %v3983_v42, 0.0 }
 0x556   : > { %7992 = vmatmul.msk.bf16.gmra.mxu3 %vm2339_vm1, %v11137_v17 }
 0x557   : > { %v4585_v19 = vpack.c.bf16 %v4480_v46, %v4464_v15  ;;  %v4433_v46 = vmax.f32 %v11513_v59, 0.0  ;;  %v8592_v15 = vld [vmem:[%s13685_s3 + $0x50] sm:$0xff] }
 0x558   : > { %v4050_v34 = vpop.f32.mrf.mxu2 }
 0x559   : > { %v4079_v7 = vpop.f32.mrf.mxu3  ;;  %v3994_v3 = vpop.f32.mrf.mxu0  ;;  %v4051_v0 = vadd.f32 %v4050_v34, %v11477_v54 }
 0x55a   : > { %v3995_v43 = vadd.f32 %v3994_v3, %v11481_v27  ;;  %v4023_v36 = vpop.f32.mrf.mxu1  ;;  %v4080_v56 = vadd.f32 %v4079_v7, %v11477_v54 }
 0x55b   : > { %v4024_v1 = vadd.f32 %v4023_v36, %v11481_v27  ;;  %v4530_v34 = vmax.f32 %v4051_v0, 0.0  ;;  %v4043_v36 = vadd.f32 %v11467_v11, %v11509_v28  ;;  %v4041_v11 = vadd.f32 %v11463_v58, %v11489_v2 }
 0x55c   : > { %v4544_v26 = vmax.f32 %v3995_v43, 0.0  ;;  %v4531_v7 = vmax.f32 %v4080_v56, 0.0  ;;  %v8590_v43 = vld [vmem:[%s13685_s3 + $0x40] sm:$0xff] }
 0x55d   : > { %v4545_v60 = vmax.f32 %v4024_v1, 0.0  ;;  %v4514_v1 = vmax.f32 %v4048_v30, 0.0  ;;  %v4482_v0 = vmax.f32 %v4043_v36, 0.0  ;;  %v4466_v8 = vmax.f32 %v4041_v11, 0.0 }
 0x55e   : > { %v4617_v6 = vpack.c.bf16 %v4544_v26, %v4528_v57  ;;  %v4072_v57 = vadd.f32 %v11469_v22, %v11509_v28  ;;  %v4515_v26 = vmax.f32 %v4077_v33, 0.0  ;;  %v4499_v22 = vmax.f32 %v4075_v40, 0.0  ;;  %v8591_v40 = vld [vmem:[%s13685_s3 + $0x48] sm:$0xff] }
 0x55f   : > { %v4618_v10 = vpack.c.bf16 %v4545_v60, %v4529_v18  ;;  %v4465_v18 = vmax.f32 %v4012_v16, 0.0  ;;  %v4498_v60 = vmax.f32 %v4046_v23, 0.0  ;;  %v4065_v30 = vadd.f32 %v11423_v55, %v11501_v50 }
 0x560   : > { %v4052_v25 = vpop.f32.mrf.mxu2  ;;  %4729 = vmatpush.bf16.msra.mxu0 %v4617_v6  ;;  %v4483_v41 = vmax.f32 %v4072_v57, 0.0 }
 0x561   : > { %v4053_v45 = vadd.f32 %v4052_v25, %v11481_v27  ;;  %v4081_v31 = vpop.f32.mrf.mxu3  ;;  %4762 = vmatpush.bf16.msra.mxu1 %v4618_v10  ;;  %v11544_v32 = vpop.f32.mrf.mxu0  ;;  %v4586_v58 = vpack.c.bf16 %v4481_v51, %v4465_v18  ;;  %v4603_v16 = vpack.c.bf16 %v4514_v1, %v4498_v60  ;;  %v4604_v25 = vpack.c.bf16 %v4515_v26, %v4499_v22 }
 0x562   : > { %v4082_v9 = vadd.f32 %v4081_v31, %v11481_v27  ;;  %v11549_v38 = vpop.f32.mrf.mxu1  ;;  %v4570_v31 = vpack.c.bf16 %v4449_v62, %v4433_v46  ;;  %v4587_v51 = vpack.c.bf16 %v4482_v0, %v4466_v8  ;;  %v4588_v33 = vpack.c.bf16 %v4483_v41, %v4467_v35 }
 0x563   : > { %v4546_v44 = vmax.f32 %v4053_v45, 0.0  ;;  %v4569_v45 = vpack.c.bf16 %v4448_v13, %v4432_v39  ;;  %v4435_v59 = vmax.f32 %v4065_v30, 0.0  ;;  %v11636_v52 = vadd.f32 %v11549_v38, %v11501_v50 }
 0x564   : > { %v4547_v3 = vmax.f32 %v4082_v9, 0.0  ;;  %7993 = vmatmul.msk.bf16.vlgmr.msrb.gmra.mxu0 %vm2339_vm1, %v8590_v43  ;;  %v4434_v9 = vmax.f32 %v4036_v53, 0.0 }
 0x565   : > { %v4619_v29 = vpack.c.bf16 %v4546_v44, %v4530_v34  ;;  %7997 = vmatmul.msk.bf16.vlgmr.msrb.gmra.mxu1 %vm2339_vm1, %v8590_v43  ;;  %8001 = vmatmul.msk.bf16.vlgmr.msrb.gmra.mxu2 %vm2339_vm1, %v8590_v43  ;;  %v4572_v44 = vpack.c.bf16 %v4451_v49, %v4435_v59 }
 0x566   : > { %v4620_v61 = vpack.c.bf16 %v4547_v3, %v4531_v7  ;;  %8005 = vmatmul.msk.bf16.vlgmr.msrb.gmra.mxu3 %vm2339_vm1, %v8590_v43  ;;  %4730 = vmatpush.bf16.msra.mxu0 %v4601_v48  ;;  %v4571_v55 = vpack.c.bf16 %v4450_v4, %v4434_v9 }
 0x567   : > { %4763 = vmatpush.bf16.msra.mxu1 %v4602_v20  ;;  %4795 = vmatpush.bf16.msra.mxu2 %v4619_v29 }
 0x568   : > { %4828 = vmatpush.bf16.msra.mxu3 %v4620_v61  ;;  %v11571_v6 = vpop.f32.mrf.mxu2 }
 0x569   : > { %v11575_v10 = vpop.f32.mrf.mxu3  ;;  %v11577_v42 = vpop.f32.mrf.mxu0 }
 0x56a   : > { %4731 = vmatpush.bf16.msra.mxu0 %v4585_v19  ;;  %v11582_v56 = vpop.f32.mrf.mxu1 }
 0x56b   : > { %4764 = vmatpush.bf16.msra.mxu1 %v4586_v58  ;;  %4796 = vmatpush.bf16.msra.mxu2 %v4603_v16  ;;  %v11631_v16 = vadd.f32 %v11544_v32, %v11501_v50  ;;  %v11645_v32 = vadd.f32 %v11577_v42, %v11516_v5  ;;  %v11653_v4 = vadd.f32 %v11582_v56, %v11516_v5 }
 0x56c   : > { %4829 = vmatpush.bf16.msra.mxu3 %v4604_v25 }
 0x56e   : > { %4732 = vmatpush.bf16.msra.mxu0 %v4569_v45 }
 0x56f   : > { %4765 = vmatpush.bf16.msra.mxu1 %v4570_v31  ;;  %4797 = vmatpush.bf16.msra.mxu2 %v4587_v51 }
 0x570   : > { %4830 = vmatpush.bf16.msra.mxu3 %v4588_v33  ;;  %v11589_v24 = vpop.f32.mrf.mxu2 }
 0x571   : > { %v11591_v12 = vpop.f32.mrf.mxu3  ;;  %v4098_v23 = vpop.f32.mrf.mxu0 }
 0x572   : > { %v4127_v34 = vpop.f32.mrf.mxu1  ;;  %v4099_v33 = vadd.f32 %v4098_v23, %v11489_v2 }
 0x573   : > { %4798 = vmatpush.bf16.msra.mxu2 %v4571_v55  ;;  %v4128_v42 = vadd.f32 %v4127_v34, %v11489_v2 }
 0x574   : > { %4831 = vmatpush.bf16.msra.mxu3 %v4572_v44  ;;  %7994 = vmatmul.msk.bf16.gmra.mxu0 %vm2339_vm1, %v8591_v40  ;;  %v11663_v44 = vld [vmem:[%s13685_s3 + $0x60] sm:$0xff] }
 0x575   : > { %7998 = vmatmul.msk.bf16.gmra.mxu1 %vm2339_vm1, %v8591_v40  ;;  %8002 = vmatmul.msk.bf16.gmra.mxu2 %vm2339_vm1, %v8591_v40 }
 0x576   : > { %8006 = vmatmul.msk.bf16.gmra.mxu3 %vm2339_vm1, %v8591_v40 }
 0x578   : > { %v11600_v7 = vpop.f32.mrf.mxu2 }
 0x579   : > { %v11602_v3 = vpop.f32.mrf.mxu3  ;;  %v4100_v43 = vpop.f32.mrf.mxu0 }
 0x57a   : > { %v4129_v48 = vpop.f32.mrf.mxu1  ;;  %v11640_v46 = vadd.f32 %v4100_v43, %v11509_v28 }
 0x57b   : > { %v11648_v35 = vadd.f32 %v4129_v48, %v11509_v28 }
 0x57c   : > { %v4484_v56 = vmax.f32 %v11640_v46, 0.0  ;;  %v4157_v46 = vadd.f32 %v11600_v7, %v11489_v2 }
 0x580   : > { %v11604_v36 = vpop.f32.mrf.mxu2 }
 0x581   : > { %v11606_v1 = vpop.f32.mrf.mxu3  ;;  %v4103_v29 = vpop.f32.mrf.mxu0 }
 0x582   : > { %v4132_v20 = vpop.f32.mrf.mxu1  ;;  %v4104_v38 = vadd.f32 %v4103_v29, %v11487_v37  ;;  %v4485_v29 = vmax.f32 %v11648_v35, 0.0 }
 0x583   : > { %v4133_v31 = vadd.f32 %v4132_v20, %v11487_v37 }
 0x584   : > { %7995 = vmatmul.msk.bf16.gmra.mxu0 %vm2339_vm1, %v11116_v63  ;;  %v4500_v20 = vmax.f32 %v4104_v38, 0.0 }
 0x585   : > { %7999 = vmatmul.msk.bf16.gmra.mxu1 %vm2339_vm1, %v11116_v63  ;;  %8003 = vmatmul.msk.bf16.gmra.mxu2 %vm2339_vm1, %v11116_v63 }
 0x586   : > { %8007 = vmatmul.msk.bf16.gmra.mxu3 %vm2339_vm1, %v8592_v15 }
 0x588   : > { %v4161_v57 = vpop.f32.mrf.mxu2 }
 0x589   : > { %v4190_v26 = vpop.f32.mrf.mxu3  ;;  %v4105_v61 = vpop.f32.mrf.mxu0 }
 0x58a   : > { %v4134_v13 = vpop.f32.mrf.mxu1 }
 0x58b   : > { %v4135_v53 = vadd.f32 %v4134_v13, %v11485_v14 }
 0x58d   : > { %v4517_v40 = vmax.f32 %v4135_v53, 0.0 }
 0x590   : > { %v4163_v18 = vpop.f32.mrf.mxu2 }
 0x591   : > { %v4192_v11 = vpop.f32.mrf.mxu3  ;;  %v4108_v60 = vpop.f32.mrf.mxu0  ;;  %v4164_v43 = vadd.f32 %v4163_v18, %v11485_v14 }
 0x592   : > { %v4137_v62 = vpop.f32.mrf.mxu1  ;;  %v4109_v63 = vadd.f32 %v4108_v60, %v11477_v54  ;;  %v4193_v15 = vadd.f32 %v4192_v11, %v11485_v14  ;;  %v4501_v60 = vmax.f32 %v4133_v31, 0.0  ;;  %v4159_v11 = vadd.f32 %v11604_v36, %v11509_v28 }
 0x593   : > { %v4138_v22 = vadd.f32 %v4137_v62, %v11477_v54  ;;  %v4162_v62 = vadd.f32 %v4161_v57, %v11487_v37  ;;  %v4452_v36 = vmax.f32 %v11645_v32, 0.0  ;;  %v4154_v32 = vadd.f32 %v11589_v24, %v11516_v5 }
 0x594   : > { %7996 = vmatmul.msk.bf16.gmra.mxu0 %vm2339_vm1, %v11137_v17  ;;  %v4532_v41 = vmax.f32 %v4109_v63, 0.0  ;;  %v4606_v57 = vpack.c.bf16 %v4517_v40, %v4501_v60  ;;  %v4152_v24 = vadd.f32 %v11571_v6, %v11501_v50 }
 0x595   : > { %8000 = vmatmul.msk.bf16.gmra.mxu1 %vm2339_vm1, %v11137_v17  ;;  %8004 = vmatmul.msk.bf16.gmra.mxu2 %vm2339_vm1, %v11137_v17  ;;  %v4533_v8 = vmax.f32 %v4138_v22, 0.0  ;;  %v4502_v53 = vmax.f32 %v4162_v62, 0.0 }
 0x596   : > { %8008 = vmatmul.msk.bf16.gmra.mxu3 %vm2339_vm1, %v11137_v17  ;;  %v4106_v17 = vadd.f32 %v4105_v61, %v11485_v14 }
 0x598   : > { %v4166_v47 = vpop.f32.mrf.mxu2  ;;  %v4516_v9 = vmax.f32 %v4106_v17, 0.0  ;;  %v4519_v17 = vmax.f32 %v4193_v15, 0.0 }
 0x599   : > { %v4195_v19 = vpop.f32.mrf.mxu3  ;;  %v4110_v21 = vpop.f32.mrf.mxu0  ;;  %v4167_v51 = vadd.f32 %v4166_v47, %v11477_v54  ;;  %v4191_v47 = vadd.f32 %v4190_v26, %v11487_v37  ;;  %v4188_v26 = vadd.f32 %v11606_v1, %v11509_v28  ;;  %v4186_v1 = vadd.f32 %v11602_v3, %v11489_v2 }
 0x59a   : > { %v4111_v0 = vadd.f32 %v4110_v21, %v11481_v27  ;;  %v4139_v58 = vpop.f32.mrf.mxu1  ;;  %v4196_v59 = vadd.f32 %v4195_v19, %v11477_v54  ;;  %v4605_v21 = vpack.c.bf16 %v4516_v9, %v4500_v20  ;;  %v4183_v3 = vadd.f32 %v11591_v12, %v11516_v5 }
 0x59b   : > { %v4140_v39 = vadd.f32 %v4139_v58, %v11481_v27  ;;  %v4534_v63 = vmax.f32 %v4167_v51, 0.0  ;;  %v4454_v12 = vmax.f32 %v4154_v32, 0.0  ;;  %v4438_v20 = vmax.f32 %v4152_v24, 0.0 }
 0x59c   : > { %v4548_v25 = vmax.f32 %v4111_v0, 0.0  ;;  %v4535_v22 = vmax.f32 %v4196_v59, 0.0  ;;  %v4518_v0 = vmax.f32 %v4164_v43, 0.0  ;;  %v4437_v59 = vmax.f32 %v11636_v52, 0.0 }
 0x59d   : > { %v4549_v30 = vmax.f32 %v4140_v39, 0.0  ;;  %v4468_v39 = vmax.f32 %v4099_v33, 0.0  ;;  %v4487_v33 = vmax.f32 %v4188_v26, 0.0  ;;  %v4575_v60 = vpack.c.bf16 %v4454_v12, %v4438_v20 }
 0x59e   : > { %v4621_v45 = vpack.c.bf16 %v4548_v25, %v4532_v41  ;;  %v4469_v25 = vmax.f32 %v4128_v42, 0.0 }
 0x59f   : > { %v4622_v49 = vpack.c.bf16 %v4549_v30, %v4533_v8  ;;  %v4453_v8 = vmax.f32 %v11653_v4, 0.0  ;;  %v4503_v30 = vmax.f32 %v4191_v47, 0.0  ;;  %v4589_v38 = vpack.c.bf16 %v4484_v56, %v4468_v39 }
 0x5a0   : > { %v4168_v55 = vpop.f32.mrf.mxu2  ;;  %4861 = vmatpush.bf16.msrb.mxu0 %v4621_v45  ;;  %v4486_v45 = vmax.f32 %v4159_v11, 0.0  ;;  %v4590_v7 = vpack.c.bf16 %v4485_v29, %v4469_v25  ;;  %v4436_v4 = vmax.f32 %v11631_v16, 0.0  ;;  %v4181_v56 = vadd.f32 %v11575_v10, %v11501_v50  ;;  %v11718_v10 = vld [vmem:[%s13685_s3 + $0x68] sm:$0xff]  ;;  %v11739_v11 = vld [vmem:[%s13685_s3 + $0x70] sm:$0xff]  ;;  %v11754_v25 = vld [vmem:[%s13685_s3 + $0x78] sm:$0xff] }
 0x5a1   : > { %v4169_v48 = vadd.f32 %v4168_v55, %v11481_v27  ;;  %v4197_v23 = vpop.f32.mrf.mxu3  ;;  %4894 = vmatpush.bf16.msrb.mxu1 %v4622_v49  ;;  %v11668_v34 = vpop.f32.mrf.mxu0  ;;  %v4607_v49 = vpack.c.bf16 %v4518_v0, %v4502_v53  ;;  %v4608_v9 = vpack.c.bf16 %v4519_v17, %v4503_v30  ;;  %v4470_v55 = vmax.f32 %v4157_v46, 0.0 }
 0x5a2   : > { %v4198_v61 = vadd.f32 %v4197_v23, %v11481_v27  ;;  %v11673_v13 = vpop.f32.mrf.mxu1  ;;  %v4471_v16 = vmax.f32 %v4186_v1, 0.0  ;;  %v4573_v40 = vpack.c.bf16 %v4452_v36, %v4436_v4  ;;  %v4574_v43 = vpack.c.bf16 %v4453_v8, %v4437_v59 }
 0x5a3   : > { %v4550_v18 = vmax.f32 %v4169_v48, 0.0  ;;  %v4591_v48 = vpack.c.bf16 %v4486_v45, %v4470_v55  ;;  %v4455_v23 = vmax.f32 %v4183_v3, 0.0  ;;  %v4439_v52 = vmax.f32 %v4181_v56, 0.0 }
 0x5a4   : > { %v4551_v19 = vmax.f32 %v4198_v61, 0.0  ;;  %8025 = vmatmul.msk.bf16.vlgmr.msra.gmra.mxu0 %vm2339_vm1, %v11663_v44  ;;  %v4592_v29 = vpack.c.bf16 %v4487_v33, %v4471_v16  ;;  %v11772_v3 = vadd.f32 %v11668_v34, %v11501_v50  ;;  %v11776_v33 = vadd.f32 %v11673_v13, %v11501_v50 }
 0x5a5   : > { %v4623_v58 = vpack.c.bf16 %v4550_v18, %v4534_v63  ;;  %8030 = vmatmul.msk.bf16.vlgmr.msra.gmra.mxu1 %vm2339_vm1, %v11663_v44  ;;  %8035 = vmatmul.msk.bf16.vlgmr.msra.gmra.mxu2 %vm2339_vm1, %v11663_v44  ;;  %v4576_v63 = vpack.c.bf16 %v4455_v23, %v4439_v52 }
 0x5a6   : > { %v4624_v41 = vpack.c.bf16 %v4551_v19, %v4535_v22  ;;  %8040 = vmatmul.msk.bf16.vlgmr.msra.gmra.mxu3 %vm2339_vm1, %v11663_v44  ;;  %4862 = vmatpush.bf16.msrb.mxu0 %v4605_v21 }
 0x5a7   : > { %4895 = vmatpush.bf16.msrb.mxu1 %v4606_v57  ;;  %4927 = vmatpush.bf16.msrb.mxu2 %v4623_v58 }
 0x5a8   : > { %4960 = vmatpush.bf16.msrb.mxu3 %v4624_v41  ;;  %v11695_v35 = vpop.f32.mrf.mxu2 }
 0x5a9   : > { %v11699_v31 = vpop.f32.mrf.mxu3  ;;  %v11701_v51 = vpop.f32.mrf.mxu0 }
 0x5aa   : > { %4863 = vmatpush.bf16.msrb.mxu0 %v4589_v38  ;;  %v11706_v42 = vpop.f32.mrf.mxu1 }
 0x5ab   : > { %4896 = vmatpush.bf16.msrb.mxu1 %v4590_v7  ;;  %4928 = vmatpush.bf16.msrb.mxu2 %v4607_v49  ;;  %v4568_v7 = vld [vmem:[%s13685_s3 + $0x80] sm:$0xf]  ;;  %v11790_v13 = vadd.f32 %v11706_v42, %v11516_v5 }
 0x5ac   : > { %4961 = vmatpush.bf16.msrb.mxu3 %v4608_v9  ;;  %v11780_v9 = vadd.f32 %v11701_v51, %v11516_v5  ;;  %v4704_v16 = vunpack.c.l.b16 %v4568_v7 }
 0x5ae   : > { %4864 = vmatpush.bf16.msrb.mxu0 %v4573_v40  ;;  %v11799_v42 = vpack.c.b16 %v4704_v16, %v4704_v16 }
 0x5af   : > { %4897 = vmatpush.bf16.msrb.mxu1 %v4574_v43  ;;  %4929 = vmatpush.bf16.msrb.mxu2 %v4591_v48 }
 0x5b0   : > { %4962 = vmatpush.bf16.msrb.mxu3 %v4592_v29  ;;  %v11713_v6 = vpop.f32.mrf.mxu2 }
 0x5b1   : > { %v11720_v15 = vpop.f32.mrf.mxu3  ;;  %v4214_v61 = vpop.f32.mrf.mxu0 }
 0x5b2   : > { %v4243_v62 = vpop.f32.mrf.mxu1  ;;  %v4215_v29 = vadd.f32 %v4214_v61, %v11489_v2 }
 0x5b3   : > { %4930 = vmatpush.bf16.msrb.mxu2 %v4575_v60 }
 0x5b4   : > { %4963 = vmatpush.bf16.msrb.mxu3 %v4576_v63  ;;  %8026 = vmatmul.msk.bf16.gmra.mxu0 %vm2339_vm1, %v11718_v10  ;;  %v4244_v63 = vadd.f32 %v4243_v62, %v11489_v2 }
 0x5b5   : > { %8031 = vmatmul.msk.bf16.gmra.mxu1 %vm2339_vm1, %v11718_v10  ;;  %8036 = vmatmul.msk.bf16.gmra.mxu2 %vm2339_vm1, %v11718_v10 }
 0x5b6   : > { %8041 = vmatmul.msk.bf16.gmra.mxu3 %vm2339_vm1, %v11718_v10 }
 0x5b8   : > { %v11730_v18 = vpop.f32.mrf.mxu2 }
 0x5b9   : > { %v11732_v47 = vpop.f32.mrf.mxu3  ;;  %v4216_v22 = vpop.f32.mrf.mxu0 }
 0x5ba   : > { %v4245_v19 = vpop.f32.mrf.mxu1  ;;  %v11785_v40 = vadd.f32 %v4216_v22, %v11509_v28 }
 0x5bb   : > { %v4246_v51 = vadd.f32 %v4245_v19, %v11509_v28 }
 0x5bc   : > { %v4488_v19 = vmax.f32 %v11785_v40, 0.0  ;;  %v4472_v40 = vmax.f32 %v4215_v29, 0.0 }
 0x5c0   : > { %v11734_v21 = vpop.f32.mrf.mxu2 }
 0x5c1   : > { %v11741_v0 = vpop.f32.mrf.mxu3  ;;  %v4219_v58 = vpop.f32.mrf.mxu0 }
 0x5c2   : > { %v4248_v57 = vpop.f32.mrf.mxu1  ;;  %v4220_v48 = vadd.f32 %v4219_v58, %v11487_v37 }
 0x5c3   : > { %v4249_v20 = vadd.f32 %v4248_v57, %v11487_v37 }
 0x5c4   : > { %8027 = vmatmul.msk.bf16.gmra.mxu0 %vm2339_vm1, %v11739_v11  ;;  %v4504_v62 = vmax.f32 %v4220_v48, 0.0 }
 0x5c5   : > { %8032 = vmatmul.msk.bf16.gmra.mxu1 %vm2339_vm1, %v11739_v11  ;;  %8037 = vmatmul.msk.bf16.gmra.mxu2 %vm2339_vm1, %v11739_v11 }
 0x5c6   : > { %8042 = vmatmul.msk.bf16.gmra.mxu3 %vm2339_vm1, %v11739_v11 }
 0x5c8   : > { %v4277_v39 = vpop.f32.mrf.mxu2 }
 0x5c9   : > { %v4306_v26 = vpop.f32.mrf.mxu3  ;;  %v4221_v17 = vpop.f32.mrf.mxu0  ;;  %v4278_v7 = vadd.f32 %v4277_v39, %v11487_v37 }
 0x5ca   : > { %v4250_v41 = vpop.f32.mrf.mxu1  ;;  %v4222_v24 = vadd.f32 %v4221_v17, %v11485_v14 }
 0x5cb   : > { %v4251_v34 = vadd.f32 %v4250_v41, %v11485_v14  ;;  %v4506_v48 = vmax.f32 %v4278_v7, 0.0 }
 0x5cc   : > { %v4520_v22 = vmax.f32 %v4222_v24, 0.0 }
 0x5cd   : > { %v4521_v58 = vmax.f32 %v4251_v34, 0.0 }
 0x5d0   : > { %v4279_v36 = vpop.f32.mrf.mxu2 }
 0x5d1   : > { %v4308_v46 = vpop.f32.mrf.mxu3  ;;  %v4224_v53 = vpop.f32.mrf.mxu0 }
 0x5d2   : > { %v4253_v8 = vpop.f32.mrf.mxu1  ;;  %v4225_v1 = vadd.f32 %v4224_v53, %v11477_v54  ;;  %v4280_v53 = vadd.f32 %v4279_v36, %v11485_v14  ;;  %v4307_v36 = vadd.f32 %v4306_v26, %v11487_v37  ;;  %v4304_v26 = vadd.f32 %v11741_v0, %v11509_v28 }
 0x5d3   : > { %v4254_v38 = vadd.f32 %v4253_v8, %v11477_v54  ;;  %v4302_v0 = vadd.f32 %v11732_v47, %v11489_v2  ;;  %v4299_v47 = vadd.f32 %v11720_v15, %v11516_v5 }
 0x5d4   : > { %8028 = vmatmul.msk.bf16.gmra.mxu0 %vm2339_vm1, %v11754_v25  ;;  %v4536_v55 = vmax.f32 %v4225_v1, 0.0  ;;  %v4489_v1 = vmax.f32 %v4246_v51, 0.0  ;;  %v4273_v51 = vadd.f32 %v11730_v18, %v11489_v2  ;;  %v4507_v29 = vmax.f32 %v4307_v36, 0.0 }
 0x5d5   : > { %8033 = vmatmul.msk.bf16.gmra.mxu1 %vm2339_vm1, %v11754_v25  ;;  %8038 = vmatmul.msk.bf16.gmra.mxu2 %vm2339_vm1, %v11754_v25  ;;  %v4537_v12 = vmax.f32 %v4254_v38, 0.0 }
 0x5d6   : > { %8043 = vmatmul.msk.bf16.gmra.mxu3 %vm2339_vm1, %v11754_v25 }
 0x5d8   : > { %v4282_v30 = vpop.f32.mrf.mxu2 }
 0x5d9   : > { %v4311_v32 = vpop.f32.mrf.mxu3  ;;  %v4226_v45 = vpop.f32.mrf.mxu0  ;;  %v4283_v52 = vadd.f32 %v4282_v30, %v11477_v54  ;;  %v4309_v30 = vadd.f32 %v4308_v46, %v11485_v14  ;;  %v4275_v46 = vadd.f32 %v11734_v21, %v11509_v28  ;;  %v4456_v21 = vmax.f32 %v11780_v9, 0.0 }
 0x5da   : > { %v4227_v49 = vadd.f32 %v4226_v45, %v11481_v27  ;;  %v4255_v4 = vpop.f32.mrf.mxu1  ;;  %v4312_v17 = vadd.f32 %v4311_v32, %v11477_v54  ;;  %v4505_v45 = vmax.f32 %v4249_v20, 0.0  ;;  %v4270_v9 = vadd.f32 %v11713_v6, %v11516_v5 }
 0x5db   : > { %v4256_v59 = vadd.f32 %v4255_v4, %v11481_v27  ;;  %v4523_v34 = vmax.f32 %v4309_v30, 0.0  ;;  %v4268_v6 = vadd.f32 %v11695_v35, %v11501_v50 }
 0x5dc   : > { %v4552_v56 = vmax.f32 %v4227_v49, 0.0  ;;  %v4538_v49 = vmax.f32 %v4283_v52, 0.0  ;;  %v4610_v39 = vpack.c.bf16 %v4521_v58, %v4505_v45  ;;  %v4593_v52 = vpack.c.bf16 %v4488_v19, %v4472_v40 }
 0x5dd   : > { %v4553_v43 = vmax.f32 %v4256_v59, 0.0  ;;  %v4539_v59 = vmax.f32 %v4312_v17, 0.0  ;;  %v4612_v19 = vpack.c.bf16 %v4523_v34, %v4507_v29  ;;  %v4458_v15 = vmax.f32 %v4270_v9, 0.0  ;;  %v11884_v29 = vpop.permute.xlu0 %4679 }
 0x5de   : > { %v4625_v23 = vpack.c.bf16 %v4552_v56, %v4536_v55  ;;  %v4609_v55 = vpack.c.bf16 %v4520_v22, %v4504_v62  ;;  %v4522_v56 = vmax.f32 %v4280_v53, 0.0  ;;  %v4441_v53 = vmax.f32 %v11776_v33, 0.0  ;;  %14003 = vst [vmem:[#allocation19_spill] sm:$0xff] %v11884_v29 }
 0x5df   : > { %v4626_v60 = vpack.c.bf16 %v4553_v43, %v4537_v12  ;;  %v4473_v43 = vmax.f32 %v4244_v63, 0.0  ;;  %v4442_v7 = vmax.f32 %v4268_v6, 0.0 }
 0x5e0   : > { %v4284_v41 = vpop.f32.mrf.mxu2  ;;  %4993 = vmatpush.bf16.msra.mxu0 %v4625_v23  ;;  %v4457_v23 = vmax.f32 %v11790_v13, 0.0  ;;  %v4611_v17 = vpack.c.bf16 %v4522_v56, %v4506_v48  ;;  %v4440_v13 = vmax.f32 %v11772_v3, 0.0  ;;  %v4475_v3 = vmax.f32 %v4302_v0, 0.0 }
 0x5e1   : > { %v4285_v61 = vadd.f32 %v4284_v41, %v11481_v27  ;;  %v4313_v57 = vpop.f32.mrf.mxu3  ;;  %5026 = vmatpush.bf16.msra.mxu1 %v4626_v60  ;;  %v11804_v8 = vpop.f32.mrf.mxu0  ;;  %v4490_v60 = vmax.f32 %v4275_v46, 0.0  ;;  %v4594_v18 = vpack.c.bf16 %v4489_v1, %v4473_v43  ;;  %v4491_v41 = vmax.f32 %v4304_v26, 0.0 }
 0x5e2   : > { %v4314_v38 = vadd.f32 %v4313_v57, %v11481_v27  ;;  %v11808_v32 = vpop.f32.mrf.mxu1  ;;  %v4297_v57 = vadd.f32 %v11699_v31, %v11501_v50  ;;  %v4577_v1 = vpack.c.bf16 %v4456_v21, %v4440_v13  ;;  %v4578_v62 = vpack.c.bf16 %v4457_v23, %v4441_v53 }
 0x5e3   : > { %v4554_v4 = vmax.f32 %v4285_v61, 0.0  ;;  %v4474_v61 = vmax.f32 %v4273_v51, 0.0  ;;  %v4596_v45 = vpack.c.bf16 %v4491_v41, %v4475_v3  ;;  %v4579_v31 = vpack.c.bf16 %v4458_v15, %v4442_v7 }
 0x5e4   : > { %v4555_v24 = vmax.f32 %v4314_v38, 0.0  ;;  %8029 = vmatmul.msk.bf16.gmra.mxu0 %vm2339_vm1, %v11799_v42  ;;  %v4459_v38 = vmax.f32 %v4299_v47, 0.0  ;;  %v4443_v33 = vmax.f32 %v4297_v57, 0.0  ;;  %v11898_v9 = vadd.f32 %v11804_v8, %v11501_v50 }
 0x5e5   : > { %v4627_v16 = vpack.c.bf16 %v4554_v4, %v4538_v49  ;;  %8034 = vmatmul.msk.bf16.gmra.mxu1 %vm2339_vm1, %v11799_v42  ;;  %8039 = vmatmul.msk.bf16.gmra.mxu2 %vm2339_vm1, %v11799_v42  ;;  %v4595_v30 = vpack.c.bf16 %v4490_v60, %v4474_v61  ;;  %v11902_v60 = vadd.f32 %v11808_v32, %v11501_v50  ;;  %v11915_v15 = vpop.permute.xlu0 %4654 }
 0x5e6   : > { %v4628_v12 = vpack.c.bf16 %v4555_v24, %v4539_v59  ;;  %8044 = vmatmul.msk.bf16.gmra.mxu3 %vm2339_vm1, %v11799_v42  ;;  %4994 = vmatpush.bf16.msra.mxu0 %v4609_v55  ;;  %v4580_v59 = vpack.c.bf16 %v4459_v38, %v4443_v33  ;;  %v4444_v6 = vmax.f32 %v11898_v9, 0.0 }
 0x5e7   : > { %5027 = vmatpush.bf16.msra.mxu1 %v4610_v39  ;;  %5059 = vmatpush.bf16.msra.mxu2 %v4627_v16  ;;  %v4445_v32 = vmax.f32 %v11902_v60, 0.0 }
 0x5e8   : > { %5092 = vmatpush.bf16.msra.mxu3 %v4628_v12  ;;  %v11830_v20 = vpop.f32.mrf.mxu2 }
 0x5e9   : > { %v11834_v63 = vpop.f32.mrf.mxu3  ;;  %v11836_v22 = vpop.f32.mrf.mxu0 }
 0x5ea   : > { %4995 = vmatpush.bf16.msra.mxu0 %v4593_v52  ;;  %v11841_v58 = vpop.f32.mrf.mxu1  ;;  %v11886_v52 = vpop.permute.xlu2 %4674  ;;  %v11910_v8 = vadd.f32 %v11836_v22, %v11516_v5 }
 0x5eb   : > { %5028 = vmatpush.bf16.msra.mxu1 %v4594_v18  ;;  %5060 = vmatpush.bf16.msra.mxu2 %v4611_v17  ;;  %14004 = vst [vmem:[#allocation15_spill] sm:$0xff] %v11886_v52  ;;  %v11925_v22 = vadd.f32 %v11841_v58, %v11516_v5 }
 0x5ec   : > { %5093 = vmatpush.bf16.msra.mxu3 %v4612_v19 }
 0x5ee   : > { %4996 = vmatpush.bf16.msra.mxu0 %v4577_v1 }
 0x5ef   : > { %5029 = vmatpush.bf16.msra.mxu1 %v4578_v62  ;;  %5061 = vmatpush.bf16.msra.mxu2 %v4595_v30 }
 0x5f0   : > { %5094 = vmatpush.bf16.msra.mxu3 %v4596_v45  ;;  %v11848_v35 = vpop.f32.mrf.mxu2 }
 0x5f1   : > { %v11850_v49 = vpop.f32.mrf.mxu3  ;;  %v11852_v4 = vpop.f32.mrf.mxu0 }
 0x5f2   : > { %v11854_v36 = vpop.f32.mrf.mxu1  ;;  %v11921_v7 = vpop.permute.xlu2 %4669 }
 0x5f3   : > { %5062 = vmatpush.bf16.msra.mxu2 %v4579_v31  ;;  %14005 = vst [vmem:[#allocation5_spill] sm:$0xff] %v11921_v7  ;;  %v4360_v58 = vadd.f32 %v11854_v36, %v11489_v2 }
 0x5f4   : > { %5095 = vmatpush.bf16.msra.mxu3 %v4580_v59  ;;  %8045 = vmatmul.msk.bf16.vlgmr.msrb.gmra.mxu0 %vm2339_vm1, %v11663_v44 }
 0x5f5   : > { %8050 = vmatmul.msk.bf16.vlgmr.msrb.gmra.mxu1 %vm2339_vm1, %v11663_v44  ;;  %8055 = vmatmul.msk.bf16.vlgmr.msrb.gmra.mxu2 %vm2339_vm1, %v11663_v44 }
 0x5f6   : > { %8060 = vmatmul.msk.bf16.vlgmr.msrb.gmra.mxu3 %vm2339_vm1, %v11663_v44 }
 0x5f8   : > { %v11864_v24 = vpop.f32.mrf.mxu2 }
 0x5f9   : > { %v11866_v55 = vpop.f32.mrf.mxu3  ;;  %v4332_v46 = vpop.f32.mrf.mxu0 }
 0x5fa   : > { %v4361_v56 = vpop.f32.mrf.mxu1  ;;  %v11918_v62 = vadd.f32 %v4332_v46, %v11509_v28 }
 0x5fb   : > { %v11928_v33 = vadd.f32 %v4361_v56, %v11509_v28 }
 0x600   : > { %v11868_v16 = vpop.f32.mrf.mxu2 }
 0x601   : > { %v11870_v39 = vpop.f32.mrf.mxu3  ;;  %v4335_v40 = vpop.f32.mrf.mxu0 }
 0x602   : > { %v4364_v26 = vpop.f32.mrf.mxu1  ;;  %v4336_v31 = vadd.f32 %v4335_v40, %v11487_v37  ;;  %v4492_v40 = vmax.f32 %v11918_v62, 0.0 }
 0x603   : > { %v4365_v46 = vadd.f32 %v4364_v26, %v11487_v37 }
 0x604   : > { %8046 = vmatmul.msk.bf16.gmra.mxu0 %vm2339_vm1, %v11718_v10 }
 0x605   : > { %8051 = vmatmul.msk.bf16.gmra.mxu1 %vm2339_vm1, %v11718_v10  ;;  %8056 = vmatmul.msk.bf16.gmra.mxu2 %vm2339_vm1, %v11718_v10 }
 0x606   : > { %8061 = vmatmul.msk.bf16.gmra.mxu3 %vm2339_vm1, %v11718_v10 }
 0x608   : > { %v11880_v34 = vpop.f32.mrf.mxu2 }
 0x609   : > { %v11882_v12 = vpop.f32.mrf.mxu3  ;;  %v4337_v21 = vpop.f32.mrf.mxu0 }
 0x60a   : > { %v4366_v43 = vpop.f32.mrf.mxu1  ;;  %v4338_v57 = vadd.f32 %v4337_v21, %v11485_v14  ;;  %v4460_v21 = vmax.f32 %v11910_v8, 0.0 }
 0x60b   : > { %v4367_v30 = vadd.f32 %v4366_v43, %v11485_v14 }
 0x610   : > { %v4395_v51 = vpop.f32.mrf.mxu2 }
 0x611   : > { %v4424_v48 = vpop.f32.mrf.mxu3  ;;  %v4340_v23 = vpop.f32.mrf.mxu0 }
 0x612   : > { %v4369_v0 = vpop.f32.mrf.mxu1  ;;  %v4341_v18 = vadd.f32 %v4340_v23, %v11477_v54  ;;  %v4425_v36 = vadd.f32 %v4424_v48, %v11485_v14 }
 0x613   : > { %v4370_v13 = vadd.f32 %v4369_v0, %v11477_v54  ;;  %v4331_v0 = vadd.f32 %v11852_v4, %v11489_v2  ;;  %v4493_v4 = vmax.f32 %v11928_v33, 0.0 }
 0x614   : > { %8047 = vmatmul.msk.bf16.gmra.mxu0 %vm2339_vm1, %v11739_v11  ;;  %v4540_v3 = vmax.f32 %v4341_v18, 0.0  ;;  %v4524_v18 = vmax.f32 %v4338_v57, 0.0 }
 0x615   : > { %8052 = vmatmul.msk.bf16.gmra.mxu1 %vm2339_vm1, %v11739_v11  ;;  %8057 = vmatmul.msk.bf16.gmra.mxu2 %vm2339_vm1, %v11739_v11  ;;  %v4541_v38 = vmax.f32 %v4370_v13, 0.0  ;;  %v4476_v33 = vmax.f32 %v4331_v0, 0.0  ;;  %v11966_v0 = vpop.permute.xlu2 %4644 }
 0x616   : > { %8062 = vmatmul.msk.bf16.gmra.mxu3 %vm2339_vm1, %v11739_v11 }
 0x618   : > { %v4398_v17 = vpop.f32.mrf.mxu2 }
 0x619   : > { %v4427_v47 = vpop.f32.mrf.mxu3  ;;  %v4342_v41 = vpop.f32.mrf.mxu0  ;;  %v4399_v43 = vadd.f32 %v4398_v17, %v11477_v54 }
 0x61a   : > { %v4343_v19 = vadd.f32 %v4342_v41, %v11481_v27  ;;  %v4371_v53 = vpop.f32.mrf.mxu1  ;;  %v4428_v56 = vadd.f32 %v4427_v47, %v11477_v54  ;;  %v4525_v41 = vmax.f32 %v4367_v30, 0.0  ;;  %v4509_v47 = vmax.f32 %v4365_v46, 0.0 }
 0x61b   : > { %v4372_v61 = vadd.f32 %v4371_v53, %v11481_v27  ;;  %v4477_v46 = vmax.f32 %v4360_v58, 0.0 }
 0x61c   : > { %v4556_v1 = vmax.f32 %v4343_v19, 0.0  ;;  %v4396_v19 = vadd.f32 %v4395_v51, %v11485_v14  ;;  %v4423_v51 = vadd.f32 %v11882_v12, %v11487_v37  ;;  %v4543_v30 = vmax.f32 %v4428_v56, 0.0 }
 0x61d   : > { %v4557_v45 = vmax.f32 %v4372_v61, 0.0  ;;  %v4508_v61 = vmax.f32 %v4336_v31, 0.0  ;;  %v4391_v14 = vadd.f32 %v11868_v16, %v11509_v28  ;;  %v4527_v12 = vmax.f32 %v4425_v36, 0.0  ;;  %v11961_v16 = vpop.permute.xlu0 %4649 }
 0x61e   : > { %v4629_v59 = vpack.c.bf16 %v4556_v1, %v4540_v3  ;;  %v4394_v3 = vadd.f32 %v11880_v34, %v11487_v37  ;;  %v4542_v1 = vmax.f32 %v4399_v43, 0.0  ;;  %v4614_v34 = vpack.c.bf16 %v4525_v41, %v4509_v47 }
 0x61f   : > { %v4630_v23 = vpack.c.bf16 %v4557_v45, %v4541_v38  ;;  %v4613_v45 = vpack.c.bf16 %v4524_v18, %v4508_v61  ;;  %v4420_v37 = vadd.f32 %v11870_v39, %v11509_v28  ;;  %v4389_v43 = vadd.f32 %v11864_v24, %v11489_v2 }
 0x620   : > { %v4400_v13 = vpop.f32.mrf.mxu2  ;;  %5125 = vmatpush.bf16.msrb.mxu0 %v4629_v59  ;;  %v4461_v59 = vmax.f32 %v11925_v22, 0.0  ;;  %v4386_v28 = vadd.f32 %v11848_v35, %v11516_v5  ;;  %v4418_v39 = vadd.f32 %v11866_v55, %v11489_v2  ;;  %v4511_v18 = vmax.f32 %v4423_v51, 0.0 }
 0x621   : > { %v4401_v26 = vadd.f32 %v4400_v13, %v11481_v27  ;;  %v4429_v17 = vpop.f32.mrf.mxu3  ;;  %5158 = vmatpush.bf16.msrb.mxu1 %v4630_v23  ;;  %v4734_v53 = vpop.f32.mrf.mxu0  ;;  %v4510_v23 = vmax.f32 %v4394_v3, 0.0  ;;  %v4597_v13 = vpack.c.bf16 %v4492_v40, %v4476_v33  ;;  %v4415_v22 = vadd.f32 %v11850_v49, %v11516_v5 }
 0x622   : > { %v4430_v57 = vadd.f32 %v4429_v17, %v11481_v27  ;;  %v4767_v54 = vpop.f32.mrf.mxu1  ;;  %v4526_v27 = vmax.f32 %v4396_v19, 0.0  ;;  %v4494_v58 = vmax.f32 %v4391_v14, 0.0  ;;  %v4598_v41 = vpack.c.bf16 %v4493_v4, %v4477_v46 }
 0x623   : > { %v4558_v62 = vmax.f32 %v4401_v26, 0.0  ;;  %v4495_v17 = vmax.f32 %v4420_v37, 0.0  ;;  %v11975_v61 = vadd.f32 %v4734_v53, %v11966_v0  ;;  %v4616_v55 = vpack.c.bf16 %v4527_v12, %v4511_v18 }
 0x624   : > { %v4559_v38 = vmax.f32 %v4430_v57, 0.0  ;;  %8048 = vmatmul.msk.bf16.gmra.mxu0 %vm2339_vm1, %v11754_v25  ;;  %v4615_v26 = vpack.c.bf16 %v4526_v27, %v4510_v23  ;;  %v4384_v40 = vadd.f32 %v11830_v20, %v11501_v50  ;;  %v4478_v36 = vmax.f32 %v4389_v43, 0.0 }
 0x625   : > { %v4631_v48 = vpack.c.bf16 %v4558_v62, %v4542_v1  ;;  %8053 = vmatmul.msk.bf16.gmra.mxu1 %vm2339_vm1, %v11754_v25  ;;  %8058 = vmatmul.msk.bf16.gmra.mxu2 %vm2339_vm1, %v11754_v25  ;;  %v11983_v5 = vadd.f32 %v4767_v54, %v11966_v0  ;;  %v4413_v53 = vadd.f32 %v11834_v63, %v11501_v50  ;;  %v4479_v4 = vmax.f32 %v4418_v39, 0.0  ;;  %v12000_v62 = vpop.permute.xlu1 %4664 }
 0x626   : > { %v4632_v31 = vpack.c.bf16 %v4559_v38, %v4543_v30  ;;  %8063 = vmatmul.msk.bf16.gmra.mxu3 %vm2339_vm1, %v11754_v25  ;;  %5126 = vmatpush.bf16.msrb.mxu0 %v4613_v45  ;;  %v4581_v20 = vpack.c.bf16 %v4460_v21, %v4444_v6  ;;  %v4462_v54 = vmax.f32 %v4386_v28, 0.0  ;;  %v4582_v3 = vpack.c.bf16 %v4461_v59, %v4445_v32 }
 0x627   : > { %5159 = vmatpush.bf16.msrb.mxu1 %v4614_v34  ;;  %5191 = vmatpush.bf16.msrb.mxu2 %v4631_v48  ;;  %v4599_v1 = vpack.c.bf16 %v4494_v58, %v4478_v36  ;;  %v4463_v50 = vmax.f32 %v4415_v22, 0.0  ;;  %v4600_v63 = vpack.c.bf16 %v4495_v17, %v4479_v4  ;;  %v4446_v51 = vmax.f32 %v4384_v40, 0.0 }
 0x628   : > { %5224 = vmatpush.bf16.msrb.mxu3 %v4632_v31  ;;  %v4800_v56 = vpop.f32.mrf.mxu2  ;;  %v4447_v9 = vmax.f32 %v4413_v53, 0.0 }
 0x629   : > { %v4833_v24 = vpop.f32.mrf.mxu3  ;;  %v4736_v19 = vpop.f32.mrf.mxu0  ;;  %v12003_v6 = vadd.f32 %v4800_v56, %v11966_v0  ;;  %v4583_v30 = vpack.c.bf16 %v4462_v54, %v4446_v51 }
 0x62a   : > { %5127 = vmatpush.bf16.msrb.mxu0 %v4597_v13  ;;  %v11978_v35 = vadd.f32 %v4736_v19, %v11961_v16  ;;  %v4769_v2 = vpop.f32.mrf.mxu1  ;;  %v12009_v38 = vadd.f32 %v4833_v24, %v11966_v0  ;;  %v4584_v27 = vpack.c.bf16 %v4463_v50, %v4447_v9 }
 0x62b   : > { %5160 = vmatpush.bf16.msrb.mxu1 %v4598_v41  ;;  %v11986_v49 = vadd.f32 %v4769_v2, %v11961_v16  ;;  %5192 = vmatpush.bf16.msrb.mxu2 %v4615_v26 }
 0x62c   : > { %5225 = vmatpush.bf16.msrb.mxu3 %v4616_v55 }
 0x62d   : > { %v12026_v33 = vpop.permute.xlu1 %4659 }
 0x62e   : > { %5128 = vmatpush.bf16.msrb.mxu0 %v4581_v20 }
 0x62f   : > { %5161 = vmatpush.bf16.msrb.mxu1 %v4582_v3  ;;  %5193 = vmatpush.bf16.msrb.mxu2 %v4599_v1  ;;  %v8189_v1 = vld [vmem:[%s8931_s18 + $0x348] sm:$0xf0] }
 0x630   : > { %5226 = vmatpush.bf16.msrb.mxu3 %v4600_v63  ;;  %v4802_v8 = vpop.f32.mrf.mxu2 }
 0x631   : > { %v12006_v21 = vadd.f32 %v4802_v8, %v11961_v16  ;;  %v4835_v60 = vpop.f32.mrf.mxu3  ;;  %v4739_v32 = vpop.f32.mrf.mxu0 }
 0x632   : > { %v12012_v45 = vadd.f32 %v4835_v60, %v11961_v16  ;;  %v4772_v14 = vpop.f32.mrf.mxu1  ;;  %v12029_v59 = vadd.f32 %v4739_v32, %v11915_v15 }
 0x633   : > { %5194 = vmatpush.bf16.msrb.mxu2 %v4583_v30  ;;  %v12035_v23 = vadd.f32 %v4772_v14, %v11915_v15 }
 0x634   : > { %5227 = vmatpush.bf16.msrb.mxu3 %v4584_v27  ;;  %8049 = vmatmul.msk.bf16.gmra.mxu0 %vm2339_vm1, %v11799_v42 }
 0x635   : > { %8054 = vmatmul.msk.bf16.gmra.mxu1 %vm2339_vm1, %v11799_v42  ;;  %8059 = vmatmul.msk.bf16.gmra.mxu2 %vm2339_vm1, %v11799_v42 }
 0x636   : > { %8064 = vmatmul.msk.bf16.gmra.mxu3 %vm2339_vm1, %v11799_v42 }
 0x638   : > { %v4805_v37 = vpop.f32.mrf.mxu2 }
 0x639   : > { %v4838_v12 = vpop.f32.mrf.mxu3  ;;  %v4741_v31 = vpop.f32.mrf.mxu0  ;;  %v12045_v13 = vadd.f32 %v4805_v37, %v11915_v15 }
 0x63a   : > { %v12032_v46 = vadd.f32 %v4741_v31, %v12026_v33  ;;  %v4774_v43 = vpop.f32.mrf.mxu1  ;;  %v12051_v41 = vadd.f32 %v4838_v12, %v11915_v15  ;;  %v12106_v37 = vpop.permute.xlu0 %6148 }
 0x63b   : > { %v12038_v28 = vadd.f32 %v4774_v43, %v12026_v33  ;;  %14006 = vst [vmem:[#allocation16_spill] sm:$0xff] %v12106_v37  ;;  %v8179_v37 = vld [vmem:[%s8931_s18 + $0x300] sm:$0xf] }
 0x640   : > { %v4807_v56 = vpop.f32.mrf.mxu2 }
 0x641   : > { %v12048_v22 = vadd.f32 %v4807_v56, %v12026_v33  ;;  %v4840_v58 = vpop.f32.mrf.mxu3  ;;  %v4744_v24 = vpop.f32.mrf.mxu0 }
 0x642   : > { %v12054_v19 = vadd.f32 %v4840_v58, %v12026_v33  ;;  %v4777_v26 = vpop.f32.mrf.mxu1  ;;  %v12069_v53 = vadd.f32 %v4744_v24, %v12000_v62 }
 0x643   : > { %v12075_v54 = vadd.f32 %v4777_v26, %v12000_v62 }
 0x644   : > { %8065 = vmatmul.msk.bf16.vlgmr.msra.gmra.mxu0 %vm2339_vm1, %v11663_v44 }
 0x645   : > { %8070 = vmatmul.msk.bf16.vlgmr.msra.gmra.mxu1 %vm2339_vm1, %v11663_v44  ;;  %8075 = vmatmul.msk.bf16.vlgmr.msra.gmra.mxu2 %vm2339_vm1, %v11663_v44 }
 0x646   : > { %8080 = vmatmul.msk.bf16.vlgmr.msra.gmra.mxu3 %vm2339_vm1, %v11663_v44 }
 0x648   : > { %v4810_v55 = vpop.f32.mrf.mxu2 }
 0x649   : > { %v4843_v40 = vpop.f32.mrf.mxu3  ;;  %v4746_v36 = vpop.f32.mrf.mxu0  ;;  %v12085_v63 = vadd.f32 %v4810_v55, %v12000_v62 }
 0x64a   : > { %v12072_v4 = vadd.f32 %v4746_v36, %v11921_v7  ;;  %v4779_v20 = vpop.f32.mrf.mxu1  ;;  %v12091_v60 = vadd.f32 %v4843_v40, %v12000_v62  ;;  %v12126_v36 = vpop.permute.xlu0 %4684 }
 0x64b   : > { %v12078_v3 = vadd.f32 %v4779_v20, %v11921_v7 }
 0x650   : > { %v4812_v50 = vpop.f32.mrf.mxu2 }
 0x651   : > { %v12088_v51 = vadd.f32 %v4812_v50, %v11921_v7  ;;  %v4845_v9 = vpop.f32.mrf.mxu3  ;;  %v4749_v8 = vpop.f32.mrf.mxu0 }
 0x652   : > { %v12094_v32 = vadd.f32 %v4845_v9, %v11921_v7  ;;  %v4782_v30 = vpop.f32.mrf.mxu1  ;;  %v12111_v56 = vadd.f32 %v4749_v8, %v11886_v52 }
 0x653   : > { %v12117_v26 = vadd.f32 %v4782_v30, %v11886_v52 }
 0x654   : > { %8066 = vmatmul.msk.bf16.gmra.mxu0 %vm2339_vm1, %v11718_v10 }
 0x655   : > { %8071 = vmatmul.msk.bf16.gmra.mxu1 %vm2339_vm1, %v11718_v10  ;;  %8076 = vmatmul.msk.bf16.gmra.mxu2 %vm2339_vm1, %v11718_v10 }
 0x656   : > { %8081 = vmatmul.msk.bf16.gmra.mxu3 %vm2339_vm1, %v11718_v10 }
 0x658   : > { %v4815_v12 = vpop.f32.mrf.mxu2 }
 0x659   : > { %v4848_v31 = vpop.f32.mrf.mxu3  ;;  %v4751_v43 = vpop.f32.mrf.mxu0  ;;  %v12129_v50 = vadd.f32 %v4815_v12, %v11886_v52 }
 0x65a   : > { %v12114_v58 = vadd.f32 %v4751_v43, %v11884_v29  ;;  %v4784_v24 = vpop.f32.mrf.mxu1  ;;  %v12135_v43 = vadd.f32 %v4848_v31, %v11886_v52 }
 0x65b   : > { %v12120_v55 = vadd.f32 %v4784_v24, %v11884_v29 }
 0x660   : > { %v4817_v20 = vpop.f32.mrf.mxu2 }
 0x661   : > { %v12132_v9 = vadd.f32 %v4817_v20, %v11884_v29  ;;  %v4850_v8 = vpop.f32.mrf.mxu3  ;;  %v4754_v30 = vpop.f32.mrf.mxu0 }
 0x662   : > { %v12138_v24 = vadd.f32 %v4850_v8, %v11884_v29  ;;  %v4755_v34 = vadd.f32 %v4754_v30, %v12126_v36  ;;  %v4787_v48 = vpop.f32.mrf.mxu1 }
 0x663   : > { %v4788_v12 = vadd.f32 %v4787_v48, %v12126_v36 }
 0x664   : > { %v5253_v57 = vmax.f32 %v4755_v34, 0.0  ;;  %8067 = vmatmul.msk.bf16.gmra.mxu0 %vm2339_vm1, %v11739_v11 }
 0x665   : > { %v5254_v31 = vmax.f32 %v4788_v12, 0.0  ;;  %8072 = vmatmul.msk.bf16.gmra.mxu1 %vm2339_vm1, %v11739_v11  ;;  %8077 = vmatmul.msk.bf16.gmra.mxu2 %vm2339_vm1, %v11739_v11 }
 0x666   : > { %6957 = vst [vmem:[#allocation1] sm:$0xff] %v5253_v57  ;;  %8082 = vmatmul.msk.bf16.gmra.mxu3 %vm2339_vm1, %v11739_v11 }
 0x667   : > { %v6866_v48 = vrot.slane %v5254_v31, 7  ;;  %6958 = vst [vmem:[#allocation1 + $0x9] sm:$0xff] %v5254_v31 }
 0x668   : > { %v4820_v8 = vpop.f32.mrf.mxu2 }
 0x669   : > { %v6881_v34 = vsel %vm6880_vm2, %v5253_v57, %v6866_v48  ;;  %v4821_v30 = vadd.f32 %v4820_v8, %v12126_v36  ;;  %v4853_v2 = vpop.f32.mrf.mxu3  ;;  %v4756_v12 = vpop.f32.mrf.mxu0 }
 0x66a   : > { %v4854_v17 = vadd.f32 %v4853_v2, %v12126_v36  ;;  %v4789_v18 = vpop.f32.mrf.mxu1 }
 0x66b   : > { %v5255_v39 = vmax.f32 %v4821_v30, 0.0 }
 0x66c   : > { %v5256_v27 = vmax.f32 %v4854_v17, 0.0 }
 0x66d   : > { %v6867_v14 = vrot.slane %v5255_v39, 6  ;;  %6959 = vst [vmem:[#allocation1 + $0x12] sm:$0xff] %v5255_v39 }
 0x66e   : > { %v6868_v44 = vrot.slane %v5256_v27, 5  ;;  %6960 = vst [vmem:[#allocation1 + $0x1b] sm:$0xff] %v5256_v27 }
 0x670   : > { %v6883_v11 = vsel %vm6882_vm3, %v6867_v14, %v6868_v44  ;;  %v4822_v31 = vpop.f32.mrf.mxu2 }
 0x671   : > { %v12159_v57 = vsel %vm6884_vm4, %v6881_v34, %v6883_v11  ;;  %v4855_v48 = vpop.f32.mrf.mxu3  ;;  %v4866_v8 = vpop.f32.mrf.mxu0  ;;  %v8187_v11 = vld [vmem:[%s8931_s18 + $0x308] sm:$0xf] }
 0x672   : > { %v4899_v12 = vpop.f32.mrf.mxu1  ;;  %v12170_v2 = vadd.f32 %v4866_v8, %v11966_v0  ;;  %v8453_v31 = vld [vmem:[%s8931_s18 + $0x344] sm:$0xf0]  ;;  %v8445_v48 = vld [vmem:[%s8931_s18 + $0x30c] sm:$0xf] }
 0x673   : > { %v12176_v27 = vadd.f32 %v4899_v12, %v11966_v0  ;;  %v8188_v8 = vor.u32 %v8453_v31, %v8187_v11 }
 0x674   : > { %8068 = vmatmul.msk.bf16.gmra.mxu0 %vm2339_vm1, %v11754_v25  ;;  %14007 = vst [vmem:[#allocation11_spill] sm:$0xff] %v12170_v2 }
 0x675   : > { %8073 = vmatmul.msk.bf16.gmra.mxu1 %vm2339_vm1, %v11754_v25  ;;  %8078 = vmatmul.msk.bf16.gmra.mxu2 %vm2339_vm1, %v11754_v25  ;;  %14009 = vst [vmem:[#allocation12_spill] sm:$0xff] %v12176_v27 }
 0x676   : > { %8083 = vmatmul.msk.bf16.gmra.mxu3 %vm2339_vm1, %v11754_v25  ;;  %5562 = vmatpush.bf16.msra.mxu2 %v8188_v8 }
 0x678   : > { %v4932_v39 = vpop.f32.mrf.mxu2 }
 0x679   : > { %v4965_v18 = vpop.f32.mrf.mxu3  ;;  %v4868_v17 = vpop.f32.mrf.mxu0  ;;  %v12190_v12 = vadd.f32 %v4932_v39, %v11966_v0 }
 0x67a   : > { %v12173_v44 = vadd.f32 %v4868_v17, %v11961_v16  ;;  %v4901_v14 = vpop.f32.mrf.mxu1  ;;  %v8192_v17 = vor.u32 %v8445_v48, %v8189_v1  ;;  %v12196_v30 = vadd.f32 %v4965_v18, %v11966_v0 }
 0x67b   : > { %v12179_v34 = vadd.f32 %v4901_v14, %v11961_v16  ;;  %14011 = vst [vmem:[#allocation7_spill] sm:$0xff] %v12190_v12  ;;  %v8181_v12 = vld [vmem:[%s8931_s18 + $0x340] sm:$0xf0] }
 0x67c   : > { %14008 = vst [vmem:[#allocation22_spill] sm:$0xff] %v12173_v44  ;;  %5581 = vmatpush.bf16.msra.mxu3 %v8192_v17 }
 0x67d   : > { %14010 = vst [vmem:[#allocation23_spill] sm:$0xff] %v12179_v34 }
 0x67e   : > { %14013 = vst [vmem:[#allocation21_spill] sm:$0xff] %v12196_v30  ;;  %v8452_v30 = vld [vmem:[%s8931_s18 + $0x33c] sm:$0xf0] }
 0x680   : > { %v4934_v20 = vpop.f32.mrf.mxu2 }
 0x681   : > { %v12193_v14 = vadd.f32 %v4934_v20, %v11961_v16  ;;  %v4967_v47 = vpop.f32.mrf.mxu3  ;;  %v4871_v10 = vpop.f32.mrf.mxu0 }
 0x682   : > { %v12199_v25 = vadd.f32 %v4967_v47, %v11961_v16  ;;  %v4904_v11 = vpop.f32.mrf.mxu1  ;;  %v12214_v31 = vadd.f32 %v4871_v10, %v11915_v15  ;;  %v8444_v10 = vld [vmem:[%s8931_s18 + $0x304] sm:$0xf] }
 0x683   : > { %14012 = vst [vmem:[#allocation20_spill] sm:$0xff] %v12193_v14  ;;  %v12220_v17 = vadd.f32 %v4904_v11, %v11915_v15 }
 0x684   : > { %14014 = vst [vmem:[#allocation17_spill] sm:$0xff] %v12199_v25  ;;  %8069 = vmatmul.msk.bf16.gmra.mxu0 %vm2339_vm1, %v11799_v42  ;;  %v8180_v25 = vor.u32 %v8452_v30, %v8179_v37 }
 0x685   : > { %8074 = vmatmul.msk.bf16.gmra.mxu1 %vm2339_vm1, %v11799_v42  ;;  %8079 = vmatmul.msk.bf16.gmra.mxu2 %vm2339_vm1, %v11799_v42  ;;  %14015 = vst [vmem:[#allocation13_spill] sm:$0xff] %v12214_v31 }
 0x686   : > { %8084 = vmatmul.msk.bf16.gmra.mxu3 %vm2339_vm1, %v11799_v42  ;;  %14017 = vst [vmem:[#allocation24_spill] sm:$0xff] %v12220_v17  ;;  %5524 = vmatpush.bf16.msra.mxu0 %v8180_v25 }
 0x688   : > { %v4937_v47 = vpop.f32.mrf.mxu2 }
 0x689   : > { %v4970_v20 = vpop.f32.mrf.mxu3  ;;  %v4873_v18 = vpop.f32.mrf.mxu0  ;;  %v12234_v11 = vadd.f32 %v4937_v47, %v11915_v15 }
 0x68a   : > { %v12217_v48 = vadd.f32 %v4873_v18, %v12026_v33  ;;  %v4906_v8 = vpop.f32.mrf.mxu1  ;;  %v8184_v18 = vor.u32 %v8444_v10, %v8181_v12  ;;  %v12240_v1 = vadd.f32 %v4970_v20, %v11915_v15  ;;  %v8593_v12 = vld [vmem:[%s13685_s3 + $0x60] sm:$0xff] }
 0x68b   : > { %v12223_v39 = vadd.f32 %v4906_v8, %v12026_v33  ;;  %14019 = vst [vmem:[#allocation25_spill] sm:$0xff] %v12234_v11 }
 0x68c   : > { %14016 = vst [vmem:[#allocation18_spill] sm:$0xff] %v12217_v48  ;;  %5543 = vmatpush.bf16.msra.mxu1 %v8184_v18 }
 0x68d   : > { %14018 = vst [vmem:[#allocation14_spill] sm:$0xff] %v12223_v39 }
 0x68e   : > { %14021 = vst [vmem:[#allocation10_spill] sm:$0xff] %v12240_v1 }
 0x690   : > { %v4939_v14 = vpop.f32.mrf.mxu2 }
 0x691   : > { %v12237_v8 = vadd.f32 %v4939_v14, %v12026_v33  ;;  %v4972_v27 = vpop.f32.mrf.mxu3  ;;  %v4876_v34 = vpop.f32.mrf.mxu0 }
 0x692   : > { %v12243_v40 = vadd.f32 %v4972_v27, %v12026_v33  ;;  %v4909_v37 = vpop.f32.mrf.mxu1  ;;  %v12257_v20 = vadd.f32 %v4876_v34, %v12000_v62 }
 0x693   : > { %14020 = vst [vmem:[#allocation9_spill] sm:$0xff] %v12237_v8  ;;  %v12263_v25 = vadd.f32 %v4909_v37, %v12000_v62  ;;  %v8429_v8 = vld [vmem:[%s8931_s18 + $0x28c] sm:$0xf] }
 0x694   : > { %14022 = vst [vmem:[#allocation8_spill] sm:$0xff] %v12243_v40  ;;  %8085 = vmatmul.msk.bf16.vlgmr.msrb.gmra.mxu0 %vm2339_vm1, %v8593_v12  ;;  %v8125_v40 = vld [vmem:[%s8931_s18 + $0x2c8] sm:$0xf0] }
 0x695   : > { %8090 = vmatmul.msk.bf16.vlgmr.msrb.gmra.mxu1 %vm2339_vm1, %v8593_v12  ;;  %8095 = vmatmul.msk.bf16.vlgmr.msrb.gmra.mxu2 %vm2339_vm1, %v8593_v12  ;;  %14023 = vst [vmem:[#allocation6_spill] sm:$0xff] %v12257_v20  ;;  %v8128_v39 = vor.u32 %v8429_v8, %v8125_v40 }
 0x696   : > { %8100 = vmatmul.msk.bf16.vlgmr.msrb.gmra.mxu3 %vm2339_vm1, %v8593_v12  ;;  %14025 = vst [vmem:[#allocation4_spill] sm:$0xff] %v12263_v25  ;;  %v8436_v25 = vld [vmem:[%s8931_s18 + $0x2bc] sm:$0xf0] }
 0x697   : > { %5582 = vmatpush.bf16.msra.mxu3 %v8128_v39 }
 0x698   : > { %v4942_v27 = vpop.f32.mrf.mxu2 }
 0x699   : > { %v4975_v14 = vpop.f32.mrf.mxu3  ;;  %v4878_v47 = vpop.f32.mrf.mxu0  ;;  %v12273_v34 = vadd.f32 %v4942_v27, %v12000_v62 }
 0x69a   : > { %v12260_v10 = vadd.f32 %v4878_v47, %v11921_v7  ;;  %v4911_v18 = vpop.f32.mrf.mxu1  ;;  %v12279_v1 = vadd.f32 %v4975_v14, %v12000_v62  ;;  %v8123_v14 = vld [vmem:[%s8931_s18 + $0x288] sm:$0xf] }
 0x69b   : > { %v12266_v30 = vadd.f32 %v4911_v18, %v11921_v7  ;;  %14027 = vst [vmem:[#allocation31_spill] sm:$0xff] %v12273_v34 }
 0x69c   : > { %14024 = vst [vmem:[#allocation3_spill] sm:$0xff] %v12260_v10 }
 0x69d   : > { %14026 = vst [vmem:[#allocation30_spill] sm:$0xff] %v12266_v30 }
 0x69e   : > { %14029 = vst [vmem:[#allocation34_spill] sm:$0xff] %v12279_v1 }
 0x6a0   : > { %v4944_v44 = vpop.f32.mrf.mxu2 }
 0x6a1   : > { %v12276_v47 = vadd.f32 %v4944_v44, %v11921_v7  ;;  %v4977_v37 = vpop.f32.mrf.mxu3  ;;  %v4881_v18 = vpop.f32.mrf.mxu0  ;;  %v8594_v44 = vld [vmem:[%s13685_s3 + $0x68] sm:$0xff] }
 0x6a2   : > { %v12282_v2 = vadd.f32 %v4977_v37, %v11921_v7  ;;  %v4914_v12 = vpop.f32.mrf.mxu1  ;;  %v8437_v37 = vld [vmem:[%s8931_s18 + $0x2c4] sm:$0xf0]  ;;  %v12300_v48 = vadd.f32 %v4881_v18, %v11886_v52 }
 0x6a3   : > { %14028 = vst [vmem:[#allocation26_spill] sm:$0xff] %v12276_v47  ;;  %v8124_v11 = vor.u32 %v8437_v37, %v8123_v14 }
 0x6a4   : > { %14030 = vst [vmem:[#allocation27_spill] sm:$0xff] %v12282_v2  ;;  %8086 = vmatmul.msk.bf16.gmra.mxu0 %vm2339_vm1, %v8594_v44 }
 0x6a5   : > { %8091 = vmatmul.msk.bf16.gmra.mxu1 %vm2339_vm1, %v8594_v44  ;;  %8096 = vmatmul.msk.bf16.gmra.mxu2 %vm2339_vm1, %v8594_v44  ;;  %14031 = vst [vmem:[#allocation38_spill] sm:$0xff] %v12300_v48  ;;  %v8147_v48 = vld [vmem:[%s8931_s18 + $0x2a0] sm:$0xf] }
 0x6a6   : > { %8101 = vmatmul.msk.bf16.gmra.mxu3 %vm2339_vm1, %v8594_v44  ;;  %5563 = vmatpush.bf16.msra.mxu2 %v8124_v11  ;;  %v12306_v44 = vadd.f32 %v4914_v12, %v11886_v52 }
 0x6a8   : > { %v4947_v17 = vpop.f32.mrf.mxu2  ;;  %14033 = vst [vmem:[#allocation35_spill] sm:$0xff] %v12306_v44 }
 0x6a9   : > { %v4980_v27 = vpop.f32.mrf.mxu3  ;;  %v4883_v31 = vpop.f32.mrf.mxu0 }
 0x6aa   : > { %v12303_v1 = vadd.f32 %v4883_v31, %v11884_v29  ;;  %v4916_v2 = vpop.f32.mrf.mxu1  ;;  %v12316_v31 = vadd.f32 %v4947_v17, %v11886_v52  ;;  %v8428_v17 = vld [vmem:[%s8931_s18 + $0x284] sm:$0xf] }
 0x6ab   : > { %v12309_v14 = vadd.f32 %v4916_v2, %v11884_v29  ;;  %v12322_v2 = vadd.f32 %v4980_v27, %v11886_v52  ;;  %v8595_v27 = vld [vmem:[%s13685_s3 + $0x70] sm:$0xff] }
 0x6ac   : > { %14032 = vst [vmem:[#allocation39_spill] sm:$0xff] %v12303_v1  ;;  %v8440_v1 = vld [vmem:[%s8931_s18 + $0x2dc] sm:$0xf0] }
 0x6ad   : > { %14034 = vst [vmem:[#allocation50_spill] sm:$0xff] %v12309_v14  ;;  %v8157_v14 = vld [vmem:[%s8931_s18 + $0x2e8] sm:$0xf0] }
 0x6ae   : > { %14035 = vst [vmem:[#allocation51_spill] sm:$0xff] %v12316_v31 }
 0x6af   : > { %14037 = vst [vmem:[#allocation32_spill] sm:$0xff] %v12322_v2 }
 0x6b0   : > { %v4949_v8 = vpop.f32.mrf.mxu2 }
 0x6b1   : > { %v12319_v39 = vadd.f32 %v4949_v8, %v11884_v29  ;;  %v4982_v12 = vpop.f32.mrf.mxu3  ;;  %v4886_v18 = vpop.f32.mrf.mxu0 }
 0x6b2   : > { %v12325_v37 = vadd.f32 %v4982_v12, %v11884_v29  ;;  %v4887_v11 = vadd.f32 %v4886_v18, %v12126_v36  ;;  %v4919_v40 = vpop.f32.mrf.mxu1  ;;  %v8115_v12 = vld [vmem:[%s8931_s18 + $0x280] sm:$0xf] }
 0x6b3   : > { %14036 = vst [vmem:[#allocation46_spill] sm:$0xff] %v12319_v39  ;;  %v4920_v34 = vadd.f32 %v4919_v40, %v12126_v36  ;;  %v8116_v18 = vor.u32 %v8436_v25, %v8115_v12  ;;  %v8117_v40 = vld [vmem:[%s8931_s18 + $0x2c0] sm:$0xf0] }
 0x6b4   : > { %14038 = vst [vmem:[#allocation47_spill] sm:$0xff] %v12325_v37  ;;  %v5257_v47 = vmax.f32 %v4887_v11, 0.0  ;;  %8087 = vmatmul.msk.bf16.gmra.mxu0 %vm2339_vm1, %v8595_v27  ;;  %v8120_v11 = vor.u32 %v8428_v17, %v8117_v40 }
 0x6b5   : > { %v5258_v30 = vmax.f32 %v4920_v34, 0.0  ;;  %8092 = vmatmul.msk.bf16.gmra.mxu1 %vm2339_vm1, %v8595_v27  ;;  %8097 = vmatmul.msk.bf16.gmra.mxu2 %vm2339_vm1, %v8595_v27 }
 0x6b6   : > { %v6869_v20 = vrot.slane %v5257_v47, 4  ;;  %6961 = vst [vmem:[#allocation1 + $0x24] sm:$0xff] %v5257_v47  ;;  %8102 = vmatmul.msk.bf16.gmra.mxu3 %vm2339_vm1, %v8595_v27  ;;  %5525 = vmatpush.bf16.msra.mxu0 %v8116_v18 }
 0x6b7   : > { %v6870_v8 = vrot.slane %v5258_v30, 3  ;;  %6962 = vst [vmem:[#allocation1 + $0x2d] sm:$0xff] %v5258_v30  ;;  %5544 = vmatpush.bf16.msra.mxu1 %v8120_v11 }
 0x6b8   : > { %v4952_v10 = vpop.f32.mrf.mxu2 }
 0x6b9   : > { %v6887_v34 = vsel %vm6886_vm5, %v6869_v20, %v6870_v8  ;;  %v4953_v2 = vadd.f32 %v4952_v10, %v12126_v36  ;;  %v4985_v37 = vpop.f32.mrf.mxu3  ;;  %v4888_v31 = vpop.f32.mrf.mxu0 }
 0x6ba   : > { %v4986_v25 = vadd.f32 %v4985_v37, %v12126_v36  ;;  %v4921_v12 = vpop.f32.mrf.mxu1 }
 0x6bb   : > { %v5259_v39 = vmax.f32 %v4953_v2, 0.0 }
 0x6bc   : > { %v5260_v47 = vmax.f32 %v4986_v25, 0.0 }
 0x6bd   : > { %v6871_v44 = vrot.slane %v5259_v39, 2  ;;  %6963 = vst [vmem:[#allocation1 + $0x36] sm:$0xff] %v5259_v39  ;;  %v8596_v39 = vld [vmem:[%s13685_s3 + $0x78] sm:$0xff] }
 0x6be   : > { %v6872_v17 = vrot.slane %v5260_v47, 1  ;;  %6964 = vst [vmem:[#allocation1 + $0x3f] sm:$0xff] %v5260_v47 }
 0x6c0   : > { %v6889_v30 = vsel %vm6888_vm6, %v6871_v44, %v6872_v17  ;;  %v4954_v27 = vpop.f32.mrf.mxu2  ;;  %v8203_v17 = vld [vmem:[%s8931_s18 + $0x318] sm:$0xf] }
 0x6c1   : > { %v6891_v20 = vsel %vm6890_vm7, %v6887_v34, %v6889_v30  ;;  %v4987_v10 = vpop.f32.mrf.mxu3  ;;  %v4998_v8 = vpop.f32.mrf.mxu0  ;;  %v8455_v30 = vld [vmem:[%s8931_s18 + $0x354] sm:$0xf0]  ;;  %v8447_v27 = vld [vmem:[%s8931_s18 + $0x31c] sm:$0xf] }
 0x6c2   : > { %v12351_v31 = vsel %vm6892_vm8, %v12159_v57, %v6891_v20  ;;  %v5031_v2 = vpop.f32.mrf.mxu1  ;;  %v12361_v18 = vadd.f32 %v4998_v8, %v11966_v0  ;;  %v8204_v20 = vor.u32 %v8455_v30, %v8203_v17  ;;  %v8205_v10 = vld [vmem:[%s8931_s18 + $0x358] sm:$0xf0] }
 0x6c3   : > { %14039 = vst [vmem:[#allocation42_spill] sm:$0xff] %v12351_v31  ;;  %v12367_v34 = vadd.f32 %v5031_v2, %v11966_v0  ;;  %v8208_v8 = vor.u32 %v8447_v27, %v8205_v10 }
 0x6c4   : > { %8088 = vmatmul.msk.bf16.gmra.mxu0 %vm2339_vm1, %v8596_v39  ;;  %14040 = vst [vmem:[#allocation54_spill] sm:$0xff] %v12361_v18  ;;  %5638 = vmatpush.bf16.msrb.mxu2 %v8204_v20 }
 0x6c5   : > { %8093 = vmatmul.msk.bf16.gmra.mxu1 %vm2339_vm1, %v8596_v39  ;;  %8098 = vmatmul.msk.bf16.gmra.mxu2 %vm2339_vm1, %v8596_v39  ;;  %14042 = vst [vmem:[#allocation55_spill] sm:$0xff] %v12367_v34  ;;  %v8439_v34 = vld [vmem:[%s8931_s18 + $0x2d4] sm:$0xf0] }
 0x6c6   : > { %8103 = vmatmul.msk.bf16.gmra.mxu3 %vm2339_vm1, %v8596_v39 }
 0x6c7   : > { %5657 = vmatpush.bf16.msrb.mxu3 %v8208_v8 }
 0x6c8   : > { %v5064_v44 = vpop.f32.mrf.mxu2 }
 0x6c9   : > { %v5097_v57 = vpop.f32.mrf.mxu3  ;;  %v5000_v37 = vpop.f32.mrf.mxu0  ;;  %v12381_v2 = vadd.f32 %v5064_v44, %v11966_v0 }
 0x6ca   : > { %v12364_v40 = vadd.f32 %v5000_v37, %v11961_v16  ;;  %v5033_v11 = vpop.f32.mrf.mxu1  ;;  %v12387_v12 = vadd.f32 %v5097_v57, %v11966_v0 }
 0x6cb   : > { %v12370_v25 = vadd.f32 %v5033_v11, %v11961_v16  ;;  %14044 = vst [vmem:[#allocation52_spill] sm:$0xff] %v12381_v2 }
 0x6cc   : > { %14041 = vst [vmem:[#allocation43_spill] sm:$0xff] %v12364_v40  ;;  %v8141_v40 = vld [vmem:[%s8931_s18 + $0x2d8] sm:$0xf0] }
 0x6cd   : > { %14043 = vst [vmem:[#allocation36_spill] sm:$0xff] %v12370_v25 }
 0x6ce   : > { %14046 = vst [vmem:[#allocation48_spill] sm:$0xff] %v12387_v12  ;;  %v8454_v12 = vld [vmem:[%s8931_s18 + $0x34c] sm:$0xf0] }
 0x6d0   : > { %v5066_v39 = vpop.f32.mrf.mxu2 }
 0x6d1   : > { %v12384_v37 = vadd.f32 %v5066_v39, %v11961_v16  ;;  %v5099_v11 = vpop.f32.mrf.mxu3  ;;  %v5003_v31 = vpop.f32.mrf.mxu0 }
 0x6d2   : > { %v12390_v47 = vadd.f32 %v5099_v11, %v11961_v16  ;;  %v5036_v17 = vpop.f32.mrf.mxu1  ;;  %v12405_v10 = vadd.f32 %v5003_v31, %v11915_v15  ;;  %v8195_v31 = vld [vmem:[%s8931_s18 + $0x310] sm:$0xf] }
 0x6d3   : > { %14045 = vst [vmem:[#allocation53_spill] sm:$0xff] %v12384_v37  ;;  %v12411_v11 = vadd.f32 %v5036_v17, %v11915_v15  ;;  %v8196_v2 = vor.u32 %v8454_v12, %v8195_v31  ;;  %v8139_v37 = vld [vmem:[%s8931_s18 + $0x298] sm:$0xf]  ;;  %v8431_v17 = vld [vmem:[%s8931_s18 + $0x29c] sm:$0xf] }
 0x6d4   : > { %14047 = vst [vmem:[#allocation44_spill] sm:$0xff] %v12390_v47  ;;  %8089 = vmatmul.msk.bf16.gmra.mxu0 %vm2339_vm1, %v11799_v42  ;;  %v8446_v47 = vld [vmem:[%s8931_s18 + $0x314] sm:$0xf]  ;;  %v8140_v18 = vor.u32 %v8439_v34, %v8139_v37  ;;  %v8144_v30 = vor.u32 %v8431_v17, %v8141_v40  ;;  %v8131_v40 = vld [vmem:[%s8931_s18 + $0x290] sm:$0xf] }
 0x6d5   : > { %8094 = vmatmul.msk.bf16.gmra.mxu1 %vm2339_vm1, %v11799_v42  ;;  %8099 = vmatmul.msk.bf16.gmra.mxu2 %vm2339_vm1, %v11799_v42  ;;  %14048 = vst [vmem:[#allocation49_spill] sm:$0xff] %v12405_v10  ;;  %v8430_v17 = vld [vmem:[%s8931_s18 + $0x294] sm:$0xf] }
 0x6d6   : > { %8104 = vmatmul.msk.bf16.gmra.mxu3 %vm2339_vm1, %v11799_v42  ;;  %14050 = vst [vmem:[#allocation45_spill] sm:$0xff] %v12411_v11  ;;  %v12431_v42 = vld [vmem:[%s13686_s4] sm:$0xff]  ;;  %5600 = vmatpush.bf16.msrb.mxu0 %v8196_v2 }
 0x6d7   : > { %5639 = vmatpush.bf16.msrb.mxu2 %v8140_v18  ;;  %5658 = vmatpush.bf16.msrb.mxu3 %v8144_v30 }
 0x6d8   : > { %v5069_v57 = vpop.f32.mrf.mxu2 }
 0x6d9   : > { %v5102_v27 = vpop.f32.mrf.mxu3  ;;  %v5005_v20 = vpop.f32.mrf.mxu0  ;;  %v12434_v12 = vadd.f32 %v5069_v57, %v11915_v15  ;;  %v8438_v57 = vld [vmem:[%s8931_s18 + $0x2cc] sm:$0xf0] }
 0x6da   : > { %v12408_v8 = vadd.f32 %v5005_v20, %v12026_v33  ;;  %v5038_v39 = vpop.f32.mrf.mxu1  ;;  %v8197_v20 = vld [vmem:[%s8931_s18 + $0x350] sm:$0xf0]  ;;  %v12440_v31 = vadd.f32 %v5102_v27, %v11915_v15  ;;  %v8132_v11 = vor.u32 %v8438_v57, %v8131_v40 }
 0x6db   : > { %v12414_v44 = vadd.f32 %v5038_v39, %v12026_v33  ;;  %v8200_v25 = vor.u32 %v8446_v47, %v8197_v20  ;;  %14052 = vst [vmem:[#allocation40_spill] sm:$0xff] %v12434_v12  ;;  %v8457_v12 = vld [vmem:[%s8931_s18 + $0x364] sm:$0xf0] }
 0x6dc   : > { %14049 = vst [vmem:[#allocation56_spill] sm:$0xff] %v12408_v8  ;;  %5601 = vmatpush.bf16.msrb.mxu0 %v8132_v11  ;;  %v8449_v11 = vld [vmem:[%s8931_s18 + $0x32c] sm:$0xf] }
 0x6dd   : > { %14051 = vst [vmem:[#allocation57_spill] sm:$0xff] %v12414_v44  ;;  %5619 = vmatpush.bf16.msrb.mxu1 %v8200_v25  ;;  %v8133_v44 = vld [vmem:[%s8931_s18 + $0x2d0] sm:$0xf0] }
 0x6de   : > { %14054 = vst [vmem:[#allocation37_spill] sm:$0xff] %v12440_v31  ;;  %v8136_v18 = vor.u32 %v8430_v17, %v8133_v44 }
 0x6e0   : > { %v5071_v39 = vpop.f32.mrf.mxu2 }
 0x6e1   : > { %v12437_v47 = vadd.f32 %v5071_v39, %v12026_v33  ;;  %v5104_v34 = vpop.f32.mrf.mxu3  ;;  %v5008_v37 = vpop.f32.mrf.mxu0  ;;  %5620 = vmatpush.bf16.msrb.mxu1 %v8136_v18 }
 0x6e2   : > { %v12443_v20 = vadd.f32 %v5104_v34, %v12026_v33  ;;  %v5041_v2 = vpop.f32.mrf.mxu1  ;;  %v12462_v40 = vadd.f32 %v5008_v37, %v12000_v62  ;;  %v12480_v37 = vld [vmem:[%s13686_s4 + $0x8] sm:$0xff] }
 0x6e3   : > { %14053 = vst [vmem:[#allocation41_spill] sm:$0xff] %v12437_v47  ;;  %v12468_v17 = vadd.f32 %v5041_v2, %v12000_v62 }
 0x6e4   : > { %14055 = vst [vmem:[#allocation33_spill] sm:$0xff] %v12443_v20  ;;  %8241 = vmatmul.msk.bf16.vlgmr.msra.gmra.mxu0 %vm5511_vm9, %v12431_v42  ;;  %v8219_v20 = vld [vmem:[%s8931_s18 + $0x328] sm:$0xf] }
 0x6e5   : > { %8243 = vmatmul.msk.bf16.vlgmr.msra.gmra.mxu1 %vm5511_vm9, %v12431_v42  ;;  %8245 = vmatmul.msk.bf16.vlgmr.msra.gmra.mxu2 %vm5511_vm9, %v12431_v42  ;;  %14056 = vst [vmem:[#allocation28_spill] sm:$0xff] %v12462_v40  ;;  %v8220_v8 = vor.u32 %v8457_v12, %v8219_v20  ;;  %v8441_v40 = vld [vmem:[%s8931_s18 + $0x2e4] sm:$0xf0] }
 0x6e6   : > { %8247 = vmatmul.msk.bf16.vlgmr.msra.gmra.mxu3 %vm5511_vm9, %v12431_v42  ;;  %14058 = vst [vmem:[#allocation62_spill] sm:$0xff] %v12468_v17  ;;  %v8221_v17 = vld [vmem:[%s8931_s18 + $0x368] sm:$0xf0] }
 0x6e7   : > { %5714 = vmatpush.bf16.msra.mxu2 %v8220_v8 }
 0x6e8   : > { %v5074_v30 = vpop.f32.mrf.mxu2 }
 0x6e9   : > { %v5107_v27 = vpop.f32.mrf.mxu3  ;;  %v5010_v34 = vpop.f32.mrf.mxu0 }
 0x6ea   : > { %v12465_v44 = vadd.f32 %v5010_v34, %v11921_v7  ;;  %v5043_v57 = vpop.f32.mrf.mxu1  ;;  %v12483_v34 = vadd.f32 %v5074_v30, %v12000_v62  ;;  %v12492_v47 = vadd.f32 %v5107_v27, %v12000_v62  ;;  %v8456_v30 = vld [vmem:[%s8931_s18 + $0x35c] sm:$0xf0] }
 0x6eb   : > { %v12471_v25 = vadd.f32 %v5043_v57, %v11921_v7 }
 0x6ec   : > { %14057 = vst [vmem:[#allocation29_spill] sm:$0xff] %v12465_v44 }
 0x6ed   : > { %14059 = vst [vmem:[#allocation63_spill] sm:$0xff] %v12471_v25  ;;  %v8224_v25 = vor.u32 %v8449_v11, %v8221_v17 }
 0x6ee   : > { %14060 = vst [vmem:[#allocation58_spill] sm:$0xff] %v12483_v34  ;;  %v8149_v34 = vld [vmem:[%s8931_s18 + $0x2e0] sm:$0xf0] }
 0x6ef   : > { %14062 = vst [vmem:[#allocation59_spill] sm:$0xff] %v12492_v47  ;;  %5733 = vmatpush.bf16.msra.mxu3 %v8224_v25  ;;  %v8448_v47 = vld [vmem:[%s8931_s18 + $0x324] sm:$0xf] }
 0x6f0   : > { %v5076_v39 = vpop.f32.mrf.mxu2 }
 0x6f1   : > { %v12486_v2 = vadd.f32 %v5076_v39, %v11921_v7  ;;  %v5109_v57 = vpop.f32.mrf.mxu3  ;;  %v5013_v31 = vpop.f32.mrf.mxu0  ;;  %v8211_v39 = vld [vmem:[%s8931_s18 + $0x320] sm:$0xf] }
 0x6f2   : > { %v12495_v18 = vadd.f32 %v5109_v57, %v11921_v7  ;;  %v5046_v10 = vpop.f32.mrf.mxu1  ;;  %v12511_v17 = vadd.f32 %v5013_v31, %v11886_v52  ;;  %v8432_v31 = vld [vmem:[%s8931_s18 + $0x2a4] sm:$0xf] }
 0x6f3   : > { %14061 = vst [vmem:[#allocation66_spill] sm:$0xff] %v12486_v2  ;;  %v12517_v57 = vadd.f32 %v5046_v10, %v11886_v52  ;;  %v8155_v2 = vld [vmem:[%s8931_s18 + $0x2a8] sm:$0xf] }
 0x6f4   : > { %14063 = vst [vmem:[#allocation70_spill] sm:$0xff] %v12495_v18  ;;  %8242 = vmatmul.msk.bf16.gmra.mxu0 %vm5511_vm9, %v12480_v37  ;;  %v8212_v18 = vor.u32 %v8456_v30, %v8211_v39  ;;  %v8156_v44 = vor.u32 %v8441_v40, %v8155_v2  ;;  %v8148_v39 = vor.u32 %v8440_v1, %v8147_v48  ;;  %v8229_v1 = vld [vmem:[%s8931_s18 + $0x370] sm:$0xf0]  ;;  %v8235_v48 = vld [vmem:[%s8931_s18 + $0x338] sm:$0xf] }
 0x6f5   : > { %8244 = vmatmul.msk.bf16.gmra.mxu1 %vm5511_vm9, %v12480_v37  ;;  %8246 = vmatmul.msk.bf16.gmra.mxu2 %vm5511_vm9, %v12480_v37  ;;  %14064 = vst [vmem:[#allocation71_spill] sm:$0xff] %v12511_v17  ;;  %v8450_v17 = vld [vmem:[%s8931_s18 + $0x334] sm:$0xf] }
 0x6f6   : > { %8248 = vmatmul.msk.bf16.gmra.mxu3 %vm5511_vm9, %v12480_v37  ;;  %14066 = vst [vmem:[#allocation82_spill] sm:$0xff] %v12517_v57  ;;  %5676 = vmatpush.bf16.msra.mxu0 %v8212_v18  ;;  %v8227_v57 = vld [vmem:[%s8931_s18 + $0x330] sm:$0xf] }
 0x6f7   : > { %5715 = vmatpush.bf16.msra.mxu2 %v8156_v44 }
 0x6f8   : > { %v5079_v12 = vpop.f32.mrf.mxu2 }
 0x6f9   : > { %v5112_v20 = vpop.f32.mrf.mxu3  ;;  %v5015_v27 = vpop.f32.mrf.mxu0  ;;  %v12542_v40 = vadd.f32 %v5079_v12, %v11886_v52 }
 0x6fa   : > { %v12514_v8 = vadd.f32 %v5015_v27, %v11884_v29  ;;  %v5048_v11 = vpop.f32.mrf.mxu1  ;;  %v8213_v27 = vld [vmem:[%s8931_s18 + $0x360] sm:$0xf0]  ;;  %v12551_v44 = vadd.f32 %v5112_v20, %v11886_v52  ;;  %5677 = vmatpush.bf16.msra.mxu0 %v8148_v39  ;;  %v8163_v39 = vld [vmem:[%s8931_s18 + $0x2b0] sm:$0xf] }
 0x6fb   : > { %v12520_v25 = vadd.f32 %v5048_v11, %v11884_v29  ;;  %v8216_v10 = vor.u32 %v8448_v47, %v8213_v27  ;;  %v8433_v11 = vld [vmem:[%s8931_s18 + $0x2ac] sm:$0xf]  ;;  %v8152_v27 = vor.u32 %v8432_v31, %v8149_v34  ;;  %14068 = vst [vmem:[#allocation78_spill] sm:$0xff] %v12542_v40 }
 0x6fc   : > { %14065 = vst [vmem:[#allocation67_spill] sm:$0xff] %v12514_v8  ;;  %v8160_v30 = vor.u32 %v8433_v11, %v8157_v14  ;;  %v8237_v8 = vld [vmem:[%s8931_s18 + $0x378] sm:$0xf0] }
 0x6fd   : > { %14067 = vst [vmem:[#allocation83_spill] sm:$0xff] %v12520_v25  ;;  %5695 = vmatpush.bf16.msra.mxu1 %v8216_v10  ;;  %v8458_v25 = vld [vmem:[%s8931_s18 + $0x36c] sm:$0xf0]  ;;  %v8459_v10 = vld [vmem:[%s8931_s18 + $0x374] sm:$0xf0] }
 0x6fe   : > { %5734 = vmatpush.bf16.msra.mxu3 %v8160_v30  ;;  %14069 = vst [vmem:[#allocation64_spill] sm:$0xff] %v12551_v44  ;;  %v8228_v11 = vor.u32 %v8458_v25, %v8227_v57  ;;  %v12559_v30 = vld [vmem:[#allocation1 + $0x1] ss:$9 sm:$0xff] }
 0x6ff   : > { %14071 = vst [vmem:[#allocation74_spill] sm:$0xff] %v12559_v30  ;;  %v8442_v30 = vld [vmem:[%s8931_s18 + $0x2ec] sm:$0xf0] }
 0x700   : > { %v5081_v47 = vpop.f32.mrf.mxu2 }
 0x701   : > { %v12545_v18 = vadd.f32 %v5081_v47, %v11884_v29  ;;  %v5114_v14 = vpop.f32.mrf.mxu3  ;;  %v5018_v2 = vpop.f32.mrf.mxu0  ;;  %v8451_v47 = vld [vmem:[%s8931_s18 + $0x33c] sm:$0xf]  ;;  %5696 = vmatpush.bf16.msra.mxu1 %v8152_v27  ;;  %v8165_v27 = vld [vmem:[%s8931_s18 + $0x2f0] sm:$0xf0] }
 0x702   : > { %v12554_v34 = vadd.f32 %v5114_v14, %v11884_v29  ;;  %v5019_v31 = vadd.f32 %v5018_v2, %v12126_v36  ;;  %v5051_v12 = vpop.f32.mrf.mxu1  ;;  %v8232_v14 = vor.u32 %v8450_v17, %v8229_v1  ;;  %v8236_v29 = vor.u32 %v8459_v10, %v8235_v48  ;;  %v8434_v17 = vld [vmem:[%s8931_s18 + $0x2b4] sm:$0xf]  ;;  %v8443_v48 = vld [vmem:[%s8931_s18 + $0x2f4] sm:$0xf0] }
 0x703   : > { %v5052_v52 = vadd.f32 %v5051_v12, %v12126_v36  ;;  %v8240_v25 = vor.u32 %v8451_v47, %v8237_v8  ;;  %v8164_v1 = vor.u32 %v8442_v30, %v8163_v39  ;;  %v8171_v8 = vld [vmem:[%s8931_s18 + $0x2b8] sm:$0xf]  ;;  %v8435_v12 = vld [vmem:[%s8931_s18 + $0x2bc] sm:$0xf] }
 0x704   : > { %14070 = vst [vmem:[#allocation79_spill] sm:$0xff] %v12554_v34  ;;  %v5261_v57 = vmax.f32 %v5019_v31, 0.0  ;;  %8249 = vmatmul.msk.bf16.vlgmr.msrb.gmra.mxu0 %vm5511_vm9, %v12431_v42  ;;  %v8172_v31 = vor.u32 %v8443_v48, %v8171_v8  ;;  %v8173_v47 = vld [vmem:[%s8931_s18 + $0x2f8] sm:$0xf0] }
 0x705   : > { %v5262_v7 = vmax.f32 %v5052_v52, 0.0  ;;  %8251 = vmatmul.msk.bf16.vlgmr.msrb.gmra.mxu1 %vm5511_vm9, %v12431_v42  ;;  %8253 = vmatmul.msk.bf16.vlgmr.msrb.gmra.mxu2 %vm5511_vm9, %v12431_v42  ;;  %v8168_v52 = vor.u32 %v8434_v17, %v8165_v27  ;;  %v8176_v20 = vor.u32 %v8435_v12, %v8173_v47  ;;  %v14167_v12 = vld [vmem:[#allocation41_spill] sm:$0xff] }
 0x706   : > { %6967 = vst [vmem:[#allocation1] sm:$0xff] %v5261_v57  ;;  %8255 = vmatmul.msk.bf16.vlgmr.msrb.gmra.mxu3 %vm5511_vm9, %v12431_v42  ;;  %5752 = vmatpush.bf16.msrb.mxu0 %v8228_v11 }
 0x707   : > { %v6873_v10 = vrot.slane %v5262_v7, 7  ;;  %6968 = vst [vmem:[#allocation1 + $0x9] sm:$0xff] %v5262_v7  ;;  %5771 = vmatpush.bf16.msrb.mxu1 %v8232_v14  ;;  %5790 = vmatpush.bf16.msrb.mxu2 %v8236_v29 }
 0x708   : > { %v5084_v2 = vpop.f32.mrf.mxu2  ;;  %5809 = vmatpush.bf16.msrb.mxu3 %v8240_v25 }
 0x709   : > { %v6894_v44 = vsel %vm6880_vm2, %v5261_v57, %v6873_v10  ;;  %v5085_v34 = vadd.f32 %v5084_v2, %v12126_v36  ;;  %v5117_v40 = vpop.f32.mrf.mxu3  ;;  %v5020_v11 = vpop.f32.mrf.mxu0 }
 0x70a   : > { %v5118_v30 = vadd.f32 %v5117_v40, %v12126_v36  ;;  %v5053_v39 = vpop.f32.mrf.mxu1  ;;  %5753 = vmatpush.bf16.msrb.mxu0 %v8164_v1 }
 0x70b   : > { %v5263_v7 = vmax.f32 %v5085_v34, 0.0  ;;  %5772 = vmatpush.bf16.msrb.mxu1 %v8168_v52  ;;  %5791 = vmatpush.bf16.msrb.mxu2 %v8172_v31 }
 0x70c   : > { %v5264_v29 = vmax.f32 %v5118_v30, 0.0  ;;  %5810 = vmatpush.bf16.msrb.mxu3 %v8176_v20 }
 0x70d   : > { %v6874_v14 = vrot.slane %v5263_v7, 6  ;;  %6969 = vst [vmem:[#allocation1 + $0x12] sm:$0xff] %v5263_v7 }
 0x70e   : > { %v6875_v17 = vrot.slane %v5264_v29, 5  ;;  %6970 = vst [vmem:[#allocation1 + $0x1b] sm:$0xff] %v5264_v29 }
 0x710   : > { %v6895_v25 = vsel %vm6882_vm3, %v6874_v14, %v6875_v17  ;;  %v5086_v57 = vpop.f32.mrf.mxu2 }
 0x711   : > { %v12587_v2 = vsel %vm6884_vm4, %v6894_v44, %v6895_v25  ;;  %v5119_v27 = vpop.f32.mrf.mxu3  ;;  %v5130_v8 = vpop.f32.mrf.mxu0  ;;  %v14162_v57 = vld [vmem:[#allocation49_spill] sm:$0xff] }
 0x712   : > { %v5163_v40 = vpop.f32.mrf.mxu1  ;;  %v12598_v44 = vadd.f32 %v5130_v8, %v11966_v0  ;;  %v14074_v8 = vpack.c.bf16 %v12132_v9, %v12129_v50  ;;  %v14077_v50 = vpack.c.bf16 %v12078_v3, %v12075_v54  ;;  %v14078_v9 = vpack.c.bf16 %v12088_v51, %v12085_v63 }
 0x713   : > { %v12604_v52 = vadd.f32 %v5163_v40, %v11966_v0  ;;  %v14075_v40 = vpack.c.bf16 %v12138_v24, %v12135_v43  ;;  %v14080_v54 = vpack.c.bf16 %v12032_v46, %v12029_v59  ;;  %v14081_v3 = vpack.c.bf16 %v12038_v28, %v12035_v23 }
 0x714   : > { %8250 = vmatmul.msk.bf16.gmra.mxu0 %vm5511_vm9, %v12480_v37  ;;  %v14082_v63 = vpack.c.bf16 %v12048_v22, %v12045_v13  ;;  %v14083_v51 = vpack.c.bf16 %v12054_v19, %v12051_v41  ;;  %v14084_v13 = vpack.c.bf16 %v11978_v35, %v11975_v61  ;;  %v14085_v19 = vpack.c.bf16 %v11986_v49, %v11983_v5 }
 0x715   : > { %8252 = vmatmul.msk.bf16.gmra.mxu1 %vm5511_vm9, %v12480_v37  ;;  %8254 = vmatmul.msk.bf16.gmra.mxu2 %vm5511_vm9, %v12480_v37 }
 0x716   : > { %8256 = vmatmul.msk.bf16.gmra.mxu3 %vm5511_vm9, %v12480_v37 }
 0x718   : > { %v5196_v34 = vpop.f32.mrf.mxu2 }
 0x719   : > { %v5229_v20 = vpop.f32.mrf.mxu3  ;;  %v5132_v1 = vpop.f32.mrf.mxu0  ;;  %v12614_v30 = vadd.f32 %v5196_v34, %v11966_v0 }
 0x71a   : > { %v12601_v48 = vadd.f32 %v5132_v1, %v11961_v16  ;;  %v5165_v10 = vpop.f32.mrf.mxu1  ;;  %v12620_v14 = vadd.f32 %v5229_v20, %v11966_v0  ;;  %v14073_v0 = vpack.c.bf16 %v12120_v55, %v12117_v26 }
 0x71b   : > { %v12607_v31 = vadd.f32 %v5165_v10, %v11961_v16 }
 0x720   : > { %v5198_v11 = vpop.f32.mrf.mxu2 }
 0x721   : > { %v12617_v39 = vadd.f32 %v5198_v11, %v11961_v16  ;;  %v5231_v7 = vpop.f32.mrf.mxu3  ;;  %v5135_v29 = vpop.f32.mrf.mxu0 }
 0x722   : > { %v12623_v17 = vadd.f32 %v5231_v7, %v11961_v16  ;;  %v5168_v25 = vpop.f32.mrf.mxu1  ;;  %v14072_v16 = vpack.c.bf16 %v12114_v58, %v12111_v56  ;;  %v12650_v10 = vadd.f32 %v5135_v29, %v11915_v15  ;;  %v14076_v56 = vpack.c.bf16 %v12072_v4, %v12069_v53 }
 0x723   : > { %v12659_v55 = vadd.f32 %v5168_v25, %v11915_v15  ;;  %v14079_v53 = vpack.c.bf16 %v12094_v32, %v12091_v60  ;;  %v14086_v7 = vpack.c.bf16 %v12006_v21, %v12003_v6  ;;  %v14088_v6 = vld [vmem:[#allocation5_spill] sm:$0xff] }
 0x724   : > { %8257 = vmatmul.msk.bf16.vlgmr.msra.gmra.mxu0 %vm5511_vm9, %v12431_v42 }
 0x725   : > { %8259 = vmatmul.msk.bf16.vlgmr.msra.gmra.mxu1 %vm5511_vm9, %v12431_v42  ;;  %8261 = vmatmul.msk.bf16.vlgmr.msra.gmra.mxu2 %vm5511_vm9, %v12431_v42 }
 0x726   : > { %8263 = vmatmul.msk.bf16.vlgmr.msra.gmra.mxu3 %vm5511_vm9, %v12431_v42  ;;  %5842 = vmatpush.bf16.msra.mxu0 %v14072_v16 }
 0x727   : > { %5861 = vmatpush.bf16.msra.mxu1 %v14073_v0  ;;  %5880 = vmatpush.bf16.msra.mxu2 %v14074_v8 }
 0x728   : > { %5899 = vmatpush.bf16.msra.mxu3 %v14075_v40  ;;  %v5201_v34 = vpop.f32.mrf.mxu2 }
 0x729   : > { %v5234_v20 = vpop.f32.mrf.mxu3  ;;  %v5137_v1 = vpop.f32.mrf.mxu0  ;;  %v12690_v32 = vadd.f32 %v5201_v34, %v11915_v15 }
 0x72a   : > { %5843 = vmatpush.bf16.msra.mxu0 %v14076_v56  ;;  %v12656_v58 = vadd.f32 %v5137_v1, %v12026_v33  ;;  %v5170_v26 = vpop.f32.mrf.mxu1  ;;  %v12696_v23 = vadd.f32 %v5234_v20, %v11915_v15  ;;  %v14168_v15 = vld [vmem:[#allocation40_spill] sm:$0xff] }
 0x72b   : > { %5862 = vmatpush.bf16.msra.mxu1 %v14077_v50  ;;  %5881 = vmatpush.bf16.msra.mxu2 %v14078_v9  ;;  %v12668_v43 = vadd.f32 %v5170_v26, %v12026_v33 }
 0x72c   : > { %5900 = vmatpush.bf16.msra.mxu3 %v14079_v53  ;;  %v14090_v53 = vld [vmem:[#allocation38_spill] sm:$0xff] }
 0x72e   : > { %5844 = vmatpush.bf16.msra.mxu0 %v14080_v54 }
 0x72f   : > { %5863 = vmatpush.bf16.msra.mxu1 %v14081_v3  ;;  %5882 = vmatpush.bf16.msra.mxu2 %v14082_v63  ;;  %v14092_v3 = vld [vmem:[#allocation50_spill] sm:$0xff]  ;;  %v14093_v63 = vld [vmem:[#allocation35_spill] sm:$0xff] }
 0x730   : > { %5901 = vmatpush.bf16.msra.mxu3 %v14083_v51  ;;  %v5203_v60 = vpop.f32.mrf.mxu2  ;;  %v14094_v51 = vpack.c.bf16 %v14092_v3, %v14093_v63  ;;  %v14110_v3 = vld [vmem:[#allocation27_spill] sm:$0xff]  ;;  %v14111_v63 = vld [vmem:[#allocation34_spill] sm:$0xff] }
 0x731   : > { %v12693_v11 = vadd.f32 %v5203_v60, %v12026_v33  ;;  %v5236_v59 = vpop.f32.mrf.mxu3  ;;  %v5140_v46 = vpop.f32.mrf.mxu0  ;;  %v14095_v60 = vld [vmem:[#allocation46_spill] sm:$0xff] }
 0x732   : > { %v12699_v28 = vadd.f32 %v5236_v59, %v12026_v33  ;;  %5845 = vmatpush.bf16.msra.mxu0 %v14084_v13  ;;  %v5173_v22 = vpop.f32.mrf.mxu1  ;;  %v14087_v33 = vpack.c.bf16 %v12012_v45, %v12009_v38  ;;  %v12726_v49 = vadd.f32 %v5140_v46, %v12000_v62  ;;  %v14096_v59 = vld [vmem:[#allocation51_spill] sm:$0xff] }
 0x733   : > { %5864 = vmatpush.bf16.msra.mxu1 %v14085_v19  ;;  %5883 = vmatpush.bf16.msra.mxu2 %v14086_v7  ;;  %v12732_v45 = vadd.f32 %v5173_v22, %v12000_v62  ;;  %v14097_v46 = vpack.c.bf16 %v14095_v60, %v14096_v59  ;;  %v14098_v13 = vld [vmem:[#allocation47_spill] sm:$0xff]  ;;  %v14099_v22 = vld [vmem:[#allocation32_spill] sm:$0xff]  ;;  %v14113_v60 = vld [vmem:[#allocation18_spill] sm:$0xff] }
 0x734   : > { %5902 = vmatpush.bf16.msra.mxu3 %v14087_v33  ;;  %8258 = vmatmul.msk.bf16.gmra.mxu0 %vm5511_vm9, %v12480_v37  ;;  %v14100_v19 = vpack.c.bf16 %v14098_v13, %v14099_v22  ;;  %v14114_v59 = vld [vmem:[#allocation13_spill] sm:$0xff]  ;;  %v14116_v13 = vld [vmem:[#allocation14_spill] sm:$0xff]  ;;  %v14117_v22 = vld [vmem:[#allocation24_spill] sm:$0xff] }
 0x735   : > { %8260 = vmatmul.msk.bf16.gmra.mxu1 %vm5511_vm9, %v12480_v37  ;;  %8262 = vmatmul.msk.bf16.gmra.mxu2 %vm5511_vm9, %v12480_v37 }
 0x736   : > { %8264 = vmatmul.msk.bf16.gmra.mxu3 %vm5511_vm9, %v12480_v37 }
 0x738   : > { %v5206_v61 = vpop.f32.mrf.mxu2 }
 0x739   : > { %v5239_v35 = vpop.f32.mrf.mxu3  ;;  %v5142_v5 = vpop.f32.mrf.mxu0  ;;  %v12742_v8 = vadd.f32 %v5206_v61, %v12000_v62  ;;  %v14101_v61 = vld [vmem:[#allocation3_spill] sm:$0xff] }
 0x73a   : > { %v12729_v21 = vadd.f32 %v5142_v5, %v14088_v6  ;;  %v5175_v38 = vpop.f32.mrf.mxu1  ;;  %v12750_v1 = vadd.f32 %v5239_v35, %v12000_v62  ;;  %v14089_v62 = vld [vmem:[#allocation39_spill] sm:$0xff]  ;;  %v14102_v35 = vld [vmem:[#allocation6_spill] sm:$0xff] }
 0x73b   : > { %v12735_v29 = vadd.f32 %v5175_v38, %v14088_v6  ;;  %v14091_v54 = vpack.c.bf16 %v14089_v62, %v14090_v53  ;;  %v14103_v5 = vpack.c.bf16 %v14101_v61, %v14102_v35  ;;  %v14104_v38 = vld [vmem:[#allocation30_spill] sm:$0xff]  ;;  %v14108_v53 = vld [vmem:[#allocation31_spill] sm:$0xff]  ;;  %v14119_v61 = vld [vmem:[#allocation9_spill] sm:$0xff] }
 0x73c   : > { %v5317_v25 = vpack.c.bf16 %v12729_v21, %v12726_v49  ;;  %v14107_v62 = vld [vmem:[#allocation26_spill] sm:$0xff]  ;;  %v14120_v35 = vld [vmem:[#allocation25_spill] sm:$0xff]  ;;  %v14190_v49 = vpack.c.bf16 %v12668_v43, %v12659_v55  ;;  %v14191_v21 = vpack.c.bf16 %v12693_v11, %v12690_v32  ;;  %v14194_v55 = vpack.c.bf16 %v12607_v31, %v12604_v52 }
 0x73d   : > { %v5318_v16 = vpack.c.bf16 %v12735_v29, %v12732_v45  ;;  %v14192_v45 = vpack.c.bf16 %v12699_v28, %v12696_v23  ;;  %v14195_v43 = vpack.c.bf16 %v12617_v39, %v12614_v30  ;;  %v14196_v32 = vpack.c.bf16 %v12623_v17, %v12620_v14 }
 0x740   : > { %v5208_v0 = vpop.f32.mrf.mxu2 }
 0x741   : > { %v12745_v40 = vadd.f32 %v5208_v0, %v14088_v6  ;;  %v5241_v34 = vpop.f32.mrf.mxu3  ;;  %v12747_v20 = vpop.f32.mrf.mxu0  ;;  %v14105_v0 = vld [vmem:[#allocation4_spill] sm:$0xff] }
 0x742   : > { %v12753_v56 = vadd.f32 %v5241_v34, %v14088_v6  ;;  %v12755_v26 = vpop.f32.mrf.mxu1  ;;  %v14106_v34 = vpack.c.bf16 %v14104_v38, %v14105_v0  ;;  %v14122_v38 = vld [vmem:[#allocation8_spill] sm:$0xff]  ;;  %v14123_v0 = vld [vmem:[#allocation10_spill] sm:$0xff] }
 0x744   : > { %8265 = vmatmul.msk.bf16.vlgmr.msrb.gmra.mxu0 %vm5511_vm9, %v12431_v42 }
 0x745   : > { %8267 = vmatmul.msk.bf16.vlgmr.msrb.gmra.mxu1 %vm5511_vm9, %v12431_v42  ;;  %8269 = vmatmul.msk.bf16.vlgmr.msrb.gmra.mxu2 %vm5511_vm9, %v12431_v42 }
 0x746   : > { %8271 = vmatmul.msk.bf16.vlgmr.msrb.gmra.mxu3 %vm5511_vm9, %v12431_v42  ;;  %5918 = vmatpush.bf16.msrb.mxu0 %v14091_v54  ;;  %v14109_v54 = vpack.c.bf16 %v14107_v62, %v14108_v53 }
 0x747   : > { %5937 = vmatpush.bf16.msrb.mxu1 %v14094_v51  ;;  %5956 = vmatpush.bf16.msrb.mxu2 %v14097_v46  ;;  %v14112_v51 = vpack.c.bf16 %v14110_v3, %v14111_v63  ;;  %v14115_v46 = vpack.c.bf16 %v14113_v60, %v14114_v59  ;;  %v14125_v3 = vld [vmem:[#allocation22_spill] sm:$0xff]  ;;  %v14126_v63 = vld [vmem:[#allocation11_spill] sm:$0xff] }
 0x748   : > { %5975 = vmatpush.bf16.msrb.mxu3 %v14100_v19  ;;  %v12781_v7 = vpop.f32.mrf.mxu2  ;;  %v14118_v19 = vpack.c.bf16 %v14116_v13, %v14117_v22  ;;  %v14129_v13 = vld [vmem:[#allocation12_spill] sm:$0xff] }
 0x749   : > { %v12783_v33 = vpop.f32.mrf.mxu3  ;;  %v12785_v42 = vpop.f32.mrf.mxu0 }
 0x74a   : > { %5919 = vmatpush.bf16.msrb.mxu0 %v14103_v5  ;;  %v12790_v6 = vpop.f32.mrf.mxu1  ;;  %v14121_v5 = vpack.c.bf16 %v14119_v61, %v14120_v35  ;;  %v14132_v61 = vld [vmem:[#allocation7_spill] sm:$0xff] }
 0x74b   : > { %5938 = vmatpush.bf16.msrb.mxu1 %v14106_v34  ;;  %5957 = vmatpush.bf16.msrb.mxu2 %v14109_v54  ;;  %v14124_v34 = vpack.c.bf16 %v14122_v38, %v14123_v0  ;;  %v14134_v38 = vld [vmem:[#allocation17_spill] sm:$0xff] }
 0x74c   : > { %5976 = vmatpush.bf16.msrb.mxu3 %v14112_v51  ;;  %v14127_v51 = vpack.c.bf16 %v14125_v3, %v14126_v63  ;;  %v14135_v0 = vld [vmem:[#allocation21_spill] sm:$0xff] }
 0x74e   : > { %5920 = vmatpush.bf16.msrb.mxu0 %v14115_v46  ;;  %v14128_v46 = vld [vmem:[#allocation23_spill] sm:$0xff] }
 0x74f   : > { %5939 = vmatpush.bf16.msrb.mxu1 %v14118_v19  ;;  %5958 = vmatpush.bf16.msrb.mxu2 %v14121_v5  ;;  %v14130_v22 = vpack.c.bf16 %v14128_v46, %v14129_v13  ;;  %v14131_v19 = vld [vmem:[#allocation20_spill] sm:$0xff] }
 0x750   : > { %5977 = vmatpush.bf16.msrb.mxu3 %v14124_v34  ;;  %v12813_v62 = vpop.f32.mrf.mxu2  ;;  %v14133_v35 = vpack.c.bf16 %v14131_v19, %v14132_v61  ;;  %v14136_v34 = vpack.c.bf16 %v14134_v38, %v14135_v0  ;;  %v12846_v0 = vld [vmem:[%s13685_s3 + $0x84] sm:$0xff] }
 0x751   : > { %v12815_v53 = vpop.f32.mrf.mxu3  ;;  %v5150_v54 = vpop.f32.mrf.mxu0 }
 0x752   : > { %5921 = vmatpush.bf16.msrb.mxu0 %v14127_v51  ;;  %v5151_v60 = vadd.f32 %v5150_v54, %v12126_v36  ;;  %v5183_v59 = vpop.f32.mrf.mxu1 }
 0x753   : > { %5940 = vmatpush.bf16.msrb.mxu1 %v14130_v22  ;;  %5959 = vmatpush.bf16.msrb.mxu2 %v14133_v35  ;;  %v5184_v5 = vadd.f32 %v5183_v59, %v12126_v36 }
 0x754   : > { %5978 = vmatpush.bf16.msrb.mxu3 %v14136_v34  ;;  %v5265_v27 = vmax.f32 %v5151_v60, 0.0  ;;  %8266 = vmatmul.msk.bf16.gmra.mxu0 %vm5511_vm9, %v12480_v37 }
 0x755   : > { %v5266_v54 = vmax.f32 %v5184_v5, 0.0  ;;  %8268 = vmatmul.msk.bf16.gmra.mxu1 %vm5511_vm9, %v12480_v37  ;;  %8270 = vmatmul.msk.bf16.gmra.mxu2 %vm5511_vm9, %v12480_v37 }
 0x756   : > { %v6876_v3 = vrot.slane %v5265_v27, 4  ;;  %6971 = vst [vmem:[#allocation1 + $0x24] sm:$0xff] %v5265_v27  ;;  %8272 = vmatmul.msk.bf16.gmra.mxu3 %vm5511_vm9, %v12480_v37 }
 0x757   : > { %v6877_v63 = vrot.slane %v5266_v54, 3  ;;  %6972 = vst [vmem:[#allocation1 + $0x2d] sm:$0xff] %v5266_v54 }
 0x758   : > { %v5216_v51 = vpop.f32.mrf.mxu2 }
 0x759   : > { %v6897_v60 = vsel %vm6886_vm5, %v6876_v3, %v6877_v63  ;;  %v5217_v59 = vadd.f32 %v5216_v51, %v12126_v36  ;;  %v5249_v46 = vpop.f32.mrf.mxu3  ;;  %v5152_v13 = vpop.f32.mrf.mxu0  ;;  %v14138_v51 = vld [vmem:[#allocation67_spill] sm:$0xff] }
 0x75a   : > { %v5250_v22 = vadd.f32 %v5249_v46, %v12126_v36  ;;  %v5185_v19 = vpop.f32.mrf.mxu1  ;;  %v14142_v46 = vld [vmem:[#allocation82_spill] sm:$0xff] }
 0x75b   : > { %v5267_v61 = vmax.f32 %v5217_v59, 0.0 }
 0x75c   : > { %v5268_v35 = vmax.f32 %v5250_v22, 0.0  ;;  %v14144_v22 = vld [vmem:[#allocation78_spill] sm:$0xff] }
 0x75d   : > { %v6878_v5 = vrot.slane %v5267_v61, 2  ;;  %6973 = vst [vmem:[#allocation1 + $0x36] sm:$0xff] %v5267_v61  ;;  %v14145_v19 = vpack.c.bf16 %v12545_v18, %v14144_v22  ;;  %v14146_v61 = vld [vmem:[#allocation79_spill] sm:$0xff] }
 0x75e   : > { %v6879_v27 = vrot.slane %v5268_v35, 1  ;;  %6974 = vst [vmem:[#allocation1 + $0x3f] sm:$0xff] %v5268_v35  ;;  %v14147_v35 = vld [vmem:[#allocation64_spill] sm:$0xff] }
 0x760   : > { %v6898_v37 = vsel %vm6888_vm6, %v6878_v5, %v6879_v27  ;;  %v5218_v38 = vpop.f32.mrf.mxu2  ;;  %v14148_v5 = vpack.c.bf16 %v14146_v61, %v14147_v35  ;;  %v14159_v61 = vld [vmem:[#allocation59_spill] sm:$0xff] }
 0x761   : > { %v6899_v34 = vsel %vm6890_vm7, %v6897_v60, %v6898_v37  ;;  %v5251_v54 = vpop.f32.mrf.mxu3  ;;  %v12849_v3 = vpop.f32.mrf.mxu0  ;;  %v14139_v60 = vld [vmem:[#allocation71_spill] sm:$0xff] }
 0x762   : > { %v12853_v36 = vsel %vm6892_vm8, %v12587_v2, %v6899_v34  ;;  %v12855_v63 = vpop.f32.mrf.mxu1  ;;  %v14140_v59 = vpack.c.bf16 %v14138_v51, %v14139_v60  ;;  %v14141_v2 = vld [vmem:[#allocation83_spill] sm:$0xff]  ;;  %v14149_v34 = vld [vmem:[#allocation29_spill] sm:$0xff]  ;;  %v14150_v54 = vld [vmem:[#allocation28_spill] sm:$0xff] }
 0x763   : > { %14137 = vst [vmem:[#allocation86_spill] sm:$0xff] %v12853_v36  ;;  %v14143_v13 = vpack.c.bf16 %v14141_v2, %v14142_v46  ;;  %v14151_v51 = vpack.c.bf16 %v14149_v34, %v14150_v54  ;;  %v14153_v2 = vld [vmem:[#allocation62_spill] sm:$0xff]  ;;  %v14164_v34 = vld [vmem:[#allocation57_spill] sm:$0xff] }
 0x764   : > { %8281 = vmatmul.msk.bf16.vlgmr.msra.gmra.mxu0 %vm2339_vm1, %v12846_v0  ;;  %v14155_v46 = vld [vmem:[#allocation66_spill] sm:$0xff]  ;;  %v14165_v54 = vld [vmem:[#allocation45_spill] sm:$0xff] }
 0x765   : > { %8283 = vmatmul.msk.bf16.vlgmr.msra.gmra.mxu1 %vm2339_vm1, %v12846_v0  ;;  %8285 = vmatmul.msk.bf16.vlgmr.msra.gmra.mxu2 %vm2339_vm1, %v12846_v0 }
 0x766   : > { %8287 = vmatmul.msk.bf16.vlgmr.msra.gmra.mxu3 %vm2339_vm1, %v12846_v0  ;;  %5994 = vmatpush.bf16.msra.mxu0 %v14140_v59  ;;  %v14152_v59 = vld [vmem:[#allocation63_spill] sm:$0xff] }
 0x767   : > { %6013 = vmatpush.bf16.msra.mxu1 %v14143_v13  ;;  %6032 = vmatpush.bf16.msra.mxu2 %v14145_v19  ;;  %v14154_v18 = vpack.c.bf16 %v14152_v59, %v14153_v2  ;;  %v14156_v13 = vld [vmem:[#allocation58_spill] sm:$0xff]  ;;  %v14169_v59 = vpack.c.bf16 %v14167_v12, %v14168_v15  ;;  %v14170_v2 = vld [vmem:[#allocation33_spill] sm:$0xff]  ;;  %v14176_v15 = vld [vmem:[#allocation36_spill] sm:$0xff] }
 0x768   : > { %6051 = vmatpush.bf16.msra.mxu3 %v14148_v5  ;;  %v12877_v27 = vpop.f32.mrf.mxu2  ;;  %v14157_v22 = vpack.c.bf16 %v14155_v46, %v14156_v13  ;;  %v14158_v19 = vld [vmem:[#allocation70_spill] sm:$0xff]  ;;  %v14161_v5 = vld [vmem:[#allocation56_spill] sm:$0xff] }
 0x769   : > { %v12879_v37 = vpop.f32.mrf.mxu3  ;;  %v12881_v38 = vpop.f32.mrf.mxu0  ;;  %v14160_v35 = vpack.c.bf16 %v14158_v19, %v14159_v61  ;;  %v14163_v47 = vpack.c.bf16 %v14161_v5, %v14162_v57  ;;  %v14173_v19 = vld [vmem:[#allocation43_spill] sm:$0xff]  ;;  %v14174_v61 = vld [vmem:[#allocation54_spill] sm:$0xff] }
 0x76a   : > { %5995 = vmatpush.bf16.msra.mxu0 %v14151_v51  ;;  %v12886_v60 = vpop.f32.mrf.mxu1  ;;  %v14166_v51 = vpack.c.bf16 %v14164_v34, %v14165_v54  ;;  %v14177_v5 = vld [vmem:[#allocation55_spill] sm:$0xff]  ;;  %v14179_v54 = vld [vmem:[#allocation53_spill] sm:$0xff] }
 0x76b   : > { %6014 = vmatpush.bf16.msra.mxu1 %v14154_v18  ;;  %6033 = vmatpush.bf16.msra.mxu2 %v14157_v22  ;;  %v14171_v18 = vld [vmem:[#allocation37_spill] sm:$0xff]  ;;  %v12914_v22 = vld [vmem:[%s13685_s3 + $0x8c] sm:$0xff]  ;;  %v14178_v34 = vpack.c.bf16 %v14176_v15, %v14177_v5 }
 0x76c   : > { %6052 = vmatpush.bf16.msra.mxu3 %v14160_v35  ;;  %v14172_v46 = vpack.c.bf16 %v14170_v2, %v14171_v18  ;;  %v14175_v35 = vpack.c.bf16 %v14173_v19, %v14174_v61  ;;  %v14182_v2 = vld [vmem:[#allocation44_spill] sm:$0xff]  ;;  %v14185_v5 = vld [vmem:[#allocation19_spill] sm:$0xff] }
 0x76d   : > { %v14183_v18 = vld [vmem:[#allocation48_spill] sm:$0xff]  ;;  %v5247_v24 = vadd.f32 %v12815_v53, %v14185_v5 }
 0x76e   : > { %5996 = vmatpush.bf16.msra.mxu0 %v14163_v47 }
 0x76f   : > { %6015 = vmatpush.bf16.msra.mxu1 %v14166_v51  ;;  %6034 = vmatpush.bf16.msra.mxu2 %v14169_v59  ;;  %v14180_v51 = vld [vmem:[#allocation52_spill] sm:$0xff] }
 0x770   : > { %6053 = vmatpush.bf16.msra.mxu3 %v14172_v46  ;;  %v12909_v13 = vpop.f32.mrf.mxu2  ;;  %v14181_v59 = vpack.c.bf16 %v14179_v54, %v14180_v51  ;;  %v14184_v46 = vpack.c.bf16 %v14182_v2, %v14183_v18  ;;  %v5181_v51 = vadd.f32 %v12790_v6, %v14185_v5 }
 0x771   : > { %v12916_v47 = vpop.f32.mrf.mxu3  ;;  %v12918_v57 = vpop.f32.mrf.mxu0 }
 0x772   : > { %5997 = vmatpush.bf16.msra.mxu0 %v14175_v35  ;;  %v12923_v12 = vpop.f32.mrf.mxu1 }
 0x773   : > { %6016 = vmatpush.bf16.msra.mxu1 %v14178_v34  ;;  %6035 = vmatpush.bf16.msra.mxu2 %v14181_v59  ;;  %v5148_v34 = vadd.f32 %v12785_v42, %v14185_v5  ;;  %v5214_v59 = vadd.f32 %v12813_v62, %v14185_v5 }
 0x774   : > { %6054 = vmatpush.bf16.msra.mxu3 %v14184_v46  ;;  %8282 = vmatmul.msk.bf16.gmra.mxu0 %vm2339_vm1, %v12914_v22  ;;  %v14186_v46 = vld [vmem:[#allocation15_spill] sm:$0xff] }
 0x775   : > { %8284 = vmatmul.msk.bf16.gmra.mxu1 %vm2339_vm1, %v12914_v22  ;;  %8286 = vmatmul.msk.bf16.gmra.mxu2 %vm2339_vm1, %v12914_v22  ;;  %v5146_v41 = vadd.f32 %v12747_v20, %v14186_v46  ;;  %v5179_v42 = vadd.f32 %v12755_v26, %v14186_v46  ;;  %v5212_v6 = vadd.f32 %v12781_v7, %v14186_v46 }
 0x776   : > { %8288 = vmatmul.msk.bf16.gmra.mxu3 %vm2339_vm1, %v12914_v22  ;;  %v5245_v62 = vadd.f32 %v12783_v33, %v14186_v46 }
 0x777   : > { %v5333_v9 = vpack.c.bf16 %v5148_v34, %v5146_v41  ;;  %v5334_v50 = vpack.c.bf16 %v5181_v51, %v5179_v42  ;;  %v5335_v20 = vpack.c.bf16 %v5214_v59, %v5212_v6 }
 0x778   : > { %v12942_v19 = vpop.f32.mrf.mxu2  ;;  %v5336_v53 = vpack.c.bf16 %v5247_v24, %v5245_v62  ;;  %v14187_v24 = vpack.c.bf16 %v12745_v40, %v12742_v8 }
 0x779   : > { %v12944_v61 = vpop.f32.mrf.mxu3  ;;  %v12946_v35 = vpop.f32.mrf.mxu0 }
 0x77a   : > { %v12948_v15 = vpop.f32.mrf.mxu1 }
 0x780   : > { %v12952_v54 = vpop.f32.mrf.mxu2 }
 0x781   : > { %v12958_v2 = vpop.f32.mrf.mxu3  ;;  %v12960_v18 = vpop.f32.mrf.mxu0 }
 0x782   : > { %v12966_v4 = vpop.f32.mrf.mxu1 }
 0x784   : > { %8289 = vmatmul.msk.bf16.vlgmr.msrb.gmra.mxu0 %vm2339_vm1, %v12846_v0 }
 0x785   : > { %8291 = vmatmul.msk.bf16.vlgmr.msrb.gmra.mxu1 %vm2339_vm1, %v12846_v0  ;;  %8293 = vmatmul.msk.bf16.vlgmr.msrb.gmra.mxu2 %vm2339_vm1, %v12846_v0 }
 0x786   : > { %8295 = vmatmul.msk.bf16.vlgmr.msrb.gmra.mxu3 %vm2339_vm1, %v12846_v0  ;;  %6070 = vmatpush.bf16.msrb.mxu0 %v5333_v9  ;;  %v14189_v9 = vpack.c.bf16 %v12656_v58, %v12650_v10  ;;  %v14193_v10 = vpack.c.bf16 %v12601_v48, %v12598_v44 }
 0x787   : > { %6089 = vmatpush.bf16.msrb.mxu1 %v5334_v50  ;;  %6108 = vmatpush.bf16.msrb.mxu2 %v5335_v20  ;;  %v14188_v50 = vpack.c.bf16 %v12753_v56, %v12750_v1 }
 0x788   : > { %6127 = vmatpush.bf16.msrb.mxu3 %v5336_v53  ;;  %v12982_v41 = vpop.f32.mrf.mxu2 }
 0x789   : > { %v12984_v26 = vpop.f32.mrf.mxu3  ;;  %v12986_v7 = vpop.f32.mrf.mxu0 }
 0x78a   : > { %6071 = vmatpush.bf16.msrb.mxu0 %v5317_v25  ;;  %v12991_v33 = vpop.f32.mrf.mxu1 }
 0x78b   : > { %6090 = vmatpush.bf16.msrb.mxu1 %v5318_v16  ;;  %6109 = vmatpush.bf16.msrb.mxu2 %v14187_v24 }
 0x78c   : > { %6128 = vmatpush.bf16.msrb.mxu3 %v14188_v50 }
 0x78e   : > { %6072 = vmatpush.bf16.msrb.mxu0 %v14189_v9 }
 0x78f   : > { %6091 = vmatpush.bf16.msrb.mxu1 %v14190_v49  ;;  %6110 = vmatpush.bf16.msrb.mxu2 %v14191_v21 }
 0x790   : > { %6129 = vmatpush.bf16.msrb.mxu3 %v14192_v45  ;;  %v13014_v29 = vpop.f32.mrf.mxu2 }
 0x791   : > { %v13016_v25 = vpop.f32.mrf.mxu3  ;;  %v13018_v16 = vpop.f32.mrf.mxu0 }
 0x792   : > { %6073 = vmatpush.bf16.msrb.mxu0 %v14193_v10  ;;  %v13023_v58 = vpop.f32.mrf.mxu1 }
 0x793   : > { %6092 = vmatpush.bf16.msrb.mxu1 %v14194_v55  ;;  %6111 = vmatpush.bf16.msrb.mxu2 %v14195_v43 }
 0x794   : > { %6130 = vmatpush.bf16.msrb.mxu3 %v14196_v32  ;;  %8290 = vmatmul.msk.bf16.gmra.mxu0 %vm2339_vm1, %v12914_v22 }
 0x795   : > { %8292 = vmatmul.msk.bf16.gmra.mxu1 %vm2339_vm1, %v12914_v22  ;;  %8294 = vmatmul.msk.bf16.gmra.mxu2 %vm2339_vm1, %v12914_v22 }
 0x796   : > { %8296 = vmatmul.msk.bf16.gmra.mxu3 %vm2339_vm1, %v12914_v22 }
 0x798   : > { %v13042_v44 = vpop.f32.mrf.mxu2 }
 0x799   : > { %v13044_v48 = vpop.f32.mrf.mxu3  ;;  %v13046_v52 = vpop.f32.mrf.mxu0 }
 0x79a   : > { %v13048_v31 = vpop.f32.mrf.mxu1 }
 0x7a0   : > { %v13050_v30 = vpop.f32.mrf.mxu2 }
 0x7a1   : > { %v13052_v39 = vpop.f32.mrf.mxu3  ;;  %v13054_v14 = vpop.f32.mrf.mxu0 }
 0x7a2   : > { %v13056_v17 = vpop.f32.mrf.mxu1 }
 0x7a4   : > { %8297 = vmatmul.msk.bf16.vlgmr.msra.gmra.mxu0 %vm2339_vm1, %v12846_v0 }
 0x7a5   : > { %8299 = vmatmul.msk.bf16.vlgmr.msra.gmra.mxu1 %vm2339_vm1, %v12846_v0  ;;  %8301 = vmatmul.msk.bf16.vlgmr.msra.gmra.mxu2 %vm2339_vm1, %v12846_v0 }
 0x7a6   : > { %8303 = vmatmul.msk.bf16.vlgmr.msra.gmra.mxu3 %vm2339_vm1, %v12846_v0 }
 0x7a8   : > { %v13066_v11 = vpop.f32.mrf.mxu2 }
 0x7a9   : > { %14197 = vst [vmem:[#allocation75_spill] sm:$0xff] %v13066_v11  ;;  %v13068_v23 = vpop.f32.mrf.mxu3  ;;  %v13070_v28 = vpop.f32.mrf.mxu0 }
 0x7aa   : > { %14198 = vst [vmem:[#allocation87_spill] sm:$0xff] %v13068_v23  ;;  %v13072_v8 = vpop.f32.mrf.mxu1 }
 0x7b0   : > { %v13074_v40 = vpop.f32.mrf.mxu2 }
 0x7b1   : > { %14199 = vst [vmem:[#allocation68_spill] sm:$0xff] %v13074_v40  ;;  %v13076_v1 = vpop.f32.mrf.mxu3  ;;  %v13078_v56 = vpop.f32.mrf.mxu0 }
 0x7b2   : > { %14200 = vst [vmem:[#allocation84_spill] sm:$0xff] %v13076_v1  ;;  %v13080_v5 = vpop.f32.mrf.mxu1 }
 0x7b4   : > { %8298 = vmatmul.msk.bf16.gmra.mxu0 %vm2339_vm1, %v12914_v22 }
 0x7b5   : > { %8300 = vmatmul.msk.bf16.gmra.mxu1 %vm2339_vm1, %v12914_v22  ;;  %8302 = vmatmul.msk.bf16.gmra.mxu2 %vm2339_vm1, %v12914_v22 }
 0x7b6   : > { %8304 = vmatmul.msk.bf16.gmra.mxu3 %vm2339_vm1, %v12914_v22 }
 0x7b8   : > { %v13090_v34 = vpop.f32.mrf.mxu2 }
 0x7b9   : > { %14201 = vst [vmem:[#allocation85_spill] sm:$0xff] %v13090_v34  ;;  %v13092_v51 = vpop.f32.mrf.mxu3  ;;  %v13094_v59 = vpop.f32.mrf.mxu0 }
 0x7ba   : > { %14202 = vst [vmem:[#allocation80_spill] sm:$0xff] %v13092_v51  ;;  %v13096_v46 = vpop.f32.mrf.mxu1  ;;  %v13161_v34 = vpop.permute.xlu2 %6163 }
 0x7c0   : > { %v13098_v42 = vpop.f32.mrf.mxu2 }
 0x7c1   : > { %14203 = vst [vmem:[#allocation76_spill] sm:$0xff] %v13098_v42  ;;  %v13100_v6 = vpop.f32.mrf.mxu3  ;;  %v13102_v62 = vpop.f32.mrf.mxu0 }
 0x7c2   : > { %14204 = vst [vmem:[#allocation81_spill] sm:$0xff] %v13100_v6  ;;  %v13104_v20 = vpop.f32.mrf.mxu1 }
 0x7c3   : > { %14205 = vst [vmem:[#allocation88_spill] sm:$0xff] %v13102_v62 }
 0x7c4   : > { %14206 = vst [vmem:[#allocation77_spill] sm:$0xff] %v13104_v20  ;;  %8305 = vmatmul.msk.bf16.vlgmr.msrb.gmra.mxu0 %vm2339_vm1, %v12846_v0 }
 0x7c5   : > { %8307 = vmatmul.msk.bf16.vlgmr.msrb.gmra.mxu1 %vm2339_vm1, %v12846_v0  ;;  %8309 = vmatmul.msk.bf16.vlgmr.msrb.gmra.mxu2 %vm2339_vm1, %v12846_v0 }
 0x7c6   : > { %8311 = vmatmul.msk.bf16.vlgmr.msrb.gmra.mxu3 %vm2339_vm1, %v12846_v0 }
 0x7c8   : > { %v13114_v53 = vpop.f32.mrf.mxu2 }
 0x7c9   : > { %14207 = vst [vmem:[#allocation89_spill] sm:$0xff] %v13114_v53  ;;  %v13116_v24 = vpop.f32.mrf.mxu3  ;;  %v13118_v50 = vpop.f32.mrf.mxu0 }
 0x7ca   : > { %14208 = vst [vmem:[#allocation72_spill] sm:$0xff] %v13116_v24  ;;  %v13120_v9 = vpop.f32.mrf.mxu1 }
 0x7cb   : > { %14209 = vst [vmem:[#allocation73_spill] sm:$0xff] %v13118_v50  ;;  %v13150_v50 = vpop.permute.xlu1 %6158 }
 0x7cc   : > { %14210 = vst [vmem:[#allocation69_spill] sm:$0xff] %v13120_v9 }
 0x7d0   : > { %v13122_v49 = vpop.f32.mrf.mxu2 }
 0x7d1   : > { %14211 = vst [vmem:[#allocation65_spill] sm:$0xff] %v13122_v49  ;;  %v13124_v21 = vpop.f32.mrf.mxu3  ;;  %v13126_v45 = vpop.f32.mrf.mxu0 }
 0x7d2   : > { %14212 = vst [vmem:[#allocation60_spill] sm:$0xff] %v13124_v21  ;;  %v13128_v10 = vpop.f32.mrf.mxu1 }
 0x7d3   : > { %14213 = vst [vmem:[#allocation61_spill] sm:$0xff] %v13126_v45  ;;  %v13159_v51 = vpop.permute.xlu1 %6153 }
 0x7d4   : > { %14214 = vst [vmem:[#allocation94_spill] sm:$0xff] %v13128_v10  ;;  %8306 = vmatmul.msk.bf16.gmra.mxu0 %vm2339_vm1, %v12914_v22 }
 0x7d5   : > { %8308 = vmatmul.msk.bf16.gmra.mxu1 %vm2339_vm1, %v12914_v22  ;;  %8310 = vmatmul.msk.bf16.gmra.mxu2 %vm2339_vm1, %v12914_v22 }
 0x7d6   : > { %8312 = vmatmul.msk.bf16.gmra.mxu3 %vm2339_vm1, %v12914_v22 }
 0x7d8   : > { %v13138_v0 = vpop.f32.mrf.mxu2 }
 0x7d9   : > { %14215 = vst [vmem:[#allocation90_spill] sm:$0xff] %v13138_v0  ;;  %v13140_v55 = vpop.f32.mrf.mxu3  ;;  %v13142_v43 = vpop.f32.mrf.mxu0 }
 0x7da   : > { %14216 = vst [vmem:[#allocation97_spill] sm:$0xff] %v13140_v55  ;;  %v13144_v32 = vpop.f32.mrf.mxu1 }
 0x7db   : > { %14217 = vst [vmem:[#allocation91_spill] sm:$0xff] %v13142_v43 }
 0x7dc   : > { %14218 = vst [vmem:[#allocation101_spill] sm:$0xff] %v13144_v32 }
 0x7e0   : > { %v13146_v36 = vpop.f32.mrf.mxu2 }
 0x7e1   : > { %14219 = vst [vmem:[#allocation102_spill] sm:$0xff] %v13146_v36  ;;  %v13148_v24 = vpop.f32.mrf.mxu3  ;;  %v5847_v21 = vpop.f32.mrf.mxu0 }
 0x7e2   : > { %14220 = vst [vmem:[#allocation98_spill] sm:$0xff] %v13148_v24  ;;  %v5866_v53 = vpop.f32.mrf.mxu1  ;;  %v5848_v42 = vadd.f32 %v5847_v21, %v12849_v3 }
 0x7e8   : > { %v5885_v49 = vpop.f32.mrf.mxu2 }
 0x7e9   : > { %v5904_v20 = vpop.f32.mrf.mxu3  ;;  %v5849_v62 = vpop.f32.mrf.mxu0 }
 0x7ea   : > { %v5868_v9 = vpop.f32.mrf.mxu1  ;;  %v5850_v36 = vadd.f32 %v5849_v62, %v12881_v38 }
 0x7eb   : > { %v5869_v24 = vadd.f32 %v5868_v9, %v12886_v60 }
 0x7ec   : > { %v6182_v60 = vadd.f32 %v13159_v51, %v5850_v36 }
 0x7ed   : > { %v6183_v3 = vadd.f32 %v13159_v51, %v5869_v24 }
 0x7f0   : > { %v5887_v22 = vpop.f32.mrf.mxu2 }
 0x7f1   : > { %v5906_v0 = vpop.f32.mrf.mxu3  ;;  %v5852_v10 = vpop.f32.mrf.mxu0 }
 0x7f2   : > { %v5871_v55 = vpop.f32.mrf.mxu1  ;;  %v5853_v43 = vadd.f32 %v5852_v10, %v12918_v57  ;;  %v5867_v57 = vadd.f32 %v5866_v53, %v12855_v63  ;;  %v5907_v24 = vadd.f32 %v5906_v0, %v12916_v47 }
 0x7f3   : > { %v5872_v32 = vadd.f32 %v5871_v55, %v12923_v12 }
 0x7f4   : > { %v6198_v1 = vadd.f32 %v13150_v50, %v5853_v43  ;;  %v6246_v43 = vmax.f32 %v6182_v60, 0.0  ;;  %v6185_v60 = vadd.f32 %v13159_v51, %v5907_v24 }
 0x7f5   : > { %v6199_v38 = vadd.f32 %v13150_v50, %v5872_v32  ;;  %v6247_v32 = vmax.f32 %v6183_v3, 0.0 }
 0x7f6   : > { %v6262_v10 = vmax.f32 %v6198_v1, 0.0 }
 0x7f8   : > { %v5890_v45 = vpop.f32.mrf.mxu2 }
 0x7f9   : > { %v5909_v6 = vpop.f32.mrf.mxu3  ;;  %v5854_v23 = vpop.f32.mrf.mxu0  ;;  %v5891_v9 = vadd.f32 %v5890_v45, %v12942_v19 }
 0x7fa   : > { %v5855_v11 = vadd.f32 %v5854_v23, %v12946_v35  ;;  %v5873_v40 = vpop.f32.mrf.mxu1  ;;  %v14221_v23 = vld [vmem:[#allocation16_spill] sm:$0xff]  ;;  %v5910_v55 = vadd.f32 %v5909_v6, %v12944_v61 }
 0x7fb   : > { %v5874_v12 = vadd.f32 %v5873_v40, %v12948_v15  ;;  %v6166_v21 = vadd.f32 %v14221_v23, %v5848_v42  ;;  %v6167_v53 = vadd.f32 %v14221_v23, %v5867_v57  ;;  %v5888_v15 = vadd.f32 %v5887_v22, %v12909_v13 }
 0x7fc   : > { %v6214_v62 = vadd.f32 %v13161_v34, %v5855_v11  ;;  %v6263_v40 = vmax.f32 %v6199_v38, 0.0  ;;  %v5886_v11 = vadd.f32 %v5885_v49, %v12877_v27  ;;  %v6200_v42 = vadd.f32 %v13150_v50, %v5891_v9 }
 0x7fd   : > { %v6215_v35 = vadd.f32 %v13161_v34, %v5874_v12  ;;  %v6230_v57 = vmax.f32 %v6166_v21, 0.0  ;;  %v5905_v13 = vadd.f32 %v5904_v20, %v12879_v37  ;;  %v6201_v22 = vadd.f32 %v13150_v50, %v5910_v55 }
 0x7fe   : > { %v6278_v63 = vmax.f32 %v6214_v62, 0.0  ;;  %v6231_v47 = vmax.f32 %v6167_v53, 0.0  ;;  %v6184_v0 = vadd.f32 %v13159_v51, %v5888_v15  ;;  %v6168_v3 = vadd.f32 %v14221_v23, %v5886_v11 }
 0x7ff   : > { %v6279_v36 = vmax.f32 %v6215_v35, 0.0  ;;  %v6295_v62 = vpack.c.bf16 %v6246_v43, %v6230_v57  ;;  %v6264_v37 = vmax.f32 %v6200_v42, 0.0  ;;  %v6265_v35 = vmax.f32 %v6201_v22, 0.0 }
 0x800   : > { %v6311_v19 = vpack.c.bf16 %v6278_v63, %v6262_v10  ;;  %v5892_v45 = vpop.f32.mrf.mxu2  ;;  %v6296_v9 = vpack.c.bf16 %v6247_v32, %v6231_v47  ;;  %v13191_v10 = vld [vmem:[%s13686_s4 + $0x10] sm:$0xf]  ;;  %v6248_v55 = vmax.f32 %v6184_v0, 0.0  ;;  %v6249_v53 = vmax.f32 %v6185_v60, 0.0 }
 0x801   : > { %v6312_v1 = vpack.c.bf16 %v6279_v36, %v6263_v40  ;;  %v5893_v61 = vadd.f32 %v5892_v45, %v12952_v54  ;;  %v5911_v6 = vpop.f32.mrf.mxu3  ;;  %v5923_v12 = vpop.f32.mrf.mxu0  ;;  %v6232_v36 = vmax.f32 %v6168_v3, 0.0 }
 0x802   : > { %v5912_v27 = vadd.f32 %v5911_v6, %v12958_v2  ;;  %v5942_v49 = vpop.f32.mrf.mxu1  ;;  %6342 = vmatpush.bf16.msra.mxu0 %v6311_v19  ;;  %v6169_v2 = vadd.f32 %v14221_v23, %v5905_v13  ;;  %v5924_v60 = vadd.f32 %v5923_v12, %v12960_v18 }
 0x803   : > { %v6216_v38 = vadd.f32 %v13161_v34, %v5893_v61  ;;  %6355 = vmatpush.bf16.msra.mxu1 %v6312_v1  ;;  %v6297_v45 = vpack.c.bf16 %v6248_v55, %v6232_v36 }
 0x804   : > { %v6217_v54 = vadd.f32 %v13161_v34, %v5912_v27  ;;  %v6233_v24 = vmax.f32 %v6169_v2, 0.0  ;;  %v6170_v12 = vadd.f32 %v14221_v23, %v5924_v60 }
 0x805   : > { %v6280_v20 = vmax.f32 %v6216_v38, 0.0 }
 0x806   : > { %v6281_v21 = vmax.f32 %v6217_v54, 0.0  ;;  %6343 = vmatpush.bf16.msra.mxu0 %v6295_v62  ;;  %v6298_v32 = vpack.c.bf16 %v6249_v53, %v6233_v24 }
 0x807   : > { %v6313_v63 = vpack.c.bf16 %v6280_v20, %v6264_v37  ;;  %6356 = vmatpush.bf16.msra.mxu1 %v6296_v9  ;;  %v5943_v37 = vadd.f32 %v5942_v49, %v12966_v4 }
 0x808   : > { %v6314_v15 = vpack.c.bf16 %v6281_v21, %v6265_v35  ;;  %v5961_v40 = vpop.f32.mrf.mxu2 }
 0x809   : > { %v5980_v11 = vpop.f32.mrf.mxu3  ;;  %6368 = vmatpush.bf16.msra.mxu2 %v6313_v63  ;;  %v5925_v43 = vpop.f32.mrf.mxu0  ;;  %8313 = vmatmul.msk.bf16.vlgmr.msra.gmra.mxu0 %vm5511_vm9, %v13191_v10  ;;  %v6171_v49 = vadd.f32 %v14221_v23, %v5943_v37  ;;  %v5962_v55 = vadd.f32 %v5961_v40, %v12982_v41 }
 0x80a   : > { %6381 = vmatpush.bf16.msra.mxu3 %v6314_v15  ;;  %v5944_v19 = vpop.f32.mrf.mxu1  ;;  %8314 = vmatmul.msk.bf16.vlgmr.msra.gmra.mxu1 %vm5511_vm9, %v13191_v10  ;;  %v5926_v22 = vadd.f32 %v5925_v43, %v12986_v7 }
 0x80b   : > { %v5945_v47 = vadd.f32 %v5944_v19, %v12991_v33 }
 0x80c   : > { %v6186_v7 = vadd.f32 %v13159_v51, %v5926_v22 }
 0x80d   : > { %6369 = vmatpush.bf16.msra.mxu2 %v6297_v45  ;;  %v6187_v33 = vadd.f32 %v13159_v51, %v5945_v47 }
 0x80e   : > { %6382 = vmatpush.bf16.msra.mxu3 %v6298_v32  ;;  %v6250_v63 = vmax.f32 %v6186_v7, 0.0  ;;  %v6234_v32 = vmax.f32 %v6170_v12, 0.0 }
 0x80f   : > { %v6251_v36 = vmax.f32 %v6187_v33, 0.0 }
 0x810   : > { %v5963_v42 = vpop.f32.mrf.mxu2  ;;  %8315 = vmatmul.msk.bf16.vlgmr.msra.gmra.mxu2 %vm5511_vm9, %v13191_v10 }
 0x811   : > { %v5982_v1 = vpop.f32.mrf.mxu3  ;;  %8316 = vmatmul.msk.bf16.vlgmr.msra.gmra.mxu3 %vm5511_vm9, %v13191_v10  ;;  %v5928_v61 = vpop.f32.mrf.mxu0 }
 0x812   : > { %v5947_v6 = vpop.f32.mrf.mxu1  ;;  %v5929_v57 = vadd.f32 %v5928_v61, %v13018_v16  ;;  %v5983_v53 = vadd.f32 %v5982_v1, %v13016_v25  ;;  %v6235_v25 = vmax.f32 %v6171_v49, 0.0 }
 0x813   : > { %v5948_v13 = vadd.f32 %v5947_v6, %v13023_v58 }
 0x814   : > { %v6202_v54 = vadd.f32 %v13150_v50, %v5929_v57  ;;  %v6189_v6 = vadd.f32 %v13159_v51, %v5983_v53  ;;  %v6299_v57 = vpack.c.bf16 %v6250_v63, %v6234_v32  ;;  %v6300_v22 = vpack.c.bf16 %v6251_v36, %v6235_v25  ;;  %v14225_v25 = vld [vmem:[#allocation75_spill] sm:$0xff] }
 0x815   : > { %v6203_v16 = vadd.f32 %v13150_v50, %v5948_v13  ;;  %v6172_v13 = vadd.f32 %v14221_v23, %v5962_v55 }
 0x816   : > { %v6253_v60 = vmax.f32 %v6189_v6, 0.0  ;;  %v14226_v6 = vld [vmem:[#allocation84_spill] sm:$0xff] }
 0x817   : > { %v6267_v35 = vmax.f32 %v6203_v16, 0.0 }
 0x818   : > { %v5966_v27 = vpop.f32.mrf.mxu2 }
 0x819   : > { %v5985_v0 = vpop.f32.mrf.mxu3  ;;  %v5930_v38 = vpop.f32.mrf.mxu0  ;;  %v5967_v9 = vadd.f32 %v5966_v27, %v13042_v44 }
 0x81a   : > { %v5931_v62 = vadd.f32 %v5930_v38, %v13046_v52  ;;  %v5949_v3 = vpop.f32.mrf.mxu1  ;;  %v6266_v52 = vmax.f32 %v6202_v54, 0.0  ;;  %v5986_v2 = vadd.f32 %v5985_v0, %v13044_v48 }
 0x81b   : > { %v5950_v58 = vadd.f32 %v5949_v3, %v13048_v31  ;;  %v5964_v31 = vadd.f32 %v5963_v42, %v13014_v29  ;;  %v6204_v43 = vadd.f32 %v13150_v50, %v5967_v9  ;;  %v5981_v29 = vadd.f32 %v5980_v11, %v12984_v26 }
 0x81c   : > { %v6218_v20 = vadd.f32 %v13161_v34, %v5931_v62  ;;  %v6205_v42 = vadd.f32 %v13150_v50, %v5986_v2  ;;  %v6236_v3 = vmax.f32 %v6172_v13, 0.0 }
 0x81d   : > { %v6219_v18 = vadd.f32 %v13161_v34, %v5950_v58  ;;  %v6188_v1 = vadd.f32 %v13159_v51, %v5964_v31  ;;  %v6268_v26 = vmax.f32 %v6204_v43, 0.0 }
 0x81e   : > { %v6282_v4 = vmax.f32 %v6218_v20, 0.0  ;;  %v6269_v27 = vmax.f32 %v6205_v42, 0.0  ;;  %v14224_v42 = vld [vmem:[#allocation68_spill] sm:$0xff] }
 0x81f   : > { %v6283_v21 = vmax.f32 %v6219_v18, 0.0  ;;  %v6252_v0 = vmax.f32 %v6188_v1, 0.0 }
 0x820   : > { %v6315_v44 = vpack.c.bf16 %v6282_v4, %v6266_v52  ;;  %v5968_v15 = vpop.f32.mrf.mxu2 }
 0x821   : > { %v6316_v24 = vpack.c.bf16 %v6283_v21, %v6267_v35  ;;  %v5969_v48 = vadd.f32 %v5968_v15, %v13050_v30  ;;  %v5987_v19 = vpop.f32.mrf.mxu3  ;;  %v5999_v45 = vpop.f32.mrf.mxu0  ;;  %v6301_v20 = vpack.c.bf16 %v6252_v0, %v6236_v3 }
 0x822   : > { %v5988_v41 = vadd.f32 %v5987_v19, %v13052_v39  ;;  %v6018_v40 = vpop.f32.mrf.mxu1  ;;  %6394 = vmatpush.bf16.msrb.mxu0 %v6315_v44  ;;  %v6173_v39 = vadd.f32 %v14221_v23, %v5981_v29  ;;  %v6000_v63 = vadd.f32 %v5999_v45, %v13054_v14  ;;  %v14223_v45 = vld [vmem:[#allocation80_spill] sm:$0xff] }
 0x823   : > { %v6220_v61 = vadd.f32 %v13161_v34, %v5969_v48  ;;  %6407 = vmatpush.bf16.msrb.mxu1 %v6316_v24  ;;  %v6019_v36 = vadd.f32 %v6018_v40, %v13056_v17  ;;  %v14222_v24 = vld [vmem:[#allocation85_spill] sm:$0xff] }
 0x824   : > { %v6221_v30 = vadd.f32 %v13161_v34, %v5988_v41  ;;  %v6237_v58 = vmax.f32 %v6173_v39, 0.0  ;;  %v6174_v19 = vadd.f32 %v14221_v23, %v6000_v63  ;;  %v14227_v39 = vld [vmem:[#allocation76_spill] sm:$0xff] }
 0x825   : > { %v6284_v11 = vmax.f32 %v6220_v61, 0.0  ;;  %v6175_v29 = vadd.f32 %v14221_v23, %v6019_v36 }
 0x826   : > { %v6285_v47 = vmax.f32 %v6221_v30, 0.0  ;;  %6395 = vmatpush.bf16.msrb.mxu0 %v6299_v57  ;;  %v6302_v33 = vpack.c.bf16 %v6253_v60, %v6237_v58  ;;  %v14228_v60 = vld [vmem:[#allocation87_spill] sm:$0xff] }
 0x827   : > { %v6317_v38 = vpack.c.bf16 %v6284_v11, %v6268_v26  ;;  %6408 = vmatpush.bf16.msrb.mxu1 %v6300_v22 }
 0x828   : > { %v6318_v54 = vpack.c.bf16 %v6285_v47, %v6269_v27  ;;  %v6037_v62 = vpop.f32.mrf.mxu2 }
 0x829   : > { %v6056_v37 = vpop.f32.mrf.mxu3  ;;  %6420 = vmatpush.bf16.msrb.mxu2 %v6317_v38  ;;  %v6001_v16 = vpop.f32.mrf.mxu0  ;;  %8317 = vmatmul.msk.bf16.vlgmr.msrb.gmra.mxu0 %vm5511_vm9, %v13191_v10  ;;  %v6038_v1 = vadd.f32 %v6037_v62, %v14225_v25  ;;  %v6238_v38 = vmax.f32 %v6174_v19, 0.0 }
 0x82a   : > { %6433 = vmatpush.bf16.msrb.mxu3 %v6318_v54  ;;  %v6020_v7 = vpop.f32.mrf.mxu1  ;;  %8318 = vmatmul.msk.bf16.vlgmr.msrb.gmra.mxu1 %vm5511_vm9, %v13191_v10  ;;  %v6002_v49 = vadd.f32 %v6001_v16, %v13070_v28  ;;  %v6057_v54 = vadd.f32 %v6056_v37, %v14228_v60  ;;  %v14229_v16 = vld [vmem:[#allocation81_spill] sm:$0xff] }
 0x82b   : > { %v6021_v35 = vadd.f32 %v6020_v7, %v13072_v8  ;;  %v6239_v7 = vmax.f32 %v6175_v29, 0.0  ;;  %v14232_v29 = vld [vmem:[#allocation73_spill] sm:$0xff] }
 0x82c   : > { %v6190_v28 = vadd.f32 %v13159_v51, %v6002_v49  ;;  %v6177_v49 = vadd.f32 %v14221_v23, %v6057_v54 }
 0x82d   : > { %6421 = vmatpush.bf16.msrb.mxu2 %v6301_v20  ;;  %v6191_v8 = vadd.f32 %v13159_v51, %v6021_v35 }
 0x82e   : > { %6434 = vmatpush.bf16.msrb.mxu3 %v6302_v33  ;;  %v6254_v61 = vmax.f32 %v6190_v28, 0.0 }
 0x82f   : > { %v6255_v26 = vmax.f32 %v6191_v8, 0.0 }
 0x830   : > { %v6039_v9 = vpop.f32.mrf.mxu2  ;;  %8319 = vmatmul.msk.bf16.vlgmr.msrb.gmra.mxu2 %vm5511_vm9, %v13191_v10 }
 0x831   : > { %v6058_v18 = vpop.f32.mrf.mxu3  ;;  %8320 = vmatmul.msk.bf16.vlgmr.msrb.gmra.mxu3 %vm5511_vm9, %v13191_v10  ;;  %v6004_v12 = vpop.f32.mrf.mxu0 }
 0x832   : > { %v6023_v52 = vpop.f32.mrf.mxu1  ;;  %v6005_v2 = vadd.f32 %v6004_v12, %v13078_v56  ;;  %v6059_v30 = vadd.f32 %v6058_v18, %v14226_v6  ;;  %v6303_v12 = vpack.c.bf16 %v6254_v61, %v6238_v38  ;;  %v14234_v61 = vld [vmem:[#allocation88_spill] sm:$0xff] }
 0x833   : > { %v6024_v4 = vadd.f32 %v6023_v52, %v13080_v5  ;;  %v6176_v52 = vadd.f32 %v14221_v23, %v6038_v1 }
 0x834   : > { %v6206_v53 = vadd.f32 %v13150_v50, %v6005_v2 }
 0x835   : > { %v6207_v56 = vadd.f32 %v13150_v50, %v6024_v4  ;;  %v6304_v4 = vpack.c.bf16 %v6255_v26, %v6239_v7 }
 0x837   : > { %v6271_v41 = vmax.f32 %v6207_v56, 0.0 }
 0x838   : > { %v6042_v31 = vpop.f32.mrf.mxu2 }
 0x839   : > { %v6061_v21 = vpop.f32.mrf.mxu3  ;;  %v6006_v55 = vpop.f32.mrf.mxu0  ;;  %v6043_v48 = vadd.f32 %v6042_v31, %v14222_v24 }
 0x83a   : > { %v6007_v44 = vadd.f32 %v6006_v55, %v13094_v59  ;;  %v6025_v15 = vpop.f32.mrf.mxu1  ;;  %v6270_v59 = vmax.f32 %v6206_v53, 0.0  ;;  %v6062_v32 = vadd.f32 %v6061_v21, %v14223_v45 }
 0x83b   : > { %v6026_v5 = vadd.f32 %v6025_v15, %v13096_v46  ;;  %v6040_v46 = vadd.f32 %v6039_v9, %v14224_v42  ;;  %v6208_v11 = vadd.f32 %v13150_v50, %v6043_v48  ;;  %v6193_v9 = vadd.f32 %v13159_v51, %v6059_v30 }
 0x83c   : > { %v6222_v43 = vadd.f32 %v13161_v34, %v6007_v44  ;;  %v6209_v3 = vadd.f32 %v13150_v50, %v6062_v32  ;;  %v6240_v15 = vmax.f32 %v6176_v52, 0.0  ;;  %v14231_v32 = vld [vmem:[#allocation94_spill] sm:$0xff] }
 0x83d   : > { %v6223_v14 = vadd.f32 %v13161_v34, %v6026_v5  ;;  %v6192_v20 = vadd.f32 %v13159_v51, %v6040_v46  ;;  %v6272_v37 = vmax.f32 %v6208_v11, 0.0  ;;  %v6257_v63 = vmax.f32 %v6193_v9, 0.0  ;;  %v14236_v11 = vld [vmem:[#allocation77_spill] sm:$0xff] }
 0x83e   : > { %v6286_v17 = vmax.f32 %v6222_v43, 0.0  ;;  %v6273_v31 = vmax.f32 %v6209_v3, 0.0  ;;  %v6241_v5 = vmax.f32 %v6177_v49, 0.0  ;;  %v14238_v3 = vld [vmem:[#allocation90_spill] sm:$0xff] }
 0x83f   : > { %v6287_v40 = vmax.f32 %v6223_v14, 0.0  ;;  %v6256_v21 = vmax.f32 %v6192_v20, 0.0  ;;  %v14239_v20 = vld [vmem:[#allocation97_spill] sm:$0xff] }
 0x840   : > { %v6319_v57 = vpack.c.bf16 %v6286_v17, %v6270_v59  ;;  %v6044_v13 = vpop.f32.mrf.mxu2  ;;  %v6306_v8 = vpack.c.bf16 %v6257_v63, %v6241_v5  ;;  %v14230_v59 = vld [vmem:[#allocation61_spill] sm:$0xff] }
 0x841   : > { %v6320_v22 = vpack.c.bf16 %v6287_v40, %v6271_v41  ;;  %v6045_v27 = vadd.f32 %v6044_v13, %v14227_v39  ;;  %v6063_v47 = vpop.f32.mrf.mxu3  ;;  %v6075_v0 = vpop.f32.mrf.mxu0  ;;  %v6305_v43 = vpack.c.bf16 %v6256_v21, %v6240_v15  ;;  %v14233_v41 = vld [vmem:[#allocation69_spill] sm:$0xff] }
 0x842   : > { %v6064_v62 = vadd.f32 %v6063_v47, %v14229_v16  ;;  %v6094_v58 = vpop.f32.mrf.mxu1  ;;  %6446 = vmatpush.bf16.msra.mxu0 %v6319_v57  ;;  %v6076_v6 = vadd.f32 %v6075_v0, %v14234_v61  ;;  %v14235_v57 = vld [vmem:[#allocation91_spill] sm:$0xff] }
 0x843   : > { %v6224_v33 = vadd.f32 %v13161_v34, %v6045_v27  ;;  %6459 = vmatpush.bf16.msra.mxu1 %v6320_v22  ;;  %v6095_v22 = vadd.f32 %v6094_v58, %v14236_v11  ;;  %v14237_v27 = vld [vmem:[#allocation101_spill] sm:$0xff] }
 0x844   : > { %v6225_v18 = vadd.f32 %v13161_v34, %v6064_v62  ;;  %v6178_v62 = vadd.f32 %v14221_v23, %v6076_v6 }
 0x845   : > { %v6288_v2 = vmax.f32 %v6224_v33, 0.0  ;;  %v6179_v9 = vadd.f32 %v14221_v23, %v6095_v22 }
 0x846   : > { %v6289_v35 = vmax.f32 %v6225_v18, 0.0  ;;  %6447 = vmatpush.bf16.msra.mxu0 %v6303_v12  ;;  %v14240_v18 = vld [vmem:[#allocation65_spill] sm:$0xff] }
 0x847   : > { %v6321_v55 = vpack.c.bf16 %v6288_v2, %v6272_v37  ;;  %6460 = vmatpush.bf16.msra.mxu1 %v6304_v4  ;;  %v14241_v2 = vld [vmem:[#allocation89_spill] sm:$0xff] }
 0x848   : > { %v6322_v53 = vpack.c.bf16 %v6289_v35, %v6273_v31  ;;  %v6113_v44 = vpop.f32.mrf.mxu2  ;;  %v14242_v31 = vld [vmem:[#allocation60_spill] sm:$0xff] }
 0x849   : > { %v6132_v36 = vpop.f32.mrf.mxu3  ;;  %6472 = vmatpush.bf16.msra.mxu2 %v6321_v55  ;;  %v6077_v56 = vpop.f32.mrf.mxu0  ;;  %8321 = vmatmul.msk.bf16.vlgmr.msra.gmra.mxu0 %vm5511_vm9, %v13191_v10  ;;  %v6114_v4 = vadd.f32 %v6113_v44, %v14241_v2  ;;  %v6243_v44 = vmax.f32 %v6179_v9, 0.0 }
 0x84a   : > { %6485 = vmatpush.bf16.msra.mxu3 %v6322_v53  ;;  %v6096_v28 = vpop.f32.mrf.mxu1  ;;  %8322 = vmatmul.msk.bf16.vlgmr.msra.gmra.mxu1 %vm5511_vm9, %v13191_v10  ;;  %v6078_v42 = vadd.f32 %v6077_v56, %v14232_v29  ;;  %v14243_v56 = vld [vmem:[#allocation102_spill] sm:$0xff] }
 0x84b   : > { %v6097_v40 = vadd.f32 %v6096_v28, %v14233_v41 }
 0x84c   : > { %v6194_v38 = vadd.f32 %v13159_v51, %v6078_v42  ;;  %v6180_v42 = vadd.f32 %v14221_v23, %v6114_v4 }
 0x84d   : > { %6473 = vmatpush.bf16.msra.mxu2 %v6305_v43  ;;  %v6195_v54 = vadd.f32 %v13159_v51, %v6097_v40  ;;  %v6242_v43 = vmax.f32 %v6178_v62, 0.0 }
 0x84e   : > { %6486 = vmatpush.bf16.msra.mxu3 %v6306_v8  ;;  %v6258_v49 = vmax.f32 %v6194_v38, 0.0  ;;  %v14244_v8 = vld [vmem:[#allocation72_spill] sm:$0xff] }
 0x84f   : > { %v6259_v63 = vmax.f32 %v6195_v54, 0.0 }
 0x850   : > { %v6115_v24 = vpop.f32.mrf.mxu2  ;;  %8323 = vmatmul.msk.bf16.vlgmr.msra.gmra.mxu2 %vm5511_vm9, %v13191_v10  ;;  %v6307_v29 = vpack.c.bf16 %v6258_v49, %v6242_v43 }
 0x851   : > { %v6134_v48 = vpop.f32.mrf.mxu3  ;;  %8324 = vmatmul.msk.bf16.vlgmr.msra.gmra.mxu3 %vm5511_vm9, %v13191_v10  ;;  %v6080_v14 = vpop.f32.mrf.mxu0  ;;  %v6116_v12 = vadd.f32 %v6115_v24, %v14240_v18  ;;  %v6308_v41 = vpack.c.bf16 %v6259_v63, %v6243_v44  ;;  %v14247_v63 = vld [vmem:[#allocation42_spill] sm:$0xff] }
 0x852   : > { %v6099_v19 = vpop.f32.mrf.mxu1  ;;  %v6081_v45 = vadd.f32 %v6080_v14, %v14230_v59  ;;  %v6135_v35 = vadd.f32 %v6134_v48, %v14242_v31  ;;  %v6133_v14 = vadd.f32 %v6132_v36, %v14244_v8 }
 0x853   : > { %v6100_v17 = vadd.f32 %v6099_v19, %v14231_v32  ;;  %v14245_v19 = vld [vmem:[#allocation98_spill] sm:$0xff]  ;;  %v6196_v48 = vadd.f32 %v13159_v51, %v6116_v12 }
 0x854   : > { %v6210_v30 = vadd.f32 %v13150_v50, %v6081_v45  ;;  %v6197_v32 = vadd.f32 %v13159_v51, %v6135_v35  ;;  %v6244_v51 = vmax.f32 %v6180_v42, 0.0 }
 0x855   : > { %v6211_v39 = vadd.f32 %v13150_v50, %v6100_v17 }
 0x856   : > { %v6274_v7 = vmax.f32 %v6210_v30, 0.0  ;;  %v6261_v6 = vmax.f32 %v6197_v32, 0.0 }
 0x857   : > { %v6275_v52 = vmax.f32 %v6211_v39, 0.0 }
 0x858   : > { %v6118_v46 = vpop.f32.mrf.mxu2 }
 0x859   : > { %v6137_v25 = vpop.f32.mrf.mxu3  ;;  %v6082_v1 = vpop.f32.mrf.mxu0  ;;  %v6119_v16 = vadd.f32 %v6118_v46, %v14238_v3 }
 0x85a   : > { %v6083_v13 = vadd.f32 %v6082_v1, %v14235_v57  ;;  %v6101_v26 = vpop.f32.mrf.mxu1  ;;  %v6138_v33 = vadd.f32 %v6137_v25, %v14239_v20  ;;  %v6260_v1 = vmax.f32 %v6196_v48, 0.0 }
 0x85b   : > { %v6102_v47 = vadd.f32 %v6101_v26, %v14237_v27  ;;  %v6212_v53 = vadd.f32 %v13150_v50, %v6119_v16  ;;  %v516_v16 = vld [vmem:[%s13333_s16] sm:$0xff] }
 0x85c   : > { %v6226_v60 = vadd.f32 %v13161_v34, %v6083_v13  ;;  %v6213_v24 = vadd.f32 %v13150_v50, %v6138_v33  ;;  %v6181_v50 = vadd.f32 %v14221_v23, %v6133_v14  ;;  %v6309_v23 = vpack.c.bf16 %v6260_v1, %v6244_v51  ;;  %v13323_v13 = vpop.permute.xlu2 %6330  ;;  %v14252_v1 = vld [vmem:[#allocation74_spill] sm:$0xff] }
 0x85d   : > { %v6227_v0 = vadd.f32 %v13161_v34, %v6102_v47  ;;  %v6276_v46 = vmax.f32 %v6212_v53, 0.0  ;;  %vm6848_vm10 = vcmp.eq.s32.totalorder %v516_v16, 0  ;;  %v14246_v33 = vmov 0  }
 0x85e   : > { %v6290_v58 = vmax.f32 %v6226_v60, 0.0  ;;  %v6277_v40 = vmax.f32 %v6213_v24, 0.0  ;;  %vm6955_vm11 = vcmp.eq.s32.totalorder %v516_v16, 1  ;;  %v6903_v53 = vsel %vm6848_vm10, %v14247_v63, 0.0 }
 0x85f   : > { %v6291_v37 = vmax.f32 %v6227_v0, 0.0  ;;  %v13345_v4 = vsel %vm6955_vm11, 1, %v14246_v33 }
 0x860   : > { %v6323_v21 = vpack.c.bf16 %v6290_v58, %v6274_v7  ;;  %v6120_v55 = vpop.f32.mrf.mxu2  ;;  %v13339_v58 = vsel %vm6848_vm10, 1, %v14246_v33 }
 0x861   : > { %v6324_v15 = vpack.c.bf16 %v6291_v37, %v6275_v52  ;;  %v6121_v5 = vadd.f32 %v6120_v55, %v14243_v56  ;;  %v6139_v28 = vpop.f32.mrf.mxu3  ;;  %v6907_v37 = vperm.slane %v13339_v58, 0 }
 0x862   : > { %v6140_v59 = vadd.f32 %v6139_v28, %v14245_v19  ;;  %6498 = vmatpush.bf16.msrb.mxu0 %v6323_v21  ;;  %v6908_v21 = vperm.slane %v13339_v58, 1  ;;  %v6982_v28 = vperm.slane %v13345_v4, 0 }
 0x863   : > { %v6228_v45 = vadd.f32 %v13161_v34, %v6121_v5  ;;  %6511 = vmatpush.bf16.msrb.mxu1 %v6324_v15  ;;  %vm13350_vm12 = vcmp.eq.s32.totalorder %v6907_v37, 1 }
 0x864   : > { %v6229_v17 = vadd.f32 %v13161_v34, %v6140_v59  ;;  %v6245_v34 = vmax.f32 %v6181_v50, 0.0  ;;  %vm13355_vm15 = vcmp.eq.s32.totalorder %v6908_v21, 1  ;;  %vm6998_vm7 = vcmp.eq.s32.totalorder %v6982_v28, 1 }
 0x865   : > { %v6292_v36 = vmax.f32 %v6228_v45, 0.0 }
 0x866   : > { %v6293_v25 = vmax.f32 %v6229_v17, 0.0  ;;  %6499 = vmatpush.bf16.msrb.mxu0 %v6307_v29  ;;  %v6310_v57 = vpack.c.bf16 %v6261_v6, %v6245_v34  ;;  %v6983_v17 = vperm.slane %v13345_v4, 1 }
 0x867   : > { %v6325_v61 = vpack.c.bf16 %v6292_v36, %v6276_v46  ;;  %6512 = vmatpush.bf16.msrb.mxu1 %v6308_v41 }
 0x868   : > { %v6326_v30 = vpack.c.bf16 %v6293_v25, %v6277_v40 }
 0x869   : > { %6524 = vmatpush.bf16.msrb.mxu2 %v6325_v61  ;;  %8325 = vmatmul.msk.bf16.vlgmr.msrb.gmra.mxu0 %vm5511_vm9, %v13191_v10  ;;  %v13369_v61 = vsel %vm6955_vm11, %v14252_v1, %v6903_v53 }
 0x86a   : > { %6537 = vmatpush.bf16.msrb.mxu3 %v6326_v30  ;;  %8326 = vmatmul.msk.bf16.vlgmr.msrb.gmra.mxu1 %vm5511_vm9, %v13191_v10 }
 0x86d   : > { %6525 = vmatpush.bf16.msrb.mxu2 %v6309_v23 }
 0x86e   : > { %6538 = vmatpush.bf16.msrb.mxu3 %v6310_v57 }
 0x870   : > { %8327 = vmatmul.msk.bf16.vlgmr.msrb.gmra.mxu2 %vm5511_vm9, %v13191_v10 }
 0x871   : > { %8328 = vmatmul.msk.bf16.vlgmr.msrb.gmra.mxu3 %vm5511_vm9, %v13191_v10  ;;  %vm13375_vm9 = vcmp.eq.s32.totalorder %v6983_v17, 1 }
 0x886   : > { %v6345_v26 = vpop.f32.mrf.mxu0 }
 0x887   : > { %v6346_v11 = vadd.f32 %v6345_v26, %v13323_v13  ;;  %v6358_v22 = vpop.f32.mrf.mxu1 }
 0x888   : > { %v6359_v39 = vadd.f32 %v6358_v22, %v13323_v13 }
 0x889   : > { %v8329_v27 = vmul.f32 -1.442695, %v6346_v11  ;;  %v6909_v11 = vperm.slane %v13339_v58, 2 }
 0x88a   : > { %v8330_v47 = vmul.f32 -1.442695, %v6359_v39 }
 0x88b   : > { %8518 = vpow2.f32 %v8329_v27  ;;  %vm13394_vm10 = vcmp.eq.s32.totalorder %v6909_v11, 1 }
 0x88c   : > { %8520 = vpow2.f32 %v8330_v47  ;;  %v7080_v47 = vperm.slane %v13369_v61, 0 }
 0x88e   : > { %v6347_v38 = vpop.f32.mrf.mxu0 }
 0x88f   : > { %v6360_v10 = vpop.f32.mrf.mxu1 }
 0x891   : > { %v8519_v60 = vpop.eup %8518 }
 0x892   : > { %v8521_v54 = vpop.eup %8520  ;;  %v6592_v3 = vadd.f32 1.0, %v8519_v60 }
 0x893   : > { %v6593_v0 = vadd.f32 1.0, %v8521_v54  ;;  %v6371_v62 = vpop.f32.mrf.mxu2 }
 0x894   : > { %8522 = vrcp.f32 %v6592_v3  ;;  %v6384_v7 = vpop.f32.mrf.mxu3  ;;  %v6372_v20 = vadd.f32 %v6371_v62, %v13323_v13  ;;  %v6619_v56 = vand.u32 2147483648, %v6592_v3  ;;  %v6617_v14 = vand.u32 2147483647, %v6592_v3 }
 0x895   : > { %8524 = vrcp.f32 %v6593_v0  ;;  %v6385_v9 = vadd.f32 %v6384_v7, %v13323_v13  ;;  %v6634_v24 = vand.u32 2147483648, %v6593_v0  ;;  %v6632_v44 = vand.u32 2147483647, %v6593_v0 }
 0x896   : > { %v8331_v18 = vmul.f32 -1.442695, %v6372_v20  ;;  %vm6613_vm0 = vweird.f32 %v6592_v3  ;;  %v6620_v42 = vor.u32 1.1754944e-38, %v6619_v56  ;;  %vm6628_vm3 = vweird.f32 %v6593_v0 }
 0x897   : > { %v8332_v12 = vmul.f32 -1.442695, %v6385_v9  ;;  %vm6618_vm4 = vcmp.eq.f32.partialorder %v6617_v14, 8.507059e+37  ;;  %v6635_v50 = vor.u32 1.1754944e-38, %v6634_v24  ;;  %vm6633_vm6 = vcmp.eq.f32.partialorder %v6632_v44, 8.507059e+37 }
 0x898   : > { %8526 = vpow2.f32 %v8331_v18  ;;  %v6985_v14 = vperm.slane %v13345_v4, 3 }
 0x899   : > { %8528 = vpow2.f32 %v8332_v12 }
 0x89a   : > { %v8523_v52 = vpop.eup %8522 }
 0x89b   : > { %v8525_v2 = vpop.eup %8524  ;;  %v6609_v49 = vmul.f32 %v8523_v52, %v6592_v3  ;;  %v6373_v31 = vpop.f32.mrf.mxu2  ;;  %vm6614_vm13 = vweird.f32 %v8523_v52 }
 0x89c   : > { %v6624_v35 = vmul.f32 %v8525_v2, %v6593_v0  ;;  %v6386_v55 = vpop.f32.mrf.mxu3  ;;  %vm6629_vm14 = vweird.f32 %v8525_v2  ;;  %vm6615_vm1 = vmor %vm6613_vm0, %vm6614_vm13  ;;  %v7081_v0 = vperm.slane %v13369_v61, 1 }
 0x89d   : > { %v6610_v15 = vsub.f32 1.0, %v6609_v49  ;;  %vm6630_vm5 = vmor %vm6628_vm3, %vm6629_vm14 }
 0x89e   : > { %v6625_v43 = vsub.f32 1.0, %v6624_v35  ;;  %v8527_v19 = vpop.eup %8526 }
 0x89f   : > { %v6611_v8 = vmul.f32 %v8523_v52, %v6610_v15  ;;  %v8529_v45 = vpop.eup %8528  ;;  %v13360_v29 = vadd.f32 1.0, %v8527_v19 }
 0x8a0   : > { %v6626_v59 = vmul.f32 %v8525_v2, %v6625_v43  ;;  %v13362_v36 = vadd.f32 1.0, %v8529_v45 }
 0x8a1   : > { %v6612_v32 = vadd.f32 %v8523_v52, %v6611_v8  ;;  %8530 = vrcp.f32 %v13360_v29  ;;  %v6649_v31 = vand.u32 2147483648, %v13360_v29  ;;  %v6647_v63 = vand.u32 2147483647, %v13360_v29 }
 0x8a2   : > { %v6627_v46 = vadd.f32 %v8525_v2, %v6626_v59  ;;  %8532 = vrcp.f32 %v13362_v36  ;;  %v6664_v53 = vand.u32 2147483648, %v13362_v36  ;;  %v6662_v5 = vand.u32 2147483647, %v13362_v36 }
 0x8a3   : > { %v6616_v41 = vsel %vm6615_vm1, %v8523_v52, %v6612_v32  ;;  %vm6643_vm13 = vweird.f32 %v13360_v29  ;;  %v6984_v8 = vperm.slane %v13345_v4, 2  ;;  %v6650_v19 = vor.u32 1.1754944e-38, %v6649_v31 }
 0x8a4   : > { %v6621_v40 = vsel %vm6618_vm4, %v6620_v42, %v6616_v41  ;;  %v6631_v25 = vsel %vm6630_vm5, %v8525_v2, %v6627_v46  ;;  %v6910_v2 = vperm.slane %v13339_v58, 3  ;;  %vm6648_vm1 = vcmp.eq.f32.partialorder %v6647_v63, 8.507059e+37 }
 0x8a5   : > { %v6939_v6 = vsel %vm13350_vm12, %v6621_v40, 0.0  ;;  %v6636_v30 = vsel %vm6633_vm6, %v6635_v50, %v6631_v25  ;;  %v6665_v45 = vor.u32 1.1754944e-38, %v6664_v53  ;;  %vm6663_vm4 = vcmp.eq.f32.partialorder %v6662_v5, 8.507059e+37 }
 0x8a6   : > { %v7030_v51 = vrot.slane %v6939_v6, 5  ;;  %v6940_v34 = vsel %vm13355_vm15, %v6636_v30, 0.0  ;;  %v6397_v57 = vpop.f32.mrf.mxu0  ;;  %vm6658_vm15 = vweird.f32 %v13362_v36  ;;  %vm13413_vm0 = vcmp.eq.s32.totalorder %v6910_v2, 1 }
 0x8a7   : > { %v7031_v26 = vrot.slane %v6940_v34, 5  ;;  %v6398_v22 = vadd.f32 %v6397_v57, %v13323_v13  ;;  %v6410_v39 = vpop.f32.mrf.mxu1  ;;  %v8531_v38 = vpop.eup %8530  ;;  %vm7000_vm5 = vcmp.eq.s32.totalorder %v6984_v8, 1  ;;  %vm7001_vm6 = vcmp.eq.s32.totalorder %v6985_v14, 1 }
 0x8a8   : > { %v7062_v27 = vsel %vm6998_vm7, %v6621_v40, %v7030_v51  ;;  %v6411_v3 = vadd.f32 %v6410_v39, %v13323_v13  ;;  %v8533_v16 = vpop.eup %8532  ;;  %v6639_v7 = vmul.f32 %v8531_v38, %v13360_v29  ;;  %vm6644_vm11 = vweird.f32 %v8531_v38 }
 0x8a9   : > { %v7128_v10 = vrot.slane %v7062_v27, 2  ;;  %v7063_v60 = vsel %vm13375_vm9, %v6636_v30, %v7031_v26  ;;  %v8333_v54 = vmul.f32 -1.442695, %v6398_v22  ;;  %v6654_v18 = vmul.f32 %v8533_v16, %v13362_v36  ;;  %vm6645_vm14 = vmor %vm6643_vm13, %vm6644_vm11 }
 0x8aa   : > { %v7129_v62 = vrot.slane %v7063_v60, 2  ;;  %v6640_v37 = vsub.f32 1.0, %v6639_v7  ;;  %v8334_v21 = vmul.f32 -1.442695, %v6411_v3  ;;  %vm6659_vm12 = vweird.f32 %v8533_v16 }
 0x8ab   : > { %v7160_v20 = vsel %vm6880_vm2, %v7080_v47, %v7128_v10  ;;  %8534 = vpow2.f32 %v8333_v54  ;;  %v6655_v35 = vsub.f32 1.0, %v6654_v18  ;;  %vm6660_vm3 = vmor %vm6658_vm15, %vm6659_vm12  ;;  %v7082_v34 = vperm.slane %v13369_v61, 2 }
 0x8ac   : > { %v7176_v12 = vsel %vm6892_vm8, %v7160_v20, 0.0  ;;  %v7161_v52 = vsel %vm6880_vm2, %v7081_v0, %v7129_v62  ;;  %v6641_v55 = vmul.f32 %v8531_v38, %v6640_v37  ;;  %8536 = vpow2.f32 %v8334_v21 }
 0x8ad   : > { %7192 = vst [vmem:[%s13389_s21] sm:$0xff] %v7176_v12  ;;  %v7177_v49 = vsel %vm6892_vm8, %v7161_v52, 0.0  ;;  %v6656_v56 = vmul.f32 %v8533_v16, %v6655_v35  ;;  %v7083_v26 = vperm.slane %v13369_v61, 3  ;;  %v6986_v2 = vperm.slane %v13345_v4, 4 }
 0x8ae   : > { %7193 = vst [vmem:[%s13389_s21 + $0x8] sm:$0xff] %v7177_v49  ;;  %v6399_v15 = vpop.f32.mrf.mxu0  ;;  %v6642_v43 = vadd.f32 %v8531_v38, %v6641_v55  ;;  %v6912_v35 = vperm.slane %v13339_v58, 5  ;;  %v6987_v8 = vperm.slane %v13345_v4, 5 }
 0x8af   : > { %v6412_v28 = vpop.f32.mrf.mxu1  ;;  %v6657_v59 = vadd.f32 %v8533_v16, %v6656_v56 }
 0x8b0   : > { %v6646_v48 = vsel %vm6645_vm14, %v8531_v38, %v6642_v43  ;;  %vm13445_vm14 = vcmp.eq.s32.totalorder %v6986_v2, 1 }
 0x8b1   : > { %v8535_v24 = vpop.eup %8534  ;;  %v6651_v17 = vsel %vm6648_vm1, %v6650_v19, %v6646_v48  ;;  %v6661_v29 = vsel %vm6660_vm3, %v8533_v16, %v6657_v59  ;;  %v6911_v16 = vperm.slane %v13339_v58, 4  ;;  %vm6928_vm1 = vcmp.eq.s32.totalorder %v6912_v35, 1 }
 0x8b2   : > { %v6596_v32 = vadd.f32 1.0, %v8535_v24  ;;  %v6941_v46 = vsel %vm13394_vm10, %v6651_v17, 0.0  ;;  %v6666_v41 = vsel %vm6663_vm4, %v6665_v45, %v6661_v29  ;;  %v8537_v50 = vpop.eup %8536  ;;  %vm7003_vm4 = vcmp.eq.s32.totalorder %v6987_v8, 1 }
 0x8b3   : > { %v6423_v42 = vpop.f32.mrf.mxu2  ;;  %v7032_v40 = vrot.slane %v6941_v46, 5  ;;  %v6942_v25 = vsel %vm13413_vm0, %v6666_v41, 0.0  ;;  %v13422_v6 = vadd.f32 1.0, %v8537_v50  ;;  %vm13437_vm9 = vcmp.eq.s32.totalorder %v6911_v16, 1 }
 0x8b4   : > { %8538 = vrcp.f32 %v6596_v32  ;;  %v6436_v36 = vpop.f32.mrf.mxu3  ;;  %v7033_v1 = vrot.slane %v6942_v25, 5  ;;  %v6424_v30 = vadd.f32 %v6423_v42, %v13323_v13  ;;  %v6677_v9 = vand.u32 2147483647, %v6596_v32 }
 0x8b5   : > { %v7064_v51 = vsel %vm7000_vm5, %v6651_v17, %v7032_v40  ;;  %8540 = vrcp.f32 %v13422_v6  ;;  %v6437_v47 = vadd.f32 %v6436_v36, %v13323_v13  ;;  %v6679_v18 = vand.u32 2147483648, %v6596_v32 }
 0x8b6   : > { %v7130_v23 = vrot.slane %v7064_v51, 2  ;;  %v7065_v57 = vsel %vm7001_vm6, %v6666_v41, %v7033_v1  ;;  %v8335_v22 = vmul.f32 -1.442695, %v6424_v30  ;;  %vm6673_vm10 = vweird.f32 %v6596_v32 }
 0x8b7   : > { %v7131_v11 = vrot.slane %v7065_v57, 2  ;;  %v8336_v7 = vmul.f32 -1.442695, %v6437_v47  ;;  %vm6678_vm12 = vcmp.eq.f32.partialorder %v6677_v9, 8.507059e+37  ;;  %v6680_v55 = vor.u32 1.1754944e-38, %v6679_v18 }
 0x8b8   : > { %v7162_v27 = vsel %vm6880_vm2, %v7082_v34, %v7130_v23  ;;  %8542 = vpow2.f32 %v8335_v22  ;;  %v6692_v63 = vand.u32 2147483647, %v13422_v6  ;;  %v6694_v53 = vand.u32 2147483648, %v13422_v6 }
 0x8b9   : > { %v7178_v38 = vsel %vm6892_vm8, %v7162_v27, 0.0  ;;  %v7163_v10 = vsel %vm6880_vm2, %v7083_v26, %v7131_v11  ;;  %8544 = vpow2.f32 %v8336_v7  ;;  %vm6688_vm15 = vweird.f32 %v13422_v6 }
 0x8ba   : > { %v8539_v39 = vpop.eup %8538  ;;  %7194 = vst [vmem:[%s13389_s21 + $0x10] sm:$0xff] %v7178_v38  ;;  %v7179_v3 = vsel %vm6892_vm8, %v7163_v10, 0.0  ;;  %v6695_v44 = vor.u32 1.1754944e-38, %v6694_v53  ;;  %vm6693_vm3 = vcmp.eq.f32.partialorder %v6692_v63, 8.507059e+37  ;;  %v7084_v46 = vperm.slane %v13369_v61, 4 }
 0x8bb   : > { %v6669_v60 = vmul.f32 %v8539_v39, %v6596_v32  ;;  %v6425_v54 = vpop.f32.mrf.mxu2  ;;  %7195 = vst [vmem:[%s13389_s21 + $0x18] sm:$0xff] %v7179_v3  ;;  %v8541_v20 = vpop.eup %8540  ;;  %vm6674_vm7 = vweird.f32 %v8539_v39  ;;  %v7085_v57 = vperm.slane %v13369_v61, 5  ;;  %v6913_v11 = vperm.slane %v13339_v58, 6 }
 0x8bc   : > { %v6438_v0 = vpop.f32.mrf.mxu3  ;;  %v6684_v52 = vmul.f32 %v8541_v20, %v13422_v6  ;;  %vm6675_vm11 = vmor %vm6673_vm10, %vm6674_vm7  ;;  %vm6689_vm13 = vweird.f32 %v8541_v20  ;;  %v6988_v7 = vperm.slane %v13345_v4, 6 }
 0x8bd   : > { %v6670_v62 = vsub.f32 1.0, %v6669_v60  ;;  %vm6690_vm0 = vmor %vm6688_vm15, %vm6689_vm13  ;;  %vm13470_vm6 = vcmp.eq.s32.totalorder %v6913_v11, 1 }
 0x8be   : > { %v6685_v31 = vsub.f32 1.0, %v6684_v52  ;;  %v8543_v21 = vpop.eup %8542 }
 0x8bf   : > { %v6671_v12 = vmul.f32 %v8539_v39, %v6670_v62  ;;  %v6598_v5 = vadd.f32 1.0, %v8543_v21  ;;  %v8545_v14 = vpop.eup %8544 }
 0x8c0   : > { %v6686_v56 = vmul.f32 %v8541_v20, %v6685_v31  ;;  %v13453_v48 = vadd.f32 1.0, %v8545_v14 }
 0x8c1   : > { %v6672_v49 = vadd.f32 %v8539_v39, %v6671_v12  ;;  %8546 = vrcp.f32 %v6598_v5  ;;  %v6709_v60 = vand.u32 2147483648, %v6598_v5  ;;  %vm6703_vm7 = vweird.f32 %v6598_v5 }
 0x8c2   : > { %v6687_v19 = vadd.f32 %v8541_v20, %v6686_v56  ;;  %8548 = vrcp.f32 %v13453_v48  ;;  %v6722_v37 = vand.u32 2147483647, %v13453_v48  ;;  %v6724_v2 = vand.u32 2147483648, %v13453_v48  ;;  %v517_v56 = vld [vmem:[%s13333_s16 + $0x8] sm:$0xff] }
 0x8c3   : > { %v6676_v15 = vsel %vm6675_vm11, %v8539_v39, %v6672_v49  ;;  %v6707_v39 = vand.u32 2147483647, %v6598_v5  ;;  %v6710_v52 = vor.u32 1.1754944e-38, %v6709_v60  ;;  %vm6718_vm13 = vweird.f32 %v13453_v48 }
 0x8c4   : > { %v6681_v28 = vsel %vm6678_vm12, %v6680_v55, %v6676_v15  ;;  %v6691_v32 = vsel %vm6690_vm0, %v8541_v20, %v6687_v19  ;;  %v6914_v20 = vperm.slane %v13339_v58, 7  ;;  %vm13481_vm12 = vcmp.eq.s32.totalorder %v6988_v7, 1 }
 0x8c5   : > { %v6943_v24 = vsel %vm13437_vm9, %v6681_v28, 0.0  ;;  %v6696_v41 = vsel %vm6693_vm3, %v6695_v44, %v6691_v32  ;;  %vm6708_vm9 = vcmp.eq.f32.partialorder %v6707_v39, 8.507059e+37  ;;  %v6989_v15 = vperm.slane %v13345_v4, 7 }
 0x8c6   : > { %v7034_v59 = vrot.slane %v6943_v24, 5  ;;  %v6449_v45 = vpop.f32.mrf.mxu0  ;;  %v6944_v50 = vsel %vm6928_vm1, %v6696_v41, 0.0  ;;  %v6725_v14 = vor.u32 1.1754944e-38, %v6724_v2  ;;  %vm6930_vm15 = vcmp.eq.s32.totalorder %v6914_v20, 1 }
 0x8c7   : > { %v6450_v17 = vadd.f32 %v6449_v45, %v13323_v13  ;;  %v6462_v29 = vpop.f32.mrf.mxu1  ;;  %v7035_v40 = vrot.slane %v6944_v50, 5  ;;  %v8547_v1 = vpop.eup %8546  ;;  %vm6723_vm0 = vcmp.eq.f32.partialorder %v6722_v37, 8.507059e+37  ;;  %vm6849_vm1 = vcmp.eq.s32.totalorder %v517_v56, 0 }
 0x8c8   : > { %v7066_v42 = vsel %vm13445_vm14, %v6681_v28, %v7034_v59  ;;  %v6463_v30 = vadd.f32 %v6462_v29, %v13323_v13  ;;  %v6699_v23 = vmul.f32 %v8547_v1, %v6598_v5  ;;  %v8549_v38 = vpop.eup %8548  ;;  %vm6704_vm5 = vweird.f32 %v8547_v1 }
 0x8c9   : > { %v7132_v36 = vrot.slane %v7066_v42, 2  ;;  %v8337_v25 = vmul.f32 -1.442695, %v6450_v17  ;;  %v7067_v34 = vsel %vm7003_vm4, %v6696_v41, %v7035_v40  ;;  %v6714_v0 = vmul.f32 %v8549_v38, %v13453_v48  ;;  %vm6705_vm10 = vmor %vm6703_vm7, %vm6704_vm5 }
 0x8ca   : > { %v7133_v26 = vrot.slane %v7067_v34, 2  ;;  %v6700_v22 = vsub.f32 1.0, %v6699_v23  ;;  %v8338_v27 = vmul.f32 -1.442695, %v6463_v30  ;;  %vm6719_vm11 = vweird.f32 %v8549_v38 }
 0x8cb   : > { %v7164_v6 = vsel %vm6880_vm2, %v7084_v46, %v7132_v36  ;;  %8550 = vpow2.f32 %v8337_v25  ;;  %v6715_v18 = vsub.f32 1.0, %v6714_v0  ;;  %vm6720_vm14 = vmor %vm6718_vm13, %vm6719_vm11  ;;  %v7086_v48 = vperm.slane %v13369_v61, 6 }
 0x8cc   : > { %v7180_v51 = vsel %vm6892_vm8, %v7164_v6, 0.0  ;;  %v7165_v10 = vsel %vm6880_vm2, %v7085_v57, %v7133_v26  ;;  %v6701_v16 = vmul.f32 %v8547_v1, %v6700_v22  ;;  %8552 = vpow2.f32 %v8338_v27  ;;  %v14269_v26 = vld [vmem:[#allocation86_spill] sm:$0xff] }
 0x8cd   : > { %7196 = vst [vmem:[%s13389_s21 + $0x20] sm:$0xff] %v7180_v51  ;;  %v7181_v3 = vsel %vm6892_vm8, %v7165_v10, 0.0  ;;  %v6716_v35 = vmul.f32 %v8549_v38, %v6715_v18  ;;  %vm13498_vm3 = vcmp.eq.s32.totalorder %v6989_v15, 1  ;;  %v13505_v42 = vsel %vm6849_vm1, 1, %v14246_v33 }
 0x8ce   : > { %v6451_v47 = vpop.f32.mrf.mxu0  ;;  %7197 = vst [vmem:[%s13389_s21 + $0x28] sm:$0xff] %v7181_v3  ;;  %v6702_v9 = vadd.f32 %v8547_v1, %v6701_v16  ;;  %vm6956_vm4 = vcmp.eq.s32.totalorder %v517_v56, 1  ;;  %v7087_v34 = vperm.slane %v13369_v61, 7  ;;  %v6915_v57 = vperm.slane %v13505_v42, 0 }
 0x8cf   : > { %v6464_v54 = vpop.f32.mrf.mxu1  ;;  %v6717_v28 = vadd.f32 %v8549_v38, %v6716_v35  ;;  %v6904_v11 = vsel %vm6849_vm1, %v14269_v26, 0.0  ;;  %v13518_v22 = vsel %vm6956_vm4, 1, %v14246_v33  ;;  %v6916_v62 = vperm.slane %v13505_v42, 1 }
 0x8d0   : > { %v6706_v31 = vsel %vm6705_vm10, %v8547_v1, %v6702_v9  ;;  %v6975_v1 = vld [vmem:[#allocation1 + $0x1] ss:$9 sm:$0xff]  ;;  %v6990_v0 = vperm.slane %v13518_v22, 0 }
 0x8d1   : > { %v8551_v12 = vpop.eup %8550  ;;  %v6711_v63 = vsel %vm6708_vm9, %v6710_v52, %v6706_v31  ;;  %v6721_v19 = vsel %vm6720_vm14, %v8549_v38, %v6717_v28  ;;  %v13521_v38 = vsel %vm6956_vm4, %v6975_v1, %v6904_v11  ;;  %vm13546_vm13 = vcmp.eq.s32.totalorder %v6916_v62, 1 }
 0x8d2   : > { %v13478_v21 = vadd.f32 1.0, %v8551_v12  ;;  %v6945_v5 = vsel %vm13470_vm6, %v6711_v63, 0.0  ;;  %v8553_v43 = vpop.eup %8552  ;;  %v6726_v45 = vsel %vm6723_vm0, %v6725_v14, %v6721_v19  ;;  %vm13528_vm6 = vcmp.eq.s32.totalorder %v6915_v57, 1 }
 0x8d3   : > { %v6475_v49 = vpop.f32.mrf.mxu2  ;;  %v7036_v8 = vrot.slane %v6945_v5, 5  ;;  %v13492_v59 = vadd.f32 1.0, %v8553_v43  ;;  %v6946_v17 = vsel %vm6930_vm15, %v6726_v45, 0.0  ;;  %v6917_v43 = vperm.slane %v13505_v42, 2 }
 0x8d4   : > { %v6476_v58 = vadd.f32 %v6475_v49, %v13323_v13  ;;  %v6488_v55 = vpop.f32.mrf.mxu3  ;;  %8554 = vrcp.f32 %v13478_v21  ;;  %v7037_v46 = vrot.slane %v6946_v17, 5  ;;  %v6737_v27 = vand.u32 2147483647, %v13478_v21 }
 0x8d5   : > { %v6489_v4 = vadd.f32 %v6488_v55, %v13323_v13  ;;  %v7068_v44 = vsel %vm13481_vm12, %v6711_v63, %v7036_v8  ;;  %8556 = vrcp.f32 %v13492_v59  ;;  %v6739_v61 = vand.u32 2147483648, %v13478_v21 }
 0x8d6   : > { %v8339_v24 = vmul.f32 -1.442695, %v6476_v58  ;;  %v7134_v32 = vrot.slane %v7068_v44, 2  ;;  %v7069_v30 = vsel %vm13498_vm3, %v6726_v45, %v7037_v46  ;;  %vm6733_vm7 = vweird.f32 %v13478_v21 }
 0x8d7   : > { %v8340_v40 = vmul.f32 -1.442695, %v6489_v4  ;;  %v7135_v23 = vrot.slane %v7069_v30, 2  ;;  %vm6738_vm9 = vcmp.eq.f32.partialorder %v6737_v27, 8.507059e+37  ;;  %v6740_v12 = vor.u32 1.1754944e-38, %v6739_v61 }
 0x8d8   : > { %8558 = vpow2.f32 %v8339_v24  ;;  %v7166_v50 = vsel %vm6880_vm2, %v7086_v48, %v7134_v32  ;;  %v6752_v52 = vand.u32 2147483647, %v13492_v59  ;;  %v6754_v37 = vand.u32 2147483648, %v13492_v59 }
 0x8d9   : > { %v7182_v6 = vsel %vm6892_vm8, %v7166_v50, 0.0  ;;  %8560 = vpow2.f32 %v8340_v40  ;;  %v7167_v10 = vsel %vm6880_vm2, %v7087_v34, %v7135_v23  ;;  %vm13542_vm12 = vcmp.eq.s32.totalorder %v6990_v0, 1 }
 0x8da   : > { %v8555_v36 = vpop.eup %8554  ;;  %7198 = vst [vmem:[%s13389_s21 + $0x30] sm:$0xff] %v7182_v6  ;;  %v7183_v54 = vsel %vm6892_vm8, %v7167_v10, 0.0  ;;  %v6991_v55 = vperm.slane %v13518_v22, 1  ;;  %vm6748_vm14 = vweird.f32 %v13492_v59  ;;  %v6755_v28 = vor.u32 1.1754944e-38, %v6754_v37 }
 0x8db   : > { %v6477_v41 = vpop.f32.mrf.mxu2  ;;  %v6729_v51 = vmul.f32 %v8555_v36, %v13478_v21  ;;  %v8557_v47 = vpop.eup %8556  ;;  %vm6734_vm5 = vweird.f32 %v8555_v36  ;;  %7199 = vst [vmem:[%s13389_s21 + $0x38] sm:$0xff] %v7183_v54  ;;  %vm6753_vm0 = vcmp.eq.f32.partialorder %v6752_v52, 8.507059e+37  ;;  %v7089_v48 = vperm.slane %v13521_v38, 1 }
 0x8dc   : > { %v6490_v25 = vpop.f32.mrf.mxu3  ;;  %v6744_v16 = vmul.f32 %v8557_v47, %v13492_v59  ;;  %vm6735_vm10 = vmor %vm6733_vm7, %vm6734_vm5  ;;  %vm6749_vm11 = vweird.f32 %v8557_v47  ;;  %v7088_v59 = vperm.slane %v13521_v38, 0  ;;  %vm13564_vm1 = vcmp.eq.s32.totalorder %v6991_v55, 1 }
 0x8dd   : > { %v6730_v39 = vsub.f32 1.0, %v6729_v51  ;;  %vm6750_vm15 = vmor %vm6748_vm14, %vm6749_vm11  ;;  %vm13569_vm3 = vcmp.eq.s32.totalorder %v6917_v43, 1  ;;  %v6918_v10 = vperm.slane %v13505_v42, 3 }
 0x8de   : > { %v8559_v60 = vpop.eup %8558  ;;  %v6745_v9 = vsub.f32 1.0, %v6744_v16 }
 0x8df   : > { %v6731_v3 = vmul.f32 %v8555_v36, %v6730_v39  ;;  %v13534_v7 = vadd.f32 1.0, %v8559_v60  ;;  %v8561_v18 = vpop.eup %8560 }
 0x8e0   : > { %v6746_v49 = vmul.f32 %v8557_v47, %v6745_v9  ;;  %v13540_v31 = vadd.f32 1.0, %v8561_v18 }
 0x8e1   : > { %v6732_v20 = vadd.f32 %v8555_v36, %v6731_v3  ;;  %8562 = vrcp.f32 %v13534_v7  ;;  %v6769_v6 = vand.u32 2147483648, %v13534_v7  ;;  %v6767_v23 = vand.u32 2147483647, %v13534_v7 }
 0x8e2   : > { %v6747_v15 = vadd.f32 %v8557_v47, %v6746_v49  ;;  %8564 = vrcp.f32 %v13540_v31  ;;  %vm6763_vm5 = vweird.f32 %v13534_v7  ;;  %v6784_v3 = vand.u32 2147483648, %v13540_v31 }
 0x8e3   : > { %v6736_v2 = vsel %vm6735_vm10, %v8555_v36, %v6732_v20  ;;  %v6992_v36 = vperm.slane %v13518_v22, 2  ;;  %v6770_v54 = vor.u32 1.1754944e-38, %v6769_v6  ;;  %v6782_v0 = vand.u32 2147483647, %v13540_v31 }
 0x8e4   : > { %v6741_v35 = vsel %vm6738_vm9, %v6740_v12, %v6736_v2  ;;  %v6751_v14 = vsel %vm6750_vm15, %v8557_v47, %v6747_v15  ;;  %vm6768_vm9 = vcmp.eq.f32.partialorder %v6767_v23, 8.507059e+37  ;;  %vm6778_vm11 = vweird.f32 %v13540_v31 }
 0x8e5   : > { %v6947_v53 = vsel %vm13528_vm6, %v6741_v35, 0.0  ;;  %v6756_v44 = vsel %vm6753_vm0, %v6755_v28, %v6751_v14  ;;  %vm13589_vm10 = vcmp.eq.s32.totalorder %v6992_v36, 1  ;;  %v6993_v12 = vperm.slane %v13518_v22, 3 }
 0x8e6   : > { %v6501_v63 = vpop.f32.mrf.mxu0  ;;  %v7038_v5 = vrot.slane %v6947_v53, 5  ;;  %v6948_v32 = vsel %vm13546_vm13, %v6756_v44, 0.0  ;;  %v6785_v49 = vor.u32 1.1754944e-38, %v6784_v3  ;;  %vm6934_vm13 = vcmp.eq.s32.totalorder %v6918_v10, 1 }
 0x8e7   : > { %v6514_v56 = vpop.f32.mrf.mxu1  ;;  %v6502_v8 = vadd.f32 %v6501_v63, %v13323_v13  ;;  %v8563_v19 = vpop.eup %8562  ;;  %v7039_v46 = vrot.slane %v6948_v32, 5  ;;  %vm6783_vm14 = vcmp.eq.f32.partialorder %v6782_v0, 8.507059e+37  ;;  %v7090_v53 = vperm.slane %v13521_v38, 2 }
 0x8e8   : > { %v6515_v24 = vadd.f32 %v6514_v56, %v13323_v13  ;;  %v7070_v4 = vsel %vm13542_vm12, %v6741_v35, %v7038_v5  ;;  %v6759_v29 = vmul.f32 %v8563_v19, %v13534_v7  ;;  %v8565_v40 = vpop.eup %8564  ;;  %vm6764_vm4 = vweird.f32 %v8563_v19 }
 0x8e9   : > { %v7136_v45 = vrot.slane %v7070_v4, 2  ;;  %v8341_v50 = vmul.f32 -1.442695, %v6502_v8  ;;  %v7071_v34 = vsel %vm13564_vm1, %v6756_v44, %v7039_v46  ;;  %v6774_v57 = vmul.f32 %v8565_v40, %v13540_v31  ;;  %vm6765_vm6 = vmor %vm6763_vm5, %vm6764_vm4 }
 0x8ea   : > { %v6760_v1 = vsub.f32 1.0, %v6759_v29  ;;  %v8342_v30 = vmul.f32 -1.442695, %v6515_v24  ;;  %v7137_v11 = vrot.slane %v7071_v34, 2  ;;  %vm6779_vm7 = vweird.f32 %v8565_v40 }
 0x8eb   : > { %v7168_v25 = vsel %vm6880_vm2, %v7088_v59, %v7136_v45  ;;  %8566 = vpow2.f32 %v8341_v50  ;;  %v6775_v47 = vsub.f32 1.0, %v6774_v57  ;;  %vm6780_vm12 = vmor %vm6778_vm11, %vm6779_vm7  ;;  %vm7009_vm15 = vcmp.eq.s32.totalorder %v6993_v12, 1 }
 0x8ec   : > { %v7184_v51 = vsel %vm6892_vm8, %v7168_v25, 0.0  ;;  %v6761_v39 = vmul.f32 %v8563_v19, %v6760_v1  ;;  %8568 = vpow2.f32 %v8342_v30  ;;  %v7169_v61 = vsel %vm6880_vm2, %v7089_v48, %v7137_v11 }
 0x8ed   : > { %7200 = vst [vmem:[%s13389_s21 + $0x40] sm:$0xff] %v7184_v51  ;;  %v7185_v16 = vsel %vm6892_vm8, %v7169_v61, 0.0  ;;  %v6776_v33 = vmul.f32 %v8565_v40, %v6775_v47  ;;  %v7091_v44 = vperm.slane %v13521_v38, 3  ;;  %v6994_v6 = vperm.slane %v13518_v22, 4 }
 0x8ee   : > { %v6503_v26 = vpop.f32.mrf.mxu0  ;;  %v6762_v60 = vadd.f32 %v8563_v19, %v6761_v39  ;;  %7201 = vst [vmem:[%s13389_s21 + $0x48] sm:$0xff] %v7185_v16 }
 0x8ef   : > { %v6516_v27 = vpop.f32.mrf.mxu1  ;;  %v6777_v18 = vadd.f32 %v8565_v40, %v6776_v33  ;;  %v6920_v26 = vperm.slane %v13505_v42, 5 }
 0x8f0   : > { %v6766_v62 = vsel %vm6765_vm6, %v8563_v19, %v6762_v60  ;;  %v6995_v60 = vperm.slane %v13518_v22, 5 }
 0x8f1   : > { %v6771_v9 = vsel %vm6768_vm9, %v6770_v54, %v6766_v62  ;;  %v8567_v37 = vpop.eup %8566  ;;  %v6781_v55 = vsel %vm6780_vm12, %v8565_v40, %v6777_v18  ;;  %vm13629_vm9 = vcmp.eq.s32.totalorder %v6994_v6, 1  ;;  %vm6936_vm11 = vcmp.eq.s32.totalorder %v6920_v26, 1 }
 0x8f2   : > { %v6949_v2 = vsel %vm13569_vm3, %v6771_v9, 0.0  ;;  %v8569_v58 = vpop.eup %8568  ;;  %v6604_v63 = vadd.f32 1.0, %v8567_v37  ;;  %v6786_v31 = vsel %vm6783_vm14, %v6785_v49, %v6781_v55  ;;  %v7092_v49 = vperm.slane %v13521_v38, 4 }
 0x8f3   : > { %v6527_v20 = vpop.f32.mrf.mxu2  ;;  %v7040_v21 = vrot.slane %v6949_v2, 5  ;;  %v13599_v15 = vadd.f32 1.0, %v8569_v58  ;;  %v6950_v5 = vsel %vm6934_vm13, %v6786_v31, 0.0  ;;  %vm7011_vm13 = vcmp.eq.s32.totalorder %v6995_v60, 1 }
 0x8f4   : > { %v6540_v52 = vpop.f32.mrf.mxu3  ;;  %v6528_v35 = vadd.f32 %v6527_v20, %v13323_v13  ;;  %8570 = vrcp.f32 %v6604_v63  ;;  %v7041_v43 = vrot.slane %v6950_v5, 5  ;;  %v6799_v25 = vand.u32 2147483648, %v6604_v63 }
 0x8f5   : > { %v7072_v56 = vsel %vm13589_vm10, %v6771_v9, %v7040_v21  ;;  %v6541_v14 = vadd.f32 %v6540_v52, %v13323_v13  ;;  %8572 = vrcp.f32 %v13599_v15  ;;  %v6919_v13 = vperm.slane %v13505_v42, 4 }
 0x8f6   : > { %v7138_v28 = vrot.slane %v7072_v56, 2  ;;  %v8343_v8 = vmul.f32 -1.442695, %v6528_v35  ;;  %v7073_v19 = vsel %vm7009_vm15, %v6786_v31, %v7041_v43  ;;  %v6797_v34 = vand.u32 2147483647, %v6604_v63 }
 0x8f7   : > { %v7139_v48 = vrot.slane %v7073_v19, 2  ;;  %v8344_v32 = vmul.f32 -1.442695, %v6541_v14  ;;  %vm13614_vm0 = vcmp.eq.s32.totalorder %v6919_v13, 1  ;;  %vm6793_vm3 = vweird.f32 %v6604_v63 }
 0x8f8   : > { %v7170_v24 = vsel %vm6880_vm2, %v7090_v53, %v7138_v28  ;;  %8574 = vpow2.f32 %v8343_v8  ;;  %v6814_v57 = vand.u32 2147483648, %v13599_v15  ;;  %v6812_v10 = vand.u32 2147483647, %v13599_v15 }
 0x8f9   : > { %v7186_v59 = vsel %vm6892_vm8, %v7170_v24, 0.0  ;;  %v7171_v29 = vsel %vm6880_vm2, %v7091_v44, %v7139_v48  ;;  %8576 = vpow2.f32 %v8344_v32  ;;  %v6800_v61 = vor.u32 1.1754944e-38, %v6799_v25 }
 0x8fa   : > { %7202 = vst [vmem:[%s13389_s21 + $0x50] sm:$0xff] %v7186_v59  ;;  %v8571_v17 = vpop.eup %8570  ;;  %v7187_v46 = vsel %vm6892_vm8, %v7171_v29, 0.0  ;;  %vm6808_vm6 = vweird.f32 %v13599_v15  ;;  %vm6798_vm7 = vcmp.eq.f32.partialorder %v6797_v34, 8.507059e+37  ;;  %v6815_v62 = vor.u32 1.1754944e-38, %v6814_v57 }
 0x8fb   : > { %v6529_v4 = vpop.f32.mrf.mxu2  ;;  %v6789_v41 = vmul.f32 %v8571_v17, %v6604_v63  ;;  %v8573_v36 = vpop.eup %8572  ;;  %7203 = vst [vmem:[%s13389_s21 + $0x58] sm:$0xff] %v7187_v46  ;;  %vm6794_vm1 = vweird.f32 %v8571_v17  ;;  %vm6813_vm12 = vcmp.eq.f32.partialorder %v6812_v10, 8.507059e+37  ;;  %v6921_v55 = vperm.slane %v13505_v42, 6 }
 0x8fc   : > { %v6542_v45 = vpop.f32.mrf.mxu3  ;;  %v6804_v40 = vmul.f32 %v8573_v36, %v13599_v15  ;;  %vm6809_vm4 = vweird.f32 %v8573_v36  ;;  %vm6795_vm5 = vmor %vm6793_vm3, %vm6794_vm1  ;;  %v7093_v31 = vperm.slane %v13521_v38, 5  ;;  %v6996_v59 = vperm.slane %v13518_v22, 6 }
 0x8fd   : > { %v6790_v50 = vsub.f32 1.0, %v6789_v41  ;;  %vm6810_vm10 = vmor %vm6808_vm6, %vm6809_vm4  ;;  %vm13650_vm15 = vcmp.eq.s32.totalorder %v6921_v55, 1  ;;  %v6922_v32 = vperm.slane %v13505_v42, 7  ;;  %v7094_v34 = vperm.slane %v13521_v38, 6 }
 0x8fe   : > { %v8575_v30 = vpop.eup %8574  ;;  %v6805_v23 = vsub.f32 1.0, %v6804_v40  ;;  %vm7012_vm6 = vcmp.eq.s32.totalorder %v6996_v59, 1 }
 0x8ff   : > { %v6791_v51 = vmul.f32 %v8571_v17, %v6790_v50  ;;  %v13621_v11 = vadd.f32 1.0, %v8575_v30  ;;  %v8577_v39 = vpop.eup %8576  ;;  %v6997_v50 = vperm.slane %v13518_v22, 7 }
 0x900   : > { %v6806_v47 = vmul.f32 %v8573_v36, %v6805_v23  ;;  %v13627_v16 = vadd.f32 1.0, %v8577_v39  ;;  %v7095_v39 = vperm.slane %v13521_v38, 7 }
 0x901   : > { %v6792_v27 = vadd.f32 %v8571_v17, %v6791_v51  ;;  %8578 = vrcp.f32 %v13621_v11  ;;  %v6829_v28 = vand.u32 2147483648, %v13621_v11  ;;  %v6827_v24 = vand.u32 2147483647, %v13621_v11 }
 0x902   : > { %v6807_v3 = vadd.f32 %v8573_v36, %v6806_v47  ;;  %8580 = vrcp.f32 %v13627_v16  ;;  %v6844_v45 = vand.u32 2147483648, %v13627_v16  ;;  %v6842_v13 = vand.u32 2147483647, %v13627_v16 }
 0x903   : > { %v6796_v54 = vsel %vm6795_vm5, %v8571_v17, %v6792_v27  ;;  %v6830_v17 = vor.u32 1.1754944e-38, %v6829_v28  ;;  %vm6828_vm4 = vcmp.eq.f32.partialorder %v6827_v24, 8.507059e+37  ;;  %vm6838_vm5 = vweird.f32 %v13627_v16 }
 0x904   : > { %v6801_v33 = vsel %vm6798_vm7, %v6800_v61, %v6796_v54  ;;  %v6811_v20 = vsel %vm6810_vm10, %v8573_v36, %v6807_v3  ;;  %v6845_v42 = vor.u32 1.1754944e-38, %v6844_v45  ;;  %vm6843_vm10 = vcmp.eq.f32.partialorder %v6842_v13, 8.507059e+37 }
 0x905   : > { %v6951_v7 = vsel %vm13614_vm0, %v6801_v33, 0.0  ;;  %v6816_v18 = vsel %vm6813_vm12, %v6815_v62, %v6811_v20  ;;  %vm6823_vm0 = vweird.f32 %v13621_v11 }
 0x906   : > { %v7042_v9 = vrot.slane %v6951_v7, 5  ;;  %v6952_v12 = vsel %vm6936_vm11, %v6816_v18, 0.0  ;;  %vm7013_vm11 = vcmp.eq.s32.totalorder %v6997_v50, 1 }
 0x907   : > { %v8579_v52 = vpop.eup %8578  ;;  %v7043_v2 = vrot.slane %v6952_v12, 5 }
 0x908   : > { %v7074_v37 = vsel %vm13629_vm9, %v6801_v33, %v7042_v9  ;;  %v6819_v58 = vmul.f32 %v8579_v52, %v13621_v11  ;;  %v8581_v63 = vpop.eup %8580  ;;  %vm6824_vm14 = vweird.f32 %v8579_v52  ;;  %vm6938_vm9 = vcmp.eq.s32.totalorder %v6922_v32, 1 }
 0x909   : > { %v7140_v35 = vrot.slane %v7074_v37, 2  ;;  %v7075_v21 = vsel %vm7011_vm13, %v6816_v18, %v7043_v2  ;;  %v6834_v43 = vmul.f32 %v8581_v63, %v13627_v16  ;;  %vm6825_vm1 = vmor %vm6823_vm0, %vm6824_vm14  ;;  %vm6839_vm3 = vweird.f32 %v8581_v63 }
 0x90a   : > { %v7141_v15 = vrot.slane %v7075_v21, 2  ;;  %v6820_v56 = vsub.f32 1.0, %v6819_v58  ;;  %vm6840_vm7 = vmor %vm6838_vm5, %vm6839_vm3 }
 0x90b   : > { %v7172_v53 = vsel %vm6880_vm2, %v7092_v49, %v7140_v35  ;;  %v6835_v44 = vsub.f32 1.0, %v6834_v43 }
 0x90c   : > { %v7188_v5 = vsel %vm6892_vm8, %v7172_v53, 0.0  ;;  %v7173_v8 = vsel %vm6880_vm2, %v7093_v31, %v7141_v15  ;;  %v6821_v14 = vmul.f32 %v8579_v52, %v6820_v56 }
 0x90d   : > { %7204 = vst [vmem:[%s13389_s21 + $0x60] sm:$0xff] %v7188_v5  ;;  %v7189_v19 = vsel %vm6892_vm8, %v7173_v8, 0.0  ;;  %v6836_v29 = vmul.f32 %v8581_v63, %v6835_v44 }
 0x90e   : > { %7205 = vst [vmem:[%s13389_s21 + $0x68] sm:$0xff] %v7189_v19  ;;  %v6822_v48 = vadd.f32 %v8579_v52, %v6821_v14 }
 0x90f   : > { %v6837_v36 = vadd.f32 %v8581_v63, %v6836_v29 }
 0x910   : > { %v6826_v46 = vsel %vm6825_vm1, %v8579_v52, %v6822_v48 }
 0x911   : > { %v6831_v41 = vsel %vm6828_vm4, %v6830_v17, %v6826_v46  ;;  %v6841_v1 = vsel %vm6840_vm7, %v8581_v63, %v6837_v36 }
 0x912   : > { %v6953_v40 = vsel %vm13650_vm15, %v6831_v41, 0.0  ;;  %v6846_v6 = vsel %vm6843_vm10, %v6845_v42, %v6841_v1 }
 0x913   : > { %v7044_v25 = vrot.slane %v6953_v40, 5  ;;  %v6954_v51 = vsel %vm6938_vm9, %v6846_v6, 0.0 }
 0x914   : > { %v7045_v22 = vrot.slane %v6954_v51, 5 }
 0x915   : > { %v7076_v30 = vsel %vm7012_vm6, %v6831_v41, %v7044_v25 }
 0x916   : > { %v7142_v23 = vrot.slane %v7076_v30, 2  ;;  %v7077_v26 = vsel %vm7013_vm11, %v6846_v6, %v7045_v22 }
 0x917   : > { %v7143_v27 = vrot.slane %v7077_v26, 2 }
 0x918   : > { %v7174_v57 = vsel %vm6880_vm2, %v7094_v34, %v7142_v23 }
 0x919   : > { %v7190_v11 = vsel %vm6892_vm8, %v7174_v57, 0.0  ;;  %v7175_v47 = vsel %vm6880_vm2, %v7095_v39, %v7143_v27 }
 0x91a   : > { %7206 = vst [vmem:[%s13389_s21 + $0x70] sm:$0xff] %v7190_v11  ;;  %v7191_v10 = vsel %vm6892_vm8, %v7175_v47, 0.0 }
 0x91b   : > { %7207 = vst [vmem:[%s13389_s21 + $0x78] sm:$0xff] %v7191_v10 }
 0x91c PF: > { %p13_p9 = scmp.ge.s32.totalorder %s8674_s25, 4   ;;  %s14288_s21 = smov %s8615_s22 }
 0x91d   : > { %s14289_s22 = smov %s8683_s28  ;;  %s14290_s23 = smov %s8674_s25 }
 0x91e   :  { %15 = sbr.rel (!%p13_p9) target bundleno = 2 (0x2), region = 106 }

</bundles_post_ra>
